<compile_context>
chip_gen: v7x
topology: tpu7x:2x2x1
jax: 0.10.0
libtpu: 0.0.40
codegen_flags: <defaults>
</compile_context>

<pallas_src>
import numpy as np

import jax
import jax.numpy as jnp
from jax import lax
from jax.experimental import pallas as pl
from jax.experimental.pallas import tpu as pltpu

# ----------------------------- configuration -------------------------------
N_CLS = 8                 # number of classes == KGCN batch_size (cfg.TRAINER.CAPKP.NCLASS)
N_CTX = 4                 # context tokens (cfg.TRAINER.CAPKP.N_CTX) -> isLinear == True
DIM = 64                  # ctx_dim == transformer width == KGCN dim == embed dim
SEQ = 16                  # text sequence length (1 prefix + N_CTX ctx + suffix)
SUFFIX = SEQ - 1 - N_CTX
N_HEADS = 2
HEAD = DIM // N_HEADS
MLP = 4 * DIM
IMG_B, IMG_C, IMG_HW, PATCH = 2, 3, 16, 8
N_PATCH = (IMG_HW // PATCH) ** 2
VIS_SEQ = N_PATCH + 1     # 1 CLS + patches
VIS_PAD = 8               # padded so (B*S, D) <-> (B, S, D) reshapes stay tile aligned
N_NEIGHBOR = 8
NUM_USER, NUM_ENT, NUM_REL = 10, 20, 5
LAM = 0.1                 # cfg.TRAINER.CAPKP.KGCN

_ATTN_SCALE = 1.0 / float(np.sqrt(HEAD))

# ------------------ packed-slab layouts (static row offsets) -----------------
# bf16 weight slab (all offsets multiples of 16 -> bf16 sublane-tile aligned)
W_COLS = 256
CONVW_OFF = 0                                   # (192, 64)
V_QKV_OFF, V_WO_OFF, V_FC_OFF, V_PW_OFF = 192, 256, 320, 384
T_QKV_OFF, T_WO_OFF, T_FC_OFF, T_PW_OFF = 640, 704, 768, 832
VPROJ_OFF, TPROJ_OFF, AGGW_OFF, EOT_OFF = 1088, 1152, 1216, 1280
WSLAB_ROWS = 1296

# f32 small-param slab
F_COLS = 256
VIS_BASE_OFF = 0                                # (8, 64)  class+pos (+zero pad rows)
LNPRE_OFF, LNPOST_OFF, LNF_OFF = 8, 10, 12      # each: row g, row g+1 = b
V_LN1_OFF, V_LN2_OFF, T_LN1_OFF, T_LN2_OFF = 14, 16, 18, 20
V_BO_OFF, T_BO_OFF, V_PB_OFF, T_PB_OFF, AGGB_OFF = 22, 23, 24, 25, 26
V_QKVB_OFF, T_QKVB_OFF, V_FCB_OFF, T_FCB_OFF = 27, 28, 29, 30
LIN_OFF, LINB_OFF = 32, 36                      # (4, 8) weight; (4, 64) broadcast bias
FSLAB_ROWS = 40

V_W_OFFS = (V_QKV_OFF, V_WO_OFF, V_FC_OFF, V_PW_OFF)
T_W_OFFS = (T_QKV_OFF, T_WO_OFF, T_FC_OFF, T_PW_OFF)
V_F_OFFS = (V_LN1_OFF, V_LN2_OFF, V_QKVB_OFF, V_BO_OFF, V_FCB_OFF, V_PB_OFF)
T_F_OFFS = (T_LN1_OFF, T_LN2_OFF, T_QKVB_OFF, T_BO_OFF, T_FCB_OFF, T_PB_OFF)

# packed KGCN gather tensor (row offsets in a (144, 64) f32 array)
KD_U_OFF, KD_SELF_OFF = 0, N_CLS
KD_NV_OFF = 2 * N_CLS
KD_NR_OFF = KD_NV_OFF + N_CLS * N_NEIGHBOR
KD_ROWS = KD_NR_OFF + N_CLS * N_NEIGHBOR        # 144


# ----------------------------- spec helpers ----------------------------------
def _full_spec(shape):
    nd = len(shape)
    return pl.BlockSpec(tuple(shape), lambda *_: (0,) * nd)


# ----------------------------- in-kernel math ---------------------------------
def _layernorm(x, g, b):
    mu = jnp.mean(x, axis=-1, keepdims=True)
    var = jnp.mean((x - mu) ** 2, axis=-1, keepdims=True)
    return (x - mu) * lax.rsqrt(var + 1e-5) * g + b


def _block_weights(w_ref, f, w_offs, f_offs):
    """Static slices of the packed slabs for one residual attention block."""
    qkv_off, wo_off, fc_off, pw_off = w_offs
    ln1_off, ln2_off, qkvb_off, bo_off, fcb_off, pb_off = f_offs
    return dict(
        qkv_w=w_ref[qkv_off:qkv_off + DIM, :],                 # (64, 256); cols 192:256 are zero pad
        wo=w_ref[wo_off:wo_off + DIM, 0:DIM],                  # (64, 64)
        fc_w=w_ref[fc_off:fc_off + DIM, 0:MLP],                # (64, 256)
        pw=w_ref[pw_off:pw_off + MLP, 0:DIM],                  # (256, 64)
        ln1g=f[ln1_off:ln1_off + 1, 0:DIM], ln1b=f[ln1_off + 1:ln1_off + 2, 0:DIM],
        ln2g=f[ln2_off:ln2_off + 1, 0:DIM], ln2b=f[ln2_off + 1:ln2_off + 2, 0:DIM],
        qkv_b=f[qkvb_off:qkvb_off + 1, :],                     # (1, 256)
        bo=f[bo_off:bo_off + 1, 0:DIM],
        fcb=f[fcb_off:fcb_off + 1, 0:MLP],
        pb=f[pb_off:pb_off + 1, 0:DIM],
    )


def _resblock(x2, batch, seq, mask, bw):
    """CLIP residual attention block on (batch*seq, DIM) f32 activations."""
    h2 = _layernorm(x2, bw["ln1g"], bw["ln1b"])
    # fused QKV projection: a single MXU push, N padded to 256
    qkv = jnp.dot(h2.astype(jnp.bfloat16), bw["qkv_w"],
                  preferred_element_type=jnp.float32) + bw["qkv_b"]          # (B*S, 256)
    maskb = jnp.broadcast_to(mask[None], (batch, seq, seq))                  # hoisted out of loop
    heads = []
    for h in range(N_HEADS):
        # static column slices of the fused QKV result; casts done on the 2-D value
        q = qkv[:, h * HEAD:(h + 1) * HEAD].astype(jnp.bfloat16).reshape(batch, seq, HEAD)
        k = qkv[:, DIM + h * HEAD:DIM + (h + 1) * HEAD].astype(jnp.bfloat16).reshape(batch, seq, HEAD)
        v = qkv[:, 2 * DIM + h * HEAD:2 * DIM + (h + 1) * HEAD].astype(jnp.bfloat16).reshape(batch, seq, HEAD)
        s = jnp.einsum("bqd,bkd->bqk", q, k,
                       preferred_element_type=jnp.float32) * _ATTN_SCALE
        s = s + maskb
        s = s - jnp.max(s, axis=-1, keepdims=True)
        p = jnp.exp(s)
        p = p * pl.reciprocal(jnp.sum(p, axis=-1, keepdims=True), approx=True)
        o = jnp.einsum("bqk,bkd->bqd", p.astype(jnp.bfloat16), v,
                       preferred_element_type=jnp.float32)
        heads.append(o.reshape(batch * seq, HEAD))
    # heads concatenated along lanes -> single out-proj matmul with full K=DIM
    o_cat = jnp.concatenate(heads, axis=-1).astype(jnp.bfloat16)             # (B*S, DIM)
    attn = jnp.dot(o_cat, bw["wo"], preferred_element_type=jnp.float32)
    x2 = x2 + attn + bw["bo"]
    h2 = _layernorm(x2, bw["ln2g"], bw["ln2b"])
    h2 = jnp.dot(h2.astype(jnp.bfloat16), bw["fc_w"], preferred_element_type=jnp.float32) + bw["fcb"]
    h2 = h2 * jax.nn.sigmoid(1.702 * h2)                                     # QuickGELU
    h2 = jnp.dot(h2.astype(jnp.bfloat16), bw["pw"], preferred_element_type=jnp.float32) + bw["pb"]
    return x2 + h2


# ----------------------------- the fused kernel --------------------------------
def _capkp_kernel(patch_ref, w_ref, f_ref, tbase_ref, kdata_ref, ls_ref, out_ref):
    f = f_ref[...]                                                            # (40, 256) f32 slab

    # ======================= CLIP ViT visual encoder =======================
    Bv, Sv = IMG_B, VIS_PAD
    conv_w = w_ref[CONVW_OFF:CONVW_OFF + IMG_C * PATCH * PATCH, 0:DIM]
    pe = jnp.dot(patch_ref[...], conv_w, preferred_element_type=jnp.float32)  # (Bv*Sv, D)
    vis_base = f[VIS_BASE_OFF:VIS_BASE_OFF + Sv, 0:DIM]                       # class@row0 + pos, 0-pad
    xv = (pe.reshape(Bv, Sv, DIM) + vis_base[None]).reshape(Bv * Sv, DIM)
    xv = _layernorm(xv, f[LNPRE_OFF:LNPRE_OFF + 1, 0:DIM],
                    f[LNPRE_OFF + 1:LNPRE_OFF + 2, 0:DIM])
    cols = lax.broadcasted_iota(jnp.int32, (Sv, Sv), 1)
    vmask = jnp.where(cols >= VIS_SEQ, -1e9, 0.0).astype(jnp.float32)         # key-padding mask
    xv = _resblock(xv, Bv, Sv, vmask, _block_weights(w_ref, f, V_W_OFFS, V_F_OFFS))
    cls = xv.reshape(Bv, Sv, DIM)[:, 0, :]                                    # CLS token, static slice
    cls = _layernorm(cls, f[LNPOST_OFF:LNPOST_OFF + 1, 0:DIM],
                     f[LNPOST_OFF + 1:LNPOST_OFF + 2, 0:DIM])
    img = jnp.dot(cls.astype(jnp.bfloat16),
                  w_ref[VPROJ_OFF:VPROJ_OFF + DIM, 0:DIM],
                  preferred_element_type=jnp.float32)                         # (Bv, D), stays in VMEM

    # ============ KGCN (n_iter=1, 'sum' aggregator, tanh, isLinear) ============
    kd = kdata_ref[...]                                                       # (144, 64)
    u = kd[KD_U_OFF:KD_U_OFF + N_CLS, :]                                      # (B, D)
    self_vec = kd[KD_SELF_OFF:KD_SELF_OFF + N_CLS, :]
    nvec = kd[KD_NV_OFF:KD_NV_OFF + N_CLS * N_NEIGHBOR, :].reshape(N_CLS, N_NEIGHBOR, DIM)
    nrel = kd[KD_NR_OFF:KD_NR_OFF + N_CLS * N_NEIGHBOR, :].reshape(N_CLS, N_NEIGHBOR, DIM)
    scores = jnp.sum(u[:, None, :] * nrel, axis=-1)                           # user-relation scores
    scores = scores - jnp.max(scores, axis=-1, keepdims=True)
    pz = jnp.exp(scores)
    pz = pz * pl.reciprocal(jnp.sum(pz, axis=-1, keepdims=True), approx=True)
    agg = jnp.sum(pz[:, :, None] * nvec, axis=1)                              # (B, D)
    item = jnp.tanh(
        jnp.dot((self_vec + agg).astype(jnp.bfloat16),
                w_ref[AGGW_OFF:AGGW_OFF + DIM, 0:DIM],
                preferred_element_type=jnp.float32)
        + f[AGGB_OFF:AGGB_OFF + 1, 0:DIM])                                    # (N_CLS, D)
    # class-mixing Linear(NCLASS -> N_CTX), computed transposed -> (N_CTX, D) lane-dense
    lin_w = f[LIN_OFF:LIN_OFF + N_CTX, 0:N_CLS]
    c_t = jnp.dot(lin_w.astype(jnp.bfloat16), item.astype(jnp.bfloat16),
                  preferred_element_type=jnp.float32) \
        + f[LINB_OFF:LINB_OFF + N_CTX, 0:DIM]

    # ============ prompt assembly + CLIP text encoder + logit head ============
    # scatter lam*c_t into ctx slots 1..N_CTX (pure VPU selects; ctx param is in tbase)
    ctx_add = LAM * c_t
    row_id = lax.broadcasted_iota(jnp.int32, (SEQ, DIM), 0)
    ctx_rows = jnp.zeros((SEQ, DIM), jnp.float32)
    for j in range(N_CTX):
        ctx_rows = ctx_rows + (row_id == (1 + j)).astype(jnp.float32) * ctx_add[j:j + 1, :]
    xt = (tbase_ref[...] + ctx_rows[None]).reshape(N_CLS * SEQ, DIM)
    rows = lax.broadcasted_iota(jnp.int32, (SEQ, SEQ), 0)
    cols = lax.broadcasted_iota(jnp.int32, (SEQ, SEQ), 1)
    cmask = jnp.where(cols > rows, -1e9, 0.0).astype(jnp.float32)             # causal mask
    xt = _resblock(xt, N_CLS, SEQ, cmask, _block_weights(w_ref, f, T_W_OFFS, T_F_OFFS))
    xt = _layernorm(xt, f[LNF_OFF:LNF_OFF + 1, 0:DIM], f[LNF_OFF + 1:LNF_OFF + 2, 0:DIM])
    # EOT select as a one-hot bf16 matmul (exact; no cross-sublane reduce)
    eot = w_ref[EOT_OFF:EOT_OFF + N_CLS, 0:N_CLS * SEQ]                       # (N_CLS, N_CLS*SEQ)
    feats = jnp.dot(eot, xt.astype(jnp.bfloat16), preferred_element_type=jnp.float32)
    txt = jnp.dot(feats.astype(jnp.bfloat16),
                  w_ref[TPROJ_OFF:TPROJ_OFF + DIM, 0:DIM],
                  preferred_element_type=jnp.float32)                         # (N_CLS, D)

    # CLIP logit head: L2-normalise both sides + scaled similarity.
    # TODO(synk): +1e-12 epsilon is a deliberate (negligible) deviation from x / x.norm().
    im = img * lax.rsqrt(jnp.sum(img * img, axis=-1, keepdims=True) + 1e-12)
    tx = txt * lax.rsqrt(jnp.sum(txt * txt, axis=-1, keepdims=True) + 1e-12)
    scale = jnp.exp(ls_ref[0, 0])
    out_ref[...] = scale * lax.dot_general(
        im.astype(jnp.bfloat16), tx.astype(jnp.bfloat16),
        (((1,), (1,)), ((), ())), preferred_element_type=jnp.float32)


# ----------------------------- wrappers ---------------------------------------
def custom_clip_forward(image, user_ids, item_idss, prepared):
    """Whole CustomCLIP forward as a single fused pallas_call."""
    B, C, H, W = image.shape
    gh, gw = H // PATCH, W // PATCH
    # patch unfold: conv(kernel=stride=PATCH, no bias) == matmul over flattened patches
    patches = image.reshape(B, C, gh, PATCH, gw, PATCH)
    patches = patches.transpose(0, 2, 4, 1, 3, 5).reshape(B, gh * gw, C * PATCH * PATCH)
    # slot 0 = CLS token, slots VIS_SEQ..VIS_PAD-1 = attention-masked padding (zeros)
    patches = jnp.pad(patches, ((0, 0), (1, VIS_PAD - 1 - gh * gw), (0, 0)))
    patches2 = patches.reshape(B * VIS_PAD, C * PATCH * PATCH).astype(jnp.bfloat16)

    # KGCN gathers (embedding / adjacency lookups) stay in JAX; pack into one tensor
    kg = prepared["kg"]
    user_emb = kg["usr"][user_ids]                                  # (N_CLS, D)
    self_vec = kg["ent"][item_idss]                                 # (N_CLS, D)
    neigh_vec = kg["ent"][kg["adj_ent"][item_idss]]                 # (N_CLS, Nn, D)
    neigh_rel = kg["rel"][kg["adj_rel"][item_idss]]                 # (N_CLS, Nn, D)
    kdata = jnp.concatenate(
        [user_emb, self_vec,
         neigh_vec.reshape(N_CLS * N_NEIGHBOR, DIM),
         neigh_rel.reshape(N_CLS * N_NEIGHBOR, DIM)], axis=0)       # (144, D)

    args = (patches2, prepared["wslab"], prepared["fslab"], prepared["tbase"],
            kdata, prepared["logit_scale"])
    in_specs = [
        _full_spec(patches2.shape),
        _full_spec((WSLAB_ROWS, W_COLS)),
        _full_spec((FSLAB_ROWS, F_COLS)),
        _full_spec((N_CLS, SEQ, DIM)),
        _full_spec((KD_ROWS, DIM)),
        pl.BlockSpec(memory_space=pltpu.MemorySpace.SMEM),          # logit_scale scalar
    ]
    return pl.pallas_call(
        _capkp_kernel,
        out_shape=jax.ShapeDtypeStruct((B, N_CLS), jnp.float32),
        in_specs=in_specs,
        out_specs=_full_spec((B, N_CLS)),
    )(*args)


# ----------------------------- parameter packing -------------------------------
def _put(slab, off, arr):
    a = jnp.asarray(arr, slab.dtype)
    r, c = a.shape
    return slab.at[off:off + r, 0:c].set(a)


def prepare_params(params, tokenized_prompts):
    """Pack all small parameters into two slabs + the prompt base (done once)."""
    vp, tp, pp = params["visual"], params["text"], params["prompt"]
    vb, tb, kg = vp["block"], tp["block"], pp["kgcn"]

    # ---- bf16 weight slab ----
    w = jnp.zeros((WSLAB_ROWS, W_COLS), jnp.bfloat16)
    w = _put(w, CONVW_OFF, vp["conv_w"])
    w = _put(w, V_QKV_OFF, vb["qkv_w"]); w = _put(w, V_WO_OFF, vb["wo"])
    w = _put(w, V_FC_OFF, vb["fc_w"]);   w = _put(w, V_PW_OFF, vb["proj_w"])
    w = _put(w, T_QKV_OFF, tb["qkv_w"]); w = _put(w, T_WO_OFF, tb["wo"])
    w = _put(w, T_FC_OFF, tb["fc_w"]);   w = _put(w, T_PW_OFF, tb["proj_w"])
    w = _put(w, VPROJ_OFF, vp["proj"]);  w = _put(w, TPROJ_OFF, tp["text_projection"])
    w = _put(w, AGGW_OFF, kg["agg_w"])
    eot_idx = jnp.argmax(tokenized_prompts, axis=-1)                 # (N_CLS,)
    eot = jax.nn.one_hot(jnp.arange(N_CLS) * SEQ + eot_idx, N_CLS * SEQ, dtype=jnp.float32)
    w = _put(w, EOT_OFF, eot)                                        # one-hot is exact in bf16

    # ---- f32 small-param slab ----
    f = jnp.zeros((FSLAB_ROWS, F_COLS), jnp.float32)
    vis_base = jnp.pad(vp["pos_emb"], ((0, VIS_PAD - VIS_SEQ), (0, 0)))
    vis_base = vis_base.at[0].add(vp["class_emb"])                   # class emb folded into row 0
    f = _put(f, VIS_BASE_OFF, vis_base)
    for off, (g, b) in ((LNPRE_OFF, (vp["ln_pre_g"], vp["ln_pre_b"])),
                        (LNPOST_OFF, (vp["ln_post_g"], vp["ln_post_b"])),
                        (LNF_OFF, (tp["lnf_g"], tp["lnf_b"])),
                        (V_LN1_OFF, (vb["ln1_g"], vb["ln1_b"])),
                        (V_LN2_OFF, (vb["ln2_g"], vb["ln2_b"])),
                        (T_LN1_OFF, (tb["ln1_g"], tb["ln1_b"])),
                        (T_LN2_OFF, (tb["ln2_g"], tb["ln2_b"]))):
        f = _put(f, off, g)
        f = _put(f, off + 1, b)
    f = _put(f, V_BO_OFF, vb["bo"]);     f = _put(f, T_BO_OFF, tb["bo"])
    f = _put(f, V_PB_OFF, vb["proj_b"]); f = _put(f, T_PB_OFF, tb["proj_b"])
    f = _put(f, AGGB_OFF, kg["agg_b"])
    f = _put(f, V_QKVB_OFF, vb["qkv_b"]); f = _put(f, T_QKVB_OFF, tb["qkv_b"])
    f = _put(f, V_FCB_OFF, vb["fc_b"]);   f = _put(f, T_FCB_OFF, tb["fc_b"])
    f = _put(f, LIN_OFF, kg["lin_w"])                                # (N_CTX, N_CLS)
    f = _put(f, LINB_OFF, jnp.broadcast_to(kg["lin_b"], (N_CTX, DIM)))

    # ---- text prompt base: prefix + ctx(param) + suffix, + positional embedding ----
    tbase = jnp.concatenate(
        [pp["token_prefix"],
         jnp.broadcast_to(pp["ctx"][None], (N_CLS, N_CTX, DIM)),
         pp["token_suffix"]], axis=1) + tp["pos_emb"][None]          # (N_CLS, SEQ, D)

    return dict(wslab=w, fslab=f, tbase=tbase,
                logit_scale=jnp.reshape(params["logit_scale"], (1, 1)),
                kg=dict(usr=kg["usr"], ent=kg["ent"], rel=kg["rel"],
                        adj_ent=kg["adj_ent"], adj_rel=kg["adj_rel"]))


# ----------------------------- parameter init ---------------------------------
def init_params(key):
    ks = iter(jax.random.split(key, 32))

    def nrm(shape, std=0.02):
        return std * jax.random.normal(next(ks), shape, jnp.float32)

    def ones(shape):
        return jnp.ones(shape, jnp.float32)

    def zeros(shape):
        return jnp.zeros(shape, jnp.float32)

    def block_params():
        # nn.MultiheadAttention weights pre-fused: qkv_w == in_proj_weight.T (cols = [Q|K|V],
        # heads contiguous inside each 64-wide group), wo == out_proj.weight.T.
        return dict(
            ln1_g=ones((1, DIM)), ln1_b=zeros((1, DIM)),
            qkv_w=nrm((DIM, 3 * DIM)), qkv_b=zeros((1, 3 * DIM)),
            wo=nrm((DIM, DIM)), bo=zeros((1, DIM)),
            ln2_g=ones((1, DIM)), ln2_b=zeros((1, DIM)),
            fc_w=nrm((DIM, MLP)), fc_b=zeros((1, MLP)),
            proj_w=nrm((MLP, DIM)), proj_b=zeros((1, DIM)),
        )

    visual = dict(
        conv_w=nrm((IMG_C * PATCH * PATCH, DIM)),
        class_emb=nrm((DIM,)),
        pos_emb=nrm((VIS_SEQ, DIM), 0.01),
        ln_pre_g=ones((1, DIM)), ln_pre_b=zeros((1, DIM)),
        block=block_params(),
        ln_post_g=ones((1, DIM)), ln_post_b=zeros((1, DIM)),
        proj=nrm((DIM, DIM)),
    )

    text = dict(
        pos_emb=nrm((SEQ, DIM), 0.01),
        block=block_params(),
        lnf_g=ones((1, DIM)), lnf_b=zeros((1, DIM)),
        text_projection=nrm((DIM, DIM)),
    )

    kgcn = dict(
        usr=nrm((NUM_USER, DIM), 1.0),               # nn.Embedding default ~ N(0,1)
        ent=nrm((NUM_ENT, DIM), 1.0),
        rel=nrm((NUM_REL + 1, DIM), 1.0),
        agg_w=nrm((DIM, DIM), 0.1), agg_b=zeros((1, DIM)),
        lin_w=nrm((N_CTX, N_CLS), 0.1),              # Linear(NCLASS -> N_CTX).weight
        lin_b=zeros((N_CTX, 1)),
        adj_ent=jax.random.randint(next(ks), (NUM_ENT, N_NEIGHBOR), 0, NUM_ENT, jnp.int32),
        adj_rel=jax.random.randint(next(ks), (NUM_ENT, N_NEIGHBOR), 1, NUM_REL + 1, jnp.int32),
    )

    prompt = dict(
        ctx=nrm((N_CTX, DIM)),                       # generic context, std=0.02
        token_prefix=nrm((N_CLS, 1, DIM)),           # SOS embedding buffer
        token_suffix=nrm((N_CLS, SUFFIX, DIM)),      # class + EOS embedding buffer
        kgcn=kgcn,
    )

    return dict(visual=visual, text=text, prompt=prompt,
                logit_scale=jnp.array(np.log(1.0 / 0.07), jnp.float32))


def build_tokenized_prompts():
    name_lens = [1, 2, 3, 1, 2, 3, 1, 2]
    tok = np.zeros((N_CLS, SEQ), np.int32)
    for i, nl in enumerate(name_lens):
        eot = 1 + N_CTX + nl + 1
        tok[i, :eot] = np.arange(1, eot + 1)
        tok[i, eot] = 49407                          # EOT token is the arg-max
    return jnp.asarray(tok)


# ----------------------------------- main --------------------------------------
if __name__ == "__main__":
    key = jax.random.PRNGKey(0)
    pkey, ikey = jax.random.split(key)
    params = init_params(pkey)
    tokenized = build_tokenized_prompts()
    prepared = prepare_params(params, tokenized)     # slabs packed once, reused every call

    image = jax.random.normal(ikey, (IMG_B, IMG_C, IMG_HW, IMG_HW), jnp.float32)
    user_ids = jnp.arange(N_CLS, dtype=jnp.int32) % NUM_USER      # one train_loader batch
    item_idss = jnp.array([3, 7, 1, 12, 5, 19, 0, 8], jnp.int32)  # synthetic item_idss

    fwd = jax.jit(custom_clip_forward)
    logits = fwd(image, user_ids, item_idss, prepared)
    jax.block_until_ready(logits)

    assert logits.shape == (IMG_B, N_CLS), logits.shape
    assert bool(jnp.all(jnp.isfinite(logits)))
    print("KERNEL_OK")
</pallas_src>

<mosaic_0001>
module attributes {stable_mosaic.version = 11 : i64} {
  func.func @_capkp_kernel(%arg0: memref<16x192xbf16, #tpu.memory_space<vmem>>, %arg1: memref<1296x256xbf16, #tpu.memory_space<vmem>>, %arg2: memref<40x256xf32, #tpu.memory_space<vmem>>, %arg3: memref<8x16x64xf32, #tpu.memory_space<vmem>>, %arg4: memref<144x64xf32, #tpu.memory_space<vmem>>, %arg5: memref<1x1xf32, #tpu.memory_space<smem>>, %arg6: memref<2x8xf32, #tpu.memory_space<vmem>>) attributes {dimension_semantics = [], scalar_prefetch = 0 : i64, scratch_operands = 0 : i64, tpu.core_type = #tpu.core_type<tc>} {
    %c0 = arith.constant 0 : index
    %c0_0 = arith.constant 0 : index
    %0 = vector.load %arg2[%c0, %c0_0] : memref<40x256xf32, #tpu.memory_space<vmem>>, vector<40x256xf32>
    %c0_1 = arith.constant 0 : index
    %c0_2 = arith.constant 0 : index
    %1 = vector.load %arg1[%c0_1, %c0_2] : memref<1296x256xbf16, #tpu.memory_space<vmem>>, vector<192x64xbf16>
    %c0_3 = arith.constant 0 : index
    %c0_4 = arith.constant 0 : index
    %2 = vector.load %arg0[%c0_3, %c0_4] : memref<16x192xbf16, #tpu.memory_space<vmem>>, vector<16x192xbf16>
    %cst = arith.constant dense<0.000000e+00> : vector<16x64xf32>
    %3 = tpu.matmul %2, %1, %cst {dimension_numbers = #tpu.dot_dimension_numbers<[1], [0], [0], [1], [0, 0, 1, 1], [], []>} : vector<16x192xbf16>, vector<192x64xbf16>, vector<16x64xf32> -> vector<16x64xf32>
    %4 = vector.extract_strided_slice %0 {offsets = [0, 0], sizes = [8, 64], strides = [1, 1]} : vector<40x256xf32> to vector<8x64xf32>
    %5 = vector.shape_cast %3 : vector<16x64xf32> to vector<2x8x64xf32>
    %6 = vector.shape_cast %4 : vector<8x64xf32> to vector<1x8x64xf32>
    %7 = vector.broadcast %6 : vector<1x8x64xf32> to vector<2x8x64xf32>
    %8 = arith.addf %5, %7 : vector<2x8x64xf32>
    %9 = vector.shape_cast %8 : vector<2x8x64xf32> to vector<16x64xf32>
    %10 = vector.extract_strided_slice %0 {offsets = [8, 0], sizes = [1, 64], strides = [1, 1]} : vector<40x256xf32> to vector<1x64xf32>
    %11 = vector.extract_strided_slice %0 {offsets = [9, 0], sizes = [1, 64], strides = [1, 1]} : vector<40x256xf32> to vector<1x64xf32>
    %cst_5 = arith.constant dense<0.000000e+00> : vector<16xf32>
    %12 = vector.multi_reduction <add>, %9, %cst_5 [1] : vector<16x64xf32> to vector<16xf32>
    %13 = vector.shape_cast %12 : vector<16xf32> to vector<16x1xf32>
    %cst_6 = arith.constant 6.400000e+01 : f32
    %14 = vector.broadcast %cst_6 : f32 to vector<16x1xf32>
    %15 = arith.divf %13, %14 : vector<16x1xf32>
    %16 = vector.broadcast %15 : vector<16x1xf32> to vector<16x64xf32>
    %17 = arith.subf %9, %16 : vector<16x64xf32>
    %18 = arith.mulf %17, %17 : vector<16x64xf32>
    %cst_7 = arith.constant dense<0.000000e+00> : vector<16xf32>
    %19 = vector.multi_reduction <add>, %18, %cst_7 [1] : vector<16x64xf32> to vector<16xf32>
    %20 = vector.shape_cast %19 : vector<16xf32> to vector<16x1xf32>
    %cst_8 = arith.constant 6.400000e+01 : f32
    %21 = vector.broadcast %cst_8 : f32 to vector<16x1xf32>
    %22 = arith.divf %20, %21 : vector<16x1xf32>
    %23 = vector.broadcast %15 : vector<16x1xf32> to vector<16x64xf32>
    %24 = arith.subf %9, %23 : vector<16x64xf32>
    %cst_9 = arith.constant 9.99999974E-6 : f32
    %25 = vector.broadcast %cst_9 : f32 to vector<16x1xf32>
    %26 = arith.addf %22, %25 : vector<16x1xf32>
    %27 = math.rsqrt %26 : vector<16x1xf32>
    %28 = vector.broadcast %27 : vector<16x1xf32> to vector<16x64xf32>
    %29 = arith.mulf %24, %28 : vector<16x64xf32>
    %30 = vector.broadcast %10 : vector<1x64xf32> to vector<16x64xf32>
    %31 = arith.mulf %29, %30 : vector<16x64xf32>
    %32 = vector.broadcast %11 : vector<1x64xf32> to vector<16x64xf32>
    %33 = arith.addf %31, %32 : vector<16x64xf32>
    %34 = tpu.iota {dimensions = array<i32: 1>} : vector<8x8xi32>
    %c5_i32 = arith.constant 5 : i32
    %35 = vector.broadcast %c5_i32 : i32 to vector<8x8xi32>
    %36 = arith.cmpi sge, %34, %35 : vector<8x8xi32>
    %cst_10 = arith.constant -1.000000e+09 : f32
    %cst_11 = arith.constant 0.000000e+00 : f32
    %37 = vector.broadcast %cst_10 : f32 to vector<8x8xf32>
    %38 = vector.broadcast %cst_11 : f32 to vector<8x8xf32>
    %39 = arith.select %36, %37, %38 : vector<8x8xi1>, vector<8x8xf32>
    %c192 = arith.constant 192 : index
    %c0_12 = arith.constant 0 : index
    %40 = vector.load %arg1[%c192, %c0_12] : memref<1296x256xbf16, #tpu.memory_space<vmem>>, vector<64x256xbf16>
    %c256 = arith.constant 256 : index
    %c0_13 = arith.constant 0 : index
    %41 = vector.load %arg1[%c256, %c0_13] : memref<1296x256xbf16, #tpu.memory_space<vmem>>, vector<64x64xbf16>
    %c320 = arith.constant 320 : index
    %c0_14 = arith.constant 0 : index
    %42 = vector.load %arg1[%c320, %c0_14] : memref<1296x256xbf16, #tpu.memory_space<vmem>>, vector<64x256xbf16>
    %c384 = arith.constant 384 : index
    %c0_15 = arith.constant 0 : index
    %43 = vector.load %arg1[%c384, %c0_15] : memref<1296x256xbf16, #tpu.memory_space<vmem>>, vector<256x64xbf16>
    %44 = vector.extract_strided_slice %0 {offsets = [14, 0], sizes = [1, 64], strides = [1, 1]} : vector<40x256xf32> to vector<1x64xf32>
    %45 = vector.extract_strided_slice %0 {offsets = [15, 0], sizes = [1, 64], strides = [1, 1]} : vector<40x256xf32> to vector<1x64xf32>
    %46 = vector.extract_strided_slice %0 {offsets = [16, 0], sizes = [1, 64], strides = [1, 1]} : vector<40x256xf32> to vector<1x64xf32>
    %47 = vector.extract_strided_slice %0 {offsets = [17, 0], sizes = [1, 64], strides = [1, 1]} : vector<40x256xf32> to vector<1x64xf32>
    %48 = vector.extract_strided_slice %0 {offsets = [27, 0], sizes = [1, 256], strides = [1, 1]} : vector<40x256xf32> to vector<1x256xf32>
    %49 = vector.extract_strided_slice %0 {offsets = [22, 0], sizes = [1, 64], strides = [1, 1]} : vector<40x256xf32> to vector<1x64xf32>
    %50 = vector.extract_strided_slice %0 {offsets = [29, 0], sizes = [1, 256], strides = [1, 1]} : vector<40x256xf32> to vector<1x256xf32>
    %51 = vector.extract_strided_slice %0 {offsets = [24, 0], sizes = [1, 64], strides = [1, 1]} : vector<40x256xf32> to vector<1x64xf32>
    %cst_16 = arith.constant dense<0.000000e+00> : vector<16xf32>
    %52 = vector.multi_reduction <add>, %33, %cst_16 [1] : vector<16x64xf32> to vector<16xf32>
    %53 = vector.shape_cast %52 : vector<16xf32> to vector<16x1xf32>
    %cst_17 = arith.constant 6.400000e+01 : f32
    %54 = vector.broadcast %cst_17 : f32 to vector<16x1xf32>
    %55 = arith.divf %53, %54 : vector<16x1xf32>
    %56 = vector.broadcast %55 : vector<16x1xf32> to vector<16x64xf32>
    %57 = arith.subf %33, %56 : vector<16x64xf32>
    %58 = arith.mulf %57, %57 : vector<16x64xf32>
    %cst_18 = arith.constant dense<0.000000e+00> : vector<16xf32>
    %59 = vector.multi_reduction <add>, %58, %cst_18 [1] : vector<16x64xf32> to vector<16xf32>
    %60 = vector.shape_cast %59 : vector<16xf32> to vector<16x1xf32>
    %cst_19 = arith.constant 6.400000e+01 : f32
    %61 = vector.broadcast %cst_19 : f32 to vector<16x1xf32>
    %62 = arith.divf %60, %61 : vector<16x1xf32>
    %63 = vector.broadcast %55 : vector<16x1xf32> to vector<16x64xf32>
    %64 = arith.subf %33, %63 : vector<16x64xf32>
    %cst_20 = arith.constant 9.99999974E-6 : f32
    %65 = vector.broadcast %cst_20 : f32 to vector<16x1xf32>
    %66 = arith.addf %62, %65 : vector<16x1xf32>
    %67 = math.rsqrt %66 : vector<16x1xf32>
    %68 = vector.broadcast %67 : vector<16x1xf32> to vector<16x64xf32>
    %69 = arith.mulf %64, %68 : vector<16x64xf32>
    %70 = vector.broadcast %44 : vector<1x64xf32> to vector<16x64xf32>
    %71 = arith.mulf %69, %70 : vector<16x64xf32>
    %72 = vector.broadcast %45 : vector<1x64xf32> to vector<16x64xf32>
    %73 = arith.addf %71, %72 : vector<16x64xf32>
    %74 = arith.truncf %73 : vector<16x64xf32> to vector<16x64xbf16>
    %cst_21 = arith.constant dense<0.000000e+00> : vector<16x256xf32>
    %75 = tpu.matmul %74, %40, %cst_21 {dimension_numbers = #tpu.dot_dimension_numbers<[1], [0], [0], [1], [0, 0, 1, 1], [], []>} : vector<16x64xbf16>, vector<64x256xbf16>, vector<16x256xf32> -> vector<16x256xf32>
    %76 = vector.broadcast %48 : vector<1x256xf32> to vector<16x256xf32>
    %77 = arith.addf %75, %76 : vector<16x256xf32>
    %78 = vector.shape_cast %39 : vector<8x8xf32> to vector<1x8x8xf32>
    %79 = vector.shape_cast %78 : vector<1x8x8xf32> to vector<1x8x8xf32>
    %80 = vector.broadcast %79 : vector<1x8x8xf32> to vector<2x8x8xf32>
    %81 = vector.extract_strided_slice %77 {offsets = [0, 0], sizes = [16, 32], strides = [1, 1]} : vector<16x256xf32> to vector<16x32xf32>
    %82 = arith.truncf %81 : vector<16x32xf32> to vector<16x32xbf16>
    %83 = vector.shape_cast %82 : vector<16x32xbf16> to vector<2x8x32xbf16>
    %84 = vector.extract_strided_slice %77 {offsets = [0, 64], sizes = [16, 32], strides = [1, 1]} : vector<16x256xf32> to vector<16x32xf32>
    %85 = arith.truncf %84 : vector<16x32xf32> to vector<16x32xbf16>
    %86 = vector.shape_cast %85 : vector<16x32xbf16> to vector<2x8x32xbf16>
    %87 = vector.extract_strided_slice %77 {offsets = [0, 128], sizes = [16, 32], strides = [1, 1]} : vector<16x256xf32> to vector<16x32xf32>
    %88 = arith.truncf %87 : vector<16x32xf32> to vector<16x32xbf16>
    %89 = vector.shape_cast %88 : vector<16x32xbf16> to vector<2x8x32xbf16>
    "tpu.trace_start"() <{level = 10 : i32, message = "bqd,bkd->bqk"}> : () -> ()
    %cst_22 = arith.constant dense<0.000000e+00> : vector<2x8x8xf32>
    %90 = tpu.matmul %83, %86, %cst_22 {dimension_numbers = #tpu.dot_dimension_numbers<[2], [2], [1], [1], [0, 0, 0, 1, 1, 1], [0], [0]>} : vector<2x8x32xbf16>, vector<2x8x32xbf16>, vector<2x8x8xf32> -> vector<2x8x8xf32>
    "tpu.trace_stop"() : () -> ()
    %cst_23 = arith.constant 0.176776692 : f32
    %91 = vector.broadcast %cst_23 : f32 to vector<2x8x8xf32>
    %92 = arith.mulf %90, %91 : vector<2x8x8xf32>
    %93 = arith.addf %92, %80 : vector<2x8x8xf32>
    %cst_24 = arith.constant dense<0xFF800000> : vector<2x8xf32>
    %94 = vector.multi_reduction <maximumf>, %93, %cst_24 [2] : vector<2x8x8xf32> to vector<2x8xf32>
    %95 = vector.shape_cast %94 : vector<2x8xf32> to vector<2x8x1xf32>
    %96 = vector.broadcast %95 : vector<2x8x1xf32> to vector<2x8x8xf32>
    %97 = arith.subf %93, %96 : vector<2x8x8xf32>
    %98 = math.exp %97 : vector<2x8x8xf32>
    %cst_25 = arith.constant dense<0.000000e+00> : vector<2x8xf32>
    %99 = vector.multi_reduction <add>, %98, %cst_25 [2] : vector<2x8x8xf32> to vector<2x8xf32>
    %100 = vector.shape_cast %99 : vector<2x8xf32> to vector<2x8x1xf32>
    %101 = tpu.reciprocal %100 {approx = true} : vector<2x8x1xf32> -> vector<2x8x1xf32>
    %102 = vector.broadcast %101 : vector<2x8x1xf32> to vector<2x8x8xf32>
    %103 = arith.mulf %98, %102 : vector<2x8x8xf32>
    %104 = arith.truncf %103 : vector<2x8x8xf32> to vector<2x8x8xbf16>
    "tpu.trace_start"() <{level = 10 : i32, message = "bqk,bkd->bqd"}> : () -> ()
    %cst_26 = arith.constant dense<0.000000e+00> : vector<2x8x32xf32>
    %105 = tpu.matmul %104, %89, %cst_26 {dimension_numbers = #tpu.dot_dimension_numbers<[2], [1], [1], [2], [0, 0, 0, 1, 1, 2], [0], [0]>} : vector<2x8x8xbf16>, vector<2x8x32xbf16>, vector<2x8x32xf32> -> vector<2x8x32xf32>
    "tpu.trace_stop"() : () -> ()
    %106 = vector.shape_cast %105 : vector<2x8x32xf32> to vector<16x32xf32>
    %107 = vector.extract_strided_slice %77 {offsets = [0, 32], sizes = [16, 32], strides = [1, 1]} : vector<16x256xf32> to vector<16x32xf32>
    %108 = arith.truncf %107 : vector<16x32xf32> to vector<16x32xbf16>
    %109 = vector.shape_cast %108 : vector<16x32xbf16> to vector<2x8x32xbf16>
    %110 = vector.extract_strided_slice %77 {offsets = [0, 96], sizes = [16, 32], strides = [1, 1]} : vector<16x256xf32> to vector<16x32xf32>
    %111 = arith.truncf %110 : vector<16x32xf32> to vector<16x32xbf16>
    %112 = vector.shape_cast %111 : vector<16x32xbf16> to vector<2x8x32xbf16>
    %113 = vector.extract_strided_slice %77 {offsets = [0, 160], sizes = [16, 32], strides = [1, 1]} : vector<16x256xf32> to vector<16x32xf32>
    %114 = arith.truncf %113 : vector<16x32xf32> to vector<16x32xbf16>
    %115 = vector.shape_cast %114 : vector<16x32xbf16> to vector<2x8x32xbf16>
    "tpu.trace_start"() <{level = 10 : i32, message = "bqd,bkd->bqk"}> : () -> ()
    %cst_27 = arith.constant dense<0.000000e+00> : vector<2x8x8xf32>
    %116 = tpu.matmul %109, %112, %cst_27 {dimension_numbers = #tpu.dot_dimension_numbers<[2], [2], [1], [1], [0, 0, 0, 1, 1, 1], [0], [0]>} : vector<2x8x32xbf16>, vector<2x8x32xbf16>, vector<2x8x8xf32> -> vector<2x8x8xf32>
    "tpu.trace_stop"() : () -> ()
    %cst_28 = arith.constant 0.176776692 : f32
    %117 = vector.broadcast %cst_28 : f32 to vector<2x8x8xf32>
    %118 = arith.mulf %116, %117 : vector<2x8x8xf32>
    %119 = arith.addf %118, %80 : vector<2x8x8xf32>
    %cst_29 = arith.constant dense<0xFF800000> : vector<2x8xf32>
    %120 = vector.multi_reduction <maximumf>, %119, %cst_29 [2] : vector<2x8x8xf32> to vector<2x8xf32>
    %121 = vector.shape_cast %120 : vector<2x8xf32> to vector<2x8x1xf32>
    %122 = vector.broadcast %121 : vector<2x8x1xf32> to vector<2x8x8xf32>
    %123 = arith.subf %119, %122 : vector<2x8x8xf32>
    %124 = math.exp %123 : vector<2x8x8xf32>
    %cst_30 = arith.constant dense<0.000000e+00> : vector<2x8xf32>
    %125 = vector.multi_reduction <add>, %124, %cst_30 [2] : vector<2x8x8xf32> to vector<2x8xf32>
    %126 = vector.shape_cast %125 : vector<2x8xf32> to vector<2x8x1xf32>
    %127 = tpu.reciprocal %126 {approx = true} : vector<2x8x1xf32> -> vector<2x8x1xf32>
    %128 = vector.broadcast %127 : vector<2x8x1xf32> to vector<2x8x8xf32>
    %129 = arith.mulf %124, %128 : vector<2x8x8xf32>
    %130 = arith.truncf %129 : vector<2x8x8xf32> to vector<2x8x8xbf16>
    "tpu.trace_start"() <{level = 10 : i32, message = "bqk,bkd->bqd"}> : () -> ()
    %cst_31 = arith.constant dense<0.000000e+00> : vector<2x8x32xf32>
    %131 = tpu.matmul %130, %115, %cst_31 {dimension_numbers = #tpu.dot_dimension_numbers<[2], [1], [1], [2], [0, 0, 0, 1, 1, 2], [0], [0]>} : vector<2x8x8xbf16>, vector<2x8x32xbf16>, vector<2x8x32xf32> -> vector<2x8x32xf32>
    "tpu.trace_stop"() : () -> ()
    %132 = vector.shape_cast %131 : vector<2x8x32xf32> to vector<16x32xf32>
    %133 = tpu.concatenate %106, %132 in 1 : vector<16x32xf32>, vector<16x32xf32> -> vector<16x64xf32>
    %134 = arith.truncf %133 : vector<16x64xf32> to vector<16x64xbf16>
    %cst_32 = arith.constant dense<0.000000e+00> : vector<16x64xf32>
    %135 = tpu.matmul %134, %41, %cst_32 {dimension_numbers = #tpu.dot_dimension_numbers<[1], [0], [0], [1], [0, 0, 1, 1], [], []>} : vector<16x64xbf16>, vector<64x64xbf16>, vector<16x64xf32> -> vector<16x64xf32>
    %136 = arith.addf %33, %135 : vector<16x64xf32>
    %137 = vector.broadcast %49 : vector<1x64xf32> to vector<16x64xf32>
    %138 = arith.addf %136, %137 : vector<16x64xf32>
    %cst_33 = arith.constant dense<0.000000e+00> : vector<16xf32>
    %139 = vector.multi_reduction <add>, %138, %cst_33 [1] : vector<16x64xf32> to vector<16xf32>
    %140 = vector.shape_cast %139 : vector<16xf32> to vector<16x1xf32>
    %cst_34 = arith.constant 6.400000e+01 : f32
    %141 = vector.broadcast %cst_34 : f32 to vector<16x1xf32>
    %142 = arith.divf %140, %141 : vector<16x1xf32>
    %143 = vector.broadcast %142 : vector<16x1xf32> to vector<16x64xf32>
    %144 = arith.subf %138, %143 : vector<16x64xf32>
    %145 = arith.mulf %144, %144 : vector<16x64xf32>
    %cst_35 = arith.constant dense<0.000000e+00> : vector<16xf32>
    %146 = vector.multi_reduction <add>, %145, %cst_35 [1] : vector<16x64xf32> to vector<16xf32>
    %147 = vector.shape_cast %146 : vector<16xf32> to vector<16x1xf32>
    %cst_36 = arith.constant 6.400000e+01 : f32
    %148 = vector.broadcast %cst_36 : f32 to vector<16x1xf32>
    %149 = arith.divf %147, %148 : vector<16x1xf32>
    %150 = vector.broadcast %142 : vector<16x1xf32> to vector<16x64xf32>
    %151 = arith.subf %138, %150 : vector<16x64xf32>
    %cst_37 = arith.constant 9.99999974E-6 : f32
    %152 = vector.broadcast %cst_37 : f32 to vector<16x1xf32>
    %153 = arith.addf %149, %152 : vector<16x1xf32>
    %154 = math.rsqrt %153 : vector<16x1xf32>
    %155 = vector.broadcast %154 : vector<16x1xf32> to vector<16x64xf32>
    %156 = arith.mulf %151, %155 : vector<16x64xf32>
    %157 = vector.broadcast %46 : vector<1x64xf32> to vector<16x64xf32>
    %158 = arith.mulf %156, %157 : vector<16x64xf32>
    %159 = vector.broadcast %47 : vector<1x64xf32> to vector<16x64xf32>
    %160 = arith.addf %158, %159 : vector<16x64xf32>
    %161 = arith.truncf %160 : vector<16x64xf32> to vector<16x64xbf16>
    %cst_38 = arith.constant dense<0.000000e+00> : vector<16x256xf32>
    %162 = tpu.matmul %161, %42, %cst_38 {dimension_numbers = #tpu.dot_dimension_numbers<[1], [0], [0], [1], [0, 0, 1, 1], [], []>} : vector<16x64xbf16>, vector<64x256xbf16>, vector<16x256xf32> -> vector<16x256xf32>
    %163 = vector.broadcast %50 : vector<1x256xf32> to vector<16x256xf32>
    %164 = arith.addf %162, %163 : vector<16x256xf32>
    %cst_39 = arith.constant 1.702000e+00 : f32
    %165 = vector.broadcast %cst_39 : f32 to vector<16x256xf32>
    %166 = arith.mulf %165, %164 : vector<16x256xf32>
    %167 = arith.negf %166 : vector<16x256xf32>
    %168 = math.exp %167 : vector<16x256xf32>
    %cst_40 = arith.constant 1.000000e+00 : f32
    %169 = vector.broadcast %cst_40 : f32 to vector<16x256xf32>
    %170 = arith.addf %169, %168 : vector<16x256xf32>
    %171 = arith.divf %169, %170 : vector<16x256xf32>
    %172 = arith.mulf %164, %171 : vector<16x256xf32>
    %173 = arith.truncf %172 : vector<16x256xf32> to vector<16x256xbf16>
    %cst_41 = arith.constant dense<0.000000e+00> : vector<16x64xf32>
    %174 = tpu.matmul %173, %43, %cst_41 {dimension_numbers = #tpu.dot_dimension_numbers<[1], [0], [0], [1], [0, 0, 1, 1], [], []>} : vector<16x256xbf16>, vector<256x64xbf16>, vector<16x64xf32> -> vector<16x64xf32>
    %175 = vector.broadcast %51 : vector<1x64xf32> to vector<16x64xf32>
    %176 = arith.addf %174, %175 : vector<16x64xf32>
    %177 = arith.addf %138, %176 : vector<16x64xf32>
    %178 = vector.shape_cast %177 : vector<16x64xf32> to vector<2x8x64xf32>
    %179 = vector.extract_strided_slice %178 {offsets = [0, 0, 0], sizes = [2, 1, 64], strides = [1, 1, 1]} : vector<2x8x64xf32> to vector<2x1x64xf32>
    %180 = vector.shape_cast %179 : vector<2x1x64xf32> to vector<2x64xf32>
    %181 = vector.extract_strided_slice %0 {offsets = [10, 0], sizes = [1, 64], strides = [1, 1]} : vector<40x256xf32> to vector<1x64xf32>
    %182 = vector.extract_strided_slice %0 {offsets = [11, 0], sizes = [1, 64], strides = [1, 1]} : vector<40x256xf32> to vector<1x64xf32>
    %cst_42 = arith.constant dense<0.000000e+00> : vector<2xf32>
    %183 = vector.multi_reduction <add>, %180, %cst_42 [1] : vector<2x64xf32> to vector<2xf32>
    %184 = vector.shape_cast %183 : vector<2xf32> to vector<2x1xf32>
    %cst_43 = arith.constant 6.400000e+01 : f32
    %185 = vector.broadcast %cst_43 : f32 to vector<2x1xf32>
    %186 = arith.divf %184, %185 : vector<2x1xf32>
    %187 = vector.broadcast %186 : vector<2x1xf32> to vector<2x64xf32>
    %188 = arith.subf %180, %187 : vector<2x64xf32>
    %189 = arith.mulf %188, %188 : vector<2x64xf32>
    %cst_44 = arith.constant dense<0.000000e+00> : vector<2xf32>
    %190 = vector.multi_reduction <add>, %189, %cst_44 [1] : vector<2x64xf32> to vector<2xf32>
    %191 = vector.shape_cast %190 : vector<2xf32> to vector<2x1xf32>
    %cst_45 = arith.constant 6.400000e+01 : f32
    %192 = vector.broadcast %cst_45 : f32 to vector<2x1xf32>
    %193 = arith.divf %191, %192 : vector<2x1xf32>
    %194 = vector.broadcast %186 : vector<2x1xf32> to vector<2x64xf32>
    %195 = arith.subf %180, %194 : vector<2x64xf32>
    %cst_46 = arith.constant 9.99999974E-6 : f32
    %196 = vector.broadcast %cst_46 : f32 to vector<2x1xf32>
    %197 = arith.addf %193, %196 : vector<2x1xf32>
    %198 = math.rsqrt %197 : vector<2x1xf32>
    %199 = vector.broadcast %198 : vector<2x1xf32> to vector<2x64xf32>
    %200 = arith.mulf %195, %199 : vector<2x64xf32>
    %201 = vector.broadcast %181 : vector<1x64xf32> to vector<2x64xf32>
    %202 = arith.mulf %200, %201 : vector<2x64xf32>
    %203 = vector.broadcast %182 : vector<1x64xf32> to vector<2x64xf32>
    %204 = arith.addf %202, %203 : vector<2x64xf32>
    %205 = arith.truncf %204 : vector<2x64xf32> to vector<2x64xbf16>
    %c1088 = arith.constant 1088 : index
    %c0_47 = arith.constant 0 : index
    %206 = vector.load %arg1[%c1088, %c0_47] : memref<1296x256xbf16, #tpu.memory_space<vmem>>, vector<64x64xbf16>
    %cst_48 = arith.constant dense<0.000000e+00> : vector<2x64xf32>
    %207 = tpu.matmul %205, %206, %cst_48 {dimension_numbers = #tpu.dot_dimension_numbers<[1], [0], [0], [1], [0, 0, 1, 1], [], []>} : vector<2x64xbf16>, vector<64x64xbf16>, vector<2x64xf32> -> vector<2x64xf32>
    %c0_49 = arith.constant 0 : index
    %c0_50 = arith.constant 0 : index
    %208 = vector.load %arg4[%c0_49, %c0_50] : memref<144x64xf32, #tpu.memory_space<vmem>>, vector<144x64xf32>
    %209 = vector.extract_strided_slice %208 {offsets = [0, 0], sizes = [8, 64], strides = [1, 1]} : vector<144x64xf32> to vector<8x64xf32>
    %210 = vector.extract_strided_slice %208 {offsets = [8, 0], sizes = [8, 64], strides = [1, 1]} : vector<144x64xf32> to vector<8x64xf32>
    %211 = vector.extract_strided_slice %208 {offsets = [16, 0], sizes = [64, 64], strides = [1, 1]} : vector<144x64xf32> to vector<64x64xf32>
    %212 = vector.shape_cast %211 : vector<64x64xf32> to vector<8x8x64xf32>
    %213 = vector.extract_strided_slice %208 {offsets = [80, 0], sizes = [64, 64], strides = [1, 1]} : vector<144x64xf32> to vector<64x64xf32>
    %214 = vector.shape_cast %213 : vector<64x64xf32> to vector<8x8x64xf32>
    %215 = vector.shape_cast %209 : vector<8x64xf32> to vector<8x1x64xf32>
    %216 = vector.broadcast %215 : vector<8x1x64xf32> to vector<8x8x64xf32>
    %217 = arith.mulf %216, %214 : vector<8x8x64xf32>
    %cst_51 = arith.constant dense<0.000000e+00> : vector<8x8xf32>
    %218 = vector.multi_reduction <add>, %217, %cst_51 [2] : vector<8x8x64xf32> to vector<8x8xf32>
    %cst_52 = arith.constant dense<0xFF800000> : vector<8xf32>
    %219 = vector.multi_reduction <maximumf>, %218, %cst_52 [1] : vector<8x8xf32> to vector<8xf32>
    %220 = vector.shape_cast %219 : vector<8xf32> to vector<8x1xf32>
    %221 = vector.broadcast %220 : vector<8x1xf32> to vector<8x8xf32>
    %222 = arith.subf %218, %221 : vector<8x8xf32>
    %223 = math.exp %222 : vector<8x8xf32>
    %cst_53 = arith.constant dense<0.000000e+00> : vector<8xf32>
    %224 = vector.multi_reduction <add>, %223, %cst_53 [1] : vector<8x8xf32> to vector<8xf32>
    %225 = vector.shape_cast %224 : vector<8xf32> to vector<8x1xf32>
    %226 = tpu.reciprocal %225 {approx = true} : vector<8x1xf32> -> vector<8x1xf32>
    %227 = vector.broadcast %226 : vector<8x1xf32> to vector<8x8xf32>
    %228 = arith.mulf %223, %227 : vector<8x8xf32>
    %229 = vector.shape_cast %228 : vector<8x8xf32> to vector<8x8x1xf32>
    %230 = vector.broadcast %229 : vector<8x8x1xf32> to vector<8x8x64xf32>
    %231 = arith.mulf %230, %212 : vector<8x8x64xf32>
    %cst_54 = arith.constant dense<0.000000e+00> : vector<8x64xf32>
    %232 = vector.multi_reduction <add>, %231, %cst_54 [1] : vector<8x8x64xf32> to vector<8x64xf32>
    %233 = arith.addf %210, %232 : vector<8x64xf32>
    %234 = arith.truncf %233 : vector<8x64xf32> to vector<8x64xbf16>
    %c1216 = arith.constant 1216 : index
    %c0_55 = arith.constant 0 : index
    %235 = vector.load %arg1[%c1216, %c0_55] : memref<1296x256xbf16, #tpu.memory_space<vmem>>, vector<64x64xbf16>
    %cst_56 = arith.constant dense<0.000000e+00> : vector<8x64xf32>
    %236 = tpu.matmul %234, %235, %cst_56 {dimension_numbers = #tpu.dot_dimension_numbers<[1], [0], [0], [1], [0, 0, 1, 1], [], []>} : vector<8x64xbf16>, vector<64x64xbf16>, vector<8x64xf32> -> vector<8x64xf32>
    %237 = vector.extract_strided_slice %0 {offsets = [26, 0], sizes = [1, 64], strides = [1, 1]} : vector<40x256xf32> to vector<1x64xf32>
    %238 = vector.broadcast %237 : vector<1x64xf32> to vector<8x64xf32>
    %239 = arith.addf %236, %238 : vector<8x64xf32>
    %240 = math.tanh %239 : vector<8x64xf32>
    %241 = vector.extract_strided_slice %0 {offsets = [32, 0], sizes = [4, 8], strides = [1, 1]} : vector<40x256xf32> to vector<4x8xf32>
    %242 = arith.truncf %241 : vector<4x8xf32> to vector<4x8xbf16>
    %243 = arith.truncf %240 : vector<8x64xf32> to vector<8x64xbf16>
    %cst_57 = arith.constant dense<0.000000e+00> : vector<4x64xf32>
    %244 = tpu.matmul %242, %243, %cst_57 {dimension_numbers = #tpu.dot_dimension_numbers<[1], [0], [0], [1], [0, 0, 1, 1], [], []>} : vector<4x8xbf16>, vector<8x64xbf16>, vector<4x64xf32> -> vector<4x64xf32>
    %245 = vector.extract_strided_slice %0 {offsets = [36, 0], sizes = [4, 64], strides = [1, 1]} : vector<40x256xf32> to vector<4x64xf32>
    %246 = arith.addf %244, %245 : vector<4x64xf32>
    %cst_58 = arith.constant 1.000000e-01 : f32
    %247 = vector.broadcast %cst_58 : f32 to vector<4x64xf32>
    %248 = arith.mulf %247, %246 : vector<4x64xf32>
    %249 = tpu.iota {dimensions = array<i32: 0>} : vector<16x64xi32>
    %cst_59 = arith.constant 0.000000e+00 : f32
    %250 = vector.broadcast %cst_59 : f32 to vector<16x64xf32>
    %c1_i32 = arith.constant 1 : i32
    %251 = vector.broadcast %c1_i32 : i32 to vector<16x64xi32>
    %252 = arith.cmpi eq, %249, %251 : vector<16x64xi32>
    %253 = arith.extui %252 : vector<16x64xi1> to vector<16x64xi32>
    %254 = arith.sitofp %253 : vector<16x64xi32> to vector<16x64xf32>
    %255 = vector.extract_strided_slice %248 {offsets = [0, 0], sizes = [1, 64], strides = [1, 1]} : vector<4x64xf32> to vector<1x64xf32>
    %256 = vector.broadcast %255 : vector<1x64xf32> to vector<16x64xf32>
    %257 = arith.mulf %254, %256 : vector<16x64xf32>
    %258 = arith.addf %250, %257 : vector<16x64xf32>
    %c2_i32 = arith.constant 2 : i32
    %259 = vector.broadcast %c2_i32 : i32 to vector<16x64xi32>
    %260 = arith.cmpi eq, %249, %259 : vector<16x64xi32>
    %261 = arith.extui %260 : vector<16x64xi1> to vector<16x64xi32>
    %262 = arith.sitofp %261 : vector<16x64xi32> to vector<16x64xf32>
    %263 = vector.extract_strided_slice %248 {offsets = [1, 0], sizes = [1, 64], strides = [1, 1]} : vector<4x64xf32> to vector<1x64xf32>
    %264 = vector.broadcast %263 : vector<1x64xf32> to vector<16x64xf32>
    %265 = arith.mulf %262, %264 : vector<16x64xf32>
    %266 = arith.addf %258, %265 : vector<16x64xf32>
    %c3_i32 = arith.constant 3 : i32
    %267 = vector.broadcast %c3_i32 : i32 to vector<16x64xi32>
    %268 = arith.cmpi eq, %249, %267 : vector<16x64xi32>
    %269 = arith.extui %268 : vector<16x64xi1> to vector<16x64xi32>
    %270 = arith.sitofp %269 : vector<16x64xi32> to vector<16x64xf32>
    %271 = vector.extract_strided_slice %248 {offsets = [2, 0], sizes = [1, 64], strides = [1, 1]} : vector<4x64xf32> to vector<1x64xf32>
    %272 = vector.broadcast %271 : vector<1x64xf32> to vector<16x64xf32>
    %273 = arith.mulf %270, %272 : vector<16x64xf32>
    %274 = arith.addf %266, %273 : vector<16x64xf32>
    %c4_i32 = arith.constant 4 : i32
    %275 = vector.broadcast %c4_i32 : i32 to vector<16x64xi32>
    %276 = arith.cmpi eq, %249, %275 : vector<16x64xi32>
    %277 = arith.extui %276 : vector<16x64xi1> to vector<16x64xi32>
    %278 = arith.sitofp %277 : vector<16x64xi32> to vector<16x64xf32>
    %279 = vector.extract_strided_slice %248 {offsets = [3, 0], sizes = [1, 64], strides = [1, 1]} : vector<4x64xf32> to vector<1x64xf32>
    %280 = vector.broadcast %279 : vector<1x64xf32> to vector<16x64xf32>
    %281 = arith.mulf %278, %280 : vector<16x64xf32>
    %282 = arith.addf %274, %281 : vector<16x64xf32>
    %c0_60 = arith.constant 0 : index
    %c0_61 = arith.constant 0 : index
    %c0_62 = arith.constant 0 : index
    %283 = vector.load %arg3[%c0_60, %c0_61, %c0_62] : memref<8x16x64xf32, #tpu.memory_space<vmem>>, vector<8x16x64xf32>
    %284 = vector.shape_cast %282 : vector<16x64xf32> to vector<1x16x64xf32>
    %285 = vector.broadcast %284 : vector<1x16x64xf32> to vector<8x16x64xf32>
    %286 = arith.addf %283, %285 : vector<8x16x64xf32>
    %287 = vector.shape_cast %286 : vector<8x16x64xf32> to vector<128x64xf32>
    %288 = tpu.iota {dimensions = array<i32: 0>} : vector<16x16xi32>
    %289 = tpu.iota {dimensions = array<i32: 1>} : vector<16x16xi32>
    %290 = arith.cmpi sgt, %289, %288 : vector<16x16xi32>
    %cst_63 = arith.constant -1.000000e+09 : f32
    %cst_64 = arith.constant 0.000000e+00 : f32
    %291 = vector.broadcast %cst_63 : f32 to vector<16x16xf32>
    %292 = vector.broadcast %cst_64 : f32 to vector<16x16xf32>
    %293 = arith.select %290, %291, %292 : vector<16x16xi1>, vector<16x16xf32>
    %c640 = arith.constant 640 : index
    %c0_65 = arith.constant 0 : index
    %294 = vector.load %arg1[%c640, %c0_65] : memref<1296x256xbf16, #tpu.memory_space<vmem>>, vector<64x256xbf16>
    %c704 = arith.constant 704 : index
    %c0_66 = arith.constant 0 : index
    %295 = vector.load %arg1[%c704, %c0_66] : memref<1296x256xbf16, #tpu.memory_space<vmem>>, vector<64x64xbf16>
    %c768 = arith.constant 768 : index
    %c0_67 = arith.constant 0 : index
    %296 = vector.load %arg1[%c768, %c0_67] : memref<1296x256xbf16, #tpu.memory_space<vmem>>, vector<64x256xbf16>
    %c832 = arith.constant 832 : index
    %c0_68 = arith.constant 0 : index
    %297 = vector.load %arg1[%c832, %c0_68] : memref<1296x256xbf16, #tpu.memory_space<vmem>>, vector<256x64xbf16>
    %298 = vector.extract_strided_slice %0 {offsets = [18, 0], sizes = [1, 64], strides = [1, 1]} : vector<40x256xf32> to vector<1x64xf32>
    %299 = vector.extract_strided_slice %0 {offsets = [19, 0], sizes = [1, 64], strides = [1, 1]} : vector<40x256xf32> to vector<1x64xf32>
    %300 = vector.extract_strided_slice %0 {offsets = [20, 0], sizes = [1, 64], strides = [1, 1]} : vector<40x256xf32> to vector<1x64xf32>
    %301 = vector.extract_strided_slice %0 {offsets = [21, 0], sizes = [1, 64], strides = [1, 1]} : vector<40x256xf32> to vector<1x64xf32>
    %302 = vector.extract_strided_slice %0 {offsets = [28, 0], sizes = [1, 256], strides = [1, 1]} : vector<40x256xf32> to vector<1x256xf32>
    %303 = vector.extract_strided_slice %0 {offsets = [23, 0], sizes = [1, 64], strides = [1, 1]} : vector<40x256xf32> to vector<1x64xf32>
    %304 = vector.extract_strided_slice %0 {offsets = [30, 0], sizes = [1, 256], strides = [1, 1]} : vector<40x256xf32> to vector<1x256xf32>
    %305 = vector.extract_strided_slice %0 {offsets = [25, 0], sizes = [1, 64], strides = [1, 1]} : vector<40x256xf32> to vector<1x64xf32>
    %cst_69 = arith.constant dense<0.000000e+00> : vector<128xf32>
    %306 = vector.multi_reduction <add>, %287, %cst_69 [1] : vector<128x64xf32> to vector<128xf32>
    %307 = vector.shape_cast %306 : vector<128xf32> to vector<128x1xf32>
    %cst_70 = arith.constant 6.400000e+01 : f32
    %308 = vector.broadcast %cst_70 : f32 to vector<128x1xf32>
    %309 = arith.divf %307, %308 : vector<128x1xf32>
    %310 = vector.broadcast %309 : vector<128x1xf32> to vector<128x64xf32>
    %311 = arith.subf %287, %310 : vector<128x64xf32>
    %312 = arith.mulf %311, %311 : vector<128x64xf32>
    %cst_71 = arith.constant dense<0.000000e+00> : vector<128xf32>
    %313 = vector.multi_reduction <add>, %312, %cst_71 [1] : vector<128x64xf32> to vector<128xf32>
    %314 = vector.shape_cast %313 : vector<128xf32> to vector<128x1xf32>
    %cst_72 = arith.constant 6.400000e+01 : f32
    %315 = vector.broadcast %cst_72 : f32 to vector<128x1xf32>
    %316 = arith.divf %314, %315 : vector<128x1xf32>
    %317 = vector.broadcast %309 : vector<128x1xf32> to vector<128x64xf32>
    %318 = arith.subf %287, %317 : vector<128x64xf32>
    %cst_73 = arith.constant 9.99999974E-6 : f32
    %319 = vector.broadcast %cst_73 : f32 to vector<128x1xf32>
    %320 = arith.addf %316, %319 : vector<128x1xf32>
    %321 = math.rsqrt %320 : vector<128x1xf32>
    %322 = vector.broadcast %321 : vector<128x1xf32> to vector<128x64xf32>
    %323 = arith.mulf %318, %322 : vector<128x64xf32>
    %324 = vector.broadcast %298 : vector<1x64xf32> to vector<128x64xf32>
    %325 = arith.mulf %323, %324 : vector<128x64xf32>
    %326 = vector.broadcast %299 : vector<1x64xf32> to vector<128x64xf32>
    %327 = arith.addf %325, %326 : vector<128x64xf32>
    %328 = arith.truncf %327 : vector<128x64xf32> to vector<128x64xbf16>
    %cst_74 = arith.constant dense<0.000000e+00> : vector<128x256xf32>
    %329 = tpu.matmul %328, %294, %cst_74 {dimension_numbers = #tpu.dot_dimension_numbers<[1], [0], [0], [1], [0, 0, 1, 1], [], []>} : vector<128x64xbf16>, vector<64x256xbf16>, vector<128x256xf32> -> vector<128x256xf32>
    %330 = vector.broadcast %302 : vector<1x256xf32> to vector<128x256xf32>
    %331 = arith.addf %329, %330 : vector<128x256xf32>
    %332 = vector.shape_cast %293 : vector<16x16xf32> to vector<1x16x16xf32>
    %333 = vector.shape_cast %332 : vector<1x16x16xf32> to vector<1x16x16xf32>
    %334 = vector.broadcast %333 : vector<1x16x16xf32> to vector<8x16x16xf32>
    %335 = vector.extract_strided_slice %331 {offsets = [0, 0], sizes = [128, 32], strides = [1, 1]} : vector<128x256xf32> to vector<128x32xf32>
    %336 = arith.truncf %335 : vector<128x32xf32> to vector<128x32xbf16>
    %337 = vector.shape_cast %336 : vector<128x32xbf16> to vector<8x16x32xbf16>
    %338 = vector.extract_strided_slice %331 {offsets = [0, 64], sizes = [128, 32], strides = [1, 1]} : vector<128x256xf32> to vector<128x32xf32>
    %339 = arith.truncf %338 : vector<128x32xf32> to vector<128x32xbf16>
    %340 = vector.shape_cast %339 : vector<128x32xbf16> to vector<8x16x32xbf16>
    %341 = vector.extract_strided_slice %331 {offsets = [0, 128], sizes = [128, 32], strides = [1, 1]} : vector<128x256xf32> to vector<128x32xf32>
    %342 = arith.truncf %341 : vector<128x32xf32> to vector<128x32xbf16>
    %343 = vector.shape_cast %342 : vector<128x32xbf16> to vector<8x16x32xbf16>
    "tpu.trace_start"() <{level = 10 : i32, message = "bqd,bkd->bqk"}> : () -> ()
    %cst_75 = arith.constant dense<0.000000e+00> : vector<8x16x16xf32>
    %344 = tpu.matmul %337, %340, %cst_75 {dimension_numbers = #tpu.dot_dimension_numbers<[2], [2], [1], [1], [0, 0, 0, 1, 1, 1], [0], [0]>} : vector<8x16x32xbf16>, vector<8x16x32xbf16>, vector<8x16x16xf32> -> vector<8x16x16xf32>
    "tpu.trace_stop"() : () -> ()
    %cst_76 = arith.constant 0.176776692 : f32
    %345 = vector.broadcast %cst_76 : f32 to vector<8x16x16xf32>
    %346 = arith.mulf %344, %345 : vector<8x16x16xf32>
    %347 = arith.addf %346, %334 : vector<8x16x16xf32>
    %cst_77 = arith.constant dense<0xFF800000> : vector<8x16xf32>
    %348 = vector.multi_reduction <maximumf>, %347, %cst_77 [2] : vector<8x16x16xf32> to vector<8x16xf32>
    %349 = vector.shape_cast %348 : vector<8x16xf32> to vector<8x16x1xf32>
    %350 = vector.broadcast %349 : vector<8x16x1xf32> to vector<8x16x16xf32>
    %351 = arith.subf %347, %350 : vector<8x16x16xf32>
    %352 = math.exp %351 : vector<8x16x16xf32>
    %cst_78 = arith.constant dense<0.000000e+00> : vector<8x16xf32>
    %353 = vector.multi_reduction <add>, %352, %cst_78 [2] : vector<8x16x16xf32> to vector<8x16xf32>
    %354 = vector.shape_cast %353 : vector<8x16xf32> to vector<8x16x1xf32>
    %355 = tpu.reciprocal %354 {approx = true} : vector<8x16x1xf32> -> vector<8x16x1xf32>
    %356 = vector.broadcast %355 : vector<8x16x1xf32> to vector<8x16x16xf32>
    %357 = arith.mulf %352, %356 : vector<8x16x16xf32>
    %358 = arith.truncf %357 : vector<8x16x16xf32> to vector<8x16x16xbf16>
    "tpu.trace_start"() <{level = 10 : i32, message = "bqk,bkd->bqd"}> : () -> ()
    %cst_79 = arith.constant dense<0.000000e+00> : vector<8x16x32xf32>
    %359 = tpu.matmul %358, %343, %cst_79 {dimension_numbers = #tpu.dot_dimension_numbers<[2], [1], [1], [2], [0, 0, 0, 1, 1, 2], [0], [0]>} : vector<8x16x16xbf16>, vector<8x16x32xbf16>, vector<8x16x32xf32> -> vector<8x16x32xf32>
    "tpu.trace_stop"() : () -> ()
    %360 = vector.shape_cast %359 : vector<8x16x32xf32> to vector<128x32xf32>
    %361 = vector.extract_strided_slice %331 {offsets = [0, 32], sizes = [128, 32], strides = [1, 1]} : vector<128x256xf32> to vector<128x32xf32>
    %362 = arith.truncf %361 : vector<128x32xf32> to vector<128x32xbf16>
    %363 = vector.shape_cast %362 : vector<128x32xbf16> to vector<8x16x32xbf16>
    %364 = vector.extract_strided_slice %331 {offsets = [0, 96], sizes = [128, 32], strides = [1, 1]} : vector<128x256xf32> to vector<128x32xf32>
    %365 = arith.truncf %364 : vector<128x32xf32> to vector<128x32xbf16>
    %366 = vector.shape_cast %365 : vector<128x32xbf16> to vector<8x16x32xbf16>
    %367 = vector.extract_strided_slice %331 {offsets = [0, 160], sizes = [128, 32], strides = [1, 1]} : vector<128x256xf32> to vector<128x32xf32>
    %368 = arith.truncf %367 : vector<128x32xf32> to vector<128x32xbf16>
    %369 = vector.shape_cast %368 : vector<128x32xbf16> to vector<8x16x32xbf16>
    "tpu.trace_start"() <{level = 10 : i32, message = "bqd,bkd->bqk"}> : () -> ()
    %cst_80 = arith.constant dense<0.000000e+00> : vector<8x16x16xf32>
    %370 = tpu.matmul %363, %366, %cst_80 {dimension_numbers = #tpu.dot_dimension_numbers<[2], [2], [1], [1], [0, 0, 0, 1, 1, 1], [0], [0]>} : vector<8x16x32xbf16>, vector<8x16x32xbf16>, vector<8x16x16xf32> -> vector<8x16x16xf32>
    "tpu.trace_stop"() : () -> ()
    %cst_81 = arith.constant 0.176776692 : f32
    %371 = vector.broadcast %cst_81 : f32 to vector<8x16x16xf32>
    %372 = arith.mulf %370, %371 : vector<8x16x16xf32>
    %373 = arith.addf %372, %334 : vector<8x16x16xf32>
    %cst_82 = arith.constant dense<0xFF800000> : vector<8x16xf32>
    %374 = vector.multi_reduction <maximumf>, %373, %cst_82 [2] : vector<8x16x16xf32> to vector<8x16xf32>
    %375 = vector.shape_cast %374 : vector<8x16xf32> to vector<8x16x1xf32>
    %376 = vector.broadcast %375 : vector<8x16x1xf32> to vector<8x16x16xf32>
    %377 = arith.subf %373, %376 : vector<8x16x16xf32>
    %378 = math.exp %377 : vector<8x16x16xf32>
    %cst_83 = arith.constant dense<0.000000e+00> : vector<8x16xf32>
    %379 = vector.multi_reduction <add>, %378, %cst_83 [2] : vector<8x16x16xf32> to vector<8x16xf32>
    %380 = vector.shape_cast %379 : vector<8x16xf32> to vector<8x16x1xf32>
    %381 = tpu.reciprocal %380 {approx = true} : vector<8x16x1xf32> -> vector<8x16x1xf32>
    %382 = vector.broadcast %381 : vector<8x16x1xf32> to vector<8x16x16xf32>
    %383 = arith.mulf %378, %382 : vector<8x16x16xf32>
    %384 = arith.truncf %383 : vector<8x16x16xf32> to vector<8x16x16xbf16>
    "tpu.trace_start"() <{level = 10 : i32, message = "bqk,bkd->bqd"}> : () -> ()
    %cst_84 = arith.constant dense<0.000000e+00> : vector<8x16x32xf32>
    %385 = tpu.matmul %384, %369, %cst_84 {dimension_numbers = #tpu.dot_dimension_numbers<[2], [1], [1], [2], [0, 0, 0, 1, 1, 2], [0], [0]>} : vector<8x16x16xbf16>, vector<8x16x32xbf16>, vector<8x16x32xf32> -> vector<8x16x32xf32>
    "tpu.trace_stop"() : () -> ()
    %386 = vector.shape_cast %385 : vector<8x16x32xf32> to vector<128x32xf32>
    %387 = tpu.concatenate %360, %386 in 1 : vector<128x32xf32>, vector<128x32xf32> -> vector<128x64xf32>
    %388 = arith.truncf %387 : vector<128x64xf32> to vector<128x64xbf16>
    %cst_85 = arith.constant dense<0.000000e+00> : vector<128x64xf32>
    %389 = tpu.matmul %388, %295, %cst_85 {dimension_numbers = #tpu.dot_dimension_numbers<[1], [0], [0], [1], [0, 0, 1, 1], [], []>} : vector<128x64xbf16>, vector<64x64xbf16>, vector<128x64xf32> -> vector<128x64xf32>
    %390 = arith.addf %287, %389 : vector<128x64xf32>
    %391 = vector.broadcast %303 : vector<1x64xf32> to vector<128x64xf32>
    %392 = arith.addf %390, %391 : vector<128x64xf32>
    %cst_86 = arith.constant dense<0.000000e+00> : vector<128xf32>
    %393 = vector.multi_reduction <add>, %392, %cst_86 [1] : vector<128x64xf32> to vector<128xf32>
    %394 = vector.shape_cast %393 : vector<128xf32> to vector<128x1xf32>
    %cst_87 = arith.constant 6.400000e+01 : f32
    %395 = vector.broadcast %cst_87 : f32 to vector<128x1xf32>
    %396 = arith.divf %394, %395 : vector<128x1xf32>
    %397 = vector.broadcast %396 : vector<128x1xf32> to vector<128x64xf32>
    %398 = arith.subf %392, %397 : vector<128x64xf32>
    %399 = arith.mulf %398, %398 : vector<128x64xf32>
    %cst_88 = arith.constant dense<0.000000e+00> : vector<128xf32>
    %400 = vector.multi_reduction <add>, %399, %cst_88 [1] : vector<128x64xf32> to vector<128xf32>
    %401 = vector.shape_cast %400 : vector<128xf32> to vector<128x1xf32>
    %cst_89 = arith.constant 6.400000e+01 : f32
    %402 = vector.broadcast %cst_89 : f32 to vector<128x1xf32>
    %403 = arith.divf %401, %402 : vector<128x1xf32>
    %404 = vector.broadcast %396 : vector<128x1xf32> to vector<128x64xf32>
    %405 = arith.subf %392, %404 : vector<128x64xf32>
    %cst_90 = arith.constant 9.99999974E-6 : f32
    %406 = vector.broadcast %cst_90 : f32 to vector<128x1xf32>
    %407 = arith.addf %403, %406 : vector<128x1xf32>
    %408 = math.rsqrt %407 : vector<128x1xf32>
    %409 = vector.broadcast %408 : vector<128x1xf32> to vector<128x64xf32>
    %410 = arith.mulf %405, %409 : vector<128x64xf32>
    %411 = vector.broadcast %300 : vector<1x64xf32> to vector<128x64xf32>
    %412 = arith.mulf %410, %411 : vector<128x64xf32>
    %413 = vector.broadcast %301 : vector<1x64xf32> to vector<128x64xf32>
    %414 = arith.addf %412, %413 : vector<128x64xf32>
    %415 = arith.truncf %414 : vector<128x64xf32> to vector<128x64xbf16>
    %cst_91 = arith.constant dense<0.000000e+00> : vector<128x256xf32>
    %416 = tpu.matmul %415, %296, %cst_91 {dimension_numbers = #tpu.dot_dimension_numbers<[1], [0], [0], [1], [0, 0, 1, 1], [], []>} : vector<128x64xbf16>, vector<64x256xbf16>, vector<128x256xf32> -> vector<128x256xf32>
    %417 = vector.broadcast %304 : vector<1x256xf32> to vector<128x256xf32>
    %418 = arith.addf %416, %417 : vector<128x256xf32>
    %cst_92 = arith.constant 1.702000e+00 : f32
    %419 = vector.broadcast %cst_92 : f32 to vector<128x256xf32>
    %420 = arith.mulf %419, %418 : vector<128x256xf32>
    %421 = arith.negf %420 : vector<128x256xf32>
    %422 = math.exp %421 : vector<128x256xf32>
    %cst_93 = arith.constant 1.000000e+00 : f32
    %423 = vector.broadcast %cst_93 : f32 to vector<128x256xf32>
    %424 = arith.addf %423, %422 : vector<128x256xf32>
    %425 = arith.divf %423, %424 : vector<128x256xf32>
    %426 = arith.mulf %418, %425 : vector<128x256xf32>
    %427 = arith.truncf %426 : vector<128x256xf32> to vector<128x256xbf16>
    %cst_94 = arith.constant dense<0.000000e+00> : vector<128x64xf32>
    %428 = tpu.matmul %427, %297, %cst_94 {dimension_numbers = #tpu.dot_dimension_numbers<[1], [0], [0], [1], [0, 0, 1, 1], [], []>} : vector<128x256xbf16>, vector<256x64xbf16>, vector<128x64xf32> -> vector<128x64xf32>
    %429 = vector.broadcast %305 : vector<1x64xf32> to vector<128x64xf32>
    %430 = arith.addf %428, %429 : vector<128x64xf32>
    %431 = arith.addf %392, %430 : vector<128x64xf32>
    %432 = vector.extract_strided_slice %0 {offsets = [12, 0], sizes = [1, 64], strides = [1, 1]} : vector<40x256xf32> to vector<1x64xf32>
    %433 = vector.extract_strided_slice %0 {offsets = [13, 0], sizes = [1, 64], strides = [1, 1]} : vector<40x256xf32> to vector<1x64xf32>
    %cst_95 = arith.constant dense<0.000000e+00> : vector<128xf32>
    %434 = vector.multi_reduction <add>, %431, %cst_95 [1] : vector<128x64xf32> to vector<128xf32>
    %435 = vector.shape_cast %434 : vector<128xf32> to vector<128x1xf32>
    %cst_96 = arith.constant 6.400000e+01 : f32
    %436 = vector.broadcast %cst_96 : f32 to vector<128x1xf32>
    %437 = arith.divf %435, %436 : vector<128x1xf32>
    %438 = vector.broadcast %437 : vector<128x1xf32> to vector<128x64xf32>
    %439 = arith.subf %431, %438 : vector<128x64xf32>
    %440 = arith.mulf %439, %439 : vector<128x64xf32>
    %cst_97 = arith.constant dense<0.000000e+00> : vector<128xf32>
    %441 = vector.multi_reduction <add>, %440, %cst_97 [1] : vector<128x64xf32> to vector<128xf32>
    %442 = vector.shape_cast %441 : vector<128xf32> to vector<128x1xf32>
    %cst_98 = arith.constant 6.400000e+01 : f32
    %443 = vector.broadcast %cst_98 : f32 to vector<128x1xf32>
    %444 = arith.divf %442, %443 : vector<128x1xf32>
    %445 = vector.broadcast %437 : vector<128x1xf32> to vector<128x64xf32>
    %446 = arith.subf %431, %445 : vector<128x64xf32>
    %cst_99 = arith.constant 9.99999974E-6 : f32
    %447 = vector.broadcast %cst_99 : f32 to vector<128x1xf32>
    %448 = arith.addf %444, %447 : vector<128x1xf32>
    %449 = math.rsqrt %448 : vector<128x1xf32>
    %450 = vector.broadcast %449 : vector<128x1xf32> to vector<128x64xf32>
    %451 = arith.mulf %446, %450 : vector<128x64xf32>
    %452 = vector.broadcast %432 : vector<1x64xf32> to vector<128x64xf32>
    %453 = arith.mulf %451, %452 : vector<128x64xf32>
    %454 = vector.broadcast %433 : vector<1x64xf32> to vector<128x64xf32>
    %455 = arith.addf %453, %454 : vector<128x64xf32>
    %c1280 = arith.constant 1280 : index
    %c0_100 = arith.constant 0 : index
    %456 = vector.load %arg1[%c1280, %c0_100] : memref<1296x256xbf16, #tpu.memory_space<vmem>>, vector<8x128xbf16>
    %457 = arith.truncf %455 : vector<128x64xf32> to vector<128x64xbf16>
    %cst_101 = arith.constant dense<0.000000e+00> : vector<8x64xf32>
    %458 = tpu.matmul %456, %457, %cst_101 {dimension_numbers = #tpu.dot_dimension_numbers<[1], [0], [0], [1], [0, 0, 1, 1], [], []>} : vector<8x128xbf16>, vector<128x64xbf16>, vector<8x64xf32> -> vector<8x64xf32>
    %459 = arith.truncf %458 : vector<8x64xf32> to vector<8x64xbf16>
    %c1152 = arith.constant 1152 : index
    %c0_102 = arith.constant 0 : index
    %460 = vector.load %arg1[%c1152, %c0_102] : memref<1296x256xbf16, #tpu.memory_space<vmem>>, vector<64x64xbf16>
    %cst_103 = arith.constant dense<0.000000e+00> : vector<8x64xf32>
    %461 = tpu.matmul %459, %460, %cst_103 {dimension_numbers = #tpu.dot_dimension_numbers<[1], [0], [0], [1], [0, 0, 1, 1], [], []>} : vector<8x64xbf16>, vector<64x64xbf16>, vector<8x64xf32> -> vector<8x64xf32>
    %462 = arith.mulf %207, %207 : vector<2x64xf32>
    %cst_104 = arith.constant dense<0.000000e+00> : vector<2xf32>
    %463 = vector.multi_reduction <add>, %462, %cst_104 [1] : vector<2x64xf32> to vector<2xf32>
    %464 = vector.shape_cast %463 : vector<2xf32> to vector<2x1xf32>
    %cst_105 = arith.constant 9.99999996E-13 : f32
    %465 = vector.broadcast %cst_105 : f32 to vector<2x1xf32>
    %466 = arith.addf %464, %465 : vector<2x1xf32>
    %467 = math.rsqrt %466 : vector<2x1xf32>
    %468 = vector.broadcast %467 : vector<2x1xf32> to vector<2x64xf32>
    %469 = arith.mulf %207, %468 : vector<2x64xf32>
    %470 = arith.mulf %461, %461 : vector<8x64xf32>
    %cst_106 = arith.constant dense<0.000000e+00> : vector<8xf32>
    %471 = vector.multi_reduction <add>, %470, %cst_106 [1] : vector<8x64xf32> to vector<8xf32>
    %472 = vector.shape_cast %471 : vector<8xf32> to vector<8x1xf32>
    %cst_107 = arith.constant 9.99999996E-13 : f32
    %473 = vector.broadcast %cst_107 : f32 to vector<8x1xf32>
    %474 = arith.addf %472, %473 : vector<8x1xf32>
    %475 = math.rsqrt %474 : vector<8x1xf32>
    %476 = vector.broadcast %475 : vector<8x1xf32> to vector<8x64xf32>
    %477 = arith.mulf %461, %476 : vector<8x64xf32>
    %c0_108 = arith.constant 0 : index
    %c0_109 = arith.constant 0 : index
    %478 = memref.load %arg5[%c0_108, %c0_109] : memref<1x1xf32, #tpu.memory_space<smem>>
    %479 = math.exp %478 : f32
    %480 = arith.truncf %469 : vector<2x64xf32> to vector<2x64xbf16>
    %481 = arith.truncf %477 : vector<8x64xf32> to vector<8x64xbf16>
    %cst_110 = arith.constant dense<0.000000e+00> : vector<2x8xf32>
    %482 = tpu.matmul %480, %481, %cst_110 {dimension_numbers = #tpu.dot_dimension_numbers<[1], [1], [0], [0], [0, 0, 1, 0], [], []>} : vector<2x64xbf16>, vector<8x64xbf16>, vector<2x8xf32> -> vector<2x8xf32>
    %483 = vector.broadcast %479 : f32 to vector<2x8xf32>
    %484 = arith.mulf %483, %482 : vector<2x8xf32>
    %c0_111 = arith.constant 0 : index
    %c0_112 = arith.constant 0 : index
    %485 = vector.load %arg6[%c0_111, %c0_112] : memref<2x8xf32, #tpu.memory_space<vmem>>, vector<2x8xf32>
    tpu.vector_store %arg6[%c0_111, %c0_112], %484 {strides = array<i32>} : memref<2x8xf32, #tpu.memory_space<vmem>>, vector<2x8xf32>,
    return
  }
}

</mosaic_0001>

<bundles_post_ra>
// kernel: custom_clip_forward.1
= control target key start
LH: loop header
LB: loop body
LE: loop exit
PB: predicated region body
PF: predicated region fallthrough
CT: control target
= control target key end

     0   :  { %v10275_v0 = vmov 0   ;;  %vm139_vm0 = vcmask 523264   ;;  %s10268_s0 = inlined_call_operand.vmem [shape: bf16[16,192], index: 0, kind: input, shape index: {}]   ;;  %s10269_s1 = inlined_call_operand.vmem [shape: bf16[1296,256], index: 1, kind: input, shape index: {}]   ;;  %s10270_s2 = inlined_call_operand.vmem [shape: f32[40,256], index: 2, kind: input, shape index: {}]   ;;  %s10271_s3 = inlined_call_operand.vmem [shape: f32[8,16,64], index: 3, kind: input, shape index: {}]   ;;  %s10272_s4 = inlined_call_operand.vmem [shape: f32[144,64], index: 4, kind: input, shape index: {}]   ;;  %s10273_s5 = inlined_call_operand.<no memory space> [shape: f32[1,1], index: 5, kind: input, shape index: {}]   ;;  %s10274_s6 = inlined_call_operand.hbm [shape: f32[2,8], index: 6, kind: output, shape index: {}]  }
   0x1   :  { %143 = vmatprep.subr.bf16.mxu0 %v10275_v0  ;;  %v7112_v1 = vld [vmem:[%s10269_s1] ss:$8 sps:$4 sm:$0xff]   ;;  %407 = vmatprep.mubr.bf16.mxu1 %v10275_v0  ;;  %v7113_v2 = vld [vmem:[%s10269_s1 + $0x10] ss:$8 sps:$4 sm:$0xff]   ;;  %v7126_v6 = vld [vmem:[%s10268_s0 + $0x4] ss:$8 sps:$4 sm:$0xff]  }
   0x2   :  { %7071 = vset.pattern.permute.xlu1 %v10275_v0  ;;  %7070 = vset.pattern.permute.xlu0 %v10275_v0  ;;  %v7114_v3 = vld [vmem:[%s10269_s1 + $0x20] ss:$8 sps:$4 sm:$0xff]   ;;  %v7115_v4 = vld [vmem:[%s10269_s1 + $0x30] ss:$8 sps:$4 sm:$0xff]  }
   0x3   :  { %144 = vmatpush1.bf16.msra.mxu0 %v7112_v1  ;;  %v7116_v5 = vld [vmem:[%s10269_s1 + $0x40] ss:$8 sps:$4 sm:$0xff]   ;;  %6295 = vmatprep.mubr.msk.bf16.mxu0 %vm139_vm0, %v7126_v6  ;;  %v7117_v7 = vld [vmem:[%s10269_s1 + $0x50] ss:$8 sps:$4 sm:$0xff]  }
   0x4   :  { %145 = vmatprep.subr.bf16.mxu0 %v10275_v0  ;;  %v7118_v8 = vld [vmem:[%s10269_s1 + $0x60] ss:$8 sps:$4 sm:$0xff]   ;;  %v7119_v9 = vld [vmem:[%s10269_s1 + $0x70] ss:$8 sps:$4 sm:$0xff]  }
   0x5   :  { %v7120_v10 = vld [vmem:[%s10269_s1 + $0x80] ss:$8 sps:$4 sm:$0xff]   ;;  %v7121_v11 = vld [vmem:[%s10269_s1 + $0x90] ss:$8 sps:$4 sm:$0xff]  }
   0x6   :  { %v7122_v12 = vld [vmem:[%s10269_s1 + $0xa0] ss:$8 sps:$4 sm:$0xff]   ;;  %v7123_v13 = vld [vmem:[%s10269_s1 + $0xb0] ss:$8 sps:$4 sm:$0xff]  }
   0x7   :  { %146 = vmatpush1.bf16.msra.mxu0 %v7113_v2  ;;  %v7124_v14 = vld [vmem:[%s10268_s0] ss:$8 sps:$4 sm:$0xff]  }
   0x8   :  { %147 = vmatprep.subr.bf16.mxu0 %v10275_v0 }
   0xb   :  { %148 = vmatpush1.bf16.msra.mxu0 %v7114_v3 }
   0xc   :  { %149 = vmatprep.subr.bf16.mxu0 %v10275_v0 }
   0xf   :  { %150 = vmatpush1.bf16.msra.mxu0 %v7115_v4 }
  0x10   :  { %151 = vmatprep.subr.bf16.mxu0 %v10275_v0 }
  0x13   :  { %152 = vmatpush1.bf16.msra.mxu0 %v7116_v5 }
  0x14   :  { %153 = vmatprep.subr.bf16.mxu0 %v10275_v0 }
  0x17   :  { %154 = vmatpush1.bf16.msra.mxu0 %v7117_v7 }
  0x18   :  { %155 = vmatprep.subr.bf16.mxu0 %v10275_v0 }
  0x1b   :  { %156 = vmatpush1.bf16.msra.mxu0 %v7118_v8 }
  0x1c   :  { %157 = vmatprep.subr.bf16.mxu0 %v10275_v0 }
  0x1f   :  { %158 = vmatpush1.bf16.msra.mxu0 %v7119_v9 }
  0x20   :  { %159 = vmatprep.subr.bf16.mxu0 %v10275_v0 }
  0x23   :  { %160 = vmatpush1.bf16.msra.mxu0 %v7120_v10 }
  0x24   :  { %161 = vmatprep.subr.bf16.mxu0 %v10275_v0 }
  0x27   :  { %162 = vmatpush1.bf16.msra.mxu0 %v7121_v11 }
  0x28   :  { %163 = vmatprep.subr.bf16.mxu0 %v10275_v0 }
  0x2b   :  { %164 = vmatpush1.bf16.msra.mxu0 %v7122_v12 }
  0x2c   :  { %165 = vmatprep.subr.bf16.mxu0 %v10275_v0 }
  0x2f   :  { %166 = vmatpush1.bf16.msra.mxu0 %v7123_v13 }
  0x32   :  { %176 = vmatmul.mubr.bf16.vlgmr.msra.gmra.mrb[0].mxu0 %v7124_v14 }
  0x33   :  { %12 = vsyncpa [#allocation4], 0  ;;  %v26_v15 = vld [vmem:[%s10270_s2] sm:$0xff]  ;;  %v213_v36 = vlaneseq  ;;  %v27_v43 = vld [vmem:[%s10270_s2 + $0x10] sm:$0xff]  ;;  %vm7687_vm1 = vmmov 0   ;;  %s7688_s24 = smov 64  }
  0x34   :  { %v7127_v4 = vld [vmem:[%s10269_s1 + $0xc4] ss:$8 sps:$4 sm:$0xff]   ;;  %v7129_v5 = vld [vmem:[%s10269_s1 + $0xc0] ss:$8 sps:$4 sm:$0xff]   ;;  %v7130_v6 = vld [vmem:[%s10269_s1 + $0xd4] ss:$8 sps:$4 sm:$0xff]  }
  0x35   :  { %v7794_v40 = vshrl.u32 %v213_v36, 7  ;;  %375 = vmatprep.subr.bf16.mxu1 %v7127_v4  ;;  %v7132_v7 = vld [vmem:[%s10269_s1 + $0xd0] ss:$8 sps:$4 sm:$0xff]   ;;  %v7133_v8 = vld [vmem:[%s10269_s1 + $0xe4] ss:$8 sps:$4 sm:$0xff]   ;;  %vm432_vm2 = vcmask 261120  }
  0x36   :  { %376 = vmatpush1.bf16.msra.mxu1 %v7129_v5  ;;  %v7135_v9 = vld [vmem:[%s10269_s1 + $0xe0] ss:$8 sps:$4 sm:$0xff]   ;;  %v7136_v10 = vld [vmem:[%s10269_s1 + $0xf4] ss:$8 sps:$4 sm:$0xff]   ;;  %v7138_v11 = vld [vmem:[%s10269_s1 + $0xf0] ss:$8 sps:$4 sm:$0xff]  }
  0x37   :  { %v7797_v42 = vsub.s32 0, %v7794_v40  ;;  %v7803_v44 = vsub.s32 1, %v7794_v40  ;;  %377 = vmatprep.subr.bf16.mxu1 %v7130_v6  ;;  %vm559_vm3 = vcmask 1043456   ;;  %vm531_vm5 = vcmask 64512   ;;  %s7689_s25 = smov 32   ;;  %s7690_s26 = smov 96  }
  0x38   :  { %vm1273_vm6 = vcmask 1041409   ;;  %vm1583_vm7 = vcmask 1042434   ;;  %vm1585_vm8 = vcmask 1043459   ;;  %vm1587_vm9 = vcmask 1044484   ;;  %s7692_s7 = smov [#allocation3]  }
  0x39   :  { %10292 = vst [vmem:[#allocation6_spill] sm:$0xff] %v7803_v44  ;;  %v216_v45 = vrot.slane %v27_v43, %v7797_v42  ;;  %v222_v48 = vrot.slane %v27_v43, %v7803_v44  ;;  %vm1589_vm10 = vcmask 1045509   ;;  %vm1591_vm11 = vcmask 1046534   ;;  %s6273_s8 = sshll.u32 %s7692_s7, 4  ;;  %s6274_s8 = int_to_ptr.vmem [resolvable:$true] %s6273_s8 }
  0x3a   :  { %378 = vmatpush1.bf16.msra.mxu1 %v7132_v7  ;;  %vm1593_vm12 = vcmask 1047559   ;;  %vm1276_vm13 = vcmask 517120   ;;  %vm2046_vm14 = vcmp.eq.s32.totalorder %v7794_v40, 1  ;;  %vm2060_vm15 = vcmp.eq.s32.totalorder %v7794_v40, 2  ;;  %s7661_s9 = scalar_lea.vmem %s6274_s8, 32  ;;  %p7666_p1 = scmp.lt.s32.totalorder %s6274_s8, %s6274_s8 }
  0x3b   :  { %379 = vmatprep.subr.bf16.mxu1 %v7133_v8  ;;  %p7662_p0 = scmp.ne.s32.totalorder %s6274_s8, %s7661_s9  ;;  %p7667_p2 = scmp.lt.s32.totalorder %s7661_s9, %s7661_s9 }
  0x3d   :  { %p7668_p3 = por %p7667_p2, %p7666_p1 }
  0x3e   :  { %380 = vmatpush1.bf16.msra.mxu1 %v7135_v9 }
  0x3f   :  { %381 = vmatprep.subr.bf16.mxu1 %v7136_v10  ;;  %p7669_p4 = pnand %p7668_p3, %p7662_p0 }
  0x42   :  { %382 = vmatpush1.bf16.msra.mxu1 %v7138_v11 }
 0x105   :  { %v177_v16 = vpop.f32.mrb[0].mxu0 }
 0x106   :  { %v184_v17 = vadd.f32 %v177_v16, %v26_v15  ;;  %v179_v18 = vpop.f32.mrb[1].mxu0 }
 0x107   :  { %v180_v19 = vpop.f32.mrb[2].mxu0  ;;  %v7844_v18 = vsub.s32 6, %v7794_v40 }
 0x108   :  { %v185_v20 = vadd.f32 %v180_v19, %v26_v15  ;;  %v182_v21 = vpop.f32.mrb[3].mxu0  ;;  %v186_v22 = vsel %vm139_vm0, %v184_v17, 0.0 }
 0x109   :  { %187 = vadd.xlane.f32.xlu0 %v186_v22  ;;  %10293 = vst [vmem:[#allocation7_spill] sm:$0xff] %v7844_v18  ;;  %v314_v21 = vrot.slane %v27_v43, %v7844_v18  ;;  %v7848_v22 = vsub.s32 7, %v7794_v40 }
 0x10a   :  { %v189_v23 = vsel %vm139_vm0, %v185_v20, 0.0 }
 0x10d   :  { %190 = vadd.xlane.f32.xlu0 %v189_v23 }
 0x196   :  { %v188_v24 = vpop.xlane.xlu0 %187 }
 0x197   :  { %v193_v25 = vmul.f32 0.015625, %v188_v24 }
 0x199   :  { %v195_v26 = vsub.f32 %v184_v17, %v193_v25 }
 0x19a   :  { %v191_v27 = vpop.xlane.xlu0 %190 }
 0x19b   :  { %v194_v28 = vmul.f32 0.015625, %v191_v27  ;;  %v197_v29 = vmul.f32 %v195_v26, %v195_v26 }
 0x19d   :  { %v196_v30 = vsub.f32 %v185_v20, %v194_v28  ;;  %v199_v31 = vsel %vm139_vm0, %v197_v29, 0.0 }
 0x19e   :  { %200 = vadd.xlane.f32.xlu1 %v199_v31  ;;  %v10277_v31 = vmov 0.0  }
 0x19f   :  { %v198_v32 = vmul.f32 %v196_v30, %v196_v30  ;;  %6711 = vmatprep.subr.bf16.mxu1 %v10277_v31  ;;  %6735 = vmatprep.subr.bf16.mxu0 %v10277_v31 }
 0x1a0   :  { %6737 = vmatprep.mubr.msk.bf16.mxu0 %vm7687_vm1, %v10277_v31 }
 0x1a1   :  { %v202_v33 = vsel %vm139_vm0, %v198_v32, 0.0  ;;  %v7855_v32 = vsub.s32 3, %v7794_v40 }
 0x1a2   :  { %203 = vadd.xlane.f32.xlu1 %v202_v33  ;;  %v7860_v33 = vld [vmem:[%s10270_s2 + $0x30] sm:$0xff] }
 0x22b   :  { %v201_v34 = vpop.xlane.xlu1 %200 }
 0x22c   :  { %v205_v35 = vmul.f32 0.015625, %v201_v34  ;;  %v327_v34 = vrot.slane %v7860_v33, %v7855_v32 }
 0x22e   :  { %v207_v37 = vadd.f32 1e-05, %v205_v35  ;;  %v7871_v35 = vld [vmem:[%s10270_s2 + $0x38] sm:$0xff] }
 0x22f   :  { %v204_v38 = vpop.xlane.xlu1 %203 }
 0x230   :  { %7228 = vrsqrt.f32 %v207_v37  ;;  %v206_v39 = vmul.f32 0.015625, %v204_v38 }
 0x232   :  { %v208_v41 = vadd.f32 1e-05, %v206_v39 }
 0x234   :  { %7230 = vrsqrt.f32 %v208_v41  ;;  %v331_v41 = vrot.slane %v7871_v35, %v7855_v32 }
 0x23a   :  { %v7229_v46 = vpop.eup %7228 }
 0x23b   :  { %v211_v47 = vmul.f32 %v7229_v46, %v195_v26  ;;  %v320_v26 = vrot.slane %v27_v43, %v7848_v22 }
 0x23d   :  { %v217_v49 = vmul.f32 %v216_v45, %v211_v47 }
 0x23e   :  { %v7231_v50 = vpop.eup %7230 }
 0x23f   :  { %v7807_v51 = vadd.f32 %v222_v48, %v217_v49  ;;  %v212_v52 = vmul.f32 %v7231_v50, %v196_v30 }
 0x241   :  { %v285_v53 = vsel %vm139_vm0, %v7807_v51, 0.0  ;;  %v218_v54 = vmul.f32 %v216_v45, %v212_v52 }
 0x242   :  { %286 = vadd.xlane.f32.xlu0 %v285_v53 }
 0x243   :  { %v7811_v55 = vadd.f32 %v222_v48, %v218_v54 }
 0x245   :  { %v288_v56 = vsel %vm139_vm0, %v7811_v55, 0.0 }
 0x246   :  { %289 = vadd.xlane.f32.xlu1 %v288_v56 }
 0x2cf   :  { %v287_v57 = vpop.xlane.xlu0 %286 }
 0x2d0   :  { %v291_v58 = vmul.f32 0.015625, %v287_v57 }
 0x2d2   :  { %v293_v59 = vsub.f32 %v7807_v51, %v291_v58 }
 0x2d3   :  { %v290_v60 = vpop.xlane.xlu1 %289 }
 0x2d4   :  { %v292_v61 = vmul.f32 0.015625, %v290_v60  ;;  %v295_v62 = vmul.f32 %v293_v59, %v293_v59 }
 0x2d6   :  { %v294_v63 = vsub.f32 %v7811_v55, %v292_v61  ;;  %v297_v1 = vsel %vm139_vm0, %v295_v62, 0.0 }
 0x2d7   :  { %298 = vadd.xlane.f32.xlu0 %v297_v1 }
 0x2d8   :  { %v296_v2 = vmul.f32 %v294_v63, %v294_v63 }
 0x2da   :  { %v300_v3 = vsel %vm139_vm0, %v296_v2, 0.0 }
 0x2db   :  { %301 = vadd.xlane.f32.xlu1 %v300_v3 }
 0x364   :  { %v299_v12 = vpop.xlane.xlu0 %298 }
 0x365   :  { %v303_v13 = vmul.f32 0.015625, %v299_v12 }
 0x367   :  { %v305_v14 = vadd.f32 1e-05, %v303_v13 }
 0x368   :  { %v302_v15 = vpop.xlane.xlu1 %301 }
 0x369   :  { %7232 = vrsqrt.f32 %v305_v14  ;;  %v304_v16 = vmul.f32 0.015625, %v302_v15 }
 0x36b   :  { %v306_v17 = vadd.f32 1e-05, %v304_v16 }
 0x36d   :  { %7234 = vrsqrt.f32 %v306_v17 }
 0x373   :  { %v7233_v19 = vpop.eup %7232 }
 0x374   :  { %v309_v20 = vmul.f32 %v7233_v19, %v293_v59  ;;  %v7899_v59 = vand.u32 127, %v213_v36 }
 0x376   :  { %v315_v25 = vmul.f32 %v314_v21, %v309_v20  ;;  %vm227_vm4 = vcmp.ge.s32.totalorder %v7899_v59, 5 }
 0x377   :  { %v7235_v23 = vpop.eup %7234  ;;  %v7903_v61 = vsel %vm227_vm4, -1e+09, %v10277_v31  ;;  %vm2088_vm4 = vcmp.eq.s32.totalorder %v7794_v40, 4 }
 0x378   :  { %v310_v24 = vmul.f32 %v7235_v23, %v294_v63  ;;  %v321_v28 = vadd.f32 %v320_v26, %v315_v25 }
 0x37a   :  { %v316_v27 = vmul.f32 %v314_v21, %v310_v24 }
 0x37c   :  { %v322_v29 = vadd.f32 %v320_v26, %v316_v27 }
 0x37e   :  { %v323_v30 = vpack.c.bf16 %v322_v29, %v321_v28 }
 0x380   :  { %6304 = vmatmul.mubr.msk.bf16.vlgmr.msra.gmra.mrb[0].mxu1 %vm139_vm0, %v323_v30 }
 0x381   :  { %6713 = vmatprep.mubr.msk.bf16.mxu1 %vm7687_vm1, %v10277_v31 }
 0x453   :  { %v409_v37 = vpop.f32.mrb[0].mxu1 }
 0x454   :  { %v410_v38 = vadd.f32 %v409_v37, %v327_v34  ;;  %v411_v39 = vpop.f32.mrb[1].mxu1 }
 0x455   :  { %v413_v43 = vpop.f32.mrb[2].mxu1  ;;  %v412_v54 = vadd.f32 %v411_v39, %v331_v41 }
 0x456   :  { %v7875_v45 = vpack.c.bf16 %v410_v38, %v410_v38  ;;  %v414_v46 = vadd.f32 %v413_v43, %v327_v34  ;;  %v415_v47 = vpop.f32.mrb[3].mxu1 }
 0x457   :  { %v7877_v48 = vadd.f32 %v415_v47, %v331_v41  ;;  %v7890_v57 = vpack.c.bf16 %v412_v54, %v412_v54 }
 0x458   :  { %v6497_v49 = vpack.c.bf16 %v414_v46, %v414_v46  ;;  %430 = vrot.lane.b32.xlu0 %v7875_v45, %s7688_s24 }
 0x459   :  { %v561_v58 = vsel %vm559_vm3, %v7890_v57, 0  ;;  %v6499_v29 = vpack.c.bf16 %v7877_v48, %v7877_v48 }
 0x45a   :  { %479 = vrot.lane.b32.xlu1 %v6497_v49, %s7688_s24 }
 0x45b   :  { %v607_v38 = vsel %vm559_vm3, %v6499_v29, 0 }
 0x4ca   :  { %v431_v50 = vpop.permute.xlu0 %430 }
 0x4cb   :  { %v437_v52 = vsel %vm432_vm2, %v431_v50, 0 }
 0x4cc   :  { %6712 = vmatpush3.bf16.xpose.msra.mxu1 %v437_v52  ;;  %v480_v53 = vpop.permute.xlu1 %479 }
 0x4cd   :  { %6717 = vmatprep.subr.bf16.mxu1 %v10277_v31  ;;  %v485_v56 = vsel %vm432_vm2, %v480_v53, 0 }
 0x4d3   :  { %6714 = vmatmul.mubr.msk.bf16.vlgmr.msra.gmra.mrb[4].mxu1 %vm432_vm2, %v7875_v45 }
 0x4d4   :  { %6718 = vmatpush3.bf16.xpose.msra.mxu1 %v485_v56  ;;  %6719 = vmatprep.mubr.msk.bf16.mxu1 %vm7687_vm1, %v10277_v31 }
 0x4d5   :  { %6723 = vmatprep.subr.bf16.mxu1 %v10277_v31 }
 0x4db   :  { %6720 = vmatmul.mubr.msk.bf16.vlgmr.msra.gmra.mrb[8].mxu1 %vm432_vm2, %v6497_v49 }
 0x4dc   :  { %6724 = vmatpush3.bf16.msra.mxu1 %v561_v58  ;;  %6725 = vmatprep.mubr.msk.bf16.mxu1 %vm7687_vm1, %v10277_v31 }
 0x4dd   :  { %6729 = vmatprep.subr.bf16.mxu1 %v10277_v31 }
 0x5a6   :  { %v473_v60 = vpop.f32.mrb[4].mxu1 }
 0x5a7   :  { %v527_v62 = vmul.f32 0.17677669, %v473_v60  ;;  %v6715_v63 = vpop.f32.mrb[5].mxu1 }
 0x5a8   :  { %v476_v1 = vpop.f32.mrb[6].mxu1 }
 0x5a9   :  { %v6716_v2 = vpop.f32.mrb[7].mxu1  ;;  %v529_v3 = vadd.f32 %v527_v62, %v7903_v61 }
 0x5ab   :  { %v532_v4 = vsel %vm531_vm5, %v529_v3, -inf }
 0x5ac   :  { %533 = vmax.xlane.f32.xlu1 %v532_v4 }
 0x5ae   :  { %v521_v5 = vpop.f32.mrb[8].mxu1 }
 0x5af   :  { %v528_v6 = vmul.f32 0.17677669, %v521_v5  ;;  %v6721_v36 = vpop.f32.mrb[9].mxu1 }
 0x5b0   :  { %v524_v7 = vpop.f32.mrb[10].mxu1 }
 0x5b1   :  { %v6722_v8 = vpop.f32.mrb[11].mxu1  ;;  %v530_v9 = vadd.f32 %v528_v6, %v7903_v61 }
 0x5b3   :  { %v535_v10 = vsel %vm531_vm5, %v530_v9, -inf }
 0x5b4   :  { %536 = vmax.xlane.f32.xlu0 %v535_v10 }
 0x5bd   :  { %701 = vrot.lane.b32.xlu1 %v6497_v49, %s7689_s25 }
 0x639   :  { %v534_v11 = vpop.xlane.xlu1 %533 }
 0x63a   :  { %v538_v12 = vsub.f32 %v529_v3, %v534_v11 }
 0x63c   :  { %v540_v13 = vmul.f32 1.442695, %v538_v12 }
 0x63d   :  { %v702_v24 = vpop.permute.xlu1 %701 }
 0x63e   :  { %7236 = vpow2.f32 %v540_v13 }
 0x641   :  { %v537_v14 = vpop.xlane.xlu0 %536 }
 0x642   :  { %v539_v15 = vsub.f32 %v530_v9, %v537_v14 }
 0x644   :  { %v542_v16 = vmul.f32 1.442695, %v539_v15 }
 0x646   :  { %7238 = vpow2.f32 %v542_v16 }
 0x648   :  { %v7237_v17 = vpop.eup %7236 }
 0x649   :  { %v544_v19 = vsel %vm531_vm5, %v7237_v17, 0.0 }
 0x64a   :  { %545 = vadd.xlane.f32.xlu0 %v544_v19 }
 0x650   :  { %v7239_v20 = vpop.eup %7238 }
 0x651   :  { %v547_v21 = vsel %vm531_vm5, %v7239_v20, 0.0 }
 0x652   :  { %548 = vadd.xlane.f32.xlu1 %v547_v21 }
 0x660   :  { %651 = vrot.lane.b32.xlu0 %v7875_v45, %s7689_s25 }
 0x663   :  { %649 = vrot.lane.b32.xlu1 %v7875_v45, %s7690_s26  ;;  %v707_v45 = vsel %vm432_vm2, %v702_v24, 0 }
 0x667   :  { %699 = vrot.lane.b32.xlu1 %v6497_v49, %s7690_s26 }
 0x6d7   :  { %v546_v23 = vpop.xlane.xlu0 %545 }
 0x6d8   :  { %7240 = vrcp.f32 %v546_v23 }
 0x6db   :  { %v652_v25 = vpop.permute.xlu0 %651 }
 0x6dc   :  { %v657_v26 = vsel %vm432_vm2, %v652_v25, 0 }
 0x6dd   :  { %6736 = vmatpush3.bf16.xpose.msra.mxu0 %v657_v26 }
 0x6de   :  { %6747 = vmatprep.subr.bf16.mxu0 %v10277_v31 }
 0x6df   :  { %v549_v27 = vpop.xlane.xlu1 %548 }
 0x6e0   :  { %7242 = vrcp.f32 %v549_v27 }
 0x6e2   :  { %v7241_v28 = vpop.eup %7240 }
 0x6e3   :  { %v650_v30 = vpop.permute.xlu1 %649  ;;  %v552_v34 = vmul.f32 %v7241_v28, %v7237_v17 }
 0x6e4   :  { %6738 = vmatmul.mubr.msk.bf16.vlgmr.msra.gmra.mrb[4].mxu0 %vm432_vm2, %v650_v30 }
 0x6e5   :  { %v554_v37 = vpack.c.bf16 %v552_v34, %v552_v34  ;;  %6749 = vmatprep.mubr.msk.bf16.mxu0 %vm7687_vm1, %v10277_v31 }
 0x6e7   :  { %6726 = vmatmul.mubr.msk.bf16.vlgmr.msra.gmra.mrb[12].mxu1 %vm531_vm5, %v554_v37  ;;  %v700_v46 = vpop.permute.xlu1 %699  ;;  %v7139_v37 = vld [vmem:[%s10269_s1 + $0x100] ss:$8 sps:$4 sm:$0xff]  }
 0x6e8   :  { %6730 = vmatpush3.bf16.msra.mxu1 %v607_v38  ;;  %6731 = vmatprep.mubr.msk.bf16.mxu1 %vm7687_vm1, %v10277_v31  ;;  %v7140_v38 = vld [vmem:[%s10269_s1 + $0x110] ss:$8 sps:$4 sm:$0xff]  }
 0x6e9   :  { %6741 = vmatprep.subr.bf16.mxu1 %v10277_v31 }
 0x6ea   :  { %v7243_v39 = vpop.eup %7242 }
 0x6eb   :  { %v553_v41 = vmul.f32 %v7243_v39, %v7239_v20  ;;  %v7141_v39 = vld [vmem:[%s10269_s1 + $0x120] ss:$8 sps:$4 sm:$0xff]  }
 0x6ed   :  { %v555_v43 = vpack.c.bf16 %v553_v41, %v553_v41  ;;  %v7142_v41 = vld [vmem:[%s10269_s1 + $0x130] ss:$8 sps:$4 sm:$0xff]  }
 0x6ef   :  { %6732 = vmatmul.mubr.msk.bf16.vlgmr.msra.gmra.mrb[16].mxu1 %vm531_vm5, %v555_v43 }
 0x6f0   :  { %6743 = vmatprep.mubr.msk.bf16.mxu1 %vm7687_vm1, %v10277_v31 }
 0x6f1   :  { %6742 = vmatpush3.bf16.xpose.msra.mxu1 %v707_v45 }
 0x6f2   :  { %6753 = vmatprep.subr.bf16.mxu1 %v10277_v31 }
 0x6f8   :  { %6744 = vmatmul.mubr.msk.bf16.vlgmr.msra.gmra.mrb[20].mxu1 %vm432_vm2, %v700_v46 }
 0x6f9   :  { %6755 = vmatprep.mubr.msk.bf16.mxu1 %vm7687_vm1, %v10277_v31 }
 0x7b7   :  { %v693_v47 = vpop.f32.mrb[4].mxu0 }
 0x7b8   :  { %v749_v48 = vmul.f32 0.17677669, %v693_v47  ;;  %v6739_v49 = vpop.f32.mrb[5].mxu0 }
 0x7b9   :  { %v696_v50 = vpop.f32.mrb[6].mxu0 }
 0x7ba   :  { %v7937_v52 = vpop.f32.mrb[12].mxu1  ;;  %v6740_v53 = vpop.f32.mrb[7].mxu0  ;;  %v751_v54 = vadd.f32 %v749_v48, %v7903_v61 }
 0x7bb   :  { %v6727_v56 = vpop.f32.mrb[13].mxu1 }
 0x7bc   :  { %v600_v58 = vpop.f32.mrb[14].mxu1  ;;  %v753_v60 = vsel %vm531_vm5, %v751_v54, -inf }
 0x7bd   :  { %754 = vmax.xlane.f32.xlu0 %v753_v60  ;;  %v6728_v62 = vpop.f32.mrb[15].mxu1 }
 0x7c2   :  { %v7941_v63 = vpop.f32.mrb[16].mxu1 }
 0x7c3   :  { %v6733_v1 = vpop.f32.mrb[17].mxu1 }
 0x7c4   :  { %v646_v2 = vpop.f32.mrb[18].mxu1 }
 0x7c5   :  { %v6734_v3 = vpop.f32.mrb[19].mxu1 }
 0x7c6   :  { %v7982_v3 = vld [vmem:[%s10270_s2 + $0x20] sm:$0xff] }
 0x7cb   :  { %v743_v4 = vpop.f32.mrb[20].mxu1 }
 0x7cc   :  { %v750_v5 = vmul.f32 0.17677669, %v743_v4  ;;  %v6745_v6 = vpop.f32.mrb[21].mxu1  ;;  %v957_v4 = vrot.slane %v7982_v3, %v7844_v18 }
 0x7cd   :  { %v746_v36 = vpop.f32.mrb[22].mxu1 }
 0x7ce   :  { %v6746_v7 = vpop.f32.mrb[23].mxu1  ;;  %v752_v8 = vadd.f32 %v750_v5, %v7903_v61 }
 0x7d0   :  { %v756_v9 = vsel %vm531_vm5, %v752_v8, -inf }
 0x7d1   :  { %757 = vmax.xlane.f32.xlu1 %v756_v9 }
 0x7e2   :  { %825 = vrot.lane.b32.xlu1 %v6499_v29, %s7690_s26 }
 0x84a   :  { %v755_v10 = vpop.xlane.xlu0 %754 }
 0x84b   :  { %v759_v11 = vsub.f32 %v751_v54, %v755_v10 }
 0x84d   :  { %v761_v12 = vmul.f32 1.442695, %v759_v11 }
 0x84f   :  { %7244 = vpow2.f32 %v761_v12  ;;  %v7691_v12 = vmov 1966171168  }
 0x859   :  { %v7245_v13 = vpop.eup %7244 }
 0x85a   :  { %v765_v14 = vsel %vm531_vm5, %v7245_v13, 0.0 }
 0x85b   :  { %766 = vadd.xlane.f32.xlu0 %v765_v14 }
 0x85e   :  { %v758_v15 = vpop.xlane.xlu1 %757 }
 0x85f   :  { %v760_v16 = vsub.f32 %v752_v8, %v758_v15 }
 0x861   :  { %v763_v17 = vmul.f32 1.442695, %v760_v16 }
 0x862   :  { %v826_v19 = vpop.permute.xlu1 %825 }
 0x863   :  { %7246 = vpow2.f32 %v763_v17  ;;  %v831_v61 = vsel %vm559_vm3, %v826_v19, 0 }
 0x864   :  { %6754 = vmatpush3.bf16.msra.mxu1 %v831_v61 }
 0x86d   :  { %v7247_v20 = vpop.eup %7246 }
 0x86e   :  { %v768_v21 = vsel %vm531_vm5, %v7247_v20, 0.0 }
 0x86f   :  { %769 = vadd.xlane.f32.xlu0 %v768_v21 }
 0x885   :  { %777 = vrot.lane.b32.xlu0 %v7890_v57, %s7690_s26 }
 0x8e8   :  { %v767_v23 = vpop.xlane.xlu0 %766 }
 0x8e9   :  { %7248 = vrcp.f32 %v767_v23 }
 0x8f3   :  { %v7249_v24 = vpop.eup %7248 }
 0x8f4   :  { %v773_v26 = vmul.f32 %v7249_v24, %v7245_v13  ;;  %v1423_v13 = vunpack.c.l.s4 %v7691_v12 }
 0x8f6   :  { %v775_v29 = vpack.c.bf16 %v773_v26, %v773_v26 }
 0x8fc   :  { %v770_v25 = vpop.xlane.xlu0 %769 }
 0x8fd   :  { %7250 = vrcp.f32 %v770_v25 }
 0x900   :  { %v778_v27 = vpop.permute.xlu0 %777 }
 0x901   :  { %v783_v28 = vsel %vm559_vm3, %v778_v27, 0 }
 0x902   :  { %6748 = vmatpush3.bf16.msra.mxu0 %v783_v28  ;;  %v1414_v28 = vld [vmem:[%s10272_s4 + $0x60] sm:$0xff] }
 0x903   :  { %6759 = vmatprep.subr.bf16.mxu0 %v10277_v31 }
 0x905   :  { %6750 = vmatmul.mubr.msk.bf16.vlgmr.msra.gmra.mrb[8].mxu0 %vm531_vm5, %v775_v29 }
 0x906   :  { %6767 = vmatprep.mubr.msk.bf16.mxu0 %vm7687_vm1, %v10277_v31  ;;  %6760 = vmatpush3.bf16.msra.mxu0 %v7139_v37 }
 0x907   :  { %v7251_v30 = vpop.eup %7250  ;;  %6761 = vmatprep.subr.bf16.mxu0 %v10277_v31 }
 0x908   :  { %v774_v57 = vmul.f32 %v7251_v30, %v7247_v20  ;;  %v1412_v20 = vld [vmem:[%s10272_s4 + $0x50] sm:$0xff] }
 0x90a   :  { %v776_v34 = vpack.c.bf16 %v774_v57, %v774_v57  ;;  %6762 = vmatpush3.bf16.msra.mxu0 %v7140_v38 }
 0x90b   :  { %6763 = vmatprep.subr.bf16.mxu0 %v10277_v31 }
 0x90c   :  { %6756 = vmatmul.mubr.msk.bf16.vlgmr.msra.gmra.mrb[24].mxu1 %vm531_vm5, %v776_v34 }
 0x90d   :  { %1082 = vmatprep.mubr.bf16.mxu1 %v10275_v0 }
 0x90e   :  { %6764 = vmatpush3.bf16.msra.mxu0 %v7141_v39  ;;  %v1416_v39 = vld [vmem:[%s10272_s4 + $0x70] sm:$0xff] }
 0x90f   :  { %6765 = vmatprep.subr.bf16.mxu0 %v10277_v31 }
 0x912   :  { %6766 = vmatpush3.bf16.msra.mxu0 %v7142_v41 }
 0x9d8   :  { %v819_v43 = vpop.f32.mrb[8].mxu0 }
 0x9d9   :  { %v6751_v45 = vpop.f32.mrb[9].mxu0 }
 0x9da   :  { %v822_v46 = vpop.f32.mrb[10].mxu0 }
 0x9db   :  { %v6752_v47 = vpop.f32.mrb[11].mxu0 }
 0x9dc   :  { %v1418_v47 = vld [vmem:[%s10272_s4 + $0x80] sm:$0xff] }
 0x9df   :  { %v867_v48 = vpop.f32.mrb[24].mxu1 }
 0x9e0   :  { %v7065_v49 = vpack.i.bf16 %v867_v48, %v819_v43  ;;  %v6757_v50 = vpop.f32.mrb[25].mxu1 }
 0x9e1   :  { %v870_v53 = vpop.f32.mrb[26].mxu1 }
 0x9e2   :  { %7066 = vrot.lane.b32.xlu1 %v7065_v49, %s7689_s25  ;;  %v6758_v54 = vpop.f32.mrb[27].mxu1 }
 0xa54   :  { %v7067_v56 = vpop.permute.xlu1 %7066 }
 0xa55   :  { %v7069_v58 = vunpack.i.h.bf16 %v7067_v56  ;;  %v7068_v60 = vunpack.i.l.bf16 %v7067_v56 }
 0xa57   :  { %v882_v62 = vsel %vm432_vm2, %v7941_v63, %v7069_v58  ;;  %v881_v1 = vsel %vm432_vm2, %v7937_v52, %v7068_v60 }
 0xa58   :  { %v883_v2 = vpack.c.bf16 %v882_v62, %v881_v1 }
 0xa5a   :  { %6768 = vmatmul.mubr.msk.bf16.vlgmr.msra.gmra.mrb[12].mxu0 %vm139_vm0, %v883_v2 }
 0xb2d   :  { %v945_v5 = vpop.f32.mrb[12].mxu0 }
 0xb2e   :  { %v952_v6 = vadd.f32 %v945_v5, %v7807_v51  ;;  %v6769_v36 = vpop.f32.mrb[13].mxu0  ;;  %v1424_v51 = vunpack.c.0.s8 %v1423_v13 }
 0xb2f   :  { %v948_v7 = vpop.f32.mrb[14].mxu0 }
 0xb30   :  { %v7987_v63 = vadd.f32 %v957_v4, %v952_v6  ;;  %v953_v52 = vadd.f32 %v948_v7, %v7811_v55  ;;  %v6770_v8 = vpop.f32.mrb[15].mxu0  ;;  %v1427_v14 = vsub.s32 %v1424_v51, %v7794_v40  ;;  %v1402_v55 = vld [vmem:[%s10272_s4] sm:$0xff]  ;;  %v1417_v51 = vld [vmem:[%s10272_s4 + $0x78] sm:$0xff] }
 0xb31   :  { %v1421_v21 = vcombine.high %v1402_v55, %v1402_v55 }
 0xb32   :  { %v7990_v9 = vadd.f32 %v957_v4, %v953_v52  ;;  %v960_v10 = vsel %vm139_vm0, %v7987_v63, 0.0  ;;  %v1428_v15 = vrot.slane %v1402_v55, %v1427_v14  ;;  %v1413_v4 = vld [vmem:[%s10272_s4 + $0x58] sm:$0xff]  ;;  %v1415_v52 = vld [vmem:[%s10272_s4 + $0x68] sm:$0xff] }
 0xb33   :  { %961 = vadd.xlane.f32.xlu1 %v960_v10  ;;  %v1435_v25 = vrot.slane %v1421_v21, %v1427_v14  ;;  %v7144_v21 = vld [vmem:[%s10269_s1 + $0x140] ss:$8 sps:$4 sm:$0xff]  }
 0xb34   :  { %v963_v11 = vsel %vm139_vm0, %v7990_v9, 0.0  ;;  %v1436_v16 = vcombine.high %v1428_v15, %v1428_v15  ;;  %v1444_v17 = vrot.slane %v1428_v15, %v1427_v14 }
 0xb35   :  { %964 = vadd.xlane.f32.xlu0 %v963_v11  ;;  %v1437_v29 = vcombine.high %v1435_v25, %v1435_v25  ;;  %v1451_v57 = vrot.slane %v1435_v25, %v1427_v14  ;;  %v7152_v25 = vld [vmem:[%s10269_s1 + $0x164] ss:$8 sps:$4 sm:$0xff]  }
 0xb36   :  { %v1458_v19 = vrot.slane %v1436_v16, %v1427_v14  ;;  %v1473_v61 = vrot.slane %v1444_v17, %v7797_v42  ;;  %v1466_v24 = vcombine.high %v1444_v17, %v1444_v17  ;;  %v1419_v16 = vld [vmem:[%s10272_s4 + $0x88] sm:$0xff] }
 0xb37   :  { %v1465_v34 = vrot.slane %v1437_v29, %v1427_v14  ;;  %v1489_v38 = vrot.slane %v1451_v57, %v7797_v42  ;;  %v1467_v43 = vcombine.high %v1451_v57, %v1451_v57 }
 0xb38   :  { %v1510_v23 = vmul.f32 %v1473_v61, %v1412_v20  ;;  %v1481_v27 = vrot.slane %v1466_v24, %v7797_v42  ;;  %v1477_v1 = vrot.slane %v1458_v19, %v7797_v42  ;;  %v1468_v2 = vcombine.high %v1458_v19, %v1458_v19  ;;  %v7146_v20 = vld [vmem:[%s10269_s1 + $0x144] ss:$8 sps:$4 sm:$0xff]   ;;  %v7147_v24 = vld [vmem:[%s10269_s1 + $0x150] ss:$8 sps:$4 sm:$0xff]  }
 0xb39   :  { %v1514_v41 = vmul.f32 %v1489_v38, %v1416_v39  ;;  %v1497_v46 = vrot.slane %v1467_v43, %v7797_v42  ;;  %v1493_v12 = vrot.slane %v1465_v34, %v7797_v42  ;;  %v1469_v13 = vcombine.high %v1465_v34, %v1465_v34  ;;  %1050 = vmatprep.subr.bf16.mxu1 %v7146_v20  ;;  %v7157_v20 = vld [vmem:[%s10269_s1 + $0x180] ss:$8 sps:$4 sm:$0xff]  }
 0xb3a   :  { %v1518_v26 = vsel %vm139_vm0, %v1510_v23, 0.0  ;;  %v1512_v30 = vmul.f32 %v1481_v27, %v1414_v28  ;;  %v1511_v36 = vmul.f32 %v1477_v1, %v1413_v4  ;;  %v1485_v7 = vrot.slane %v1468_v2, %v7797_v42  ;;  %1051 = vmatpush1.bf16.msra.mxu1 %v7144_v21  ;;  %v7149_v23 = vld [vmem:[%s10269_s1 + $0x154] ss:$8 sps:$4 sm:$0xff]   ;;  %v7153_v27 = vld [vmem:[%s10269_s1 + $0x170] ss:$8 sps:$4 sm:$0xff]  }
 0xb3b   :  { %1519 = vadd.xlane.f32.xlu1 %v1518_v26  ;;  %v1530_v45 = vsel %vm139_vm0, %v1514_v41, 0.0  ;;  %v1516_v48 = vmul.f32 %v1497_v46, %v1418_v47  ;;  %v1515_v55 = vmul.f32 %v1493_v12, %v1417_v51  ;;  %v1501_v15 = vrot.slane %v1469_v13, %v7797_v42  ;;  %1052 = vmatprep.subr.bf16.mxu1 %v7149_v23  ;;  %v7150_v26 = vld [vmem:[%s10269_s1 + $0x160] ss:$8 sps:$4 sm:$0xff]   ;;  %v7155_v28 = vld [vmem:[%s10269_s1 + $0x174] ss:$8 sps:$4 sm:$0xff]  }
 0xb3c   :  { %v1524_v37 = vsel %vm139_vm0, %v1512_v30, 0.0  ;;  %v1521_v10 = vsel %vm139_vm0, %v1511_v36, 0.0  ;;  %v1513_v11 = vmul.f32 %v1485_v7, %v1415_v52  ;;  %v989_v4 = vrot.slane %v7982_v3, %v7797_v42  ;;  %v7158_v21 = vld [vmem:[%s10269_s1 + $0x210] ss:$8 sps:$4 sm:$0xff]  }
 0xb3d   :  { %v1536_v49 = vsel %vm139_vm0, %v1516_v48, 0.0  ;;  %v1533_v17 = vsel %vm139_vm0, %v1515_v55, 0.0  ;;  %v1517_v19 = vmul.f32 %v1501_v15, %v1419_v16  ;;  %v995_v12 = vrot.slane %v7982_v3, %v7803_v44  ;;  %v7159_v23 = vld [vmem:[%s10269_s1 + $0x190] ss:$8 sps:$4 sm:$0xff]  }
 0xb3e   :  { %v1527_v14 = vsel %vm139_vm0, %v1513_v11, 0.0  ;;  %1053 = vmatpush1.bf16.msra.mxu1 %v7147_v24  ;;  %v7160_v24 = vld [vmem:[%s10269_s1 + $0x220] ss:$8 sps:$4 sm:$0xff]  }
 0xb3f   :  { %1525 = vadd.xlane.f32.xlu1 %v1524_v37  ;;  %v1539_v61 = vsel %vm139_vm0, %v1517_v19, 0.0  ;;  %1054 = vmatprep.subr.bf16.mxu1 %v7152_v25  ;;  %v8083_v37 = vsub.s32 %v7899_v59, %v7794_v40  ;;  %v7161_v25 = vld [vmem:[%s10269_s1 + $0x1a0] ss:$8 sps:$4 sm:$0xff]  }
 0xb42   :  { %1055 = vmatpush1.bf16.msra.mxu1 %v7150_v26  ;;  %v7162_v26 = vld [vmem:[%s10269_s1 + $0x230] ss:$8 sps:$4 sm:$0xff]  }
 0xb43   :  { %1531 = vadd.xlane.f32.xlu1 %v1530_v45  ;;  %1056 = vmatprep.subr.bf16.mxu1 %v7155_v28  ;;  %v7164_v28 = vld [vmem:[%s10269_s1 + $0x240] ss:$8 sps:$4 sm:$0xff]  }
 0xb46   :  { %1057 = vmatpush1.bf16.msra.mxu1 %v7153_v27  ;;  %v7163_v27 = vld [vmem:[%s10269_s1 + $0x1b0] ss:$8 sps:$4 sm:$0xff]  }
 0xb47   :  { %1537 = vadd.xlane.f32.xlu1 %v1536_v49  ;;  %6771 = vmatprep.subr.bf16.mxu1 %v10277_v31 }
 0xbc0   :  { %v962_v50 = vpop.xlane.xlu1 %961 }
 0xbc1   :  { %v966_v53 = vmul.f32 0.015625, %v962_v50 }
 0xbc2   :  { %v965_v54 = vpop.xlane.xlu0 %964 }
 0xbc3   :  { %v8021_v56 = vsub.f32 %v7987_v63, %v966_v53  ;;  %v967_v58 = vmul.f32 0.015625, %v965_v54 }
 0xbc5   :  { %v8024_v60 = vsub.f32 %v7990_v9, %v967_v58  ;;  %v970_v62 = vmul.f32 %v8021_v56, %v8021_v56 }
 0xbc7   :  { %v972_v5 = vsel %vm139_vm0, %v970_v62, 0.0  ;;  %v971_v6 = vmul.f32 %v8024_v60, %v8024_v60 }
 0xbc8   :  { %973 = vadd.xlane.f32.xlu0 %v972_v5  ;;  %v8077_v29 = vpop.xlane.xlu1 %1519 }
 0xbc9   :  { %v975_v8 = vsel %vm139_vm0, %v971_v6, 0.0  ;;  %v1553_v45 = vrot.slane %v8077_v29, %v8083_v37 }
 0xbcc   :  { %976 = vadd.xlane.f32.xlu0 %v975_v8  ;;  %v8079_v34 = vpop.xlane.xlu1 %1525 }
 0xbcd   :  { %v1561_v48 = vrot.slane %v8079_v34, %v8083_v37 }
 0xbd0   :  { %1522 = vadd.xlane.f32.xlu0 %v1521_v10  ;;  %v8087_v46 = vpop.xlane.xlu1 %1531 }
 0xbd1   :  { %v1569_v58 = vrot.slane %v8087_v46, %v8083_v37 }
 0xbd4   :  { %1528 = vadd.xlane.f32.xlu0 %v1527_v14  ;;  %v8103_v1 = vpop.xlane.xlu1 %1537 }
 0xbd5   :  { %v1577_v52 = vrot.slane %v8103_v1, %v8083_v37 }
 0xbd8   :  { %1534 = vadd.xlane.f32.xlu0 %v1533_v17 }
 0xbdc   :  { %1540 = vadd.xlane.f32.xlu0 %v1539_v61 }
 0xc55   :  { %v974_v30 = vpop.xlane.xlu0 %973 }
 0xc56   :  { %v978_v57 = vmul.f32 0.015625, %v974_v30  ;;  %v7165_v30 = vld [vmem:[%s10269_s1 + $0x1c0] ss:$8 sps:$4 sm:$0xff]  }
 0xc58   :  { %v980_v38 = vadd.f32 1e-05, %v978_v57  ;;  %v7166_v57 = vld [vmem:[%s10269_s1 + $0x250] ss:$8 sps:$4 sm:$0xff]  }
 0xc59   :  { %v977_v39 = vpop.xlane.xlu0 %976 }
 0xc5a   :  { %7252 = vrsqrt.f32 %v980_v38  ;;  %v979_v41 = vmul.f32 0.015625, %v977_v39  ;;  %v7167_v38 = vld [vmem:[%s10269_s1 + $0x1d0] ss:$8 sps:$4 sm:$0xff]   ;;  %v7168_v39 = vld [vmem:[%s10269_s1 + $0x260] ss:$8 sps:$4 sm:$0xff]  }
 0xc5c   :  { %v981_v43 = vadd.f32 1e-05, %v979_v41  ;;  %v7169_v41 = vld [vmem:[%s10269_s1 + $0x1e0] ss:$8 sps:$4 sm:$0xff]  }
 0xc5d   :  { %v8089_v47 = vpop.xlane.xlu0 %1522 }
 0xc5e   :  { %7254 = vrsqrt.f32 %v981_v43  ;;  %v1557_v49 = vrot.slane %v8089_v47, %v8083_v37  ;;  %v7170_v43 = vld [vmem:[%s10269_s1 + $0x270] ss:$8 sps:$4 sm:$0xff]  }
 0xc60   :  { %v1582_v50 = vsel %vm1273_vm6, %v1557_v49, %v1553_v45  ;;  %v7171_v45 = vld [vmem:[%s10269_s1 + $0x1f0] ss:$8 sps:$4 sm:$0xff]  }
 0xc61   :  { %v1584_v53 = vsel %vm1583_vm7, %v1561_v48, %v1582_v50  ;;  %v8097_v54 = vpop.xlane.xlu0 %1528  ;;  %v8180_v48 = vsub.s32 2, %v7794_v40 }
 0xc62   :  { %v1565_v62 = vrot.slane %v8097_v54, %v8083_v37 }
 0xc64   :  { %v7253_v2 = vpop.eup %7252  ;;  %v1586_v5 = vsel %vm1585_vm8, %v1565_v62, %v1584_v53  ;;  %v8186_v62 = vsub.s32 4, %v7794_v40 }
 0xc65   :  { %v984_v6 = vmul.f32 %v7253_v2, %v8021_v56  ;;  %v1588_v36 = vsel %vm1587_vm9, %v1569_v58, %v1586_v5  ;;  %v8110_v7 = vpop.xlane.xlu0 %1534 }
 0xc66   :  { %v1573_v8 = vrot.slane %v8110_v7, %v8083_v37  ;;  %10294 = vst [vmem:[#allocation8_spill] sm:$0xff] %v8186_v62 }
 0xc67   :  { %v990_v13 = vmul.f32 %v989_v4, %v984_v6 }
 0xc68   :  { %v7255_v10 = vpop.eup %7254  ;;  %v1590_v11 = vsel %vm1589_vm10, %v1573_v8, %v1588_v36  ;;  %v8193_v8 = vsub.s32 5, %v7794_v40 }
 0xc69   :  { %v985_v56 = vmul.f32 %v7255_v10, %v8024_v60  ;;  %v8120_v51 = vpop.xlane.xlu0 %1540  ;;  %v1592_v14 = vsel %vm1591_vm11, %v1577_v52, %v1590_v11  ;;  %v996_v19 = vadd.f32 %v995_v12, %v990_v13  ;;  %v7156_v60 = vld [vmem:[%s10269_s1 + $0x200] ss:$8 sps:$4 sm:$0xff]  }
 0xc6a   :  { %v1581_v55 = vrot.slane %v8120_v51, %v8083_v37  ;;  %6521 = vmatprep.subr.bf16.mxu0 %v7156_v60  ;;  %10295 = vst [vmem:[#allocation9_spill] sm:$0xff] %v8193_v8 }
 0xc6b   :  { %v991_v15 = vmul.f32 %v989_v4, %v985_v56  ;;  %6522 = vmatpush3.bf16.msra.mxu0 %v7157_v20 }
 0xc6c   :  { %v1594_v16 = vsel %vm1593_vm12, %v1581_v55, %v1592_v14  ;;  %6523 = vmatprep.subr.bf16.mxu0 %v7158_v21  ;;  %v1002_v21 = vrot.slane %v7860_v33, %v8193_v8 }
 0xc6d   :  { %v1596_v17 = vsel %vm531_vm5, %v1594_v16, -inf  ;;  %v997_v61 = vadd.f32 %v995_v12, %v991_v15 }
 0xc6e   :  { %1597 = vmax.xlane.f32.xlu1 %v1596_v17 }
 0xc6f   :  { %v998_v3 = vpack.c.bf16 %v997_v61, %v996_v19  ;;  %6524 = vmatpush3.bf16.msra.mxu0 %v7159_v23  ;;  %v1006_v23 = vrot.slane %v7871_v35, %v8193_v8 }
 0xc70   :  { %6525 = vmatprep.subr.bf16.mxu0 %v7160_v24 }
 0xc71   :  { %6330 = vmatmul.mubr.msk.bf16.vlgmr.msra.gmra.mrb[28].mxu1 %vm139_vm0, %v998_v3 }
 0xc72   :  { %6779 = vmatprep.mubr.msk.bf16.mxu1 %vm7687_vm1, %v10277_v31 }
 0xc73   :  { %6526 = vmatpush3.bf16.msra.mxu0 %v7161_v25 }
 0xc74   :  { %6527 = vmatprep.subr.bf16.mxu0 %v7162_v26 }
 0xc77   :  { %6528 = vmatpush3.bf16.msra.mxu0 %v7163_v27 }
 0xc78   :  { %6529 = vmatprep.subr.bf16.mxu0 %v7164_v28 }
 0xc7b   :  { %6530 = vmatpush3.bf16.msra.mxu0 %v7165_v30 }
 0xc7c   :  { %6531 = vmatprep.subr.bf16.mxu0 %v7166_v57 }
 0xc7f   :  { %6532 = vmatpush3.bf16.msra.mxu0 %v7167_v38 }
 0xc80   :  { %6533 = vmatprep.subr.bf16.mxu0 %v7168_v39 }
 0xc83   :  { %6534 = vmatpush3.bf16.msra.mxu0 %v7169_v41 }
 0xc84   :  { %6535 = vmatprep.subr.bf16.mxu0 %v7170_v43 }
 0xc87   :  { %6536 = vmatpush3.bf16.msra.mxu0 %v7171_v45 }
 0xc88   :  { %6795 = vmatprep.subr.bf16.mxu0 %v10277_v31 }
 0xcfb   :  { %v1598_v49 = vpop.xlane.xlu1 %1597 }
 0xcfc   :  { %v1603_v50 = vrot.slane %v1598_v49, %v7797_v42  ;;  %v1607_v53 = vrot.slane %v1598_v49, %v7803_v44  ;;  %v1611_v58 = vrot.slane %v1598_v49, %v8180_v48  ;;  %v1615_v2 = vrot.slane %v1598_v49, %v7855_v32 }
 0xcfd   :  { %v1619_v10 = vrot.slane %v1598_v49, %v8186_v62  ;;  %v1623_v13 = vrot.slane %v1598_v49, %v8193_v8 }
 0xcfe   :  { %v1641_v4 = vsub.f32 %v8089_v47, %v1607_v53  ;;  %v1640_v5 = vsub.f32 %v8077_v29, %v1603_v50  ;;  %v1642_v6 = vsub.f32 %v8079_v34, %v1611_v58  ;;  %v1643_v12 = vsub.f32 %v8097_v54, %v1615_v2 }
 0xcff   :  { %v1644_v29 = vsub.f32 %v8087_v46, %v1619_v10  ;;  %v1627_v34 = vrot.slane %v1598_v49, %v7844_v18  ;;  %v1645_v14 = vsub.f32 %v8110_v7, %v1623_v13  ;;  %v1631_v54 = vrot.slane %v1598_v49, %v7848_v22 }
 0xd00   :  { %v1650_v36 = vmul.f32 1.442695, %v1641_v4  ;;  %v1648_v52 = vmul.f32 1.442695, %v1640_v5  ;;  %v1652_v11 = vmul.f32 1.442695, %v1642_v6 }
 0xd01   :  { %v1654_v47 = vmul.f32 1.442695, %v1643_v12  ;;  %v1656_v56 = vmul.f32 1.442695, %v1644_v29  ;;  %v1658_v16 = vmul.f32 1.442695, %v1645_v14  ;;  %v1646_v46 = vsub.f32 %v8103_v1, %v1627_v34 }
 0xd02   :  { %7256 = vpow2.f32 %v1650_v36  ;;  %v1647_v19 = vsub.f32 %v8120_v51, %v1631_v54 }
 0xd03   :  { %7258 = vpow2.f32 %v1648_v52  ;;  %v1660_v7 = vmul.f32 1.442695, %v1646_v46 }
 0xd04   :  { %7260 = vpow2.f32 %v1652_v11  ;;  %v1662_v3 = vmul.f32 1.442695, %v1647_v19 }
 0xd05   :  { %7262 = vpow2.f32 %v1654_v47 }
 0xd06   :  { %7264 = vpow2.f32 %v1656_v56 }
 0xd07   :  { %7266 = vpow2.f32 %v1658_v16 }
 0xd08   :  { %7268 = vpow2.f32 %v1660_v7 }
 0xd09   :  { %7270 = vpow2.f32 %v1662_v3 }
 0xd0c   :  { %v8201_v55 = vpop.eup %7256 }
 0xd0d   :  { %v8203_v15 = vpop.eup %7258  ;;  %1676 = vperm.xlu1 %7071, %v8201_v55  }
 0xd0e   :  { %1673 = vperm.xlu0 %7070, %v8203_v15   ;;  %v8209_v17 = vpop.eup %7260 }
 0xd0f   :  { %v8213_v61 = vpop.eup %7262 }
 0xd10   :  { %v8216_v60 = vpop.eup %7264 }
 0xd11   :  { %1679 = vperm.xlu1 %7071, %v8209_v17   ;;  %v8219_v1 = vpop.eup %7266 }
 0xd12   :  { %v8222_v20 = vpop.eup %7268 }
 0xd13   :  { %v8225_v51 = vpop.eup %7270 }
 0xd15   :  { %1682 = vperm.xlu1 %7071, %v8213_v61  }
 0xd19   :  { %1685 = vperm.xlu1 %7071, %v8216_v60  }
 0xd1d   :  { %1688 = vperm.xlu1 %7071, %v8219_v1  }
 0xd21   :  { %1691 = vperm.xlu1 %7071, %v8222_v20  }
 0xd25   :  { %1694 = vperm.xlu1 %7071, %v8225_v51  }
 0xd44   :  { %v1084_v24 = vpop.f32.mrb[28].mxu1 }
 0xd45   :  { %v1085_v25 = vadd.f32 %v1084_v24, %v1002_v21  ;;  %v1086_v26 = vpop.f32.mrb[29].mxu1 }
 0xd46   :  { %v1087_v27 = vadd.f32 %v1086_v26, %v1006_v23  ;;  %v1088_v28 = vpop.f32.mrb[30].mxu1 }
 0xd47   :  { %v6331_v30 = vmul.f32 -1.702, %v1085_v25  ;;  %v1089_v57 = vadd.f32 %v1088_v28, %v1002_v21  ;;  %v1090_v38 = vpop.f32.mrb[31].mxu1 }
 0xd48   :  { %v6332_v39 = vmul.f32 -1.702, %v1087_v27  ;;  %v1091_v41 = vadd.f32 %v1090_v38, %v1006_v23 }
 0xd49   :  { %v1101_v43 = vmul.f32 1.442695, %v6331_v30  ;;  %v6333_v45 = vmul.f32 -1.702, %v1089_v57 }
 0xd4a   :  { %v1103_v49 = vmul.f32 1.442695, %v6332_v39  ;;  %v6334_v50 = vmul.f32 -1.702, %v1091_v41 }
 0xd4b   :  { %7272 = vpow2.f32 %v1101_v43  ;;  %v1105_v53 = vmul.f32 1.442695, %v6333_v45 }
 0xd4c   :  { %7274 = vpow2.f32 %v1103_v49  ;;  %v1107_v33 = vmul.f32 1.442695, %v6334_v50 }
 0xd4d   :  { %7276 = vpow2.f32 %v1105_v53 }
 0xd4e   :  { %7278 = vpow2.f32 %v1107_v33 }
 0xd55   :  { %v7273_v35 = vpop.eup %7272 }
 0xd56   :  { %v7275_v58 = vpop.eup %7274  ;;  %v1109_v2 = vadd.f32 1.0, %v7273_v35 }
 0xd57   :  { %v7277_v4 = vpop.eup %7276  ;;  %v1110_v5 = vadd.f32 1.0, %v7275_v58 }
 0xd58   :  { %v7279_v6 = vpop.eup %7278  ;;  %7280 = vrcp.f32 %v1109_v2  ;;  %v1111_v36 = vadd.f32 1.0, %v7277_v4 }
 0xd59   :  { %7282 = vrcp.f32 %v1110_v5  ;;  %v1112_v52 = vadd.f32 1.0, %v7279_v6  ;;  %v8253_v5 = vld [vmem:[%s10270_s2 + $0x30] sm:$0xff] }
 0xd5a   :  { %7284 = vrcp.f32 %v1111_v36 }
 0xd5b   :  { %7286 = vrcp.f32 %v1112_v52 }
 0xd62   :  { %v7281_v10 = vpop.eup %7280 }
 0xd63   :  { %v7283_v11 = vpop.eup %7282  ;;  %v1121_v47 = vmul.f32 %v7281_v10, %v1085_v25 }
 0xd64   :  { %v7285_v12 = vpop.eup %7284  ;;  %v1122_v34 = vmul.f32 %v7283_v11, %v1087_v27 }
 0xd65   :  { %v7287_v13 = vpop.eup %7286  ;;  %v1123_v29 = vmul.f32 %v7285_v12, %v1089_v57 }
 0xd66   :  { %v1124_v56 = vmul.f32 %v7287_v13, %v1091_v41 }
 0xd67   :  { %v1125_v14 = vpack.c.bf16 %v1123_v29, %v1121_v47 }
 0xd68   :  { %v1126_v54 = vpack.c.bf16 %v1124_v56, %v1122_v34 }
 0xd6a   :  { %1259 = vmatprep.mubr.bf16.mxu0 %v1126_v54 }
 0xd6b   :  { %1260 = vmatmul.mubr.bf16.vlgmr.msra.gmra.mrb[16].mxu0 %v1125_v14 }
 0xd6c   :  { %6797 = vmatprep.mubr.msk.bf16.mxu0 %vm7687_vm1, %v10277_v31 }
 0xd8c   :  { %v1677_v16 = vpop.permute.xlu1 %1676 }
 0xd8d   :  { %v1674_v3 = vpop.permute.xlu0 %1673  ;;  %v1703_v23 = vrot.slane %v1677_v16, %v8083_v37 }
 0xd8e   :  { %v1699_v24 = vrot.slane %v1674_v3, %v8083_v37 }
 0xd90   :  { %v1680_v46 = vpop.permute.xlu1 %1679  ;;  %v1728_v30 = vsel %vm1273_vm6, %v1703_v23, %v1699_v24 }
 0xd91   :  { %v1707_v25 = vrot.slane %v1680_v46, %v8083_v37 }
 0xd93   :  { %v1729_v38 = vsel %vm1583_vm7, %v1707_v25, %v1728_v30 }
 0xd94   :  { %v1683_v7 = vpop.permute.xlu1 %1682 }
 0xd95   :  { %v1711_v26 = vrot.slane %v1683_v7, %v8083_v37 }
 0xd97   :  { %v1730_v41 = vsel %vm1585_vm8, %v1711_v26, %v1729_v38 }
 0xd98   :  { %v1686_v19 = vpop.permute.xlu1 %1685 }
 0xd99   :  { %v1715_v27 = vrot.slane %v1686_v19, %v8083_v37 }
 0xd9b   :  { %v1731_v43 = vsel %vm1587_vm9, %v1715_v27, %v1730_v41 }
 0xd9c   :  { %v1689_v21 = vpop.permute.xlu1 %1688 }
 0xd9d   :  { %v1719_v57 = vrot.slane %v1689_v21, %v8083_v37 }
 0xd9f   :  { %v1732_v50 = vsel %vm1589_vm10, %v1719_v57, %v1731_v43  ;;  %v7172_v43 = vld [vmem:[%s10269_s1 + $0x440] ss:$8 sps:$4 sm:$0xff]  }
 0xda0   :  { %v1692_v28 = vpop.permute.xlu1 %1691  ;;  %6772 = vmatpush3.bf16.msra.mxu1 %v7172_v43  ;;  %v7653_v43 = vld [vmem:[%s10270_s2 + $0x10] sm:$0xff] }
 0xda1   :  { %v1723_v39 = vrot.slane %v1692_v28, %v8083_v37  ;;  %6773 = vmatprep.subr.bf16.mxu1 %v10277_v31 }
 0xda3   :  { %v1733_v53 = vsel %vm1591_vm11, %v1723_v39, %v1732_v50 }
 0xda4   :  { %v1695_v45 = vpop.permute.xlu1 %1694 }
 0xda5   :  { %v1727_v49 = vrot.slane %v1695_v45, %v8083_v37  ;;  %v1130_v37 = vrot.slane %v8253_v5, %v7797_v42  ;;  %v7173_v45 = vld [vmem:[%s10269_s1 + $0x450] ss:$8 sps:$4 sm:$0xff]  }
 0xda6   :  { %6774 = vmatpush3.bf16.msra.mxu1 %v7173_v45  ;;  %v1309_v45 = vrot.slane %v7653_v43, %v8180_v48 }
 0xda7   :  { %v1734_v33 = vsel %vm1593_vm12, %v1727_v49, %v1733_v53  ;;  %6775 = vmatprep.subr.bf16.mxu1 %v10277_v31  ;;  %v1404_v53 = vld [vmem:[%s10272_s4 + $0x10] sm:$0xff] }
 0xda8   :  { %v1736_v35 = vsel %vm531_vm5, %v1734_v33, 0.0  ;;  %v1405_v33 = vld [vmem:[%s10272_s4 + $0x18] sm:$0xff] }
 0xda9   :  { %1737 = vadd.xlane.f32.xlu0 %v1736_v35 }
 0xe36   :  { %v1738_v58 = vpop.xlane.xlu0 %1737 }
 0xe37   :  { %7288 = vrcp.f32 %v1738_v58 }
 0xe3e   :  { %v6537_v2 = vpop.f32.mrb[16].mxu0 }
 0xe3f   :  { %v6538_v4 = vpop.f32.mrb[17].mxu0 }
 0xe40   :  { %v6539_v6 = vadd.f32 %v6538_v4, %v6537_v2  ;;  %v6540_v36 = vpop.f32.mrb[18].mxu0  ;;  %v1406_v2 = vld [vmem:[%s10272_s4 + $0x20] sm:$0xff]  ;;  %v1407_v4 = vld [vmem:[%s10272_s4 + $0x28] sm:$0xff] }
 0xe41   :  { %v7289_v52 = vpop.eup %7288  ;;  %v6541_v10 = vpop.f32.mrb[19].mxu0 }
 0xe42   :  { %v6542_v11 = vadd.f32 %v6541_v10, %v6540_v36  ;;  %v1748_v12 = vrot.slane %v7289_v52, %v7803_v44  ;;  %v1262_v13 = vadd.f32 %v6539_v6, %v1130_v37  ;;  %v1744_v46 = vrot.slane %v7289_v52, %v7797_v42 }
 0xe43   :  { %v1752_v19 = vrot.slane %v7289_v52, %v8180_v48  ;;  %v1764_v3 = vrot.slane %v7289_v52, %v8193_v8  ;;  %v1772_v23 = vrot.slane %v7289_v52, %v7848_v22  ;;  %v1768_v39 = vrot.slane %v7289_v52, %v7844_v18 }
 0xe44   :  { %v1265_v47 = vadd.f32 %v6542_v11, %v1130_v37  ;;  %v1782_v29 = vmul.f32 %v8201_v55, %v1748_v12  ;;  %v1268_v56 = vadd.f32 %v1262_v13, %v7987_v63  ;;  %v1781_v7 = vmul.f32 %v8203_v15, %v1744_v46 }
 0xe45   :  { %v1783_v55 = vmul.f32 %v8209_v17, %v1752_v19  ;;  %v1786_v21 = vmul.f32 %v8219_v1, %v1764_v3  ;;  %v1788_v15 = vmul.f32 %v8225_v51, %v1772_v23  ;;  %v1760_v51 = vrot.slane %v7289_v52, %v8186_v62 }
 0xe46   :  { %v1269_v34 = vadd.f32 %v1265_v47, %v7990_v9  ;;  %1796 = vperm.xlu0 %7070, %v1782_v29   ;;  %v1756_v9 = vrot.slane %v7289_v52, %v7855_v32  ;;  %v1787_v41 = vmul.f32 %v8222_v20, %v1768_v39  ;;  %v7175_v20 = vld [vmem:[%s10269_s1 + $0x470] ss:$8 sps:$4 sm:$0xff]  }
 0xe47   :  { %v1785_v38 = vmul.f32 %v8216_v60, %v1760_v51  ;;  %v7174_v60 = vld [vmem:[%s10269_s1 + $0x460] ss:$8 sps:$4 sm:$0xff]   ;;  %v1409_v29 = vld [vmem:[%s10272_s4 + $0x38] sm:$0xff] }
 0xe48   :  { %v1272_v14 = vrot.slane %v1269_v34, 7  ;;  %v1784_v63 = vmul.f32 %v8213_v61, %v1756_v9  ;;  %6776 = vmatpush3.bf16.msra.mxu1 %v7174_v60  ;;  %v1411_v9 = vld [vmem:[%s10272_s4 + $0x48] sm:$0xff] }
 0xe49   :  { %6777 = vmatprep.subr.bf16.mxu1 %v10277_v31 }
 0xe4a   :  { %v1274_v54 = vsel %vm1273_vm6, %v1272_v14, %v1268_v56 }
 0xe4b   :  { %v1277_v16 = vsel %vm1276_vm13, %v1274_v54, 0.0 }
 0xe4c   :  { %1278 = vadd.xlane.f32.xlu1 %v1277_v16  ;;  %6778 = vmatpush3.bf16.msra.mxu1 %v7175_v20 }
 0xe4d   :  { %6783 = vmatprep.subr.bf16.mxu1 %v10277_v31 }
 0xe5d   :  { %1791 = vperm.xlu1 %7071, %v1781_v7   ;;  %v1408_v7 = vld [vmem:[%s10272_s4 + $0x30] sm:$0xff] }
 0xe61   :  { %1801 = vperm.xlu1 %7071, %v1783_v55  }
 0xe65   :  { %1806 = vperm.xlu1 %7071, %v1784_v63  }
 0xe69   :  { %1816 = vperm.xlu1 %7071, %v1786_v21  }
 0xe6d   :  { %1826 = vperm.xlu1 %7071, %v1788_v15  }
 0xec5   :  { %v1797_v35 = vpop.permute.xlu0 %1796 }
 0xec6   :  { %v1830_v6 = vmul.f32 %v1797_v35, %v1405_v33 }
 0xec8   :  { %v1844_v47 = vsel %vm139_vm0, %v1830_v6, 0.0 }
 0xec9   :  { %v1845_v16 = vrot.slane %v1844_v47, 4 }
 0xecb   :  { %v1846_v15 = vadd.f32 %v1845_v16, %v1844_v47 }
 0xed9   :  { %v1279_v24 = vpop.xlane.xlu1 %1278 }
 0xeda   :  { %v1280_v25 = vmul.f32 0.015625, %v1279_v24 }
 0xedc   :  { %v1282_v26 = vrot.slane %v1280_v25, 1  ;;  %v8273_v17 = vsub.f32 %v1268_v56, %v1280_v25  ;;  %v1410_v25 = vld [vmem:[%s10272_s4 + $0x40] sm:$0xff] }
 0xedd   :  { %v1792_v49 = vpop.permute.xlu1 %1791 }
 0xede   :  { %v8275_v27 = vsub.f32 %v1269_v34, %v1282_v26  ;;  %v1287_v28 = vmul.f32 %v8273_v17, %v8273_v17  ;;  %v1829_v37 = vmul.f32 %v1792_v49, %v1404_v53 }
 0xee0   :  { %v1288_v61 = vmul.f32 %v8275_v27, %v8275_v27  ;;  %v1837_v12 = vsel %vm139_vm0, %v1829_v37, 0.0 }
 0xee1   :  { %v1802_v50 = vpop.permute.xlu1 %1801  ;;  %v1838_v54 = vrot.slane %v1837_v12, 4 }
 0xee2   :  { %v1291_v1 = vrot.slane %v1288_v61, 7  ;;  %v1831_v36 = vmul.f32 %v1802_v50, %v1406_v2 }
 0xee3   :  { %v1839_v21 = vadd.f32 %v1838_v54, %v1837_v12 }
 0xee4   :  { %v1292_v30 = vsel %vm1273_vm6, %v1291_v1, %v1287_v28  ;;  %v1851_v56 = vsel %vm139_vm0, %v1831_v36, 0.0 }
 0xee5   :  { %v1294_v57 = vsel %vm1276_vm13, %v1292_v30, 0.0  ;;  %v1807_v58 = vpop.permute.xlu1 %1806  ;;  %v1852_v19 = vrot.slane %v1851_v56, 4  ;;  %v1840_v51 = vrot.slane %v1839_v21, 2 }
 0xee6   :  { %1295 = vadd.xlane.f32.xlu0 %v1294_v57  ;;  %v1832_v52 = vmul.f32 %v1807_v58, %v1407_v4  ;;  %v1315_v4 = vrot.slane %v7653_v43, %v7855_v32 }
 0xee7   :  { %v1853_v26 = vadd.f32 %v1852_v19, %v1851_v56  ;;  %v1841_v37 = vadd.f32 %v1840_v51, %v1839_v21 }
 0xee8   :  { %v1858_v14 = vsel %vm139_vm0, %v1832_v52, 0.0 }
 0xee9   :  { %v1817_v13 = vpop.permute.xlu1 %1816  ;;  %v1859_v55 = vrot.slane %v1858_v14, 4  ;;  %v1854_v49 = vrot.slane %v1853_v26, 2  ;;  %v1842_v16 = vrot.slane %v1841_v37, 1 }
 0xeea   :  { %v1834_v46 = vmul.f32 %v1817_v13, %v1409_v29 }
 0xeeb   :  { %v1860_v61 = vadd.f32 %v1859_v55, %v1858_v14  ;;  %v1855_v13 = vadd.f32 %v1854_v49, %v1853_v26 }
 0xeec   :  { %v1872_v24 = vsel %vm139_vm0, %v1834_v46, 0.0 }
 0xeed   :  { %v1827_v63 = vpop.permute.xlu1 %1826  ;;  %v1861_v50 = vrot.slane %v1860_v61, 2  ;;  %v1856_v19 = vrot.slane %v1855_v13, 1 }
 0xeee   :  { %v1836_v28 = vmul.f32 %v1827_v63, %v1411_v9 }
 0xeef   :  { %v1862_v29 = vadd.f32 %v1861_v50, %v1860_v61  ;;  %v1857_v26 = vadd.f32 %v1856_v19, %v1855_v13  ;;  %v31_v19 = vld [vmem:[%s10270_s2 + $0x40] sm:$0xff] }
 0xef0   :  { %v1886_v53 = vsel %vm139_vm0, %v1836_v28, 0.0 }
 0xef1   :  { %v1887_v52 = vrot.slane %v1886_v53, 4  ;;  %v1863_v9 = vrot.slane %v1862_v29, 1 }
 0xef3   :  { %v1888_v46 = vadd.f32 %v1887_v52, %v1886_v53  ;;  %v1864_v28 = vadd.f32 %v1863_v9, %v1862_v29 }
 0xefc   :  { %1811 = vperm.xlu0 %7070, %v1785_v38   ;;  %v1873_v38 = vrot.slane %v1872_v24, 4 }
 0xefe   :  { %v1874_v6 = vadd.f32 %v1873_v38, %v1872_v24 }
 0xf00   :  { %1821 = vperm.xlu0 %7070, %v1787_v41   ;;  %v1847_v41 = vrot.slane %v1846_v15, 2 }
 0xf02   :  { %v1848_v47 = vadd.f32 %v1847_v41, %v1846_v15 }
 0xf04   :  { %v1849_v55 = vrot.slane %v1848_v47, 1 }
 0xf06   :  { %v1850_v61 = vadd.f32 %v1849_v55, %v1848_v47 }
 0xf73   :  { %v1296_v10 = vpop.xlane.xlu0 %1295 }
 0xf74   :  { %v1297_v11 = vmul.f32 0.015625, %v1296_v10 }
 0xf76   :  { %v1298_v34 = vadd.f32 1e-05, %v1297_v11 }
 0xf78   :  { %7290 = vrsqrt.f32 %v1298_v34 }
 0xf7b   :  { %v1812_v3 = vpop.permute.xlu0 %1811 }
 0xf7c   :  { %v1833_v23 = vmul.f32 %v1812_v3, %v1408_v7 }
 0xf7e   :  { %v1865_v1 = vsel %vm139_vm0, %v1833_v23, 0.0  ;;  %v1843_v23 = vadd.f32 %v1842_v16, %v1841_v37 }
 0xf7f   :  { %v1866_v30 = vrot.slane %v1865_v1, 4  ;;  %v1822_v57 = vpop.permute.xlu0 %1821 }
 0xf80   :  { %v1835_v39 = vmul.f32 %v1822_v57, %v1410_v25  ;;  %v1889_v25 = vrot.slane %v1888_v46, 2  ;;  %v1901_v38 = vsel %vm1273_vm6, %v1850_v61, %v1843_v23 }
 0xf81   :  { %v1867_v60 = vadd.f32 %v1866_v30, %v1865_v1 }
 0xf82   :  { %v7291_v20 = vpop.eup %7290  ;;  %v1879_v33 = vsel %vm139_vm0, %v1835_v39, 0.0  ;;  %v1890_v41 = vadd.f32 %v1889_v25, %v1888_v46 }
 0xf83   :  { %v1301_v35 = vrot.slane %v7291_v20, 1  ;;  %v1304_v58 = vmul.f32 %v7291_v20, %v8273_v17  ;;  %v1880_v2 = vrot.slane %v1879_v33, 4  ;;  %v1868_v36 = vrot.slane %v1867_v60, 2 }
 0xf84   :  { %v1875_v17 = vrot.slane %v1874_v6, 2 }
 0xf85   :  { %v1305_v10 = vmul.f32 %v1301_v35, %v8275_v27  ;;  %v1310_v11 = vmul.f32 %v1309_v45, %v1304_v58  ;;  %v1881_v12 = vadd.f32 %v1880_v2, %v1879_v33  ;;  %v1869_v14 = vadd.f32 %v1868_v36, %v1867_v60  ;;  %v7177_v58 = vld [vmem:[%s10269_s1 + $0x4d0] ss:$8 sps:$4 sm:$0xff]   ;;  %v1403_v36 = vld [vmem:[%s10272_s4 + $0x8] sm:$0xff] }
 0xf86   :  { %v1876_v24 = vadd.f32 %v1875_v17, %v1874_v6  ;;  %v1902_v60 = vsel %vm1583_vm7, %v1857_v26, %v1901_v38  ;;  %v1891_v35 = vrot.slane %v1890_v41, 1  ;;  %v7178_v6 = vld [vmem:[%s10269_s1 + $0x4e0] ss:$8 sps:$4 sm:$0xff]   ;;  %v6363_v26 = vsel %vm2060_vm15, 1.0, %v10277_v31 }
 0xf87   :  { %v1311_v34 = vmul.f32 %v1309_v45, %v1305_v10  ;;  %v1316_v56 = vadd.f32 %v1315_v4, %v1310_v11  ;;  %v1882_v54 = vrot.slane %v1881_v12, 2  ;;  %v1870_v21 = vrot.slane %v1869_v14, 1  ;;  %v7176_v45 = vld [vmem:[%s10269_s1 + $0x4c0] ss:$8 sps:$4 sm:$0xff]   ;;  %v7179_v10 = vld [vmem:[%s10269_s1 + $0x4f0] ss:$8 sps:$4 sm:$0xff]  }
 0xf88   :  { %v1877_v39 = vrot.slane %v1876_v24, 1  ;;  %v1903_v49 = vsel %vm1585_vm8, %v1864_v28, %v1902_v60  ;;  %v1892_v37 = vadd.f32 %v1891_v35, %v1890_v41  ;;  %v2103_v35 = vld [vmem:[%s10271_s3 + $0x8] sm:$0xff]  ;;  %vm3083_vm7 = vcmask 130048  }
 0xf89   :  { %v1317_v7 = vadd.f32 %v1315_v4, %v1311_v34  ;;  %v1318_v63 = vpack.c.bf16 %v1316_v56, %v1316_v56  ;;  %v1883_v27 = vadd.f32 %v1882_v54, %v1881_v12  ;;  %v1871_v57 = vadd.f32 %v1870_v21, %v1869_v14 }
 0xf8a   :  { %v1878_v33 = vadd.f32 %v1877_v39, %v1876_v24  ;;  %v1922_v56 = vrot.slane %v8253_v5, %v8180_v48  ;;  %v1994_v5 = vrot.slane %v31_v19, 4 }
 0xf8b   :  { %v1319_v3 = vpack.c.bf16 %v1317_v7, %v1317_v7  ;;  %v1330_v1 = vunpack.c.l.b16 %v1318_v63  ;;  %v1884_v51 = vrot.slane %v1883_v27, 1  ;;  %v1904_v50 = vsel %vm1587_vm9, %v1871_v57, %v1903_v49 }
 0xf8c   :  { %v1905_v2 = vsel %vm1589_vm10, %v1878_v33, %v1904_v50  ;;  %v1991_v63 = vpack.c.bf16 %v31_v19, %v31_v19 }
 0xf8d   :  { %v1331_v15 = vunpack.c.l.b16 %v1319_v3  ;;  %v1885_v53 = vadd.f32 %v1884_v51, %v1883_v27 }
 0xf8f   :  { %v1332_v30 = vrot.slane %v1331_v15, 7  ;;  %v1906_v4 = vsel %vm1591_vm11, %v1885_v53, %v1905_v2  ;;  %v6362_v15 = vsel %vm2046_vm14, 1.0, %v10277_v31 }
 0xf90   :  { %v1907_v52 = vsel %vm1593_vm12, %v1892_v37, %v1906_v4  ;;  %v2106_v37 = vld [vmem:[%s10271_s3 + $0x20] sm:$0xff] }
 0xf91   :  { %v1333_v43 = vsel %vm1273_vm6, %v1332_v30, %v1330_v1  ;;  %v1909_v11 = vadd.f32 %v1907_v52, %v1403_v36 }
 0xf92   :  { %v1334_v20 = vpack.c.b16 %v1333_v43, %v1333_v43  ;;  %v6365_v43 = vsel %vm2088_vm4, 1.0, %v10277_v31 }
 0xf93   :  { %v1910_v12 = vpack.c.bf16 %v1909_v11, %v1909_v11 }
 0xf94   :  { %6780 = vmatmul.mubr.msk.bf16.vlgmr.msra.gmra.mrb[32].mxu1 %vm139_vm0, %v1334_v20 }
 0xf95   :  { %6784 = vmatpush3.bf16.msra.mxu1 %v7176_v45  ;;  %6791 = vmatprep.mubr.msk.bf16.mxu1 %vm7687_vm1, %v10277_v31 }
 0xf96   :  { %6785 = vmatprep.subr.bf16.mxu1 %v10277_v31 }
 0xf99   :  { %6786 = vmatpush3.bf16.msra.mxu1 %v7177_v58  ;;  %v2102_v58 = vld [vmem:[%s10271_s3] sm:$0xff] }
 0xf9a   :  { %6787 = vmatprep.subr.bf16.mxu1 %v10277_v31 }
 0xf9d   :  { %6788 = vmatpush3.bf16.msra.mxu1 %v7178_v6  ;;  %v2104_v6 = vld [vmem:[%s10271_s3 + $0x10] sm:$0xff] }
 0xf9e   :  { %6789 = vmatprep.subr.bf16.mxu1 %v10277_v31 }
 0xfa1   :  { %6790 = vmatpush3.bf16.msra.mxu1 %v7179_v10 }
 0xfa4   :  { %6792 = vmatmul.mubr.msk.bf16.vlgmr.msra.gmra.mrb[36].mxu1 %vm139_vm0, %v1910_v12 }
 0xfa5   :  { %2554 = vmatprep.mubr.bf16.mxu1 %v10275_v0 }
0x1067   :  { %v8373_v13 = vpop.f32.mrb[32].mxu1 }
0x1068   :  { %10296 = vst [vmem:[#allocation10_spill] sm:$0xff] %v8373_v13  ;;  %v6781_v47 = vpop.f32.mrb[33].mxu1 }
0x1069   :  { %v1399_v29 = vpop.f32.mrb[34].mxu1 }
0x106a   :  { %v6782_v34 = vpop.f32.mrb[35].mxu1  ;;  %v2108_v29 = vld [vmem:[%s10271_s3 + $0x30] sm:$0xff] }
0x106b   :  { %v2105_v34 = vld [vmem:[%s10271_s3 + $0x18] sm:$0xff] }
0x1077   :  { %v1984_v14 = vpop.f32.mrb[36].mxu1 }
0x1078   :  { %v1985_v54 = vadd.f32 %v1984_v14, %v1922_v56  ;;  %v6793_v16 = vpop.f32.mrb[37].mxu1 }
0x1079   :  { %v1987_v17 = vpop.f32.mrb[38].mxu1 }
0x107a   :  { %7292 = vtanh.f32 %v1985_v54  ;;  %v6794_v46 = vpop.f32.mrb[39].mxu1  ;;  %v2110_v17 = vld [vmem:[%s10271_s3 + $0x40] sm:$0xff] }
0x107b   :  { %v2107_v46 = vld [vmem:[%s10271_s3 + $0x28] sm:$0xff] }
0x1084   :  { %v7293_v7 = vpop.eup %7292 }
0x1085   :  { %v1992_v55 = vpack.c.bf16 %v7293_v7, %v7293_v7 }
0x1087   :  { %v2000_v9 = vsel %vm559_vm3, %v1992_v55, 0  ;;  %vm2074_vm3 = vcmp.eq.s32.totalorder %v7794_v40, 3 }
0x1088   :  { %6796 = vmatpush3.bf16.msra.mxu0 %v2000_v9  ;;  %v6364_v30 = vsel %vm2074_vm3, 1.0, %v10277_v31 }
0x1089   :  { %6801 = vmatprep.subr.bf16.mxu0 %v10277_v31 }
0x108b   :  { %6798 = vmatmul.mubr.msk.bf16.vlgmr.msra.gmra.mrb[20].mxu0 %vm531_vm5, %v1991_v63  ;;  %v2112_v63 = vld [vmem:[%s10271_s3 + $0x50] sm:$0xff]  ;;  %vm2134_vm5 = vcmp.gt.s32.totalorder %v7899_v59, %v7794_v40 }
0x108c   :  { %6803 = vmatprep.mubr.msk.bf16.mxu0 %vm7687_vm1, %v10277_v31 }
0x115e   :  { %v2036_v3 = vpop.f32.mrb[20].mxu0 }
0x115f   :  { %v2037_v21 = vadd.f32 %v2036_v3, %v1994_v5  ;;  %v6799_v27 = vpop.f32.mrb[21].mxu0  ;;  %v2109_v5 = vld [vmem:[%s10271_s3 + $0x38] sm:$0xff] }
0x1160   :  { %v2039_v23 = vpop.f32.mrb[22].mxu0 }
0x1161   :  { %v2042_v24 = vmul.f32 0.1, %v2037_v21  ;;  %v6800_v25 = vpop.f32.mrb[23].mxu0 }
0x1162   :  { %v2111_v25 = vld [vmem:[%s10271_s3 + $0x48] sm:$0xff] }
0x1163   :  { %v2055_v61 = vrot.slane %v2042_v24, %v7797_v42  ;;  %v2069_v28 = vrot.slane %v2042_v24, %v7803_v44  ;;  %v2083_v1 = vrot.slane %v2042_v24, %v8180_v48  ;;  %v2097_v57 = vrot.slane %v2042_v24, %v7855_v32  ;;  %v2114_v24 = vld [vmem:[%s10271_s3 + $0x60] sm:$0xff] }
0x1165   :  { %v2056_v51 = vmul.f32 %v6362_v15, %v2055_v61  ;;  %v2057_v38 = vmul.f32 0.0, %v2055_v61  ;;  %v2070_v39 = vmul.f32 %v6363_v26, %v2069_v28  ;;  %v2071_v41 = vmul.f32 0.0, %v2069_v28 }
0x1166   :  { %v2084_v20 = vmul.f32 %v6364_v30, %v2083_v1  ;;  %v2085_v42 = vmul.f32 0.0, %v2083_v1  ;;  %v2098_v53 = vmul.f32 %v6365_v43, %v2097_v57  ;;  %v2099_v33 = vmul.f32 0.0, %v2097_v57  ;;  %v2116_v1 = vld [vmem:[%s10271_s3 + $0x70] sm:$0xff]  ;;  %v2113_v30 = vld [vmem:[%s10271_s3 + $0x58] sm:$0xff] }
0x1167   :  { %v2072_v45 = vadd.f32 %v2070_v39, %v2056_v51  ;;  %v2073_v60 = vadd.f32 %v2071_v41, %v2057_v38  ;;  %v2115_v41 = vld [vmem:[%s10271_s3 + $0x68] sm:$0xff] }
0x1169   :  { %v2086_v49 = vadd.f32 %v2084_v20, %v2072_v45  ;;  %v2087_v50 = vadd.f32 %v2085_v42, %v2073_v60  ;;  %v2117_v20 = vld [vmem:[%s10271_s3 + $0x78] sm:$0xff] }
0x116b   :  { %v2100_v2 = vadd.f32 %v2098_v53, %v2086_v49  ;;  %v2101_v4 = vadd.f32 %v2099_v33, %v2087_v50 }
0x116d   :  { %v8409_v36 = vadd.f32 %v2103_v35, %v2101_v4  ;;  %v8411_v52 = vadd.f32 %v2102_v58, %v2100_v2  ;;  %v8417_v12 = vadd.f32 %v2106_v37, %v2100_v2  ;;  %v8419_v47 = vadd.f32 %v2104_v6, %v2100_v2 }
0x116e   :  { %v8431_v54 = vadd.f32 %v2108_v29, %v2100_v2  ;;  %v8433_v16 = vadd.f32 %v2105_v34, %v2101_v4  ;;  %v8445_v55 = vadd.f32 %v2110_v17, %v2100_v2  ;;  %v8447_v9 = vadd.f32 %v2107_v46, %v2101_v4 }
0x116f   :  { %v2197_v10 = vsel %vm139_vm0, %v8409_v36, 0.0  ;;  %v2194_v11 = vsel %vm139_vm0, %v8411_v52, 0.0  ;;  %v2206_v56 = vsel %vm139_vm0, %v8417_v12, 0.0  ;;  %v2200_v14 = vsel %vm139_vm0, %v8419_v47, 0.0 }
0x1170   :  { %2198 = vadd.xlane.f32.xlu1 %v2197_v10  ;;  %2195 = vadd.xlane.f32.xlu0 %v2194_v11  ;;  %v2212_v7 = vsel %vm139_vm0, %v8431_v54, 0.0  ;;  %v2203_v19 = vsel %vm139_vm0, %v8433_v16, 0.0  ;;  %v2218_v3 = vsel %vm139_vm0, %v8445_v55, 0.0  ;;  %v2209_v21 = vsel %vm139_vm0, %v8447_v9, 0.0 }
0x1171   :  { %v8459_v27 = vadd.f32 %v2112_v63, %v2100_v2  ;;  %v8461_v23 = vadd.f32 %v2109_v5, %v2101_v4  ;;  %v8473_v61 = vadd.f32 %v2114_v24, %v2100_v2  ;;  %v8475_v28 = vadd.f32 %v2111_v25, %v2101_v4 }
0x1172   :  { %v8487_v38 = vadd.f32 %v2116_v1, %v2100_v2  ;;  %v8489_v39 = vadd.f32 %v2113_v30, %v2101_v4  ;;  %v8498_v60 = vadd.f32 %v2115_v41, %v2101_v4  ;;  %v8505_v49 = vadd.f32 %v2117_v20, %v2101_v4 }
0x1173   :  { %v2224_v15 = vsel %vm139_vm0, %v8459_v27, 0.0  ;;  %v2215_v26 = vsel %vm139_vm0, %v8461_v23, 0.0  ;;  %10297 = vst [vmem:[#allocation11_spill] sm:$0xff] %v8473_v61  ;;  %10298 = vst [vmem:[#allocation12_spill] sm:$0xff] %v8475_v28  ;;  %v2230_v57 = vsel %vm139_vm0, %v8473_v61, 0.0  ;;  %v2221_v51 = vsel %vm139_vm0, %v8475_v28, 0.0 }
0x1174   :  { %2207 = vadd.xlane.f32.xlu1 %v2206_v56  ;;  %2201 = vadd.xlane.f32.xlu0 %v2200_v14  ;;  %10299 = vst [vmem:[#allocation13_spill] sm:$0xff] %v8487_v38  ;;  %v2236_v43 = vsel %vm139_vm0, %v8487_v38, 0.0  ;;  %v2227_v45 = vsel %vm139_vm0, %v8489_v39, 0.0  ;;  %10300 = vst [vmem:[#allocation14_spill] sm:$0xff] %v8498_v60  ;;  %v2233_v42 = vsel %vm139_vm0, %v8498_v60, 0.0  ;;  %v2239_v50 = vsel %vm139_vm0, %v8505_v49, 0.0 }
0x1175   :  { %10301 = vst [vmem:[#allocation15_spill] sm:$0xff] %v8505_v49 }
0x1178   :  { %2213 = vadd.xlane.f32.xlu1 %v2212_v7  ;;  %2204 = vadd.xlane.f32.xlu0 %v2203_v19 }
0x117c   :  { %2219 = vadd.xlane.f32.xlu1 %v2218_v3  ;;  %2210 = vadd.xlane.f32.xlu0 %v2209_v21 }
0x1180   :  { %2225 = vadd.xlane.f32.xlu1 %v2224_v15  ;;  %2216 = vadd.xlane.f32.xlu0 %v2215_v26 }
0x1184   :  { %2231 = vadd.xlane.f32.xlu1 %v2230_v57  ;;  %2222 = vadd.xlane.f32.xlu0 %v2221_v51 }
0x1188   :  { %2237 = vadd.xlane.f32.xlu1 %v2236_v43  ;;  %2228 = vadd.xlane.f32.xlu0 %v2227_v45 }
0x118c   :  { %2234 = vadd.xlane.f32.xlu0 %v2233_v42 }
0x1190   :  { %2240 = vadd.xlane.f32.xlu0 %v2239_v50 }
0x11fd   :  { %v2199_v53 = vpop.xlane.xlu1 %2198  ;;  %v2196_v33 = vpop.xlane.xlu0 %2195 }
0x11fe   :  { %v2243_v35 = vmul.f32 0.015625, %v2199_v53  ;;  %v2242_v58 = vmul.f32 0.015625, %v2196_v33 }
0x1200   :  { %v8510_v2 = vsub.f32 %v8409_v36, %v2243_v35  ;;  %v8513_v37 = vsub.f32 %v8411_v52, %v2242_v58 }
0x1201   :  { %v2208_v6 = vpop.xlane.xlu1 %2207  ;;  %v2202_v10 = vpop.xlane.xlu0 %2201 }
0x1202   :  { %v2246_v11 = vmul.f32 0.015625, %v2208_v6  ;;  %v2244_v4 = vmul.f32 0.015625, %v2202_v10  ;;  %v2275_v29 = vmul.f32 %v8510_v2, %v8510_v2  ;;  %v2274_v34 = vmul.f32 %v8513_v37, %v8513_v37 }
0x1204   :  { %v8520_v56 = vsub.f32 %v8417_v12, %v2246_v11  ;;  %v8523_v14 = vsub.f32 %v8419_v47, %v2244_v4  ;;  %v2293_v17 = vsel %vm139_vm0, %v2275_v29, 0.0  ;;  %v2290_v46 = vsel %vm139_vm0, %v2274_v34, 0.0 }
0x1205   :  { %v2214_v7 = vpop.xlane.xlu1 %2213  ;;  %2294 = vadd.xlane.f32.xlu0 %v2293_v17  ;;  %2291 = vadd.xlane.f32.xlu1 %v2290_v46  ;;  %v2205_v19 = vpop.xlane.xlu0 %2204 }
0x1206   :  { %v2248_v63 = vmul.f32 0.015625, %v2214_v7  ;;  %v2245_v5 = vmul.f32 0.015625, %v2205_v19  ;;  %v2276_v3 = vmul.f32 %v8523_v14, %v8523_v14  ;;  %v2278_v15 = vmul.f32 %v8520_v56, %v8520_v56 }
0x1208   :  { %v8530_v21 = vsub.f32 %v8431_v54, %v2248_v63  ;;  %v8533_v24 = vsub.f32 %v8433_v16, %v2245_v5  ;;  %v2296_v25 = vsel %vm139_vm0, %v2276_v3, 0.0  ;;  %v2302_v20 = vsel %vm139_vm0, %v2278_v15, 0.0 }
0x1209   :  { %v2220_v26 = vpop.xlane.xlu1 %2219  ;;  %2297 = vadd.xlane.f32.xlu1 %v2296_v25  ;;  %v2211_v1 = vpop.xlane.xlu0 %2210 }
0x120a   :  { %v2250_v30 = vmul.f32 0.015625, %v2220_v26  ;;  %v2247_v57 = vmul.f32 0.015625, %v2211_v1  ;;  %v2277_v51 = vmul.f32 %v8533_v24, %v8533_v24  ;;  %v2280_v41 = vmul.f32 %v8530_v21, %v8530_v21 }
0x120c   :  { %v8543_v43 = vsub.f32 %v8445_v55, %v2250_v30  ;;  %v8546_v45 = vsub.f32 %v8447_v9, %v2247_v57  ;;  %v2299_v42 = vsel %vm139_vm0, %v2277_v51, 0.0  ;;  %v2308_v6 = vsel %vm139_vm0, %v2280_v41, 0.0 }
0x120d   :  { %v2226_v50 = vpop.xlane.xlu1 %2225  ;;  %2303 = vadd.xlane.f32.xlu1 %v2302_v20  ;;  %2300 = vadd.xlane.f32.xlu0 %v2299_v42  ;;  %v2217_v53 = vpop.xlane.xlu0 %2216 }
0x120e   :  { %v2252_v33 = vmul.f32 0.015625, %v2226_v50  ;;  %v2249_v35 = vmul.f32 0.015625, %v2217_v53  ;;  %v2279_v58 = vmul.f32 %v8546_v45, %v8546_v45  ;;  %v2282_v29 = vmul.f32 %v8543_v43, %v8543_v43 }
0x1210   :  { %v8554_v10 = vsub.f32 %v8459_v27, %v2252_v33  ;;  %v8557_v11 = vsub.f32 %v8461_v23, %v2249_v35  ;;  %v2305_v4 = vsel %vm139_vm0, %v2279_v58, 0.0  ;;  %v2314_v25 = vsel %vm139_vm0, %v2282_v29, 0.0 }
0x1211   :  { %v2232_v34 = vpop.xlane.xlu1 %2231  ;;  %2309 = vadd.xlane.f32.xlu1 %v2308_v6  ;;  %2306 = vadd.xlane.f32.xlu0 %v2305_v4  ;;  %v2223_v17 = vpop.xlane.xlu0 %2222 }
0x1212   :  { %v2254_v46 = vmul.f32 0.015625, %v2232_v34  ;;  %v2251_v7 = vmul.f32 0.015625, %v2223_v17  ;;  %v2281_v19 = vmul.f32 %v8557_v11, %v8557_v11  ;;  %v2284_v63 = vmul.f32 %v8554_v10, %v8554_v10 }
0x1214   :  { %v8567_v5 = vsub.f32 %v8473_v61, %v2254_v46  ;;  %v8570_v3 = vsub.f32 %v8475_v28, %v2251_v7  ;;  %v2311_v15 = vsel %vm139_vm0, %v2281_v19, 0.0  ;;  %v2320_v41 = vsel %vm139_vm0, %v2284_v63, 0.0  ;;  %v7182_v19 = vld [vmem:[%s10269_s1 + $0x284] ss:$8 sps:$4 sm:$0xff]   ;;  %v7180_v63 = vld [vmem:[%s10269_s1 + $0x280] ss:$8 sps:$4 sm:$0xff]  }
0x1215   :  { %v2238_v26 = vpop.xlane.xlu1 %2237  ;;  %2315 = vadd.xlane.f32.xlu1 %v2314_v25  ;;  %2312 = vadd.xlane.f32.xlu0 %v2311_v15  ;;  %v2229_v1 = vpop.xlane.xlu0 %2228 }
0x1216   :  { %v2256_v30 = vmul.f32 0.015625, %v2238_v26  ;;  %v2253_v57 = vmul.f32 0.015625, %v2229_v1  ;;  %v2283_v51 = vmul.f32 %v8570_v3, %v8570_v3  ;;  %v2286_v53 = vmul.f32 %v8567_v5, %v8567_v5  ;;  %2522 = vmatprep.subr.bf16.mxu1 %v7182_v19 }
0x1217   :  { %2523 = vmatpush1.bf16.msra.mxu1 %v7180_v63 }
0x1218   :  { %v8578_v20 = vsub.f32 %v8487_v38, %v2256_v30  ;;  %v8581_v42 = vsub.f32 %v8489_v39, %v2253_v57  ;;  %v2317_v50 = vsel %vm139_vm0, %v2283_v51, 0.0  ;;  %v2326_v4 = vsel %vm139_vm0, %v2286_v53, 0.0  ;;  %v7185_v30 = vld [vmem:[%s10269_s1 + $0x294] ss:$8 sps:$4 sm:$0xff]   ;;  %v7183_v57 = vld [vmem:[%s10269_s1 + $0x290] ss:$8 sps:$4 sm:$0xff]  }
0x1219   :  { %2321 = vadd.xlane.f32.xlu1 %v2320_v41  ;;  %2318 = vadd.xlane.f32.xlu0 %v2317_v50  ;;  %v2235_v33 = vpop.xlane.xlu0 %2234  ;;  %v7188_v41 = vld [vmem:[%s10269_s1 + $0x2a4] ss:$8 sps:$4 sm:$0xff]   ;;  %v7186_v50 = vld [vmem:[%s10269_s1 + $0x2a0] ss:$8 sps:$4 sm:$0xff]   ;;  %v7191_v53 = vld [vmem:[%s10269_s1 + $0x2b4] ss:$8 sps:$4 sm:$0xff]  }
0x121a   :  { %v2255_v35 = vmul.f32 0.015625, %v2235_v33  ;;  %v2285_v58 = vmul.f32 %v8581_v42, %v8581_v42  ;;  %v2288_v34 = vmul.f32 %v8578_v20, %v8578_v20  ;;  %2524 = vmatprep.subr.bf16.mxu1 %v7185_v30  ;;  %v7189_v33 = vld [vmem:[%s10269_s1 + $0x2b0] ss:$8 sps:$4 sm:$0xff]  }
0x121b   :  { %2525 = vmatpush1.bf16.msra.mxu1 %v7183_v57 }
0x121c   :  { %v8589_v6 = vsub.f32 %v8498_v60, %v2255_v35  ;;  %v2323_v29 = vsel %vm139_vm0, %v2285_v58, 0.0  ;;  %v2332_v15 = vsel %vm139_vm0, %v2288_v34, 0.0  ;;  %2526 = vmatprep.subr.bf16.mxu1 %v7188_v41 }
0x121d   :  { %2327 = vadd.xlane.f32.xlu1 %v2326_v4  ;;  %2324 = vadd.xlane.f32.xlu0 %v2323_v29  ;;  %v2241_v17 = vpop.xlane.xlu0 %2240 }
0x121e   :  { %v2257_v46 = vmul.f32 0.015625, %v2241_v17  ;;  %v2287_v7 = vmul.f32 %v8589_v6, %v8589_v6 }
0x121f   :  { %2527 = vmatpush1.bf16.msra.mxu1 %v7186_v50 }
0x1220   :  { %v8604_v25 = vsub.f32 %v8505_v49, %v2257_v46  ;;  %v2329_v26 = vsel %vm139_vm0, %v2287_v7, 0.0  ;;  %2528 = vmatprep.subr.bf16.mxu1 %v7191_v53  ;;  %v7654_v53 = vld [vmem:[%s10270_s2 + $0x20] sm:$0xff] }
0x1221   :  { %2333 = vadd.xlane.f32.xlu1 %v2332_v15  ;;  %2330 = vadd.xlane.f32.xlu0 %v2329_v26 }
0x1222   :  { %v2289_v1 = vmul.f32 %v8604_v25, %v8604_v25 }
0x1223   :  { %2529 = vmatpush1.bf16.msra.mxu1 %v7189_v33  ;;  %v8634_v33 = vrot.slane %v7654_v53, %v8180_v48 }
0x1224   :  { %v2335_v51 = vsel %vm139_vm0, %v2289_v1, 0.0  ;;  %6855 = vmatprep.subr.bf16.mxu1 %v10277_v31 }
0x1225   :  { %2336 = vadd.xlane.f32.xlu0 %v2335_v51 }
0x1292   :  { %v2292_v35 = vpop.xlane.xlu1 %2291  ;;  %v2295_v58 = vpop.xlane.xlu0 %2294 }
0x1293   :  { %v2338_v4 = vmul.f32 0.015625, %v2292_v35  ;;  %v2339_v29 = vmul.f32 0.015625, %v2295_v58 }
0x1295   :  { %v2354_v34 = vadd.f32 1e-05, %v2338_v4  ;;  %v2355_v17 = vadd.f32 1e-05, %v2339_v29  ;;  %v8637_v29 = vrot.slane %v7654_v53, %v7855_v32 }
0x1296   :  { %v2298_v46 = vpop.xlane.xlu1 %2297 }
0x1297   :  { %7294 = vrsqrt.f32 %v2354_v34  ;;  %v2340_v7 = vmul.f32 0.015625, %v2298_v46 }
0x1298   :  { %7296 = vrsqrt.f32 %v2355_v17 }
0x1299   :  { %v2356_v19 = vadd.f32 1e-05, %v2340_v7 }
0x129a   :  { %v2304_v63 = vpop.xlane.xlu1 %2303  ;;  %v2301_v15 = vpop.xlane.xlu0 %2300 }
0x129b   :  { %7298 = vrsqrt.f32 %v2356_v19  ;;  %v2342_v26 = vmul.f32 0.015625, %v2304_v63  ;;  %v2341_v1 = vmul.f32 0.015625, %v2301_v15 }
0x129d   :  { %v2357_v30 = vadd.f32 1e-05, %v2341_v1  ;;  %v2358_v57 = vadd.f32 1e-05, %v2342_v26 }
0x129e   :  { %v2307_v51 = vpop.xlane.xlu0 %2306  ;;  %v2310_v41 = vpop.xlane.xlu1 %2309 }
0x129f   :  { %v2343_v50 = vmul.f32 0.015625, %v2307_v51  ;;  %7300 = vrsqrt.f32 %v2357_v30  ;;  %v2344_v17 = vmul.f32 0.015625, %v2310_v41 }
0x12a0   :  { %7302 = vrsqrt.f32 %v2358_v57 }
0x12a1   :  { %v7295_v35 = vpop.eup %7294  ;;  %v2359_v58 = vadd.f32 1e-05, %v2343_v50  ;;  %v2360_v1 = vadd.f32 1e-05, %v2344_v17 }
0x12a2   :  { %v7297_v4 = vpop.eup %7296  ;;  %v2386_v34 = vmul.f32 %v7295_v35, %v8513_v37  ;;  %v2313_v46 = vpop.xlane.xlu0 %2312 }
0x12a3   :  { %v2387_v7 = vmul.f32 %v7297_v4, %v8510_v2  ;;  %v2345_v19 = vmul.f32 0.015625, %v2313_v46  ;;  %7304 = vrsqrt.f32 %v2359_v58  ;;  %v2316_v51 = vpop.xlane.xlu1 %2315 }
0x12a4   :  { %v2406_v63 = vmul.f32 %v8634_v33, %v2386_v34  ;;  %v2346_v53 = vmul.f32 0.015625, %v2316_v51 }
0x12a5   :  { %v7299_v48 = vpop.eup %7298  ;;  %v2407_v15 = vmul.f32 %v8634_v33, %v2387_v7  ;;  %v2361_v26 = vadd.f32 1e-05, %v2345_v19 }
0x12a6   :  { %v2319_v30 = vpop.xlane.xlu0 %2318  ;;  %v2426_v32 = vadd.f32 %v8637_v29, %v2406_v63  ;;  %v2388_v57 = vmul.f32 %v7299_v48, %v8523_v14  ;;  %v2362_v7 = vadd.f32 1e-05, %v2346_v53 }
0x12a7   :  { %v2427_v37 = vadd.f32 %v8637_v29, %v2407_v15  ;;  %7306 = vrsqrt.f32 %v2361_v26  ;;  %v2347_v41 = vmul.f32 0.015625, %v2319_v30  ;;  %v2322_v19 = vpop.xlane.xlu1 %2321 }
0x12a8   :  { %7308 = vrsqrt.f32 %v2360_v1  ;;  %v2408_v58 = vmul.f32 %v8634_v33, %v2388_v57 }
0x12a9   :  { %v2442_v2 = vpack.c.bf16 %v2427_v37, %v2426_v32  ;;  %v7301_v50 = vpop.eup %7300  ;;  %v2363_v34 = vadd.f32 1e-05, %v2347_v41  ;;  %v2348_v32 = vmul.f32 0.015625, %v2322_v19 }
0x12aa   :  { %v2389_v35 = vmul.f32 %v7301_v50, %v8533_v24  ;;  %v7303_v4 = vpop.eup %7302  ;;  %v2325_v17 = vpop.xlane.xlu0 %2324  ;;  %v2428_v63 = vadd.f32 %v8637_v29, %v2408_v58 }
0x12ab   :  { %6374 = vmatmul.mubr.msk.bf16.vlgmr.msra.gmra.mrb[40].mxu1 %vm139_vm0, %v2442_v2  ;;  %v2390_v15 = vmul.f32 %v7303_v4, %v8520_v56  ;;  %7310 = vrsqrt.f32 %v2363_v34  ;;  %v2349_v24 = vmul.f32 0.015625, %v2325_v17  ;;  %v2328_v53 = vpop.xlane.xlu1 %2327 }
0x12ac   :  { %2564 = vmatprep.mubr.bf16.mxu1 %v10275_v0  ;;  %v2409_v46 = vmul.f32 %v8634_v33, %v2389_v35  ;;  %7312 = vrsqrt.f32 %v2362_v7 }
0x12ad   :  { %v7305_v14 = vpop.eup %7304  ;;  %v2410_v37 = vmul.f32 %v8634_v33, %v2390_v15  ;;  %v2365_v41 = vadd.f32 1e-05, %v2349_v24 }
0x12ae   :  { %v2429_v48 = vadd.f32 %v8637_v29, %v2409_v46  ;;  %v2391_v26 = vmul.f32 %v7305_v14, %v8546_v45  ;;  %v2331_v2 = vpop.xlane.xlu0 %2330  ;;  %v2364_v45 = vadd.f32 1e-05, %v2348_v32  ;;  %v2350_v14 = vmul.f32 0.015625, %v2328_v53 }
0x12af   :  { %v2430_v35 = vadd.f32 %v8637_v29, %v2410_v37  ;;  %7314 = vrsqrt.f32 %v2365_v41  ;;  %v2351_v4 = vmul.f32 0.015625, %v2331_v2  ;;  %v2334_v24 = vpop.xlane.xlu1 %2333 }
0x12b0   :  { %v2443_v1 = vpack.c.bf16 %v2429_v48, %v2428_v63  ;;  %v2411_v51 = vmul.f32 %v8634_v33, %v2391_v26  ;;  %7316 = vrsqrt.f32 %v2364_v45  ;;  %v2366_v15 = vadd.f32 1e-05, %v2350_v14 }
0x12b1   :  { %v7307_v30 = vpop.eup %7306 }
0x12b2   :  { %v7309_v57 = vpop.eup %7308  ;;  %v2431_v56 = vadd.f32 %v8637_v29, %v2411_v51  ;;  %v2393_v50 = vmul.f32 %v7307_v30, %v8557_v11  ;;  %v2367_v11 = vadd.f32 1e-05, %v2351_v4  ;;  %v2337_v63 = vpop.xlane.xlu0 %2336 }
0x12b3   :  { %6375 = vmatmul.mubr.msk.bf16.gmra.mrb[44].mxu1 %vm139_vm0, %v2443_v1  ;;  %v2392_v58 = vmul.f32 %v7309_v57, %v8530_v21  ;;  %v2353_v30 = vmul.f32 0.015625, %v2337_v63  ;;  %v2352_v57 = vmul.f32 0.015625, %v2334_v24 }
0x12b4   :  { %2574 = vmatprep.mubr.bf16.mxu1 %v10275_v0  ;;  %v2444_v34 = vpack.c.bf16 %v2431_v56, %v2430_v35  ;;  %v2413_v17 = vmul.f32 %v8634_v33, %v2393_v50  ;;  %7318 = vrsqrt.f32 %v2367_v11 }
0x12b5   :  { %v7311_v46 = vpop.eup %7310  ;;  %v2412_v7 = vmul.f32 %v8634_v33, %v2392_v58  ;;  %7320 = vrsqrt.f32 %v2366_v15  ;;  %v2368_v50 = vadd.f32 1e-05, %v2352_v57 }
0x12b6   :  { %v7313_v19 = vpop.eup %7312  ;;  %v2433_v48 = vadd.f32 %v8637_v29, %v2413_v17  ;;  %v2395_v21 = vmul.f32 %v7311_v46, %v8570_v3  ;;  %v2369_v3 = vadd.f32 1e-05, %v2353_v30 }
0x12b7   :  { %v2432_v26 = vadd.f32 %v8637_v29, %v2412_v7  ;;  %v2394_v1 = vmul.f32 %v7313_v19, %v8543_v43 }
0x12b8   :  { %v2415_v51 = vmul.f32 %v8634_v33, %v2395_v21  ;;  %7322 = vrsqrt.f32 %v2369_v3 }
0x12b9   :  { %v2445_v32 = vpack.c.bf16 %v2433_v48, %v2432_v26  ;;  %v7315_v37 = vpop.eup %7314  ;;  %v2414_v41 = vmul.f32 %v8634_v33, %v2394_v1  ;;  %7324 = vrsqrt.f32 %v2368_v50 }
0x12ba   :  { %v7317_v2 = vpop.eup %7316  ;;  %v2435_v56 = vadd.f32 %v8637_v29, %v2415_v51  ;;  %v2397_v43 = vmul.f32 %v7315_v37, %v8581_v42 }
0x12bb   :  { %6376 = vmatmul.mubr.msk.bf16.gmra.mrb[48].mxu1 %vm139_vm0, %v2444_v34  ;;  %v2434_v45 = vadd.f32 %v8637_v29, %v2414_v41  ;;  %v2396_v53 = vmul.f32 %v7317_v2, %v8554_v10 }
0x12bc   :  { %2584 = vmatprep.mubr.bf16.mxu1 %v10275_v0  ;;  %v2417_v58 = vmul.f32 %v8634_v33, %v2397_v43 }
0x12bd   :  { %v2446_v35 = vpack.c.bf16 %v2435_v56, %v2434_v45  ;;  %v2416_v34 = vmul.f32 %v8634_v33, %v2396_v53 }
0x12be   :  { %v7319_v4 = vpop.eup %7318  ;;  %v2437_v42 = vadd.f32 %v8637_v29, %v2417_v58 }
0x12bf   :  { %v7321_v17 = vpop.eup %7320  ;;  %v2399_v46 = vmul.f32 %v7319_v4, %v8589_v6  ;;  %v2436_v14 = vadd.f32 %v8637_v29, %v2416_v34 }
0x12c0   :  { %v2398_v10 = vmul.f32 %v7321_v17, %v8567_v5 }
0x12c1   :  { %v2447_v7 = vpack.c.bf16 %v2437_v42, %v2436_v14  ;;  %v2419_v19 = vmul.f32 %v8634_v33, %v2399_v46 }
0x12c2   :  { %v7323_v11 = vpop.eup %7322  ;;  %v2418_v63 = vmul.f32 %v8634_v33, %v2398_v10 }
0x12c3   :  { %6377 = vmatmul.mubr.msk.bf16.gmra.mrb[52].mxu1 %vm139_vm0, %v2445_v32  ;;  %v7325_v48 = vpop.eup %7324  ;;  %v2439_v21 = vadd.f32 %v8637_v29, %v2419_v19  ;;  %v2401_v15 = vmul.f32 %v7323_v11, %v8604_v25 }
0x12c4   :  { %2594 = vmatprep.mubr.bf16.mxu1 %v10275_v0  ;;  %v2438_v6 = vadd.f32 %v8637_v29, %v2418_v63  ;;  %v2400_v24 = vmul.f32 %v7325_v48, %v8578_v20  ;;  %v7655_v20 = vld [vmem:[%s10270_s2 + $0x38] sm:$0xff] }
0x12c5   :  { %v2421_v26 = vmul.f32 %v8634_v33, %v2401_v15  ;;  %v8708_v25 = vrot.slane %v7655_v20, %v8186_v62 }
0x12c6   :  { %v2448_v5 = vpack.c.bf16 %v2439_v21, %v2438_v6  ;;  %v2420_v1 = vmul.f32 %v8634_v33, %v2400_v24  ;;  %v7656_v33 = vld [vmem:[%s10270_s2 + $0x30] sm:$0xff] }
0x12c7   :  { %v2441_v30 = vadd.f32 %v8637_v29, %v2421_v26  ;;  %v8714_v37 = vrot.slane %v7656_v33, %v8186_v62 }
0x12c8   :  { %v2440_v32 = vadd.f32 %v8637_v29, %v2420_v1 }
0x12ca   :  { %v2449_v51 = vpack.c.bf16 %v2441_v30, %v2440_v32 }
0x12cb   :  { %6378 = vmatmul.mubr.msk.bf16.gmra.mrb[56].mxu1 %vm139_vm0, %v2446_v35 }
0x12cc   :  { %2604 = vmatprep.mubr.bf16.mxu1 %v10275_v0 }
0x12d3   :  { %6379 = vmatmul.mubr.msk.bf16.gmra.mrb[60].mxu1 %vm139_vm0, %v2447_v7 }
0x12d4   :  { %2614 = vmatprep.mubr.bf16.mxu1 %v10275_v0 }
0x12db   :  { %6380 = vmatmul.mubr.msk.bf16.gmra.mrb[64].mxu1 %vm139_vm0, %v2448_v5 }
0x12dc   :  { %2624 = vmatprep.mubr.bf16.mxu1 %v10275_v0 }
0x12e3   :  { %6381 = vmatmul.mubr.msk.bf16.gmra.mrb[68].mxu1 %vm139_vm0, %v2449_v51 }
0x12e4   :  { %6857 = vmatprep.mubr.msk.bf16.mxu1 %vm7687_vm1, %v10277_v31 }
0x137e   :  { %v2556_v29 = vpop.f32.mrb[40].mxu1 }
0x137f   :  { %v2558_v57 = vpop.f32.mrb[41].mxu1  ;;  %v2557_v3 = vadd.f32 %v2556_v29, %v8714_v37 }
0x1380   :  { %v2559_v41 = vadd.f32 %v2558_v57, %v8708_v25  ;;  %v2560_v2 = vpop.f32.mrb[42].mxu1 }
0x1381   :  { %v2561_v56 = vadd.f32 %v2560_v2, %v8714_v37  ;;  %v2562_v43 = vpop.f32.mrb[43].mxu1 }
0x1382   :  { %v2563_v50 = vadd.f32 %v2562_v43, %v8708_v25 }
0x1383   :  { %v8720_v45 = vpack.c.bf16 %v2561_v56, %v2557_v3 }
0x1384   :  { %v8722_v53 = vpack.c.bf16 %v2563_v50, %v2559_v41 }
0x1385   :  { %2652 = vrot.lane.b32.xlu1 %v8720_v45, %s7688_s24 }
0x1386   :  { %v2566_v35 = vpop.f32.mrb[44].mxu1 }
0x1387   :  { %v2568_v58 = vpop.f32.mrb[45].mxu1  ;;  %v2567_v34 = vadd.f32 %v2566_v35, %v8714_v37 }
0x1388   :  { %v2570_v4 = vpop.f32.mrb[46].mxu1  ;;  %v2569_v46 = vadd.f32 %v2568_v58, %v8708_v25 }
0x1389   :  { %v2571_v17 = vadd.f32 %v2570_v4, %v8714_v37  ;;  %v2572_v42 = vpop.f32.mrb[47].mxu1 }
0x138a   :  { %v2573_v14 = vadd.f32 %v2572_v42, %v8708_v25 }
0x138b   :  { %v8730_v10 = vpack.c.bf16 %v2571_v17, %v2567_v34 }
0x138c   :  { %v8732_v7 = vpack.c.bf16 %v2573_v14, %v2569_v46 }
0x138d   :  { %2702 = vrot.lane.b32.xlu0 %v8730_v10, %s7688_s24 }
0x138e   :  { %v2576_v19 = vpop.f32.mrb[48].mxu1  ;;  %6856 = vmatpush3.bf16.msra.mxu1 %v8732_v7 }
0x138f   :  { %v2578_v11 = vpop.f32.mrb[49].mxu1  ;;  %6867 = vmatprep.subr.bf16.mxu1 %v10277_v31  ;;  %v2577_v21 = vadd.f32 %v2576_v19, %v8714_v37 }
0x1390   :  { %v2579_v63 = vadd.f32 %v2578_v11, %v8708_v25  ;;  %v2580_v48 = vpop.f32.mrb[50].mxu1 }
0x1391   :  { %v2581_v15 = vadd.f32 %v2580_v48, %v8714_v37  ;;  %v2582_v6 = vpop.f32.mrb[51].mxu1 }
0x1392   :  { %v2583_v24 = vadd.f32 %v2582_v6, %v8708_v25 }
0x1393   :  { %v8742_v5 = vpack.c.bf16 %v2581_v15, %v2577_v21 }
0x1394   :  { %v8744_v26 = vpack.c.bf16 %v2583_v24, %v2579_v63 }
0x1395   :  { %2752 = vrot.lane.b32.xlu1 %v8742_v5, %s7688_s24 }
0x1396   :  { %v2586_v1 = vpop.f32.mrb[52].mxu1 }
0x1397   :  { %v2588_v30 = vpop.f32.mrb[53].mxu1  ;;  %v2587_v20 = vadd.f32 %v2586_v1, %v8714_v37 }
0x1398   :  { %v2589_v32 = vadd.f32 %v2588_v30, %v8708_v25  ;;  %v2590_v51 = vpop.f32.mrb[54].mxu1 }
0x1399   :  { %v2591_v33 = vadd.f32 %v2590_v51, %v8714_v37  ;;  %v2592_v29 = vpop.f32.mrb[55].mxu1 }
0x139a   :  { %v2593_v57 = vadd.f32 %v2592_v29, %v8708_v25 }
0x139b   :  { %v8752_v41 = vpack.c.bf16 %v2591_v33, %v2587_v20 }
0x139c   :  { %v8754_v2 = vpack.c.bf16 %v2593_v57, %v2589_v32 }
0x139d   :  { %2802 = vrot.lane.b32.xlu1 %v8752_v41, %s7688_s24 }
0x139e   :  { %v2596_v3 = vpop.f32.mrb[56].mxu1 }
0x139f   :  { %v2598_v56 = vpop.f32.mrb[57].mxu1  ;;  %v2597_v35 = vadd.f32 %v2596_v3, %v8714_v37 }
0x13a0   :  { %v2599_v43 = vadd.f32 %v2598_v56, %v8708_v25  ;;  %v2600_v50 = vpop.f32.mrb[58].mxu1 }
0x13a1   :  { %v2601_v58 = vadd.f32 %v2600_v50, %v8714_v37  ;;  %v2602_v4 = vpop.f32.mrb[59].mxu1 }
0x13a2   :  { %v2603_v34 = vadd.f32 %v2602_v4, %v8708_v25 }
0x13a3   :  { %v8762_v17 = vpack.c.bf16 %v2601_v58, %v2597_v35 }
0x13a4   :  { %v8764_v42 = vpack.c.bf16 %v2603_v34, %v2599_v43 }
0x13a5   :  { %2852 = vrot.lane.b32.xlu0 %v8762_v17, %s7688_s24 }
0x13a6   :  { %v2606_v46 = vpop.f32.mrb[60].mxu1 }
0x13a7   :  { %v2608_v14 = vpop.f32.mrb[61].mxu1  ;;  %v2607_v63 = vadd.f32 %v2606_v46, %v8714_v37 }
0x13a8   :  { %v2609_v19 = vadd.f32 %v2608_v14, %v8708_v25  ;;  %v2610_v11 = vpop.f32.mrb[62].mxu1 }
0x13a9   :  { %v2611_v48 = vadd.f32 %v2610_v11, %v8714_v37  ;;  %v2612_v21 = vpop.f32.mrb[63].mxu1 }
0x13aa   :  { %v2613_v15 = vadd.f32 %v2612_v21, %v8708_v25 }
0x13ab   :  { %v8772_v6 = vpack.c.bf16 %v2611_v48, %v2607_v63 }
0x13ac   :  { %v8774_v24 = vpack.c.bf16 %v2613_v15, %v2609_v19 }
0x13ad   :  { %2902 = vrot.lane.b32.xlu1 %v8772_v6, %s7688_s24 }
0x13ae   :  { %v2616_v1 = vpop.f32.mrb[64].mxu1 }
0x13af   :  { %v2618_v30 = vpop.f32.mrb[65].mxu1  ;;  %v2617_v20 = vadd.f32 %v2616_v1, %v8714_v37 }
0x13b0   :  { %v2619_v32 = vadd.f32 %v2618_v30, %v8708_v25  ;;  %v2620_v51 = vpop.f32.mrb[66].mxu1 }
0x13b1   :  { %v2621_v33 = vadd.f32 %v2620_v51, %v8714_v37  ;;  %v2622_v29 = vpop.f32.mrb[67].mxu1 }
0x13b2   :  { %v2623_v57 = vadd.f32 %v2622_v29, %v8708_v25 }
0x13b3   :  { %v8782_v3 = vpack.c.bf16 %v2621_v33, %v2617_v20 }
0x13b4   :  { %v8784_v56 = vpack.c.bf16 %v2623_v57, %v2619_v32 }
0x13b5   :  { %2952 = vrot.lane.b32.xlu0 %v8782_v3, %s7688_s24 }
0x13b6   :  { %v2626_v43 = vpop.f32.mrb[68].mxu1 }
0x13b7   :  { %v2628_v50 = vpop.f32.mrb[69].mxu1  ;;  %v2627_v4 = vadd.f32 %v2626_v43, %v8714_v37 }
0x13b8   :  { %v2629_v35 = vadd.f32 %v2628_v50, %v8708_v25  ;;  %v2630_v58 = vpop.f32.mrb[70].mxu1 }
0x13b9   :  { %v2631_v34 = vadd.f32 %v2630_v58, %v8714_v37  ;;  %v2632_v46 = vpop.f32.mrb[71].mxu1  ;;  %v8853_v58 = vsel %vm2134_vm5, -1e+09, %v10277_v31 }
0x13ba   :  { %v2633_v14 = vadd.f32 %v2632_v46, %v8708_v25 }
0x13bb   :  { %v8792_v19 = vpack.c.bf16 %v2631_v34, %v2627_v4 }
0x13bc   :  { %v8794_v11 = vpack.c.bf16 %v2633_v14, %v2629_v35  ;;  %v2045_v35 = vadd.s32 8, %v7794_v40 }
0x13bd   :  { %3002 = vrot.lane.b32.xlu1 %v8792_v19, %s7688_s24 }
0x13be   :  { %vm2135_vm6 = vcmp.gt.s32.totalorder %v7899_v59, %v2045_v35 }
0x13bf   :  { %v8856_v14 = vsel %vm2135_vm6, -1e+09, %v10277_v31 }
0x13f7   :  { %v2653_v63 = vpop.permute.xlu1 %2652 }
0x13f8   :  { %v2658_v48 = vsel %vm432_vm2, %v2653_v63, 0 }
0x13f9   :  { %6802 = vmatpush3.bf16.xpose.msra.mxu0 %v2658_v48 }
0x13fa   :  { %6807 = vmatprep.subr.bf16.mxu0 %v10277_v31 }
0x13ff   :  { %v2703_v21 = vpop.permute.xlu0 %2702 }
0x1400   :  { %v2708_v15 = vsel %vm432_vm2, %v2703_v21, 0  ;;  %6804 = vmatmul.mubr.msk.bf16.vlgmr.msra.gmra.mrb[24].mxu0 %vm432_vm2, %v8720_v45 }
0x1401   :  { %6808 = vmatpush3.bf16.xpose.msra.mxu0 %v2708_v15  ;;  %6809 = vmatprep.mubr.msk.bf16.mxu0 %vm7687_vm1, %v10277_v31 }
0x1402   :  { %6813 = vmatprep.subr.bf16.mxu0 %v10277_v31 }
0x1407   :  { %v2753_v25 = vpop.permute.xlu1 %2752 }
0x1408   :  { %v2758_v37 = vsel %vm432_vm2, %v2753_v25, 0  ;;  %6810 = vmatmul.mubr.msk.bf16.vlgmr.msra.gmra.mrb[28].mxu0 %vm432_vm2, %v8730_v10 }
0x1409   :  { %6814 = vmatpush3.bf16.xpose.msra.mxu0 %v2758_v37  ;;  %6815 = vmatprep.mubr.msk.bf16.mxu0 %vm7687_vm1, %v10277_v31 }
0x140a   :  { %6819 = vmatprep.subr.bf16.mxu0 %v10277_v31 }
0x140f   :  { %v2803_v1 = vpop.permute.xlu1 %2802 }
0x1410   :  { %v2808_v30 = vsel %vm432_vm2, %v2803_v1, 0  ;;  %6816 = vmatmul.mubr.msk.bf16.vlgmr.msra.gmra.mrb[32].mxu0 %vm432_vm2, %v8742_v5 }
0x1411   :  { %6820 = vmatpush3.bf16.xpose.msra.mxu0 %v2808_v30  ;;  %6821 = vmatprep.mubr.msk.bf16.mxu0 %vm7687_vm1, %v10277_v31 }
0x1412   :  { %6825 = vmatprep.subr.bf16.mxu0 %v10277_v31 }
0x1417   :  { %v2853_v32 = vpop.permute.xlu0 %2852 }
0x1418   :  { %v2858_v51 = vsel %vm432_vm2, %v2853_v32, 0  ;;  %6822 = vmatmul.mubr.msk.bf16.vlgmr.msra.gmra.mrb[36].mxu0 %vm432_vm2, %v8752_v41 }
0x1419   :  { %6826 = vmatpush3.bf16.xpose.msra.mxu0 %v2858_v51  ;;  %6827 = vmatprep.mubr.msk.bf16.mxu0 %vm7687_vm1, %v10277_v31 }
0x141a   :  { %6831 = vmatprep.subr.bf16.mxu0 %v10277_v31 }
0x141f   :  { %v2903_v20 = vpop.permute.xlu1 %2902 }
0x1420   :  { %v2908_v33 = vsel %vm432_vm2, %v2903_v20, 0  ;;  %6828 = vmatmul.mubr.msk.bf16.vlgmr.msra.gmra.mrb[40].mxu0 %vm432_vm2, %v8762_v17 }
0x1421   :  { %6832 = vmatpush3.bf16.xpose.msra.mxu0 %v2908_v33  ;;  %6833 = vmatprep.mubr.msk.bf16.mxu0 %vm7687_vm1, %v10277_v31 }
0x1422   :  { %6837 = vmatprep.subr.bf16.mxu0 %v10277_v31 }
0x1427   :  { %v2953_v29 = vpop.permute.xlu0 %2952 }
0x1428   :  { %v2958_v57 = vsel %vm432_vm2, %v2953_v29, 0  ;;  %6834 = vmatmul.mubr.msk.bf16.vlgmr.msra.gmra.mrb[44].mxu0 %vm432_vm2, %v8772_v6 }
0x1429   :  { %6838 = vmatpush3.bf16.xpose.msra.mxu0 %v2958_v57  ;;  %6839 = vmatprep.mubr.msk.bf16.mxu0 %vm7687_vm1, %v10277_v31 }
0x142a   :  { %6843 = vmatprep.subr.bf16.mxu0 %v10277_v31 }
0x142f   :  { %v3003_v43 = vpop.permute.xlu1 %3002 }
0x1430   :  { %v3008_v50 = vsel %vm432_vm2, %v3003_v43, 0  ;;  %6840 = vmatmul.mubr.msk.bf16.vlgmr.msra.gmra.mrb[48].mxu0 %vm432_vm2, %v8782_v3 }
0x1431   :  { %6844 = vmatpush3.bf16.xpose.msra.mxu0 %v3008_v50  ;;  %6845 = vmatprep.mubr.msk.bf16.mxu0 %vm7687_vm1, %v10277_v31 }
0x1432   :  { %6849 = vmatprep.subr.bf16.mxu0 %v10277_v31 }
0x1438   :  { %6846 = vmatmul.mubr.msk.bf16.vlgmr.msra.gmra.mrb[52].mxu0 %vm432_vm2, %v8792_v19 }
0x1439   :  { %6850 = vmatpush3.bf16.msra.mxu0 %v8722_v53  ;;  %6851 = vmatprep.mubr.msk.bf16.mxu0 %vm7687_vm1, %v10277_v31 }
0x143a   :  { %6861 = vmatprep.subr.bf16.mxu0 %v10277_v31 }
0x14d3   :  { %v2694_v4 = vpop.f32.mrb[24].mxu0 }
0x14d4   :  { %v3051_v34 = vmul.f32 0.17677669, %v2694_v4  ;;  %v6805_v46 = vpop.f32.mrb[25].mxu0 }
0x14d5   :  { %v2697_v63 = vpop.f32.mrb[26].mxu0 }
0x14d6   :  { %v3052_v48 = vmul.f32 0.17677669, %v2697_v63  ;;  %v6806_v21 = vpop.f32.mrb[27].mxu0  ;;  %v8859_v15 = vadd.f32 %v3051_v34, %v8853_v58 }
0x14d8   :  { %v8862_v40 = vadd.f32 %v3052_v48, %v8856_v14  ;;  %v3084_v59 = vsel %vm3083_vm7, %v8859_v15, -inf }
0x14d9   :  { %3085 = vmax.xlane.f32.xlu0 %v3084_v59 }
0x14da   :  { %v3087_v25 = vsel %vm3083_vm7, %v8862_v40, -inf }
0x14db   :  { %3088 = vmax.xlane.f32.xlu1 %v3087_v25  ;;  %v2744_v37 = vpop.f32.mrb[28].mxu0 }
0x14dc   :  { %v3053_v1 = vmul.f32 0.17677669, %v2744_v37  ;;  %v6811_v30 = vpop.f32.mrb[29].mxu0 }
0x14dd   :  { %v2747_v32 = vpop.f32.mrb[30].mxu0 }
0x14de   :  { %v3054_v51 = vmul.f32 0.17677669, %v2747_v32  ;;  %v6812_v20 = vpop.f32.mrb[31].mxu0  ;;  %v8869_v33 = vadd.f32 %v3053_v1, %v8853_v58 }
0x14e0   :  { %v3090_v29 = vsel %vm3083_vm7, %v8869_v33, -inf  ;;  %v8874_v57 = vadd.f32 %v3054_v51, %v8856_v14 }
0x14e1   :  { %3091 = vmax.xlane.f32.xlu0 %v3090_v29 }
0x14e2   :  { %v3093_v4 = vsel %vm3083_vm7, %v8874_v57, -inf }
0x14e3   :  { %v2794_v43 = vpop.f32.mrb[32].mxu0 }
0x14e4   :  { %v3055_v50 = vmul.f32 0.17677669, %v2794_v43  ;;  %v6817_v35 = vpop.f32.mrb[33].mxu0 }
0x14e5   :  { %3094 = vmax.xlane.f32.xlu0 %v3093_v4  ;;  %v2797_v34 = vpop.f32.mrb[34].mxu0 }
0x14e6   :  { %v8879_v46 = vadd.f32 %v3055_v50, %v8853_v58  ;;  %v3056_v63 = vmul.f32 0.17677669, %v2797_v34  ;;  %v6818_v48 = vpop.f32.mrb[35].mxu0 }
0x14e8   :  { %v3096_v21 = vsel %vm3083_vm7, %v8879_v46, -inf  ;;  %v8884_v59 = vadd.f32 %v3056_v63, %v8856_v14 }
0x14e9   :  { %3097 = vmax.xlane.f32.xlu1 %v3096_v21 }
0x14ea   :  { %v3099_v25 = vsel %vm3083_vm7, %v8884_v59, -inf }
0x14eb   :  { %3100 = vmax.xlane.f32.xlu0 %v3099_v25  ;;  %v2844_v37 = vpop.f32.mrb[36].mxu0 }
0x14ec   :  { %v3057_v1 = vmul.f32 0.17677669, %v2844_v37  ;;  %v6823_v30 = vpop.f32.mrb[37].mxu0 }
0x14ed   :  { %v2847_v32 = vpop.f32.mrb[38].mxu0 }
0x14ee   :  { %v8889_v51 = vadd.f32 %v3057_v1, %v8853_v58  ;;  %v3058_v20 = vmul.f32 0.17677669, %v2847_v32  ;;  %v6824_v29 = vpop.f32.mrb[39].mxu0 }
0x14f0   :  { %v8892_v43 = vadd.f32 %v3058_v20, %v8856_v14  ;;  %v3102_v50 = vsel %vm3083_vm7, %v8889_v51, -inf }
0x14f1   :  { %3103 = vmax.xlane.f32.xlu1 %v3102_v50 }
0x14f2   :  { %v3105_v35 = vsel %vm3083_vm7, %v8892_v43, -inf }
0x14f3   :  { %3106 = vmax.xlane.f32.xlu0 %v3105_v35  ;;  %v2894_v4 = vpop.f32.mrb[40].mxu0 }
0x14f4   :  { %v3059_v34 = vmul.f32 0.17677669, %v2894_v4  ;;  %v6829_v63 = vpop.f32.mrb[41].mxu0 }
0x14f5   :  { %v2897_v48 = vpop.f32.mrb[42].mxu0 }
0x14f6   :  { %v8899_v21 = vadd.f32 %v3059_v34, %v8853_v58  ;;  %v3060_v25 = vmul.f32 0.17677669, %v2897_v48  ;;  %v6830_v37 = vpop.f32.mrb[43].mxu0 }
0x14f8   :  { %v8902_v1 = vadd.f32 %v3060_v25, %v8856_v14  ;;  %v3108_v30 = vsel %vm3083_vm7, %v8899_v21, -inf }
0x14f9   :  { %3109 = vmax.xlane.f32.xlu1 %v3108_v30 }
0x14fa   :  { %v3111_v32 = vsel %vm3083_vm7, %v8902_v1, -inf }
0x14fb   :  { %3112 = vmax.xlane.f32.xlu0 %v3111_v32  ;;  %v2944_v20 = vpop.f32.mrb[44].mxu0 }
0x14fc   :  { %v3061_v29 = vmul.f32 0.17677669, %v2944_v20  ;;  %v6835_v50 = vpop.f32.mrb[45].mxu0 }
0x14fd   :  { %v2947_v35 = vpop.f32.mrb[46].mxu0 }
0x14fe   :  { %v8909_v4 = vadd.f32 %v3061_v29, %v8853_v58  ;;  %v3062_v34 = vmul.f32 0.17677669, %v2947_v35  ;;  %v6836_v63 = vpop.f32.mrb[47].mxu0 }
0x1500   :  { %v8912_v48 = vadd.f32 %v3062_v34, %v8856_v14  ;;  %v3114_v25 = vsel %vm3083_vm7, %v8909_v4, -inf }
0x1501   :  { %3115 = vmax.xlane.f32.xlu1 %v3114_v25 }
0x1502   :  { %v3117_v37 = vsel %vm3083_vm7, %v8912_v48, -inf }
0x1503   :  { %3118 = vmax.xlane.f32.xlu0 %v3117_v37  ;;  %v2994_v30 = vpop.f32.mrb[48].mxu0 }
0x1504   :  { %v3063_v32 = vmul.f32 0.17677669, %v2994_v30  ;;  %v6841_v20 = vpop.f32.mrb[49].mxu0 }
0x1505   :  { %v2997_v50 = vpop.f32.mrb[50].mxu0 }
0x1506   :  { %v8919_v29 = vadd.f32 %v3063_v32, %v8853_v58  ;;  %v3064_v35 = vmul.f32 0.17677669, %v2997_v50  ;;  %v6842_v63 = vpop.f32.mrb[51].mxu0 }
0x1508   :  { %v8922_v34 = vadd.f32 %v3064_v35, %v8856_v14  ;;  %v3120_v0 = vsel %vm3083_vm7, %v8919_v29, -inf }
0x1509   :  { %3121 = vmax.xlane.f32.xlu1 %v3120_v0 }
0x150a   :  { %v3123_v25 = vsel %vm3083_vm7, %v8922_v34, -inf }
0x150b   :  { %3124 = vmax.xlane.f32.xlu0 %v3123_v25  ;;  %v3044_v37 = vpop.f32.mrb[52].mxu0 }
0x150c   :  { %v3065_v30 = vmul.f32 0.17677669, %v3044_v37  ;;  %v6847_v20 = vpop.f32.mrb[53].mxu0 }
0x150d   :  { %v3047_v31 = vpop.f32.mrb[54].mxu0 }
0x150e   :  { %v8929_v32 = vadd.f32 %v3065_v30, %v8853_v58  ;;  %v3066_v50 = vmul.f32 0.17677669, %v3047_v31  ;;  %v6848_v63 = vpop.f32.mrb[55].mxu0 }
0x1510   :  { %v8932_v35 = vadd.f32 %v3066_v50, %v8856_v14  ;;  %v3126_v13 = vsel %vm3083_vm7, %v8929_v32, -inf }
0x1511   :  { %3127 = vmax.xlane.f32.xlu1 %v3126_v13 }
0x1512   :  { %v3129_v0 = vsel %vm3083_vm7, %v8932_v35, -inf }
0x1513   :  { %3130 = vmax.xlane.f32.xlu0 %v3129_v0 }
0x1522   :  { %3622 = vrot.lane.b32.xlu1 %v8720_v45, %s7689_s25 }
0x1566   :  { %v3086_v25 = vpop.xlane.xlu0 %3085 }
0x1567   :  { %v3132_v37 = vsub.f32 %v8859_v15, %v3086_v25 }
0x1568   :  { %v3089_v30 = vpop.xlane.xlu1 %3088 }
0x1569   :  { %v3148_v31 = vmul.f32 1.442695, %v3132_v37  ;;  %v3133_v20 = vsub.f32 %v8862_v40, %v3089_v30 }
0x156b   :  { %7326 = vpow2.f32 %v3148_v31  ;;  %v3150_v50 = vmul.f32 1.442695, %v3133_v20 }
0x156d   :  { %7328 = vpow2.f32 %v3150_v50 }
0x156e   :  { %v3092_v63 = vpop.xlane.xlu0 %3091 }
0x156f   :  { %v3134_v13 = vsub.f32 %v8869_v33, %v3092_v63 }
0x1571   :  { %v3152_v44 = vmul.f32 1.442695, %v3134_v13 }
0x1572   :  { %v3095_v18 = vpop.xlane.xlu0 %3094 }
0x1573   :  { %7330 = vpow2.f32 %v3152_v44  ;;  %v3135_v0 = vsub.f32 %v8874_v57, %v3095_v18 }
0x1575   :  { %v8944_v8 = vpop.eup %7326  ;;  %v3154_v62 = vmul.f32 1.442695, %v3135_v0 }
0x1576   :  { %v3098_v60 = vpop.xlane.xlu1 %3097  ;;  %v3180_v15 = vsel %vm3083_vm7, %v8944_v8, 0.0 }
0x1577   :  { %v8948_v25 = vpop.eup %7328  ;;  %7332 = vpow2.f32 %v3154_v62  ;;  %v3136_v40 = vsub.f32 %v8879_v46, %v3098_v60  ;;  %3181 = vadd.xlane.f32.xlu1 %v3180_v15 }
0x1578   :  { %v3101_v37 = vpop.xlane.xlu0 %3100  ;;  %v3183_v33 = vsel %vm3083_vm7, %v8948_v25, 0.0 }
0x1579   :  { %v3156_v44 = vmul.f32 1.442695, %v3136_v40  ;;  %v3137_v18 = vsub.f32 %v8884_v59, %v3101_v37  ;;  %3184 = vadd.xlane.f32.xlu0 %v3183_v33 }
0x157b   :  { %7334 = vpow2.f32 %v3156_v44  ;;  %v3158_v57 = vmul.f32 1.442695, %v3137_v18 }
0x157d   :  { %v8954_v30 = vpop.eup %7330  ;;  %7336 = vpow2.f32 %v3158_v57 }
0x157e   :  { %v3104_v31 = vpop.xlane.xlu1 %3103  ;;  %v3186_v62 = vsel %vm3083_vm7, %v8954_v30, 0.0 }
0x157f   :  { %v3138_v60 = vsub.f32 %v8889_v51, %v3104_v31  ;;  %3187 = vadd.xlane.f32.xlu1 %v3186_v62 }
0x1580   :  { %v3107_v46 = vpop.xlane.xlu0 %3106 }
0x1581   :  { %v8959_v20 = vpop.eup %7332  ;;  %v3160_v50 = vmul.f32 1.442695, %v3138_v60  ;;  %v3139_v63 = vsub.f32 %v8892_v43, %v3107_v46 }
0x1582   :  { %v3189_v59 = vsel %vm3083_vm7, %v8959_v20, 0.0 }
0x1583   :  { %7338 = vpow2.f32 %v3160_v50  ;;  %v3162_v13 = vmul.f32 1.442695, %v3139_v63  ;;  %3190 = vadd.xlane.f32.xlu0 %v3189_v59 }
0x1585   :  { %v8964_v0 = vpop.eup %7334  ;;  %7340 = vpow2.f32 %v3162_v13 }
0x1586   :  { %v3110_v15 = vpop.xlane.xlu1 %3109  ;;  %v3192_v51 = vsel %vm3083_vm7, %v8964_v0, 0.0 }
0x1587   :  { %v8968_v40 = vpop.eup %7336  ;;  %v3140_v37 = vsub.f32 %v8899_v21, %v3110_v15  ;;  %3193 = vadd.xlane.f32.xlu1 %v3192_v51 }
0x1588   :  { %v3113_v33 = vpop.xlane.xlu0 %3112  ;;  %v3195_v43 = vsel %vm3083_vm7, %v8968_v40, 0.0 }
0x1589   :  { %v3164_v44 = vmul.f32 1.442695, %v3140_v37  ;;  %v3141_v18 = vsub.f32 %v8902_v1, %v3113_v33  ;;  %3196 = vadd.xlane.f32.xlu0 %v3195_v43 }
0x158b   :  { %7342 = vpow2.f32 %v3164_v44  ;;  %v3166_v57 = vmul.f32 1.442695, %v3141_v18 }
0x158d   :  { %v8974_v31 = vpop.eup %7338  ;;  %7344 = vpow2.f32 %v3166_v57 }
0x158e   :  { %v3116_v62 = vpop.xlane.xlu1 %3115  ;;  %v3198_v60 = vsel %vm3083_vm7, %v8974_v31, 0.0 }
0x158f   :  { %v8978_v46 = vpop.eup %7340  ;;  %v3142_v21 = vsub.f32 %v8909_v4, %v3116_v62  ;;  %3199 = vadd.xlane.f32.xlu1 %v3198_v60 }
0x1590   :  { %v3119_v50 = vpop.xlane.xlu0 %3118  ;;  %v3201_v63 = vsel %vm3083_vm7, %v8978_v46, 0.0 }
0x1591   :  { %v3168_v1 = vmul.f32 1.442695, %v3142_v21  ;;  %v3143_v59 = vsub.f32 %v8912_v48, %v3119_v50  ;;  %3202 = vadd.xlane.f32.xlu0 %v3201_v63 }
0x1593   :  { %7346 = vpow2.f32 %v3168_v1  ;;  %v3170_v13 = vmul.f32 1.442695, %v3143_v59 }
0x1595   :  { %v8984_v15 = vpop.eup %7342  ;;  %7348 = vpow2.f32 %v3170_v13 }
0x1596   :  { %v3122_v51 = vpop.xlane.xlu1 %3121  ;;  %v3204_v37 = vsel %vm3083_vm7, %v8984_v15, 0.0 }
0x1597   :  { %v8988_v33 = vpop.eup %7344  ;;  %v3144_v4 = vsub.f32 %v8919_v29, %v3122_v51  ;;  %3205 = vadd.xlane.f32.xlu1 %v3204_v37 }
0x1598   :  { %v3125_v43 = vpop.xlane.xlu0 %3124  ;;  %v3207_v44 = vsel %vm3083_vm7, %v8988_v33, 0.0 }
0x1599   :  { %v3172_v48 = vmul.f32 1.442695, %v3144_v4  ;;  %v3145_v18 = vsub.f32 %v8922_v34, %v3125_v43  ;;  %3208 = vadd.xlane.f32.xlu0 %v3207_v44 }
0x159b   :  { %7350 = vpow2.f32 %v3172_v48  ;;  %v3174_v57 = vmul.f32 1.442695, %v3145_v18 }
0x159d   :  { %v8994_v62 = vpop.eup %7346  ;;  %7352 = vpow2.f32 %v3174_v57 }
0x159e   :  { %v3128_v60 = vpop.xlane.xlu1 %3127  ;;  %v3210_v21 = vsel %vm3083_vm7, %v8994_v62, 0.0 }
0x159f   :  { %v8998_v50 = vpop.eup %7348  ;;  %v3146_v29 = vsub.f32 %v8929_v32, %v3128_v60  ;;  %3211 = vadd.xlane.f32.xlu1 %v3210_v21  ;;  %v10302_v21 = vmov 0.0  }
0x15a0   :  { %v3131_v63 = vpop.xlane.xlu0 %3130  ;;  %v3213_v1 = vsel %vm3083_vm7, %v8998_v50, 0.0 }
0x15a1   :  { %v3176_v34 = vmul.f32 1.442695, %v3146_v29  ;;  %v3147_v59 = vsub.f32 %v8932_v35, %v3131_v63  ;;  %3214 = vadd.xlane.f32.xlu0 %v3213_v1 }
0x15a3   :  { %7354 = vpow2.f32 %v3176_v34  ;;  %v3178_v13 = vmul.f32 1.442695, %v3147_v59 }
0x15a5   :  { %v9004_v51 = vpop.eup %7350  ;;  %7356 = vpow2.f32 %v3178_v13 }
0x15a6   :  { %v3216_v37 = vsel %vm3083_vm7, %v9004_v51, 0.0 }
0x15a7   :  { %v9008_v4 = vpop.eup %7352  ;;  %3217 = vadd.xlane.f32.xlu1 %v3216_v37 }
0x15a8   :  { %v3219_v32 = vsel %vm3083_vm7, %v9008_v4, 0.0 }
0x15a9   :  { %3220 = vadd.xlane.f32.xlu0 %v3219_v32 }
0x15ad   :  { %v9012_v43 = vpop.eup %7354 }
0x15ae   :  { %v3222_v35 = vsel %vm3083_vm7, %v9012_v43, 0.0 }
0x15af   :  { %v9016_v44 = vpop.eup %7356  ;;  %3223 = vadd.xlane.f32.xlu1 %v3222_v35 }
0x15b0   :  { %v3225_v48 = vsel %vm3083_vm7, %v9016_v44, 0.0 }
0x15b1   :  { %3226 = vadd.xlane.f32.xlu0 %v3225_v48 }
0x15c0   :  { %3620 = vrot.lane.b32.xlu1 %v8720_v45, %s7690_s26  ;;  %v9052_v45 = vpop.permute.xlu1 %3622 }
0x15c4   :  { %3671 = vrot.lane.b32.xlu1 %v8730_v10, %s7690_s26 }
0x15c7   :  { %3673 = vrot.lane.b32.xlu0 %v8730_v10, %s7689_s25 }
0x15c8   :  { %3775 = vrot.lane.b32.xlu1 %v8752_v41, %s7689_s25 }
0x15cb   :  { %3724 = vrot.lane.b32.xlu0 %v8742_v5, %s7689_s25 }
0x15cc   :  { %3773 = vrot.lane.b32.xlu1 %v8752_v41, %s7690_s26 }
0x15cf   :  { %3722 = vrot.lane.b32.xlu0 %v8742_v5, %s7690_s26 }
0x15d0   :  { %3877 = vrot.lane.b32.xlu1 %v8772_v6, %s7689_s25 }
0x15d3   :  { %3826 = vrot.lane.b32.xlu0 %v8762_v17, %s7689_s25 }
0x15d4   :  { %3875 = vrot.lane.b32.xlu1 %v8772_v6, %s7690_s26 }
0x15d7   :  { %3824 = vrot.lane.b32.xlu0 %v8762_v17, %s7690_s26 }
0x15d8   :  { %3979 = vrot.lane.b32.xlu1 %v8792_v19, %s7689_s25 }
0x15db   :  { %3928 = vrot.lane.b32.xlu0 %v8782_v3, %s7689_s25 }
0x15dc   :  { %3977 = vrot.lane.b32.xlu1 %v8792_v19, %s7690_s26 }
0x15df   :  { %3926 = vrot.lane.b32.xlu0 %v8782_v3, %s7690_s26 }
0x15e0   :  { %4245 = vrot.lane.b32.xlu1 %v8722_v53, %s7690_s26 }
0x1604   :  { %v3182_v10 = vpop.xlane.xlu1 %3181 }
0x1605   :  { %7358 = vrcp.f32 %v3182_v10 }
0x1606   :  { %v3185_v5 = vpop.xlane.xlu0 %3184 }
0x1607   :  { %7360 = vrcp.f32 %v3185_v5 }
0x160c   :  { %v3188_v41 = vpop.xlane.xlu1 %3187 }
0x160d   :  { %7362 = vrcp.f32 %v3188_v41 }
0x160f   :  { %v7359_v17 = vpop.eup %7358 }
0x1610   :  { %v3191_v6 = vpop.xlane.xlu0 %3190  ;;  %v3244_v19 = vmul.f32 %v7359_v17, %v8944_v8 }
0x1611   :  { %v7361_v18 = vpop.eup %7360  ;;  %7364 = vrcp.f32 %v3191_v6 }
0x1612   :  { %v3245_v57 = vmul.f32 %v7361_v18, %v8948_v25 }
0x1614   :  { %v3194_v3 = vpop.xlane.xlu1 %3193  ;;  %v3260_v60 = vpack.c.bf16 %v3245_v57, %v3244_v19 }
0x1615   :  { %7366 = vrcp.f32 %v3194_v3 }
0x1616   :  { %v3197_v53 = vpop.xlane.xlu0 %3196  ;;  %6852 = vmatmul.mubr.msk.bf16.vlgmr.msra.gmra.mrb[56].mxu0 %vm3083_vm7, %v3260_v60 }
0x1617   :  { %7368 = vrcp.f32 %v3197_v53  ;;  %6862 = vmatpush3.bf16.msra.mxu0 %v8744_v26  ;;  %6863 = vmatprep.mubr.msk.bf16.mxu0 %vm7687_vm1, %v10302_v21  ;;  %v7363_v29 = vpop.eup %7362 }
0x1618   :  { %6873 = vmatprep.subr.bf16.mxu0 %v10302_v21  ;;  %v3246_v8 = vmul.f32 %v7363_v29, %v8954_v30 }
0x161b   :  { %v7365_v63 = vpop.eup %7364 }
0x161c   :  { %v3247_v25 = vmul.f32 %v7365_v63, %v8959_v20  ;;  %v3200_v1 = vpop.xlane.xlu1 %3199 }
0x161d   :  { %7370 = vrcp.f32 %v3200_v1 }
0x161e   :  { %v3261_v34 = vpack.c.bf16 %v3247_v25, %v3246_v8  ;;  %v3203_v59 = vpop.xlane.xlu0 %3202 }
0x161f   :  { %v7367_v13 = vpop.eup %7366  ;;  %7372 = vrcp.f32 %v3203_v59 }
0x1620   :  { %6858 = vmatmul.mubr.msk.bf16.vlgmr.msra.gmra.mrb[72].mxu1 %vm3083_vm7, %v3261_v34  ;;  %v3248_v32 = vmul.f32 %v7367_v13, %v8964_v0 }
0x1621   :  { %v7369_v37 = vpop.eup %7368  ;;  %6868 = vmatpush3.bf16.msra.mxu1 %v8754_v2  ;;  %6869 = vmatprep.mubr.msk.bf16.mxu1 %vm7687_vm1, %v10302_v21 }
0x1622   :  { %v3249_v30 = vmul.f32 %v7369_v37, %v8968_v40  ;;  %6879 = vmatprep.subr.bf16.mxu1 %v10302_v21 }
0x1624   :  { %v3206_v20 = vpop.xlane.xlu1 %3205  ;;  %v3262_v35 = vpack.c.bf16 %v3249_v30, %v3248_v32  ;;  %v3628_v30 = vsel %vm432_vm2, %v9052_v45, 0 }
0x1625   :  { %7374 = vrcp.f32 %v3206_v20 }
0x1626   :  { %v3209_v48 = vpop.xlane.xlu0 %3208  ;;  %6864 = vmatmul.mubr.msk.bf16.vlgmr.msra.gmra.mrb[60].mxu0 %vm3083_vm7, %v3262_v35 }
0x1627   :  { %v7371_v10 = vpop.eup %7370  ;;  %7376 = vrcp.f32 %v3209_v48  ;;  %6874 = vmatpush3.bf16.msra.mxu0 %v8764_v42  ;;  %6875 = vmatprep.mubr.msk.bf16.mxu0 %vm7687_vm1, %v10302_v21 }
0x1628   :  { %6885 = vmatprep.subr.bf16.mxu0 %v10302_v21  ;;  %v3250_v40 = vmul.f32 %v7371_v10, %v8974_v31 }
0x1629   :  { %v7373_v0 = vpop.eup %7372 }
0x162a   :  { %v3251_v5 = vmul.f32 %v7373_v0, %v8978_v46 }
0x162c   :  { %v3212_v41 = vpop.xlane.xlu1 %3211  ;;  %v3263_v17 = vpack.c.bf16 %v3251_v5, %v3250_v40 }
0x162d   :  { %7378 = vrcp.f32 %v3212_v41 }
0x162e   :  { %v3215_v6 = vpop.xlane.xlu0 %3214  ;;  %6870 = vmatmul.mubr.msk.bf16.vlgmr.msra.gmra.mrb[76].mxu1 %vm3083_vm7, %v3263_v17 }
0x162f   :  { %v7375_v18 = vpop.eup %7374  ;;  %7380 = vrcp.f32 %v3215_v6  ;;  %6880 = vmatpush3.bf16.msra.mxu1 %v8774_v24  ;;  %6881 = vmatprep.mubr.msk.bf16.mxu1 %vm7687_vm1, %v10302_v21 }
0x1630   :  { %6891 = vmatprep.subr.bf16.mxu1 %v10302_v21  ;;  %v3252_v31 = vmul.f32 %v7375_v18, %v8984_v15 }
0x1631   :  { %v7377_v19 = vpop.eup %7376 }
0x1632   :  { %v3253_v46 = vmul.f32 %v7377_v19, %v8988_v33 }
0x1634   :  { %v3218_v57 = vpop.xlane.xlu1 %3217  ;;  %v3264_v3 = vpack.c.bf16 %v3253_v46, %v3252_v31 }
0x1635   :  { %7382 = vrcp.f32 %v3218_v57 }
0x1636   :  { %v3221_v60 = vpop.xlane.xlu0 %3220  ;;  %6876 = vmatmul.mubr.msk.bf16.vlgmr.msra.gmra.mrb[64].mxu0 %vm3083_vm7, %v3264_v3 }
0x1637   :  { %v7379_v53 = vpop.eup %7378  ;;  %7384 = vrcp.f32 %v3221_v60  ;;  %6886 = vmatpush3.bf16.msra.mxu0 %v8784_v56  ;;  %6887 = vmatprep.mubr.msk.bf16.mxu0 %vm7687_vm1, %v10302_v21 }
0x1638   :  { %6897 = vmatprep.subr.bf16.mxu0 %v10302_v21  ;;  %v3254_v15 = vmul.f32 %v7379_v53, %v8994_v62 }
0x1639   :  { %v7381_v29 = vpop.eup %7380 }
0x163a   :  { %v3255_v33 = vmul.f32 %v7381_v29, %v8998_v50 }
0x163c   :  { %v3224_v63 = vpop.xlane.xlu1 %3223  ;;  %v3265_v8 = vpack.c.bf16 %v3255_v33, %v3254_v15 }
0x163d   :  { %7386 = vrcp.f32 %v3224_v63 }
0x163e   :  { %v3227_v25 = vpop.xlane.xlu0 %3226  ;;  %6882 = vmatmul.mubr.msk.bf16.vlgmr.msra.gmra.mrb[80].mxu1 %vm3083_vm7, %v3265_v8 }
0x163f   :  { %v7383_v1 = vpop.eup %7382  ;;  %7388 = vrcp.f32 %v3227_v25  ;;  %6892 = vmatpush3.bf16.msra.mxu1 %v8794_v11  ;;  %6893 = vmatprep.mubr.msk.bf16.mxu1 %vm7687_vm1, %v10302_v21 }
0x1640   :  { %v3621_v34 = vpop.permute.xlu1 %3620  ;;  %6903 = vmatprep.subr.bf16.mxu1 %v10302_v21  ;;  %v3256_v62 = vmul.f32 %v7383_v1, %v9004_v51 }
0x1641   :  { %v7385_v59 = vpop.eup %7384 }
0x1642   :  { %v3257_v50 = vmul.f32 %v7385_v59, %v9008_v4  ;;  %v3674_v13 = vpop.permute.xlu0 %3673 }
0x1643   :  { %v3679_v45 = vsel %vm432_vm2, %v3674_v13, 0 }
0x1644   :  { %v3672_v37 = vpop.permute.xlu1 %3671  ;;  %v3266_v32 = vpack.c.bf16 %v3257_v50, %v3256_v62 }
0x1646   :  { %v3725_v20 = vpop.permute.xlu0 %3724  ;;  %6888 = vmatmul.mubr.msk.bf16.vlgmr.msra.gmra.mrb[68].mxu0 %vm3083_vm7, %v3266_v32 }
0x1647   :  { %v7387_v35 = vpop.eup %7386  ;;  %6898 = vmatpush3.bf16.xpose.msra.mxu0 %v3628_v30  ;;  %6899 = vmatprep.mubr.msk.bf16.mxu0 %vm7687_vm1, %v10302_v21  ;;  %v3730_v41 = vsel %vm432_vm2, %v3725_v20, 0 }
0x1648   :  { %v3776_v48 = vpop.permute.xlu1 %3775  ;;  %6909 = vmatprep.subr.bf16.mxu0 %v10302_v21  ;;  %v3258_v4 = vmul.f32 %v7387_v35, %v9012_v43 }
0x1649   :  { %v7389_v51 = vpop.eup %7388  ;;  %v3781_v18 = vsel %vm432_vm2, %v3776_v48, 0 }
0x164a   :  { %v3259_v10 = vmul.f32 %v7389_v51, %v9016_v44  ;;  %v3723_v0 = vpop.permute.xlu0 %3722 }
0x164c   :  { %v3774_v40 = vpop.permute.xlu1 %3773  ;;  %v3267_v5 = vpack.c.bf16 %v3259_v10, %v3258_v4 }
0x164e   :  { %6894 = vmatmul.mubr.msk.bf16.vlgmr.msra.gmra.mrb[84].mxu1 %vm3083_vm7, %v3267_v5  ;;  %6900 = vmatmul.mubr.msk.bf16.vlgmr.msra.gmra.mrb[72].mxu0 %vm432_vm2, %v3621_v34  ;;  %v3827_v17 = vpop.permute.xlu0 %3826 }
0x164f   :  { %6904 = vmatpush3.bf16.xpose.msra.mxu1 %v3679_v45  ;;  %6910 = vmatpush3.bf16.xpose.msra.mxu0 %v3730_v41  ;;  %v3832_v19 = vsel %vm432_vm2, %v3827_v17, 0 }
0x1650   :  { %v3878_v6 = vpop.permute.xlu1 %3877  ;;  %6905 = vmatprep.mubr.msk.bf16.mxu1 %vm7687_vm1, %v10302_v21  ;;  %6911 = vmatprep.mubr.msk.bf16.mxu0 %vm7687_vm1, %v10302_v21 }
0x1651   :  { %6915 = vmatprep.subr.bf16.mxu1 %v10302_v21  ;;  %6921 = vmatprep.subr.bf16.mxu0 %v10302_v21  ;;  %v3883_v57 = vsel %vm432_vm2, %v3878_v6, 0 }
0x1652   :  { %v3825_v44 = vpop.permute.xlu0 %3824 }
0x1654   :  { %v3876_v43 = vpop.permute.xlu1 %3875 }
0x1656   :  { %6906 = vmatmul.mubr.msk.bf16.vlgmr.msra.gmra.mrb[88].mxu1 %vm432_vm2, %v3672_v37  ;;  %6912 = vmatmul.mubr.msk.bf16.vlgmr.msra.gmra.mrb[76].mxu0 %vm432_vm2, %v3723_v0  ;;  %v3929_v46 = vpop.permute.xlu0 %3928 }
0x1657   :  { %6916 = vmatpush3.bf16.xpose.msra.mxu1 %v3781_v18  ;;  %6922 = vmatpush3.bf16.xpose.msra.mxu0 %v3832_v19  ;;  %v3934_v3 = vsel %vm432_vm2, %v3929_v46, 0 }
0x1658   :  { %6917 = vmatprep.mubr.msk.bf16.mxu1 %vm7687_vm1, %v10302_v21  ;;  %6923 = vmatprep.mubr.msk.bf16.mxu0 %vm7687_vm1, %v10302_v21  ;;  %v3980_v31 = vpop.permute.xlu1 %3979 }
0x1659   :  { %6927 = vmatprep.subr.bf16.mxu1 %v10302_v21  ;;  %6933 = vmatprep.subr.bf16.mxu0 %v10302_v21  ;;  %v3985_v29 = vsel %vm432_vm2, %v3980_v31, 0 }
0x165a   :  { %v3927_v53 = vpop.permute.xlu0 %3926 }
0x165c   :  { %v3978_v60 = vpop.permute.xlu1 %3977 }
0x165e   :  { %6918 = vmatmul.mubr.msk.bf16.vlgmr.msra.gmra.mrb[92].mxu1 %vm432_vm2, %v3774_v40  ;;  %6924 = vmatmul.mubr.msk.bf16.vlgmr.msra.gmra.mrb[80].mxu0 %vm432_vm2, %v3825_v44 }
0x165f   :  { %6928 = vmatpush3.bf16.xpose.msra.mxu1 %v3883_v57  ;;  %6934 = vmatpush3.bf16.xpose.msra.mxu0 %v3934_v3 }
0x1660   :  { %6929 = vmatprep.mubr.msk.bf16.mxu1 %vm7687_vm1, %v10302_v21  ;;  %6935 = vmatprep.mubr.msk.bf16.mxu0 %vm7687_vm1, %v10302_v21  ;;  %v4246_v15 = vpop.permute.xlu1 %4245 }
0x1661   :  { %6939 = vmatprep.subr.bf16.mxu1 %v10302_v21  ;;  %6945 = vmatprep.subr.bf16.mxu0 %v10302_v21 }
0x1666   :  { %6930 = vmatmul.mubr.msk.bf16.vlgmr.msra.gmra.mrb[96].mxu1 %vm432_vm2, %v3876_v43  ;;  %6936 = vmatmul.mubr.msk.bf16.vlgmr.msra.gmra.mrb[84].mxu0 %vm432_vm2, %v3927_v53 }
0x1667   :  { %6940 = vmatpush3.bf16.xpose.msra.mxu1 %v3985_v29  ;;  %6946 = vmatpush3.bf16.msra.mxu0 %v4246_v15 }
0x1668   :  { %6941 = vmatprep.mubr.msk.bf16.mxu1 %vm7687_vm1, %v10302_v21  ;;  %6951 = vmatprep.subr.bf16.mxu1 %v10302_v21 }
0x1669   :  { %6947 = vmatprep.mubr.msk.bf16.mxu0 %vm7687_vm1, %v10302_v21  ;;  %6957 = vmatprep.subr.bf16.mxu0 %v10302_v21 }
0x166e   :  { %6942 = vmatmul.mubr.msk.bf16.vlgmr.msra.gmra.mrb[100].mxu1 %vm432_vm2, %v3978_v60 }
0x166f   :  { %6953 = vmatprep.mubr.msk.bf16.mxu1 %vm7687_vm1, %v10302_v21 }
0x16e9   :  { %v9148_v33 = vpop.f32.mrb[56].mxu0 }
0x16ea   :  { %v6853_v63 = vpop.f32.mrb[57].mxu0 }
0x16eb   :  { %v9150_v8 = vpop.f32.mrb[58].mxu0 }
0x16ec   :  { %v6854_v25 = vpop.f32.mrb[59].mxu0 }
0x16f3   :  { %v9152_v1 = vpop.f32.mrb[72].mxu1 }
0x16f4   :  { %v6859_v34 = vpop.f32.mrb[73].mxu1 }
0x16f5   :  { %v9154_v59 = vpop.f32.mrb[74].mxu1 }
0x16f6   :  { %v6860_v62 = vpop.f32.mrb[75].mxu1 }
0x16f9   :  { %v9156_v50 = vpop.f32.mrb[60].mxu0 }
0x16fa   :  { %v6865_v13 = vpop.f32.mrb[61].mxu0 }
0x16fb   :  { %v9158_v37 = vpop.f32.mrb[62].mxu0 }
0x16fc   :  { %v6866_v32 = vpop.f32.mrb[63].mxu0 }
0x1701   :  { %v9160_v30 = vpop.f32.mrb[76].mxu1 }
0x1702   :  { %v6871_v20 = vpop.f32.mrb[77].mxu1 }
0x1703   :  { %v9162_v35 = vpop.f32.mrb[78].mxu1 }
0x1704   :  { %v6872_v48 = vpop.f32.mrb[79].mxu1 }
0x1709   :  { %v9164_v51 = vpop.f32.mrb[64].mxu0 }
0x170a   :  { %v6877_v4 = vpop.f32.mrb[65].mxu0 }
0x170b   :  { %v9166_v10 = vpop.f32.mrb[66].mxu0 }
0x170c   :  { %v6878_v0 = vpop.f32.mrb[67].mxu0 }
0x1711   :  { %v9168_v40 = vpop.f32.mrb[80].mxu1 }
0x1712   :  { %v6883_v5 = vpop.f32.mrb[81].mxu1 }
0x1713   :  { %v9170_v45 = vpop.f32.mrb[82].mxu1 }
0x1714   :  { %v6884_v41 = vpop.f32.mrb[83].mxu1 }
0x1719   :  { %v9172_v17 = vpop.f32.mrb[68].mxu0 }
0x171a   :  { %v6889_v6 = vpop.f32.mrb[69].mxu0 }
0x171b   :  { %v9174_v43 = vpop.f32.mrb[70].mxu0 }
0x171c   :  { %v6890_v44 = vpop.f32.mrb[71].mxu0 }
0x1721   :  { %v9176_v18 = vpop.f32.mrb[84].mxu1  ;;  %v3664_v19 = vpop.f32.mrb[72].mxu0 }
0x1722   :  { %v4028_v31 = vmul.f32 0.17677669, %v3664_v19  ;;  %v6895_v46 = vpop.f32.mrb[85].mxu1  ;;  %v6901_v57 = vpop.f32.mrb[73].mxu0 }
0x1723   :  { %v9178_v3 = vpop.f32.mrb[86].mxu1  ;;  %v3667_v60 = vpop.f32.mrb[74].mxu0 }
0x1724   :  { %v9181_v53 = vadd.f32 %v4028_v31, %v8853_v58  ;;  %v4029_v29 = vmul.f32 0.17677669, %v3667_v60  ;;  %v6896_v15 = vpop.f32.mrb[87].mxu1  ;;  %v6902_v63 = vpop.f32.mrb[75].mxu0 }
0x1726   :  { %v9184_v25 = vadd.f32 %v4029_v29, %v8856_v14  ;;  %v4060_v34 = vsel %vm3083_vm7, %v9181_v53, -inf }
0x1727   :  { %4061 = vmax.xlane.f32.xlu0 %v4060_v34 }
0x1728   :  { %v4063_v62 = vsel %vm3083_vm7, %v9184_v25, -inf }
0x1729   :  { %4064 = vmax.xlane.f32.xlu1 %v4063_v62  ;;  %v3715_v13 = vpop.f32.mrb[88].mxu1  ;;  %v3766_v32 = vpop.f32.mrb[76].mxu0 }
0x172a   :  { %v4030_v20 = vmul.f32 0.17677669, %v3715_v13  ;;  %v4032_v48 = vmul.f32 0.17677669, %v3766_v32  ;;  %v6907_v4 = vpop.f32.mrb[89].mxu1  ;;  %v6913_v0 = vpop.f32.mrb[77].mxu0 }
0x172b   :  { %v3718_v5 = vpop.f32.mrb[90].mxu1  ;;  %v3769_v41 = vpop.f32.mrb[78].mxu0 }
0x172c   :  { %v9191_v6 = vadd.f32 %v4030_v20, %v8853_v58  ;;  %v9194_v44 = vadd.f32 %v4032_v48, %v8853_v58  ;;  %v4031_v19 = vmul.f32 0.17677669, %v3718_v5  ;;  %v6908_v31 = vpop.f32.mrb[91].mxu1  ;;  %v6914_v46 = vpop.f32.mrb[79].mxu0  ;;  %v4033_v60 = vmul.f32 0.17677669, %v3769_v41 }
0x172e   :  { %v9197_v57 = vadd.f32 %v4031_v19, %v8856_v14  ;;  %v4072_v29 = vsel %vm3083_vm7, %v9194_v44, -inf  ;;  %v4066_v15 = vsel %vm3083_vm7, %v9191_v6, -inf  ;;  %v9206_v13 = vadd.f32 %v4033_v60, %v8856_v14 }
0x172f   :  { %4073 = vmax.xlane.f32.xlu1 %v4072_v29  ;;  %4067 = vmax.xlane.f32.xlu0 %v4066_v15 }
0x1730   :  { %v4069_v62 = vsel %vm3083_vm7, %v9197_v57, -inf  ;;  %v4075_v60 = vsel %vm3083_vm7, %v9206_v13, -inf }
0x1731   :  { %v3817_v63 = vpop.f32.mrb[92].mxu1  ;;  %v3868_v34 = vpop.f32.mrb[80].mxu0 }
0x1732   :  { %v4034_v32 = vmul.f32 0.17677669, %v3817_v63  ;;  %v4036_v20 = vmul.f32 0.17677669, %v3868_v34  ;;  %v6919_v48 = vpop.f32.mrb[93].mxu1  ;;  %v6925_v4 = vpop.f32.mrb[81].mxu0 }
0x1733   :  { %v3871_v0 = vpop.f32.mrb[82].mxu0  ;;  %4070 = vmax.xlane.f32.xlu0 %v4069_v62  ;;  %v3820_v5 = vpop.f32.mrb[94].mxu1 }
0x1734   :  { %v9209_v41 = vadd.f32 %v4034_v32, %v8853_v58  ;;  %v4035_v19 = vmul.f32 0.17677669, %v3820_v5  ;;  %v6920_v31 = vpop.f32.mrb[95].mxu1  ;;  %v6926_v46 = vpop.f32.mrb[83].mxu0  ;;  %v9212_v29 = vadd.f32 %v4036_v20, %v8853_v58 }
0x1736   :  { %v9215_v15 = vadd.f32 %v4035_v19, %v8856_v14  ;;  %v4078_v63 = vsel %vm3083_vm7, %v9209_v41, -inf  ;;  %v4084_v20 = vsel %vm3083_vm7, %v9212_v29, -inf }
0x1737   :  { %4076 = vmax.xlane.f32.xlu0 %v4075_v60  ;;  %4079 = vmax.xlane.f32.xlu1 %v4078_v63 }
0x1738   :  { %v4081_v5 = vsel %vm3083_vm7, %v9215_v15, -inf }
0x1739   :  { %v3919_v34 = vpop.f32.mrb[96].mxu1  ;;  %v3970_v62 = vpop.f32.mrb[84].mxu0 }
0x173a   :  { %v4038_v32 = vmul.f32 0.17677669, %v3919_v34  ;;  %v6931_v48 = vpop.f32.mrb[97].mxu1  ;;  %v6937_v4 = vpop.f32.mrb[85].mxu0 }
0x173b   :  { %v3973_v19 = vpop.f32.mrb[86].mxu0  ;;  %4085 = vmax.xlane.f32.xlu1 %v4084_v20  ;;  %4082 = vmax.xlane.f32.xlu0 %v4081_v5  ;;  %v3922_v31 = vpop.f32.mrb[98].mxu1  ;;  %v4037_v20 = vmul.f32 0.17677669, %v3871_v0  ;;  %v4040_v5 = vmul.f32 0.17677669, %v3970_v62 }
0x173c   :  { %v9226_v46 = vadd.f32 %v4038_v32, %v8853_v58  ;;  %v6932_v60 = vpop.f32.mrb[99].mxu1  ;;  %v6938_v63 = vpop.f32.mrb[87].mxu0 }
0x173d   :  { %v9235_v32 = vadd.f32 %v4037_v20, %v8856_v14  ;;  %v4039_v60 = vmul.f32 0.17677669, %v3922_v31  ;;  %v4041_v63 = vmul.f32 0.17677669, %v3973_v19  ;;  %v9238_v38 = vadd.f32 %v4040_v5, %v8853_v58 }
0x173e   :  { %v4090_v34 = vsel %vm3083_vm7, %v9226_v46, -inf }
0x173f   :  { %4091 = vmax.xlane.f32.xlu1 %v4090_v34  ;;  %v9241_v34 = vadd.f32 %v4039_v60, %v8856_v14  ;;  %v4096_v19 = vsel %vm3083_vm7, %v9238_v38, -inf }
0x1741   :  { %v4021_v48 = vpop.f32.mrb[100].mxu1  ;;  %v4093_v31 = vsel %vm3083_vm7, %v9241_v34, -inf }
0x1742   :  { %v6943_v4 = vpop.f32.mrb[101].mxu1 }
0x1743   :  { %v4024_v49 = vpop.f32.mrb[102].mxu1 }
0x1744   :  { %v6944_v61 = vpop.f32.mrb[103].mxu1  ;;  %v4043_v62 = vmul.f32 0.17677669, %v4024_v49 }
0x1745   :  { %v4042_v61 = vmul.f32 0.17677669, %v4021_v48 }
0x1746   :  { %v9256_v48 = vadd.f32 %v4043_v62, %v8856_v14 }
0x1747   :  { %v9249_v0 = vadd.f32 %v4042_v61, %v8853_v58 }
0x1748   :  { %v4105_v49 = vsel %vm3083_vm7, %v9256_v48, -inf }
0x1749   :  { %v4102_v20 = vsel %vm3083_vm7, %v9249_v0, -inf }
0x1750   :  { %4341 = vrot.lane.b32.xlu1 %v8744_v26, %s7690_s26  ;;  %v4087_v26 = vsel %vm3083_vm7, %v9235_v32, -inf }
0x1751   :  { %4293 = vrot.lane.b32.xlu0 %v8732_v7, %s7690_s26  ;;  %v9246_v7 = vadd.f32 %v4041_v63, %v8856_v14 }
0x1753   :  { %v4099_v4 = vsel %vm3083_vm7, %v9246_v7, -inf }
0x1770   :  { %4088 = vmax.xlane.f32.xlu0 %v4087_v26 }
0x1774   :  { %4097 = vmax.xlane.f32.xlu1 %v4096_v19  ;;  %4094 = vmax.xlane.f32.xlu0 %v4093_v31 }
0x1778   :  { %4100 = vmax.xlane.f32.xlu0 %v4099_v4  ;;  %4103 = vmax.xlane.f32.xlu1 %v4102_v20 }
0x177c   :  { %4106 = vmax.xlane.f32.xlu0 %v4105_v49 }
0x17b4   :  { %v4062_v58 = vpop.xlane.xlu0 %4061 }
0x17b5   :  { %v4108_v5 = vsub.f32 %v9181_v53, %v4062_v58 }
0x17b6   :  { %v4065_v60 = vpop.xlane.xlu1 %4064 }
0x17b7   :  { %v4124_v63 = vmul.f32 1.442695, %v4108_v5  ;;  %v4109_v14 = vsub.f32 %v9184_v25, %v4065_v60 }
0x17b9   :  { %7390 = vpow2.f32 %v4124_v63  ;;  %v4126_v61 = vmul.f32 1.442695, %v4109_v14 }
0x17bb   :  { %7392 = vpow2.f32 %v4126_v61 }
0x17bc   :  { %v4068_v26 = vpop.xlane.xlu0 %4067  ;;  %v4074_v62 = vpop.xlane.xlu1 %4073 }
0x17bd   :  { %v4110_v19 = vsub.f32 %v9191_v6, %v4068_v26  ;;  %v4112_v31 = vsub.f32 %v9194_v44, %v4074_v62 }
0x17bf   :  { %v4128_v4 = vmul.f32 1.442695, %v4110_v19  ;;  %v4132_v20 = vmul.f32 1.442695, %v4112_v31 }
0x17c0   :  { %v4071_v28 = vpop.xlane.xlu0 %4070 }
0x17c1   :  { %7394 = vpow2.f32 %v4128_v4  ;;  %v4111_v49 = vsub.f32 %v9197_v57, %v4071_v28 }
0x17c2   :  { %7396 = vpow2.f32 %v4132_v20 }
0x17c3   :  { %v9269_v53 = vpop.eup %7390  ;;  %v4130_v58 = vmul.f32 1.442695, %v4111_v49 }
0x17c4   :  { %v4077_v25 = vpop.xlane.xlu0 %4076  ;;  %v4080_v5 = vpop.xlane.xlu1 %4079  ;;  %v4156_v60 = vsel %vm3083_vm7, %v9269_v53, 0.0 }
0x17c5   :  { %v9273_v63 = vpop.eup %7392  ;;  %7398 = vpow2.f32 %v4130_v58  ;;  %v4114_v6 = vsub.f32 %v9209_v41, %v4080_v5  ;;  %4157 = vadd.xlane.f32.xlu1 %v4156_v60  ;;  %v4113_v49 = vsub.f32 %v9206_v13, %v4077_v25 }
0x17c6   :  { %v4159_v44 = vsel %vm3083_vm7, %v9273_v63, 0.0 }
0x17c7   :  { %v4136_v14 = vmul.f32 1.442695, %v4114_v6  ;;  %4160 = vadd.xlane.f32.xlu0 %v4159_v44  ;;  %v4134_v5 = vmul.f32 1.442695, %v4113_v49 }
0x17c8   :  { %v4083_v28 = vpop.xlane.xlu0 %4082  ;;  %v4086_v58 = vpop.xlane.xlu1 %4085 }
0x17c9   :  { %7400 = vpow2.f32 %v4136_v14  ;;  %v4115_v60 = vsub.f32 %v9215_v15, %v4083_v28  ;;  %v4116_v6 = vsub.f32 %v9212_v29, %v4086_v58 }
0x17ca   :  { %7402 = vpow2.f32 %v4134_v5 }
0x17cb   :  { %v9278_v57 = vpop.eup %7394  ;;  %v4138_v14 = vmul.f32 1.442695, %v4115_v60 }
0x17cc   :  { %v4294_v61 = vpop.permute.xlu0 %4293  ;;  %v4162_v26 = vsel %vm3083_vm7, %v9278_v57, 0.0  ;;  %v9282_v62 = vpop.eup %7396 }
0x17cd   :  { %6952 = vmatpush3.bf16.msra.mxu1 %v4294_v61  ;;  %4163 = vadd.xlane.f32.xlu1 %v4162_v26  ;;  %v4168_v31 = vsel %vm3083_vm7, %v9282_v62, 0.0  ;;  %v4092_v44 = vpop.xlane.xlu1 %4091  ;;  %v4140_v61 = vmul.f32 1.442695, %v4116_v6  ;;  %7404 = vpow2.f32 %v4138_v14 }
0x17ce   :  { %6963 = vmatprep.subr.bf16.mxu1 %v10302_v21  ;;  %v4118_v26 = vsub.f32 %v9226_v46, %v4092_v44 }
0x17cf   :  { %v9285_v41 = vpop.eup %7398  ;;  %7406 = vpow2.f32 %v4140_v61 }
0x17d0   :  { %v4165_v19 = vsel %vm3083_vm7, %v9285_v41, 0.0 }
0x17d1   :  { %4166 = vadd.xlane.f32.xlu0 %v4165_v19  ;;  %4169 = vadd.xlane.f32.xlu1 %v4168_v31  ;;  %v9303_v19 = vpop.permute.xlu1 %4341 }
0x17d3   :  { %v9291_v4 = vpop.eup %7400 }
0x17d4   :  { %v4174_v20 = vsel %vm3083_vm7, %v9291_v4, 0.0  ;;  %v9306_v28 = vpop.eup %7402 }
0x17d5   :  { %4175 = vadd.xlane.f32.xlu1 %v4174_v20  ;;  %v4171_v60 = vsel %vm3083_vm7, %v9306_v28, 0.0 }
0x17d7   :  { %v9312_v6 = vpop.eup %7404 }
0x17d9   :  { %v9316_v14 = vpop.eup %7406 }
0x17e6   :  { %4437 = vrot.lane.b32.xlu1 %v8764_v42, %s7690_s26  ;;  %v4144_v42 = vmul.f32 1.442695, %v4118_v26  ;;  %v4177_v26 = vsel %vm3083_vm7, %v9312_v6, 0.0 }
0x17e7   :  { %4389 = vrot.lane.b32.xlu0 %v8754_v2, %s7690_s26 }
0x17e8   :  { %7408 = vpow2.f32 %v4144_v42 }
0x17fd   :  { %v4089_v2 = vpop.xlane.xlu0 %4088 }
0x17fe   :  { %v4117_v13 = vsub.f32 %v9235_v32, %v4089_v2  ;;  %v4180_v2 = vsel %vm3083_vm7, %v9316_v14, 0.0 }
0x1800   :  { %v4142_v25 = vmul.f32 1.442695, %v4117_v13 }
0x1801   :  { %v4095_v31 = vpop.xlane.xlu0 %4094  ;;  %v4098_v15 = vpop.xlane.xlu1 %4097 }
0x1802   :  { %7410 = vpow2.f32 %v4142_v25  ;;  %v4119_v29 = vsub.f32 %v9241_v34, %v4095_v31  ;;  %v4120_v20 = vsub.f32 %v9238_v38, %v4098_v15 }
0x1804   :  { %v4146_v46 = vmul.f32 1.442695, %v4119_v29  ;;  %v4148_v49 = vmul.f32 1.442695, %v4120_v20 }
0x1805   :  { %v4101_v58 = vpop.xlane.xlu0 %4100  ;;  %v4104_v5 = vpop.xlane.xlu1 %4103 }
0x1806   :  { %7412 = vpow2.f32 %v4146_v46  ;;  %v4121_v32 = vsub.f32 %v9246_v7, %v4101_v58  ;;  %v4122_v44 = vsub.f32 %v9249_v0, %v4104_v5  ;;  %4172 = vadd.xlane.f32.xlu0 %v4171_v60  ;;  %v9323_v7 = vpop.eup %7408 }
0x1807   :  { %7414 = vpow2.f32 %v4148_v49  ;;  %v4186_v31 = vsel %vm3083_vm7, %v9323_v7, 0.0 }
0x1808   :  { %v4150_v34 = vmul.f32 1.442695, %v4121_v32  ;;  %v4152_v38 = vmul.f32 1.442695, %v4122_v44 }
0x1809   :  { %v4107_v61 = vpop.xlane.xlu0 %4106 }
0x180a   :  { %7416 = vpow2.f32 %v4150_v34  ;;  %v4123_v42 = vsub.f32 %v9256_v48, %v4107_v61  ;;  %4178 = vadd.xlane.f32.xlu0 %v4177_v26  ;;  %4181 = vadd.xlane.f32.xlu1 %v4180_v2 }
0x180b   :  { %7418 = vpow2.f32 %v4152_v38 }
0x180c   :  { %v9325_v0 = vpop.eup %7410  ;;  %v4154_v13 = vmul.f32 1.442695, %v4123_v42 }
0x180d   :  { %v4183_v25 = vsel %vm3083_vm7, %v9325_v0, 0.0 }
0x180e   :  { %7420 = vpow2.f32 %v4154_v13  ;;  %4184 = vadd.xlane.f32.xlu0 %v4183_v25  ;;  %4187 = vadd.xlane.f32.xlu1 %v4186_v31 }
0x1810   :  { %v9331_v48 = vpop.eup %7412 }
0x1811   :  { %v9333_v15 = vpop.eup %7414  ;;  %v4189_v29 = vsel %vm3083_vm7, %v9331_v48, 0.0 }
0x1812   :  { %4190 = vadd.xlane.f32.xlu0 %v4189_v29  ;;  %v4192_v20 = vsel %vm3083_vm7, %v9333_v15, 0.0 }
0x1813   :  { %4193 = vadd.xlane.f32.xlu1 %v4192_v20 }
0x1814   :  { %v9339_v46 = vpop.eup %7416 }
0x1815   :  { %v9341_v49 = vpop.eup %7418  ;;  %v4195_v58 = vsel %vm3083_vm7, %v9339_v46, 0.0 }
0x1816   :  { %4196 = vadd.xlane.f32.xlu0 %v4195_v58  ;;  %v4198_v5 = vsel %vm3083_vm7, %v9341_v49, 0.0 }
0x1817   :  { %4199 = vadd.xlane.f32.xlu1 %v4198_v5 }
0x1818   :  { %v9347_v60 = vpop.eup %7420 }
0x1819   :  { %v4201_v32 = vsel %vm3083_vm7, %v9347_v60, 0.0 }
0x181a   :  { %4202 = vadd.xlane.f32.xlu0 %v4201_v32 }
0x1828   :  { %4533 = vrot.lane.b32.xlu1 %v8784_v56, %s7690_s26 }
0x182c   :  { %4581 = vrot.lane.b32.xlu1 %v8794_v11, %s7690_s26 }
0x1830   :  { %4485 = vrot.lane.b32.xlu0 %v8774_v24, %s7690_s26 }
0x1852   :  { %v4158_v44 = vpop.xlane.xlu1 %4157 }
0x1853   :  { %7422 = vrcp.f32 %v4158_v44 }
0x1854   :  { %v4161_v34 = vpop.xlane.xlu0 %4160 }
0x1855   :  { %7424 = vrcp.f32 %v4161_v34 }
0x185a   :  { %v4164_v38 = vpop.xlane.xlu1 %4163 }
0x185b   :  { %7426 = vrcp.f32 %v4164_v38 }
0x185d   :  { %v7423_v61 = vpop.eup %7422 }
0x185e   :  { %v4167_v26 = vpop.xlane.xlu0 %4166  ;;  %v4220_v2 = vmul.f32 %v7423_v61, %v9269_v53 }
0x185f   :  { %v7425_v42 = vpop.eup %7424  ;;  %7428 = vrcp.f32 %v4167_v26 }
0x1860   :  { %v4221_v56 = vmul.f32 %v7425_v42, %v9273_v63  ;;  %v4170_v63 = vpop.xlane.xlu1 %4169 }
0x1861   :  { %7430 = vrcp.f32 %v4170_v63 }
0x1862   :  { %v4236_v13 = vpack.c.bf16 %v4221_v56, %v4220_v2  ;;  %v4390_v53 = vpop.permute.xlu0 %4389 }
0x1864   :  { %6948 = vmatmul.mubr.msk.bf16.vlgmr.msra.gmra.mrb[88].mxu0 %vm3083_vm7, %v4236_v13 }
0x1865   :  { %6958 = vmatpush3.bf16.msra.mxu0 %v9303_v19  ;;  %6959 = vmatprep.mubr.msk.bf16.mxu0 %vm7687_vm1, %v10302_v21  ;;  %v7427_v24 = vpop.eup %7426  ;;  %v4176_v19 = vpop.xlane.xlu1 %4175 }
0x1866   :  { %6969 = vmatprep.subr.bf16.mxu0 %v10302_v21  ;;  %v4222_v25 = vmul.f32 %v7427_v24, %v9278_v57 }
0x1869   :  { %v7429_v11 = vpop.eup %7428  ;;  %v4438_v58 = vpop.permute.xlu1 %4437 }
0x186a   :  { %v4223_v31 = vmul.f32 %v7429_v11, %v9285_v41 }
0x186b   :  { %v7431_v32 = vpop.eup %7430 }
0x186c   :  { %v4237_v29 = vpack.c.bf16 %v4223_v31, %v4222_v25  ;;  %v4224_v38 = vmul.f32 %v7431_v32, %v9282_v62 }
0x186e   :  { %6954 = vmatmul.mubr.msk.bf16.vlgmr.msra.gmra.mrb[104].mxu1 %vm3083_vm7, %v4237_v29 }
0x186f   :  { %6964 = vmatpush3.bf16.msra.mxu1 %v4390_v53  ;;  %6965 = vmatprep.mubr.msk.bf16.mxu1 %vm7687_vm1, %v10302_v21 }
0x1870   :  { %6975 = vmatprep.subr.bf16.mxu1 %v10302_v21 }
0x1893   :  { %v4173_v20 = vpop.xlane.xlu0 %4172 }
0x1894   :  { %7432 = vrcp.f32 %v4173_v20 }
0x1895   :  { %7434 = vrcp.f32 %v4176_v19 }
0x1897   :  { %v4179_v57 = vpop.xlane.xlu0 %4178  ;;  %v4182_v41 = vpop.xlane.xlu1 %4181 }
0x1898   :  { %7436 = vrcp.f32 %v4179_v57 }
0x1899   :  { %7438 = vrcp.f32 %v4182_v41 }
0x189b   :  { %v4185_v5 = vpop.xlane.xlu0 %4184  ;;  %v4188_v44 = vpop.xlane.xlu1 %4187 }
0x189c   :  { %7440 = vrcp.f32 %v4185_v5 }
0x189d   :  { %7442 = vrcp.f32 %v4188_v44 }
0x189e   :  { %v7433_v34 = vpop.eup %7432 }
0x189f   :  { %v4225_v61 = vmul.f32 %v7433_v34, %v9306_v28  ;;  %v4191_v26 = vpop.xlane.xlu0 %4190  ;;  %v7435_v42 = vpop.eup %7434 }
0x18a0   :  { %7444 = vrcp.f32 %v4191_v26  ;;  %v4194_v2 = vpop.xlane.xlu1 %4193  ;;  %v4226_v24 = vmul.f32 %v7435_v42, %v9291_v4 }
0x18a1   :  { %v4238_v56 = vpack.c.bf16 %v4225_v61, %v4224_v38  ;;  %7446 = vrcp.f32 %v4194_v2 }
0x18a2   :  { %v7437_v13 = vpop.eup %7436 }
0x18a3   :  { %v4227_v11 = vmul.f32 %v7437_v13, %v9312_v6  ;;  %v4197_v25 = vpop.xlane.xlu0 %4196  ;;  %6960 = vmatmul.mubr.msk.bf16.vlgmr.msra.gmra.mrb[92].mxu0 %vm3083_vm7, %v4238_v56  ;;  %v7439_v31 = vpop.eup %7438  ;;  %v7193_v56 = vld [vmem:[%s10269_s1 + $0x2d0] ss:$8 sps:$4 sm:$0xff]  }
0x18a4   :  { %7448 = vrcp.f32 %v4197_v25  ;;  %6970 = vmatpush3.bf16.msra.mxu0 %v4438_v58  ;;  %v4200_v62 = vpop.xlane.xlu1 %4199  ;;  %6971 = vmatprep.mubr.msk.bf16.mxu0 %vm7687_vm1, %v10302_v21  ;;  %v4228_v53 = vmul.f32 %v7439_v31, %v9316_v14  ;;  %v7195_v31 = vld [vmem:[%s10269_s1 + $0x2f0] ss:$8 sps:$4 sm:$0xff]  }
0x18a5   :  { %v4239_v28 = vpack.c.bf16 %v4227_v11, %v4226_v24  ;;  %6981 = vmatprep.subr.bf16.mxu0 %v10302_v21  ;;  %7450 = vrcp.f32 %v4200_v62 }
0x18a6   :  { %v7441_v29 = vpop.eup %7440 }
0x18a7   :  { %v4229_v4 = vmul.f32 %v7441_v29, %v9325_v0  ;;  %v4203_v6 = vpop.xlane.xlu0 %4202  ;;  %6966 = vmatmul.mubr.msk.bf16.vlgmr.msra.gmra.mrb[108].mxu1 %vm3083_vm7, %v4239_v28  ;;  %v7443_v63 = vpop.eup %7442 }
0x18a8   :  { %7452 = vrcp.f32 %v4203_v6  ;;  %6977 = vmatprep.mubr.msk.bf16.mxu1 %vm7687_vm1, %v10302_v21  ;;  %v4534_v19 = vpop.permute.xlu1 %4533  ;;  %v4230_v57 = vmul.f32 %v7443_v63, %v9323_v7 }
0x18a9   :  { %v4240_v20 = vpack.c.bf16 %v4229_v4, %v4228_v53 }
0x18aa   :  { %v7445_v58 = vpop.eup %7444 }
0x18ab   :  { %v4231_v41 = vmul.f32 %v7445_v58, %v9331_v48  ;;  %v4486_v5 = vpop.permute.xlu0 %4485  ;;  %6972 = vmatmul.mubr.msk.bf16.vlgmr.msra.gmra.mrb[96].mxu0 %vm3083_vm7, %v4240_v20  ;;  %v7447_v14 = vpop.eup %7446 }
0x18ac   :  { %6982 = vmatpush3.bf16.msra.mxu0 %v4534_v19  ;;  %6976 = vmatpush3.bf16.msra.mxu1 %v4486_v5  ;;  %v4232_v44 = vmul.f32 %v7447_v14, %v9333_v15  ;;  %v4582_v7 = vpop.permute.xlu1 %4581  ;;  %v10303_v15 = vmov 0  }
0x18ad   :  { %v4241_v0 = vpack.c.bf16 %v4231_v41, %v4230_v57  ;;  %6987 = vmatprep.subr.bf16.mxu1 %v10302_v21  ;;  %6983 = vmatprep.mubr.msk.bf16.mxu0 %vm7687_vm1, %v10302_v21 }
0x18ae   :  { %v7449_v32 = vpop.eup %7448 }
0x18af   :  { %v4233_v34 = vmul.f32 %v7449_v32, %v9339_v46  ;;  %6978 = vmatmul.mubr.msk.bf16.vlgmr.msra.gmra.mrb[112].mxu1 %vm3083_vm7, %v4241_v0  ;;  %v7451_v48 = vpop.eup %7450  ;;  %v7192_v46 = vld [vmem:[%s10269_s1 + $0x2c0] ss:$8 sps:$4 sm:$0xff]  }
0x18b0   :  { %6988 = vmatpush3.bf16.msra.mxu1 %v4582_v7  ;;  %6989 = vmatprep.mubr.msk.bf16.mxu1 %vm7687_vm1, %v10302_v21  ;;  %v4234_v26 = vmul.f32 %v7451_v48, %v9341_v49  ;;  %v7194_v49 = vld [vmem:[%s10269_s1 + $0x2e0] ss:$8 sps:$4 sm:$0xff]  }
0x18b1   :  { %v4242_v38 = vpack.c.bf16 %v4233_v34, %v4232_v44  ;;  %6993 = vmatprep.subr.bf16.mxu0 %v7192_v46 }
0x18b2   :  { %v7453_v61 = vpop.eup %7452 }
0x18b3   :  { %v4235_v42 = vmul.f32 %v7453_v61, %v9347_v60  ;;  %6984 = vmatmul.mubr.msk.bf16.vlgmr.msra.gmra.mrb[100].mxu0 %vm3083_vm7, %v4242_v38 }
0x18b4   :  { %6994 = vmatpush3.bf16.msra.mxu0 %v7192_v46 }
0x18b5   :  { %v4243_v2 = vpack.c.bf16 %v4235_v42, %v4234_v26  ;;  %6995 = vmatprep.subr.bf16.mxu0 %v7193_v56 }
0x18b7   :  { %6990 = vmatmul.mubr.msk.bf16.vlgmr.msra.gmra.mrb[116].mxu1 %vm3083_vm7, %v4243_v2 }
0x18b8   :  { %5257 = vmatprep.mubr.bf16.mxu1 %v10303_v15  ;;  %6996 = vmatpush3.bf16.msra.mxu0 %v7193_v56 }
0x18b9   :  { %6997 = vmatprep.subr.bf16.mxu0 %v7194_v49 }
0x18bc   :  { %6998 = vmatpush3.bf16.msra.mxu0 %v7194_v49 }
0x18bd   :  { %6999 = vmatprep.subr.bf16.mxu0 %v7195_v31 }
0x18c0   :  { %7000 = vmatpush3.bf16.msra.mxu0 %v7195_v31 }
0x1937   :  { %v4285_v60 = vpop.f32.mrb[88].mxu0 }
0x1938   :  { %v6949_v13 = vpop.f32.mrb[89].mxu0 }
0x1939   :  { %v4288_v24 = vpop.f32.mrb[90].mxu0 }
0x193a   :  { %v7072_v11 = vpack.i.bf16 %v4288_v24, %v4285_v60  ;;  %v6950_v25 = vpop.f32.mrb[91].mxu0 }
0x193c   :  { %7073 = vrot.lane.b32.xlu0 %v7072_v11, %s7689_s25 }
0x1941   :  { %v4333_v62 = vpop.f32.mrb[104].mxu1 }
0x1942   :  { %v6955_v28 = vpop.f32.mrb[105].mxu1 }
0x1943   :  { %v4336_v29 = vpop.f32.mrb[106].mxu1 }
0x1944   :  { %v7077_v53 = vpack.i.bf16 %v4336_v29, %v4333_v62  ;;  %v6956_v4 = vpop.f32.mrb[107].mxu1 }
0x1946   :  { %7078 = vrot.lane.b32.xlu1 %v7077_v53, %s7689_s25 }
0x1976   :  { %v4381_v6 = vpop.f32.mrb[92].mxu0 }
0x1977   :  { %v6961_v63 = vpop.f32.mrb[93].mxu0 }
0x1978   :  { %v4384_v19 = vpop.f32.mrb[94].mxu0 }
0x1979   :  { %v7082_v20 = vpack.i.bf16 %v4384_v19, %v4381_v6  ;;  %v6962_v58 = vpop.f32.mrb[95].mxu0 }
0x197a   :  { %v4429_v57 = vpop.f32.mrb[108].mxu1 }
0x197b   :  { %7083 = vrot.lane.b32.xlu0 %v7082_v20, %s7689_s25  ;;  %v6967_v41 = vpop.f32.mrb[109].mxu1 }
0x197c   :  { %v4432_v5 = vpop.f32.mrb[110].mxu1 }
0x197d   :  { %v7087_v14 = vpack.i.bf16 %v4432_v5, %v4429_v57  ;;  %v6968_v0 = vpop.f32.mrb[111].mxu1 }
0x197e   :  { %v4477_v32 = vpop.f32.mrb[96].mxu0 }
0x197f   :  { %7088 = vrot.lane.b32.xlu1 %v7087_v14, %s7689_s25  ;;  %v6973_v44 = vpop.f32.mrb[97].mxu0 }
0x1980   :  { %v4480_v34 = vpop.f32.mrb[98].mxu0 }
0x1981   :  { %v7092_v7 = vpack.i.bf16 %v4480_v34, %v4477_v32  ;;  %v6974_v48 = vpop.f32.mrb[99].mxu0 }
0x1982   :  { %v4525_v38 = vpop.f32.mrb[112].mxu1 }
0x1983   :  { %7093 = vrot.lane.b32.xlu0 %v7092_v7, %s7689_s25  ;;  %v6979_v61 = vpop.f32.mrb[113].mxu1 }
0x1984   :  { %v4528_v26 = vpop.f32.mrb[114].mxu1 }
0x1985   :  { %v7097_v42 = vpack.i.bf16 %v4528_v26, %v4525_v38  ;;  %v6980_v2 = vpop.f32.mrb[115].mxu1 }
0x1986   :  { %v4573_v46 = vpop.f32.mrb[100].mxu0 }
0x1987   :  { %7098 = vrot.lane.b32.xlu1 %v7097_v42, %s7689_s25  ;;  %v6985_v56 = vpop.f32.mrb[101].mxu0 }
0x1988   :  { %v4576_v49 = vpop.f32.mrb[102].mxu0 }
0x1989   :  { %v7102_v60 = vpack.i.bf16 %v4576_v49, %v4573_v46  ;;  %v6986_v13 = vpop.f32.mrb[103].mxu0 }
0x198a   :  { %v4621_v24 = vpop.f32.mrb[116].mxu1 }
0x198b   :  { %7103 = vrot.lane.b32.xlu0 %v7102_v60, %s7689_s25  ;;  %v6991_v11 = vpop.f32.mrb[117].mxu1 }
0x198c   :  { %v4624_v25 = vpop.f32.mrb[118].mxu1 }
0x198d   :  { %v7107_v31 = vpack.i.bf16 %v4624_v25, %v4621_v24  ;;  %v6992_v62 = vpop.f32.mrb[119].mxu1 }
0x198f   :  { %7108 = vrot.lane.b32.xlu1 %v7107_v31, %s7689_s25 }
0x19ae   :  { %v7074_v28 = vpop.permute.xlu0 %7073 }
0x19af   :  { %v7076_v29 = vunpack.i.h.bf16 %v7074_v28  ;;  %v7075_v53 = vunpack.i.l.bf16 %v7074_v28 }
0x19b1   :  { %v4693_v4 = vsel %vm432_vm2, %v9150_v8, %v7076_v29  ;;  %v4692_v6 = vsel %vm432_vm2, %v9148_v33, %v7075_v53 }
0x19b2   :  { %v4708_v63 = vpack.c.bf16 %v4693_v4, %v4692_v6 }
0x19b4   :  { %7001 = vmatprep.mubr.msk.bf16.mxu0 %vm139_vm0, %v4708_v63 }
0x19b8   :  { %v7079_v19 = vpop.permute.xlu1 %7078 }
0x19b9   :  { %v7081_v20 = vunpack.i.h.bf16 %v7079_v19  ;;  %v7080_v58 = vunpack.i.l.bf16 %v7079_v19 }
0x19bb   :  { %v4695_v57 = vsel %vm432_vm2, %v9154_v59, %v7081_v20  ;;  %v4694_v41 = vsel %vm432_vm2, %v9152_v1, %v7080_v58 }
0x19bc   :  { %v4709_v5 = vpack.c.bf16 %v4695_v57, %v4694_v41 }
0x19be   :  { %7002 = vmatmul.mubr.msk.bf16.vlgmr.msra.gmra.mrb[104].mxu0 %vm139_vm0, %v4709_v5 }
0x19ed   :  { %v7084_v14 = vpop.permute.xlu0 %7083 }
0x19ee   :  { %v7086_v8 = vunpack.i.h.bf16 %v7084_v14  ;;  %v7085_v0 = vunpack.i.l.bf16 %v7084_v14 }
0x19f0   :  { %v4697_v33 = vsel %vm432_vm2, %v9158_v37, %v7086_v8  ;;  %v4696_v32 = vsel %vm432_vm2, %v9156_v50, %v7085_v0 }
0x19f1   :  { %v4710_v44 = vpack.c.bf16 %v4697_v33, %v4696_v32  ;;  %v7089_v34 = vpop.permute.xlu1 %7088 }
0x19f2   :  { %v7091_v7 = vunpack.i.h.bf16 %v7089_v34  ;;  %v7090_v48 = vunpack.i.l.bf16 %v7089_v34 }
0x19f3   :  { %7005 = vmatprep.mubr.msk.bf16.mxu0 %vm139_vm0, %v4710_v44 }
0x19f4   :  { %v4699_v1 = vsel %vm432_vm2, %v9162_v35, %v7091_v7  ;;  %v4698_v59 = vsel %vm432_vm2, %v9160_v30, %v7090_v48 }
0x19f5   :  { %v4711_v38 = vpack.c.bf16 %v4699_v1, %v4698_v59  ;;  %v7094_v61 = vpop.permute.xlu0 %7093 }
0x19f6   :  { %v7096_v26 = vunpack.i.h.bf16 %v7094_v61  ;;  %v7095_v42 = vunpack.i.l.bf16 %v7094_v61 }
0x19f7   :  { %7006 = vmatmul.mubr.msk.bf16.gmra.mrb[108].mxu0 %vm139_vm0, %v4711_v38 }
0x19f8   :  { %v4701_v50 = vsel %vm432_vm2, %v9166_v10, %v7096_v26  ;;  %v4700_v37 = vsel %vm432_vm2, %v9164_v51, %v7095_v42 }
0x19f9   :  { %v4712_v2 = vpack.c.bf16 %v4701_v50, %v4700_v37  ;;  %v7099_v46 = vpop.permute.xlu1 %7098 }
0x19fa   :  { %v7101_v56 = vunpack.i.h.bf16 %v7099_v46  ;;  %v7100_v49 = vunpack.i.l.bf16 %v7099_v46  ;;  %v10304_v46 = vld [vmem:[#allocation12_spill] sm:$0xff] }
0x19fb   :  { %7009 = vmatprep.mubr.msk.bf16.mxu0 %vm139_vm0, %v4712_v2 }
0x19fc   :  { %v4703_v30 = vsel %vm432_vm2, %v9170_v45, %v7101_v56  ;;  %v4702_v35 = vsel %vm432_vm2, %v9168_v40, %v7100_v49 }
0x19fd   :  { %v4713_v60 = vpack.c.bf16 %v4703_v30, %v4702_v35  ;;  %v7104_v13 = vpop.permute.xlu0 %7103 }
0x19fe   :  { %v7106_v24 = vunpack.i.h.bf16 %v7104_v13  ;;  %v7105_v11 = vunpack.i.l.bf16 %v7104_v13 }
0x19ff   :  { %7010 = vmatmul.mubr.msk.bf16.gmra.mrb[112].mxu0 %vm139_vm0, %v4713_v60 }
0x1a00   :  { %v4705_v51 = vsel %vm432_vm2, %v9174_v43, %v7106_v24  ;;  %v4704_v10 = vsel %vm432_vm2, %v9172_v17, %v7105_v11  ;;  %v9462_v43 = vld [vmem:[%s10270_s2 + $0x20] sm:$0xff] }
0x1a01   :  { %v4714_v25 = vpack.c.bf16 %v4705_v51, %v4704_v10  ;;  %v7109_v31 = vpop.permute.xlu1 %7108  ;;  %v9466_v17 = vrot.slane %v9462_v43, %v7848_v22  ;;  %v10305_v24 = vld [vmem:[#allocation13_spill] sm:$0xff]  ;;  %v10306_v51 = vld [vmem:[#allocation11_spill] sm:$0xff] }
0x1a02   :  { %v7111_v62 = vunpack.i.h.bf16 %v7109_v31  ;;  %v7110_v28 = vunpack.i.l.bf16 %v7109_v31 }
0x1a03   :  { %7013 = vmatprep.mubr.msk.bf16.mxu0 %vm139_vm0, %v4714_v25 }
0x1a04   :  { %v4707_v40 = vsel %vm432_vm2, %v9178_v3, %v7111_v62  ;;  %v4706_v45 = vsel %vm432_vm2, %v9176_v18, %v7110_v28 }
0x1a05   :  { %v4715_v29 = vpack.c.bf16 %v4707_v40, %v4706_v45  ;;  %v10307_v40 = vld [vmem:[#allocation15_spill] sm:$0xff] }
0x1a07   :  { %7014 = vmatmul.mubr.msk.bf16.gmra.mrb[116].mxu0 %vm139_vm0, %v4715_v29  ;;  %v10308_v29 = vld [vmem:[#allocation14_spill] sm:$0xff] }
0x1a91   :  { %v7003_v53 = vpop.f32.mrb[104].mxu0 }
0x1a92   :  { %v4798_v4 = vpop.f32.mrb[105].mxu0  ;;  %v4863_v6 = vadd.f32 %v7003_v53, %v8419_v47 }
0x1a93   :  { %v4861_v3 = vadd.f32 %v4798_v4, %v8411_v52  ;;  %v7004_v63 = vpop.f32.mrb[106].mxu0 }
0x1a94   :  { %v4801_v18 = vpop.f32.mrb[107].mxu0  ;;  %v9475_v58 = vadd.f32 %v9466_v17, %v4863_v6  ;;  %v4864_v57 = vadd.f32 %v7004_v63, %v8433_v16 }
0x1a95   :  { %v9471_v19 = vadd.f32 %v9466_v17, %v4861_v3  ;;  %v4862_v20 = vadd.f32 %v4801_v18, %v8409_v36 }
0x1a96   :  { %v9486_v41 = vadd.f32 %v9466_v17, %v4864_v57  ;;  %v4903_v36 = vsel %vm139_vm0, %v9475_v58, 0.0 }
0x1a97   :  { %v9479_v22 = vadd.f32 %v9466_v17, %v4862_v20  ;;  %v4897_v47 = vsel %vm139_vm0, %v9471_v19, 0.0 }
0x1a98   :  { %4898 = vadd.xlane.f32.xlu0 %v4897_v47  ;;  %v4906_v16 = vsel %vm139_vm0, %v9486_v41, 0.0 }
0x1a99   :  { %v4900_v52 = vsel %vm139_vm0, %v9479_v22, 0.0 }
0x1a9a   :  { %4901 = vadd.xlane.f32.xlu1 %v4900_v52 }
0x1a9c   :  { %4904 = vadd.xlane.f32.xlu0 %v4903_v36 }
0x1aa0   :  { %4907 = vadd.xlane.f32.xlu0 %v4906_v16 }
0x1aca   :  { %v7007_v5 = vpop.f32.mrb[108].mxu0 }
0x1acb   :  { %v4814_v14 = vpop.f32.mrb[109].mxu0  ;;  %v4867_v8 = vadd.f32 %v7007_v5, %v8431_v54 }
0x1acc   :  { %v4865_v0 = vadd.f32 %v4814_v14, %v8417_v12  ;;  %v7008_v33 = vpop.f32.mrb[110].mxu0 }
0x1acd   :  { %v4817_v32 = vpop.f32.mrb[111].mxu0  ;;  %v4868_v34 = vadd.f32 %v7008_v33, %v8461_v23  ;;  %v9500_v48 = vadd.f32 %v9466_v17, %v4867_v8 }
0x1ace   :  { %v9495_v44 = vadd.f32 %v9466_v17, %v4865_v0  ;;  %v4866_v7 = vadd.f32 %v4817_v32, %v8447_v9 }
0x1acf   :  { %v9508_v12 = vadd.f32 %v9466_v17, %v4868_v34  ;;  %v4915_v42 = vsel %vm139_vm0, %v9500_v48, 0.0 }
0x1ad0   :  { %v9503_v1 = vadd.f32 %v9466_v17, %v4866_v7  ;;  %v4909_v54 = vsel %vm139_vm0, %v9495_v44, 0.0 }
0x1ad1   :  { %4910 = vadd.xlane.f32.xlu1 %v4909_v54  ;;  %v4918_v49 = vsel %vm139_vm0, %v9508_v12, 0.0 }
0x1ad2   :  { %v7011_v59 = vpop.f32.mrb[112].mxu0  ;;  %v4912_v38 = vsel %vm139_vm0, %v9503_v1, 0.0 }
0x1ad3   :  { %4913 = vadd.xlane.f32.xlu0 %v4912_v38  ;;  %v4830_v23 = vpop.f32.mrb[113].mxu0  ;;  %v4871_v9 = vadd.f32 %v7011_v59, %v8459_v27 }
0x1ad4   :  { %v4869_v61 = vadd.f32 %v4830_v23, %v8445_v55  ;;  %v7012_v26 = vpop.f32.mrb[114].mxu0 }
0x1ad5   :  { %4916 = vadd.xlane.f32.xlu1 %v4915_v42  ;;  %v4833_v50 = vpop.f32.mrb[115].mxu0  ;;  %v4872_v2 = vadd.f32 %v7012_v26, %v8489_v39  ;;  %v9524_v27 = vadd.f32 %v9466_v17, %v4871_v9 }
0x1ad6   :  { %v9517_v37 = vadd.f32 %v9466_v17, %v4869_v61  ;;  %v4870_v56 = vadd.f32 %v4833_v50, %v10304_v46  ;;  %v7198_v50 = vld [vmem:[%s10269_s1 + $0x304] ss:$8 sps:$4 sm:$0xff]   ;;  %v7201_v46 = vld [vmem:[%s10269_s1 + $0x314] ss:$8 sps:$4 sm:$0xff]  }
0x1ad7   :  { %4919 = vadd.xlane.f32.xlu0 %v4918_v49  ;;  %v9532_v35 = vadd.f32 %v9466_v17, %v4872_v2  ;;  %v4927_v31 = vsel %vm139_vm0, %v9524_v27, 0.0  ;;  %v7196_v2 = vld [vmem:[%s10269_s1 + $0x300] ss:$8 sps:$4 sm:$0xff]   ;;  %5225 = vmatprep.subr.bf16.mxu1 %v7198_v50  ;;  %v7204_v49 = vld [vmem:[%s10269_s1 + $0x324] ss:$8 sps:$4 sm:$0xff]  }
0x1ad8   :  { %v9527_v55 = vadd.f32 %v9466_v17, %v4870_v56  ;;  %v4921_v30 = vsel %vm139_vm0, %v9517_v37, 0.0  ;;  %5226 = vmatpush1.bf16.msra.mxu1 %v7196_v2  ;;  %v7199_v56 = vld [vmem:[%s10269_s1 + $0x310] ss:$8 sps:$4 sm:$0xff]  }
0x1ad9   :  { %4922 = vadd.xlane.f32.xlu1 %v4921_v30  ;;  %v4930_v4 = vsel %vm139_vm0, %v9532_v35, 0.0  ;;  %5227 = vmatprep.subr.bf16.mxu1 %v7201_v46  ;;  %v7202_v30 = vld [vmem:[%s10269_s1 + $0x320] ss:$8 sps:$4 sm:$0xff]  }
0x1ada   :  { %v7015_v39 = vpop.f32.mrb[116].mxu0  ;;  %v4924_v60 = vsel %vm139_vm0, %v9527_v55, 0.0 }
0x1adb   :  { %4925 = vadd.xlane.f32.xlu0 %v4924_v60  ;;  %v4846_v13 = vpop.f32.mrb[117].mxu0  ;;  %v4875_v11 = vadd.f32 %v7015_v39, %v10305_v24  ;;  %v7205_v39 = vld [vmem:[%s10269_s1 + $0x330] ss:$8 sps:$4 sm:$0xff]   ;;  %v7207_v60 = vld [vmem:[%s10269_s1 + $0x334] ss:$8 sps:$4 sm:$0xff]  }
0x1adc   :  { %v4873_v10 = vadd.f32 %v4846_v13, %v10306_v51  ;;  %v7016_v25 = vpop.f32.mrb[118].mxu0  ;;  %5228 = vmatpush1.bf16.msra.mxu1 %v7199_v56 }
0x1add   :  { %4928 = vadd.xlane.f32.xlu1 %v4927_v31  ;;  %v4849_v62 = vpop.f32.mrb[119].mxu0  ;;  %v4876_v45 = vadd.f32 %v7016_v25, %v10307_v40  ;;  %v9548_v6 = vadd.f32 %v9466_v17, %v4875_v11  ;;  %5229 = vmatprep.subr.bf16.mxu1 %v7204_v49 }
0x1ade   :  { %v9541_v28 = vadd.f32 %v9466_v17, %v4873_v10  ;;  %v4874_v53 = vadd.f32 %v4849_v62, %v10308_v29 }
0x1adf   :  { %4931 = vadd.xlane.f32.xlu0 %v4930_v4  ;;  %v9556_v18 = vadd.f32 %v9466_v17, %v4876_v45  ;;  %v4939_v57 = vsel %vm139_vm0, %v9548_v6, 0.0 }
0x1ae0   :  { %v9551_v3 = vadd.f32 %v9466_v17, %v4874_v53  ;;  %v4933_v63 = vsel %vm139_vm0, %v9541_v28, 0.0  ;;  %5230 = vmatpush1.bf16.msra.mxu1 %v7202_v30 }
0x1ae1   :  { %4934 = vadd.xlane.f32.xlu1 %v4933_v63  ;;  %v4942_v47 = vsel %vm139_vm0, %v9556_v18, 0.0  ;;  %5231 = vmatprep.subr.bf16.mxu1 %v7207_v60 }
0x1ae2   :  { %v4936_v20 = vsel %vm139_vm0, %v9551_v3, 0.0 }
0x1ae3   :  { %4937 = vadd.xlane.f32.xlu0 %v4936_v20 }
0x1ae4   :  { %5232 = vmatpush1.bf16.msra.mxu1 %v7205_v39 }
0x1ae5   :  { %4940 = vadd.xlane.f32.xlu1 %v4939_v57  ;;  %7017 = vmatprep.subr.bf16.mxu1 %v10302_v21 }
0x1ae7   :  { %4943 = vadd.xlane.f32.xlu0 %v4942_v47 }
0x1b25   :  { %v4899_v52 = vpop.xlane.xlu0 %4898 }
0x1b26   :  { %v4945_v36 = vmul.f32 0.015625, %v4899_v52 }
0x1b27   :  { %v4902_v16 = vpop.xlane.xlu1 %4901 }
0x1b28   :  { %v9565_v5 = vsub.f32 %v9471_v19, %v4945_v36  ;;  %v4946_v17 = vmul.f32 0.015625, %v4902_v16 }
0x1b29   :  { %v4905_v14 = vpop.xlane.xlu0 %4904 }
0x1b2a   :  { %v9568_v8 = vsub.f32 %v9479_v22, %v4946_v17  ;;  %v4947_v0 = vmul.f32 0.015625, %v4905_v14  ;;  %v4977_v33 = vmul.f32 %v9565_v5, %v9565_v5 }
0x1b2c   :  { %v9573_v32 = vsub.f32 %v9475_v58, %v4947_v0  ;;  %v4993_v34 = vsel %vm139_vm0, %v4977_v33, 0.0  ;;  %v4978_v7 = vmul.f32 %v9568_v8, %v9568_v8 }
0x1b2d   :  { %v4908_v54 = vpop.xlane.xlu0 %4907  ;;  %4994 = vadd.xlane.f32.xlu1 %v4993_v34 }
0x1b2e   :  { %v4948_v59 = vmul.f32 0.015625, %v4908_v54  ;;  %v4996_v38 = vsel %vm139_vm0, %v4978_v7, 0.0  ;;  %v4979_v23 = vmul.f32 %v9573_v32, %v9573_v32 }
0x1b2f   :  { %4997 = vadd.xlane.f32.xlu0 %v4996_v38 }
0x1b30   :  { %v9582_v9 = vsub.f32 %v9486_v41, %v4948_v59  ;;  %v4999_v61 = vsel %vm139_vm0, %v4979_v23, 0.0 }
0x1b31   :  { %5000 = vadd.xlane.f32.xlu1 %v4999_v61 }
0x1b32   :  { %v4980_v26 = vmul.f32 %v9582_v9, %v9582_v9 }
0x1b34   :  { %v5002_v42 = vsel %vm139_vm0, %v4980_v26, 0.0 }
0x1b35   :  { %5003 = vadd.xlane.f32.xlu0 %v5002_v42 }
0x1b5e   :  { %v4911_v13 = vpop.xlane.xlu1 %4910 }
0x1b5f   :  { %v4949_v24 = vmul.f32 0.015625, %v4911_v13 }
0x1b60   :  { %v4914_v11 = vpop.xlane.xlu0 %4913 }
0x1b61   :  { %v9614_v51 = vsub.f32 %v9495_v44, %v4949_v24  ;;  %v4950_v10 = vmul.f32 0.015625, %v4914_v11 }
0x1b62   :  { %v4917_v25 = vpop.xlane.xlu1 %4916 }
0x1b63   :  { %v9617_v31 = vsub.f32 %v9503_v1, %v4950_v10  ;;  %v4951_v62 = vmul.f32 0.015625, %v4917_v25  ;;  %v4981_v40 = vmul.f32 %v9614_v51, %v9614_v51 }
0x1b64   :  { %v4920_v45 = vpop.xlane.xlu0 %4919 }
0x1b65   :  { %v9622_v29 = vsub.f32 %v9500_v48, %v4951_v62  ;;  %v4952_v53 = vmul.f32 0.015625, %v4920_v45  ;;  %v5005_v4 = vsel %vm139_vm0, %v4981_v40, 0.0  ;;  %v4982_v63 = vmul.f32 %v9617_v31, %v9617_v31 }
0x1b66   :  { %v4923_v20 = vpop.xlane.xlu1 %4922  ;;  %5006 = vadd.xlane.f32.xlu1 %v5005_v4 }
0x1b67   :  { %v9628_v57 = vsub.f32 %v9508_v12, %v4952_v53  ;;  %v4953_v47 = vmul.f32 0.015625, %v4923_v20  ;;  %v5008_v52 = vsel %vm139_vm0, %v4982_v63, 0.0  ;;  %v4983_v36 = vmul.f32 %v9622_v29, %v9622_v29 }
0x1b68   :  { %v4926_v16 = vpop.xlane.xlu0 %4925  ;;  %5009 = vadd.xlane.f32.xlu0 %v5008_v52 }
0x1b69   :  { %v9634_v17 = vsub.f32 %v9517_v37, %v4953_v47  ;;  %v4954_v14 = vmul.f32 0.015625, %v4926_v16  ;;  %v5011_v0 = vsel %vm139_vm0, %v4983_v36, 0.0  ;;  %v4984_v33 = vmul.f32 %v9628_v57, %v9628_v57 }
0x1b6a   :  { %v4929_v34 = vpop.xlane.xlu1 %4928  ;;  %5012 = vadd.xlane.f32.xlu1 %v5011_v0 }
0x1b6b   :  { %v9640_v7 = vsub.f32 %v9527_v55, %v4954_v14  ;;  %v4955_v54 = vmul.f32 0.015625, %v4929_v34  ;;  %v5014_v59 = vsel %vm139_vm0, %v4984_v33, 0.0  ;;  %v4985_v38 = vmul.f32 %v9634_v17, %v9634_v17 }
0x1b6c   :  { %v4932_v23 = vpop.xlane.xlu0 %4931  ;;  %5015 = vadd.xlane.f32.xlu0 %v5014_v59 }
0x1b6d   :  { %v9646_v61 = vsub.f32 %v9524_v27, %v4955_v54  ;;  %v4956_v26 = vmul.f32 0.015625, %v4932_v23  ;;  %v5017_v42 = vsel %vm139_vm0, %v4985_v38, 0.0  ;;  %v4986_v50 = vmul.f32 %v9640_v7, %v9640_v7 }
0x1b6e   :  { %5018 = vadd.xlane.f32.xlu1 %v5017_v42  ;;  %v4935_v2 = vpop.xlane.xlu1 %4934 }
0x1b6f   :  { %v9652_v46 = vsub.f32 %v9532_v35, %v4956_v26  ;;  %v4957_v56 = vmul.f32 0.015625, %v4935_v2  ;;  %v5020_v49 = vsel %vm139_vm0, %v4986_v50, 0.0  ;;  %v4987_v30 = vmul.f32 %v9646_v61, %v9646_v61 }
0x1b70   :  { %5021 = vadd.xlane.f32.xlu0 %v5020_v49  ;;  %v4938_v39 = vpop.xlane.xlu0 %4937 }
0x1b71   :  { %v9658_v60 = vsub.f32 %v9541_v28, %v4957_v56  ;;  %v4958_v13 = vmul.f32 0.015625, %v4938_v39  ;;  %v5023_v24 = vsel %vm139_vm0, %v4987_v30, 0.0  ;;  %v4988_v11 = vmul.f32 %v9652_v46, %v9652_v46  ;;  %v10309_v39 = vld [vmem:[#allocation8_spill] sm:$0xff] }
0x1b72   :  { %5024 = vadd.xlane.f32.xlu1 %v5023_v24  ;;  %v4941_v10 = vpop.xlane.xlu1 %4940 }
0x1b73   :  { %v9664_v25 = vsub.f32 %v9551_v3, %v4958_v13  ;;  %v4959_v62 = vmul.f32 0.015625, %v4941_v10  ;;  %v5026_v40 = vsel %vm139_vm0, %v4988_v11, 0.0  ;;  %v4989_v45 = vmul.f32 %v9658_v60, %v9658_v60 }
0x1b74   :  { %5027 = vadd.xlane.f32.xlu0 %v5026_v40  ;;  %v4944_v53 = vpop.xlane.xlu0 %4943  ;;  %v9687_v13 = vrot.slane %v9462_v43, %v10309_v39 }
0x1b75   :  { %v9670_v4 = vsub.f32 %v9548_v6, %v4959_v62  ;;  %v4960_v63 = vmul.f32 0.015625, %v4944_v53  ;;  %v5029_v20 = vsel %vm139_vm0, %v4989_v45, 0.0  ;;  %v4990_v47 = vmul.f32 %v9664_v25, %v9664_v25  ;;  %v10310_v62 = vld [vmem:[#allocation9_spill] sm:$0xff] }
0x1b76   :  { %5030 = vadd.xlane.f32.xlu1 %v5029_v20  ;;  %v9692_v40 = vrot.slane %v9462_v43, %v10310_v62 }
0x1b77   :  { %v9676_v52 = vsub.f32 %v9556_v18, %v4960_v63  ;;  %v5032_v36 = vsel %vm139_vm0, %v4990_v47, 0.0  ;;  %v4991_v16 = vmul.f32 %v9670_v4, %v9670_v4 }
0x1b78   :  { %5033 = vadd.xlane.f32.xlu0 %v5032_v36 }
0x1b79   :  { %v5035_v14 = vsel %vm139_vm0, %v4991_v16, 0.0  ;;  %v4992_v0 = vmul.f32 %v9676_v52, %v9676_v52 }
0x1b7a   :  { %5036 = vadd.xlane.f32.xlu1 %v5035_v14 }
0x1b7b   :  { %v5038_v33 = vsel %vm139_vm0, %v4992_v0, 0.0 }
0x1b7c   :  { %5039 = vadd.xlane.f32.xlu0 %v5038_v33 }
0x1bba   :  { %v4995_v34 = vpop.xlane.xlu1 %4994 }
0x1bbb   :  { %v5041_v54 = vmul.f32 0.015625, %v4995_v34 }
0x1bbc   :  { %v4998_v59 = vpop.xlane.xlu0 %4997 }
0x1bbd   :  { %v5057_v38 = vadd.f32 1e-05, %v5041_v54  ;;  %v5042_v23 = vmul.f32 0.015625, %v4998_v59 }
0x1bbe   :  { %v5001_v26 = vpop.xlane.xlu1 %5000 }
0x1bbf   :  { %7454 = vrsqrt.f32 %v5057_v38  ;;  %v5058_v42 = vadd.f32 1e-05, %v5042_v23  ;;  %v5043_v50 = vmul.f32 0.015625, %v5001_v26 }
0x1bc1   :  { %7456 = vrsqrt.f32 %v5058_v42  ;;  %v5059_v2 = vadd.f32 1e-05, %v5043_v50 }
0x1bc2   :  { %v5004_v56 = vpop.xlane.xlu0 %5003 }
0x1bc3   :  { %7458 = vrsqrt.f32 %v5059_v2  ;;  %v5044_v49 = vmul.f32 0.015625, %v5004_v56 }
0x1bc5   :  { %v5060_v30 = vadd.f32 1e-05, %v5044_v49 }
0x1bc7   :  { %7460 = vrsqrt.f32 %v5060_v30 }
0x1bc9   :  { %v7455_v24 = vpop.eup %7454 }
0x1bca   :  { %v5089_v11 = vmul.f32 %v7455_v24, %v9565_v5 }
0x1bcb   :  { %v7457_v10 = vpop.eup %7456 }
0x1bcc   :  { %v5109_v45 = vmul.f32 %v9687_v13, %v5089_v11  ;;  %v5090_v53 = vmul.f32 %v7457_v10, %v9568_v8 }
0x1bcd   :  { %v7459_v63 = vpop.eup %7458 }
0x1bce   :  { %v5110_v20 = vmul.f32 %v9687_v13, %v5090_v53  ;;  %v5091_v47 = vmul.f32 %v7459_v63, %v9573_v32  ;;  %v5129_v36 = vadd.f32 %v9692_v40, %v5109_v45 }
0x1bd0   :  { %v5130_v16 = vadd.f32 %v9692_v40, %v5110_v20  ;;  %v5111_v43 = vmul.f32 %v9687_v13, %v5091_v47 }
0x1bd1   :  { %v7461_v14 = vpop.eup %7460 }
0x1bd2   :  { %v5092_v5 = vmul.f32 %v7461_v14, %v9582_v9  ;;  %v5145_v0 = vpack.c.bf16 %v5130_v16, %v5129_v36  ;;  %v5131_v32 = vadd.f32 %v9692_v40, %v5111_v43 }
0x1bd4   :  { %6434 = vmatmul.mubr.msk.bf16.vlgmr.msra.gmra.mrb[120].mxu1 %vm139_vm0, %v5145_v0  ;;  %v5112_v33 = vmul.f32 %v9687_v13, %v5092_v5 }
0x1bd5   :  { %5267 = vmatprep.mubr.bf16.mxu1 %v10303_v15 }
0x1bd6   :  { %v5132_v8 = vadd.f32 %v9692_v40, %v5112_v33 }
0x1bd8   :  { %v5146_v34 = vpack.c.bf16 %v5132_v8, %v5131_v32 }
0x1bdc   :  { %6435 = vmatmul.mubr.msk.bf16.gmra.mrb[124].mxu1 %vm139_vm0, %v5146_v34 }
0x1bdd   :  { %5277 = vmatprep.mubr.bf16.mxu1 %v10303_v15 }
0x1bf3   :  { %v5007_v54 = vpop.xlane.xlu1 %5006 }
0x1bf4   :  { %v5045_v9 = vmul.f32 0.015625, %v5007_v54 }
0x1bf5   :  { %v5010_v59 = vpop.xlane.xlu0 %5009 }
0x1bf6   :  { %v5061_v38 = vadd.f32 1e-05, %v5045_v9  ;;  %v5046_v23 = vmul.f32 0.015625, %v5010_v59 }
0x1bf7   :  { %v5013_v26 = vpop.xlane.xlu1 %5012 }
0x1bf8   :  { %7462 = vrsqrt.f32 %v5061_v38  ;;  %v5062_v42 = vadd.f32 1e-05, %v5046_v23  ;;  %v5047_v50 = vmul.f32 0.015625, %v5013_v26 }
0x1bf9   :  { %v5016_v2 = vpop.xlane.xlu0 %5015 }
0x1bfa   :  { %7464 = vrsqrt.f32 %v5062_v42  ;;  %v5063_v56 = vadd.f32 1e-05, %v5047_v50  ;;  %v5048_v49 = vmul.f32 0.015625, %v5016_v2 }
0x1bfb   :  { %v5019_v30 = vpop.xlane.xlu1 %5018 }
0x1bfc   :  { %7466 = vrsqrt.f32 %v5063_v56  ;;  %v5064_v24 = vadd.f32 1e-05, %v5048_v49  ;;  %v5049_v11 = vmul.f32 0.015625, %v5019_v30 }
0x1bfd   :  { %v5022_v10 = vpop.xlane.xlu0 %5021 }
0x1bfe   :  { %7468 = vrsqrt.f32 %v5064_v24  ;;  %v5050_v45 = vmul.f32 0.015625, %v5022_v10  ;;  %v5065_v53 = vadd.f32 1e-05, %v5049_v11 }
0x1bff   :  { %v5025_v20 = vpop.xlane.xlu1 %5024 }
0x1c00   :  { %v5066_v63 = vadd.f32 1e-05, %v5050_v45  ;;  %v5051_v0 = vmul.f32 0.015625, %v5025_v20 }
0x1c01   :  { %v5028_v47 = vpop.xlane.xlu0 %5027 }
0x1c02   :  { %v7463_v36 = vpop.eup %7462  ;;  %7470 = vrsqrt.f32 %v5066_v63  ;;  %v5052_v16 = vmul.f32 0.015625, %v5028_v47  ;;  %v5067_v59 = vadd.f32 1e-05, %v5051_v0 }
0x1c03   :  { %v5093_v14 = vmul.f32 %v7463_v36, %v9614_v51  ;;  %7472 = vrsqrt.f32 %v5065_v53  ;;  %v5031_v26 = vpop.xlane.xlu1 %5030 }
0x1c04   :  { %v7465_v5 = vpop.eup %7464  ;;  %v5068_v32 = vadd.f32 1e-05, %v5052_v16  ;;  %v5053_v49 = vmul.f32 0.015625, %v5031_v26 }
0x1c05   :  { %v5094_v43 = vmul.f32 %v7465_v5, %v9617_v31  ;;  %v5113_v33 = vmul.f32 %v9687_v13, %v5093_v14  ;;  %v5034_v34 = vpop.xlane.xlu0 %5033 }
0x1c06   :  { %v7467_v8 = vpop.eup %7466  ;;  %7474 = vrsqrt.f32 %v5068_v32  ;;  %v5054_v31 = vmul.f32 0.015625, %v5034_v34  ;;  %v5069_v45 = vadd.f32 1e-05, %v5053_v49 }
0x1c07   :  { %v5114_v54 = vmul.f32 %v9687_v13, %v5094_v43  ;;  %v5095_v38 = vmul.f32 %v7467_v8, %v9622_v29  ;;  %v5133_v51 = vadd.f32 %v9692_v40, %v5113_v33  ;;  %7476 = vrsqrt.f32 %v5067_v59  ;;  %v5037_v63 = vpop.xlane.xlu1 %5036 }
0x1c08   :  { %v7469_v9 = vpop.eup %7468  ;;  %v5070_v24 = vadd.f32 1e-05, %v5054_v31  ;;  %v5055_v5 = vmul.f32 0.015625, %v5037_v63  ;;  %v7214_v63 = vld [vmem:[%s10269_s1 + $0x3f0] ss:$8 sps:$4 sm:$0xff]  }
0x1c09   :  { %v5096_v23 = vmul.f32 %v7469_v9, %v9628_v57  ;;  %v5134_v42 = vadd.f32 %v9692_v40, %v5114_v54  ;;  %v5115_v30 = vmul.f32 %v9687_v13, %v5095_v38  ;;  %v5040_v11 = vpop.xlane.xlu0 %5039 }
0x1c0a   :  { %7478 = vrsqrt.f32 %v5070_v24  ;;  %v5056_v47 = vmul.f32 0.015625, %v5040_v11  ;;  %v5071_v8 = vadd.f32 1e-05, %v5055_v5  ;;  %v7220_v5 = vld [vmem:[%s10269_s1 + $0x420] ss:$8 sps:$4 sm:$0xff]  }
0x1c0b   :  { %v5147_v50 = vpack.c.bf16 %v5134_v42, %v5133_v51  ;;  %v5116_v2 = vmul.f32 %v9687_v13, %v5096_v23  ;;  %v5135_v20 = vadd.f32 %v9692_v40, %v5115_v30  ;;  %7480 = vrsqrt.f32 %v5069_v45 }
0x1c0c   :  { %v7471_v56 = vpop.eup %7470  ;;  %v5072_v43 = vadd.f32 1e-05, %v5056_v47  ;;  %v7216_v47 = vld [vmem:[%s10269_s1 + $0x400] ss:$8 sps:$4 sm:$0xff]  }
0x1c0d   :  { %6436 = vmatmul.mubr.msk.bf16.gmra.mrb[128].mxu1 %vm139_vm0, %v5147_v50  ;;  %v7473_v29 = vpop.eup %7472  ;;  %v5098_v57 = vmul.f32 %v7471_v56, %v9640_v7  ;;  %v5136_v10 = vadd.f32 %v9692_v40, %v5116_v2 }
0x1c0e   :  { %5287 = vmatprep.mubr.bf16.mxu1 %v10303_v15  ;;  %v5097_v53 = vmul.f32 %v7473_v29, %v9634_v17  ;;  %7482 = vrsqrt.f32 %v5072_v43  ;;  %v7223_v43 = vld [vmem:[%s10269_s1 + $0x3b0] ss:$8 sps:$4 sm:$0xff]  }
0x1c0f   :  { %v5148_v36 = vpack.c.bf16 %v5136_v10, %v5135_v20  ;;  %v5118_v16 = vmul.f32 %v9687_v13, %v5098_v57  ;;  %7484 = vrsqrt.f32 %v5071_v8  ;;  %v7215_v20 = vld [vmem:[%s10269_s1 + $0x370] ss:$8 sps:$4 sm:$0xff]  }
0x1c10   :  { %v7475_v14 = vpop.eup %7474  ;;  %v5117_v7 = vmul.f32 %v9687_v13, %v5097_v53  ;;  %v7213_v53 = vld [vmem:[%s10269_s1 + $0x360] ss:$8 sps:$4 sm:$0xff]  }
0x1c11   :  { %v7477_v0 = vpop.eup %7476  ;;  %v5100_v17 = vmul.f32 %v7475_v14, %v9652_v46  ;;  %v5138_v33 = vadd.f32 %v9692_v40, %v5118_v16  ;;  %v7218_v16 = vld [vmem:[%s10269_s1 + $0x410] ss:$8 sps:$4 sm:$0xff]  }
0x1c12   :  { %v5099_v32 = vmul.f32 %v7477_v0, %v9646_v61  ;;  %v5137_v34 = vadd.f32 %v9692_v40, %v5117_v7  ;;  %v7219_v14 = vld [vmem:[%s10269_s1 + $0x390] ss:$8 sps:$4 sm:$0xff]   ;;  %v7221_v7 = vld [vmem:[%s10269_s1 + $0x3a0] ss:$8 sps:$4 sm:$0xff]  }
0x1c13   :  { %v5120_v9 = vmul.f32 %v9687_v13, %v5100_v17  ;;  %v7222_v0 = vld [vmem:[%s10269_s1 + $0x430] ss:$8 sps:$4 sm:$0xff]  }
0x1c14   :  { %v5149_v54 = vpack.c.bf16 %v5138_v33, %v5137_v34  ;;  %v7479_v59 = vpop.eup %7478  ;;  %v5119_v38 = vmul.f32 %v9687_v13, %v5099_v32  ;;  %v9809_v17 = vld [vmem:[%s10270_s2 + $0x30] sm:$0xff]  ;;  %v7659_v32 = vld [vmem:[%s10270_s2 + $0x38] sm:$0xff] }
0x1c15   :  { %6437 = vmatmul.mubr.msk.bf16.gmra.mrb[132].mxu1 %vm139_vm0, %v5148_v36  ;;  %v7481_v23 = vpop.eup %7480  ;;  %v5102_v46 = vmul.f32 %v7479_v59, %v9664_v25  ;;  %v5140_v26 = vadd.f32 %v9692_v40, %v5120_v9  ;;  %v7217_v36 = vld [vmem:[%s10269_s1 + $0x380] ss:$8 sps:$4 sm:$0xff]  }
0x1c16   :  { %5297 = vmatprep.mubr.bf16.mxu1 %v10303_v15  ;;  %v5101_v61 = vmul.f32 %v7481_v23, %v9658_v60  ;;  %v5139_v51 = vadd.f32 %v9692_v40, %v5119_v38  ;;  %v10311_v33 = vld [vmem:[#allocation7_spill] sm:$0xff] }
0x1c17   :  { %v5122_v31 = vmul.f32 %v9687_v13, %v5102_v46  ;;  %v9813_v8 = vrot.slane %v9809_v17, %v10311_v33  ;;  %v9819_v34 = vrot.slane %v7659_v32, %v10311_v33 }
0x1c18   :  { %v5150_v42 = vpack.c.bf16 %v5140_v26, %v5139_v51  ;;  %v7483_v50 = vpop.eup %7482  ;;  %v5121_v2 = vmul.f32 %v9687_v13, %v5101_v61 }
0x1c19   :  { %v7485_v56 = vpop.eup %7484  ;;  %v5104_v49 = vmul.f32 %v7483_v50, %v9676_v52  ;;  %v5142_v25 = vadd.f32 %v9692_v40, %v5122_v31  ;;  %v7208_v52 = vld [vmem:[%s10269_s1 + $0x3c0] ss:$8 sps:$4 sm:$0xff]  }
0x1c1a   :  { %v5103_v30 = vmul.f32 %v7485_v56, %v9670_v4  ;;  %v5141_v60 = vadd.f32 %v9692_v40, %v5121_v2  ;;  %v7209_v4 = vld [vmem:[%s10269_s1 + $0x340] ss:$8 sps:$4 sm:$0xff]   ;;  %6631 = vmatprep.subr.bf16.mxu0 %v7208_v52 }
0x1c1b   :  { %v5124_v24 = vmul.f32 %v9687_v13, %v5104_v49  ;;  %6632 = vmatpush3.bf16.msra.mxu0 %v7209_v4 }
0x1c1c   :  { %v5151_v29 = vpack.c.bf16 %v5142_v25, %v5141_v60  ;;  %v5123_v57 = vmul.f32 %v9687_v13, %v5103_v30  ;;  %v7211_v13 = vld [vmem:[%s10269_s1 + $0x350] ss:$8 sps:$4 sm:$0xff]  }
0x1c1d   :  { %6438 = vmatmul.mubr.msk.bf16.gmra.mrb[136].mxu1 %vm139_vm0, %v5149_v54  ;;  %v5144_v11 = vadd.f32 %v9692_v40, %v5124_v24 }
0x1c1e   :  { %5307 = vmatprep.mubr.bf16.mxu1 %v10303_v15  ;;  %v5143_v10 = vadd.f32 %v9692_v40, %v5123_v57  ;;  %v7212_v40 = vld [vmem:[%s10269_s1 + $0x3e0] ss:$8 sps:$4 sm:$0xff]  }
0x1c20   :  { %v5152_v45 = vpack.c.bf16 %v5144_v11, %v5143_v10 }
0x1c25   :  { %6439 = vmatmul.mubr.msk.bf16.gmra.mrb[140].mxu1 %vm139_vm0, %v5150_v42 }
0x1c26   :  { %5317 = vmatprep.mubr.bf16.mxu1 %v10303_v15 }
0x1c2d   :  { %6440 = vmatmul.mubr.msk.bf16.gmra.mrb[144].mxu1 %vm139_vm0, %v5151_v29 }
0x1c2e   :  { %5327 = vmatprep.mubr.bf16.mxu1 %v10303_v15  ;;  %v7210_v15 = vld [vmem:[%s10269_s1 + $0x3d0] ss:$8 sps:$4 sm:$0xff]  }
0x1c2f   :  { %6633 = vmatprep.subr.bf16.mxu0 %v7210_v15 }
0x1c30   :  { %6634 = vmatpush3.bf16.msra.mxu0 %v7211_v13 }
0x1c31   :  { %6635 = vmatprep.subr.bf16.mxu0 %v7212_v40 }
0x1c34   :  { %6636 = vmatpush3.bf16.msra.mxu0 %v7213_v53 }
0x1c35   :  { %6441 = vmatmul.mubr.msk.bf16.gmra.mrb[148].mxu1 %vm139_vm0, %v5152_v45  ;;  %6637 = vmatprep.subr.bf16.mxu0 %v7214_v63 }
0x1c36   :  { %7033 = vmatprep.mubr.msk.bf16.mxu1 %vm7687_vm1, %v10302_v21 }
0x1c38   :  { %6638 = vmatpush3.bf16.msra.mxu0 %v7215_v20 }
0x1c39   :  { %6639 = vmatprep.subr.bf16.mxu0 %v7216_v47 }
0x1c3c   :  { %6640 = vmatpush3.bf16.msra.mxu0 %v7217_v36 }
0x1c3d   :  { %6641 = vmatprep.subr.bf16.mxu0 %v7218_v16 }
0x1c40   :  { %6642 = vmatpush3.bf16.msra.mxu0 %v7219_v14 }
0x1c41   :  { %6643 = vmatprep.subr.bf16.mxu0 %v7220_v5 }
0x1c44   :  { %6644 = vmatpush3.bf16.msra.mxu0 %v7221_v7 }
0x1c45   :  { %6645 = vmatprep.subr.bf16.mxu0 %v7222_v0 }
0x1c48   :  { %6646 = vmatpush3.bf16.msra.mxu0 %v7223_v43 }
0x1ca7   :  { %v5259_v54 = vpop.f32.mrb[120].mxu1 }
0x1ca8   :  { %v9822_v9 = vadd.f32 %v5259_v54, %v9813_v8  ;;  %v5261_v59 = vpop.f32.mrb[121].mxu1 }
0x1ca9   :  { %v9825_v38 = vadd.f32 %v5261_v59, %v9819_v34  ;;  %v5263_v23 = vpop.f32.mrb[122].mxu1 }
0x1caa   :  { %v6442_v46 = vmul.f32 -1.702, %v9822_v9  ;;  %v9829_v26 = vadd.f32 %v5263_v23, %v9813_v8  ;;  %v5265_v61 = vpop.f32.mrb[123].mxu1 }
0x1cab   :  { %v6443_v51 = vmul.f32 -1.702, %v9825_v38  ;;  %v5266_v42 = vadd.f32 %v5265_v61, %v9819_v34 }
0x1cac   :  { %v5402_v31 = vmul.f32 1.442695, %v6442_v46  ;;  %v6444_v50 = vmul.f32 -1.702, %v9829_v26 }
0x1cad   :  { %v5404_v2 = vmul.f32 1.442695, %v6443_v51  ;;  %v6445_v56 = vmul.f32 -1.702, %v5266_v42 }
0x1cae   :  { %7486 = vpow2.f32 %v5402_v31  ;;  %v5406_v49 = vmul.f32 1.442695, %v6444_v50 }
0x1caf   :  { %7488 = vpow2.f32 %v5404_v2  ;;  %v5408_v25 = vmul.f32 1.442695, %v6445_v56  ;;  %v5269_v30 = vpop.f32.mrb[124].mxu1 }
0x1cb0   :  { %7490 = vpow2.f32 %v5406_v49  ;;  %v5270_v60 = vadd.f32 %v5269_v30, %v9813_v8  ;;  %v5271_v29 = vpop.f32.mrb[125].mxu1 }
0x1cb1   :  { %7492 = vpow2.f32 %v5408_v25  ;;  %v5272_v24 = vadd.f32 %v5271_v29, %v9819_v34  ;;  %v5273_v57 = vpop.f32.mrb[126].mxu1 }
0x1cb2   :  { %v6446_v11 = vmul.f32 -1.702, %v5270_v60  ;;  %v5274_v10 = vadd.f32 %v5273_v57, %v9813_v8  ;;  %v5275_v52 = vpop.f32.mrb[127].mxu1 }
0x1cb3   :  { %v6447_v4 = vmul.f32 -1.702, %v5272_v24  ;;  %v5276_v45 = vadd.f32 %v5275_v52, %v9819_v34 }
0x1cb4   :  { %v5410_v15 = vmul.f32 1.442695, %v6446_v11  ;;  %v6448_v13 = vmul.f32 -1.702, %v5274_v10 }
0x1cb5   :  { %v5412_v40 = vmul.f32 1.442695, %v6447_v4  ;;  %v6449_v53 = vmul.f32 -1.702, %v5276_v45 }
0x1cb6   :  { %7494 = vpow2.f32 %v5410_v15  ;;  %v5414_v63 = vmul.f32 1.442695, %v6448_v13 }
0x1cb7   :  { %7496 = vpow2.f32 %v5412_v40  ;;  %v5416_v20 = vmul.f32 1.442695, %v6449_v53 }
0x1cb8   :  { %v7487_v47 = vpop.eup %7486  ;;  %7498 = vpow2.f32 %v5414_v63 }
0x1cb9   :  { %v7489_v36 = vpop.eup %7488  ;;  %v5466_v16 = vadd.f32 1.0, %v7487_v47  ;;  %7500 = vpow2.f32 %v5416_v20 }
0x1cba   :  { %v7491_v14 = vpop.eup %7490  ;;  %v5467_v5 = vadd.f32 1.0, %v7489_v36 }
0x1cbb   :  { %v7493_v7 = vpop.eup %7492  ;;  %7502 = vrcp.f32 %v5466_v16  ;;  %v5468_v0 = vadd.f32 1.0, %v7491_v14 }
0x1cbc   :  { %7504 = vrcp.f32 %v5467_v5  ;;  %v5469_v43 = vadd.f32 1.0, %v7493_v7 }
0x1cbd   :  { %7506 = vrcp.f32 %v5468_v0 }
0x1cbe   :  { %7508 = vrcp.f32 %v5469_v43 }
0x1cc0   :  { %v7495_v33 = vpop.eup %7494 }
0x1cc1   :  { %v7497_v32 = vpop.eup %7496  ;;  %v5470_v54 = vadd.f32 1.0, %v7495_v33 }
0x1cc2   :  { %v7499_v59 = vpop.eup %7498  ;;  %v5471_v23 = vadd.f32 1.0, %v7497_v32 }
0x1cc3   :  { %v7501_v46 = vpop.eup %7500  ;;  %7510 = vrcp.f32 %v5470_v54  ;;  %v5472_v61 = vadd.f32 1.0, %v7499_v59 }
0x1cc4   :  { %7512 = vrcp.f32 %v5471_v23  ;;  %v5473_v51 = vadd.f32 1.0, %v7501_v46 }
0x1cc5   :  { %v7503_v31 = vpop.eup %7502  ;;  %7514 = vrcp.f32 %v5472_v61 }
0x1cc6   :  { %v7505_v50 = vpop.eup %7504  ;;  %7516 = vrcp.f32 %v5473_v51  ;;  %v5562_v49 = vmul.f32 %v7503_v31, %v9822_v9 }
0x1cc7   :  { %v7507_v2 = vpop.eup %7506  ;;  %v5563_v30 = vmul.f32 %v7505_v50, %v9825_v38 }
0x1cc8   :  { %v7509_v56 = vpop.eup %7508  ;;  %v5564_v25 = vmul.f32 %v7507_v2, %v9829_v26 }
0x1cc9   :  { %v5565_v29 = vmul.f32 %v7509_v56, %v5266_v42 }
0x1cca   :  { %v5594_v57 = vpack.c.bf16 %v5564_v25, %v5562_v49 }
0x1ccb   :  { %v5595_v11 = vpack.c.bf16 %v5565_v29, %v5563_v30 }
0x1ccd   :  { %v7511_v52 = vpop.eup %7510  ;;  %5742 = vmatprep.mubr.bf16.mxu0 %v5595_v11 }
0x1cce   :  { %v7513_v4 = vpop.eup %7512  ;;  %5743 = vmatmul.mubr.bf16.vlgmr.msra.gmra.mrb[120].mxu0 %v5594_v57  ;;  %v5566_v40 = vmul.f32 %v7511_v52, %v5270_v60 }
0x1ccf   :  { %v7515_v15 = vpop.eup %7514  ;;  %v5567_v63 = vmul.f32 %v7513_v4, %v5272_v24 }
0x1cd0   :  { %v7517_v13 = vpop.eup %7516  ;;  %v5568_v53 = vmul.f32 %v7515_v15, %v5274_v10 }
0x1cd1   :  { %v5569_v20 = vmul.f32 %v7517_v13, %v5276_v45 }
0x1cd2   :  { %v5596_v47 = vpack.c.bf16 %v5568_v53, %v5566_v40 }
0x1cd3   :  { %v5597_v36 = vpack.c.bf16 %v5569_v20, %v5567_v63 }
0x1cd5   :  { %5750 = vmatprep.mubr.bf16.mxu0 %v5597_v36 }
0x1cd6   :  { %5751 = vmatmul.mubr.bf16.gmra.mrb[124].mxu0 %v5596_v47 }
0x1ce0   :  { %v5279_v9 = vpop.f32.mrb[128].mxu1 }
0x1ce1   :  { %v9842_v38 = vadd.f32 %v5279_v9, %v9813_v8  ;;  %v5281_v26 = vpop.f32.mrb[129].mxu1 }
0x1ce2   :  { %v9845_v42 = vadd.f32 %v5281_v26, %v9819_v34  ;;  %v5283_v16 = vpop.f32.mrb[130].mxu1 }
0x1ce3   :  { %v6450_v14 = vmul.f32 -1.702, %v9842_v38  ;;  %v9849_v60 = vadd.f32 %v5283_v16, %v9813_v8  ;;  %v5285_v24 = vpop.f32.mrb[131].mxu1 }
0x1ce4   :  { %v6451_v10 = vmul.f32 -1.702, %v9845_v42  ;;  %v9853_v45 = vadd.f32 %v5285_v24, %v9819_v34 }
0x1ce5   :  { %v5418_v5 = vmul.f32 1.442695, %v6450_v14  ;;  %v6452_v7 = vmul.f32 -1.702, %v9849_v60 }
0x1ce6   :  { %v5420_v0 = vmul.f32 1.442695, %v6451_v10  ;;  %v6453_v43 = vmul.f32 -1.702, %v9853_v45 }
0x1ce7   :  { %7518 = vpow2.f32 %v5418_v5  ;;  %v5422_v33 = vmul.f32 1.442695, %v6452_v7 }
0x1ce8   :  { %7520 = vpow2.f32 %v5420_v0  ;;  %v5424_v32 = vmul.f32 1.442695, %v6453_v43  ;;  %v5289_v54 = vpop.f32.mrb[132].mxu1 }
0x1ce9   :  { %7522 = vpow2.f32 %v5422_v33  ;;  %v9858_v59 = vadd.f32 %v5289_v54, %v9813_v8  ;;  %v5291_v23 = vpop.f32.mrb[133].mxu1 }
0x1cea   :  { %7524 = vpow2.f32 %v5424_v32  ;;  %v9861_v46 = vadd.f32 %v5291_v23, %v9819_v34  ;;  %v5293_v61 = vpop.f32.mrb[134].mxu1 }
0x1ceb   :  { %v6454_v51 = vmul.f32 -1.702, %v9858_v59  ;;  %v9865_v31 = vadd.f32 %v5293_v61, %v9813_v8  ;;  %v5295_v50 = vpop.f32.mrb[135].mxu1 }
0x1cec   :  { %v6455_v2 = vmul.f32 -1.702, %v9861_v46  ;;  %v9869_v56 = vadd.f32 %v5295_v50, %v9819_v34 }
0x1ced   :  { %v5426_v49 = vmul.f32 1.442695, %v6454_v51  ;;  %v6456_v25 = vmul.f32 -1.702, %v9865_v31 }
0x1cee   :  { %v5428_v30 = vmul.f32 1.442695, %v6455_v2  ;;  %v6457_v29 = vmul.f32 -1.702, %v9869_v56 }
0x1cef   :  { %7526 = vpow2.f32 %v5426_v49  ;;  %v5430_v57 = vmul.f32 1.442695, %v6456_v25 }
0x1cf0   :  { %7528 = vpow2.f32 %v5428_v30  ;;  %v5432_v11 = vmul.f32 1.442695, %v6457_v29  ;;  %v5299_v52 = vpop.f32.mrb[136].mxu1 }
0x1cf1   :  { %v7519_v4 = vpop.eup %7518  ;;  %7530 = vpow2.f32 %v5430_v57  ;;  %v9874_v15 = vadd.f32 %v5299_v52, %v9813_v8  ;;  %v5301_v13 = vpop.f32.mrb[137].mxu1 }
0x1cf2   :  { %v7521_v40 = vpop.eup %7520  ;;  %v5474_v53 = vadd.f32 1.0, %v7519_v4  ;;  %7532 = vpow2.f32 %v5432_v11  ;;  %v9877_v63 = vadd.f32 %v5301_v13, %v9819_v34  ;;  %v5303_v20 = vpop.f32.mrb[138].mxu1 }
0x1cf3   :  { %v7523_v47 = vpop.eup %7522  ;;  %v5475_v36 = vadd.f32 1.0, %v7521_v40  ;;  %v6458_v9 = vmul.f32 -1.702, %v9874_v15  ;;  %v9881_v26 = vadd.f32 %v5303_v20, %v9813_v8  ;;  %v5305_v16 = vpop.f32.mrb[139].mxu1 }
0x1cf4   :  { %v7525_v14 = vpop.eup %7524  ;;  %7534 = vrcp.f32 %v5474_v53  ;;  %v5476_v24 = vadd.f32 1.0, %v7523_v47  ;;  %v6459_v10 = vmul.f32 -1.702, %v9877_v63  ;;  %v9885_v5 = vadd.f32 %v5305_v16, %v9819_v34 }
0x1cf5   :  { %7536 = vrcp.f32 %v5475_v36  ;;  %v5477_v7 = vadd.f32 1.0, %v7525_v14  ;;  %v5434_v0 = vmul.f32 1.442695, %v6458_v9  ;;  %v6460_v43 = vmul.f32 -1.702, %v9881_v26 }
0x1cf6   :  { %7538 = vrcp.f32 %v5476_v24  ;;  %v5436_v33 = vmul.f32 1.442695, %v6459_v10  ;;  %v6461_v32 = vmul.f32 -1.702, %v9885_v5 }
0x1cf7   :  { %7540 = vrcp.f32 %v5477_v7  ;;  %v5438_v54 = vmul.f32 1.442695, %v6460_v43 }
0x1cf8   :  { %7542 = vpow2.f32 %v5434_v0  ;;  %v5440_v23 = vmul.f32 1.442695, %v6461_v32  ;;  %v5309_v61 = vpop.f32.mrb[140].mxu1 }
0x1cf9   :  { %v7527_v51 = vpop.eup %7526  ;;  %7544 = vpow2.f32 %v5436_v33  ;;  %v9890_v50 = vadd.f32 %v5309_v61, %v9813_v8  ;;  %v5311_v2 = vpop.f32.mrb[141].mxu1 }
0x1cfa   :  { %v7529_v49 = vpop.eup %7528  ;;  %v5478_v25 = vadd.f32 1.0, %v7527_v51  ;;  %7546 = vpow2.f32 %v5438_v54  ;;  %v9893_v30 = vadd.f32 %v5311_v2, %v9819_v34  ;;  %v5313_v29 = vpop.f32.mrb[142].mxu1 }
0x1cfb   :  { %v7531_v57 = vpop.eup %7530  ;;  %v5479_v11 = vadd.f32 1.0, %v7529_v49  ;;  %7548 = vpow2.f32 %v5440_v23  ;;  %v6462_v52 = vmul.f32 -1.702, %v9890_v50  ;;  %v9897_v4 = vadd.f32 %v5313_v29, %v9813_v8  ;;  %v5315_v13 = vpop.f32.mrb[143].mxu1 }
0x1cfc   :  { %v7533_v40 = vpop.eup %7532  ;;  %7550 = vrcp.f32 %v5478_v25  ;;  %v5480_v53 = vadd.f32 1.0, %v7531_v57  ;;  %v6463_v20 = vmul.f32 -1.702, %v9893_v30  ;;  %v9901_v47 = vadd.f32 %v5315_v13, %v9819_v34 }
0x1cfd   :  { %7552 = vrcp.f32 %v5479_v11  ;;  %v5481_v36 = vadd.f32 1.0, %v7533_v40  ;;  %v5442_v9 = vmul.f32 1.442695, %v6462_v52  ;;  %v6464_v16 = vmul.f32 -1.702, %v9897_v4 }
0x1cfe   :  { %v7535_v14 = vpop.eup %7534  ;;  %7554 = vrcp.f32 %v5480_v53  ;;  %v5444_v24 = vmul.f32 1.442695, %v6463_v20  ;;  %v6465_v10 = vmul.f32 -1.702, %v9901_v47 }
0x1cff   :  { %v7537_v7 = vpop.eup %7536  ;;  %7556 = vrcp.f32 %v5481_v36  ;;  %v5446_v0 = vmul.f32 1.442695, %v6464_v16  ;;  %v5570_v23 = vmul.f32 %v7535_v14, %v9842_v38 }
0x1d00   :  { %v7539_v43 = vpop.eup %7538  ;;  %7558 = vpow2.f32 %v5442_v9  ;;  %v5448_v33 = vmul.f32 1.442695, %v6465_v10  ;;  %v5319_v32 = vpop.f32.mrb[144].mxu1  ;;  %v5571_v61 = vmul.f32 %v7537_v7, %v9845_v42 }
0x1d01   :  { %v7541_v54 = vpop.eup %7540  ;;  %7560 = vpow2.f32 %v5444_v24  ;;  %v9908_v51 = vadd.f32 %v5319_v32, %v9813_v8  ;;  %v5321_v2 = vpop.f32.mrb[145].mxu1  ;;  %v5572_v25 = vmul.f32 %v7539_v43, %v9849_v60 }
0x1d02   :  { %v7543_v49 = vpop.eup %7542  ;;  %v5573_v29 = vmul.f32 %v7541_v54, %v9853_v45  ;;  %7562 = vpow2.f32 %v5446_v0  ;;  %v9913_v57 = vadd.f32 %v5321_v2, %v9819_v34  ;;  %v5323_v11 = vpop.f32.mrb[146].mxu1 }
0x1d03   :  { %v7545_v52 = vpop.eup %7544  ;;  %v5482_v13 = vadd.f32 1.0, %v7543_v49  ;;  %7564 = vpow2.f32 %v5448_v33  ;;  %v6466_v38 = vmul.f32 -1.702, %v9908_v51  ;;  %v9917_v42 = vadd.f32 %v5323_v11, %v9813_v8  ;;  %v5325_v40 = vpop.f32.mrb[147].mxu1 }
0x1d04   :  { %v7547_v53 = vpop.eup %7546  ;;  %v5483_v20 = vadd.f32 1.0, %v7545_v52  ;;  %v6467_v60 = vmul.f32 -1.702, %v9913_v57  ;;  %v9921_v45 = vadd.f32 %v5325_v40, %v9819_v34  ;;  %v5599_v36 = vpack.c.bf16 %v5573_v29, %v5571_v61 }
0x1d05   :  { %v7549_v9 = vpop.eup %7548  ;;  %7566 = vrcp.f32 %v5482_v13  ;;  %v5484_v16 = vadd.f32 1.0, %v7547_v53  ;;  %v5450_v14 = vmul.f32 1.442695, %v6466_v38  ;;  %v6468_v24 = vmul.f32 -1.702, %v9917_v42 }
0x1d06   :  { %v7551_v10 = vpop.eup %7550  ;;  %7568 = vrcp.f32 %v5483_v20  ;;  %v5485_v7 = vadd.f32 1.0, %v7549_v9  ;;  %v5452_v0 = vmul.f32 1.442695, %v6467_v60  ;;  %v6469_v43 = vmul.f32 -1.702, %v9921_v45  ;;  %5758 = vmatprep.mubr.bf16.mxu0 %v5599_v36 }
0x1d07   :  { %v7553_v33 = vpop.eup %7552  ;;  %7570 = vrcp.f32 %v5484_v16  ;;  %v5454_v32 = vmul.f32 1.442695, %v6468_v24  ;;  %v5598_v54 = vpack.c.bf16 %v5572_v25, %v5570_v23  ;;  %v5574_v11 = vmul.f32 %v7551_v10, %v9858_v59 }
0x1d08   :  { %v7555_v2 = vpop.eup %7554  ;;  %7572 = vrcp.f32 %v5485_v7  ;;  %v5456_v61 = vmul.f32 1.442695, %v6469_v43  ;;  %v5329_v49 = vpop.f32.mrb[148].mxu1  ;;  %v5575_v52 = vmul.f32 %v7553_v33, %v9861_v46 }
0x1d09   :  { %v7557_v29 = vpop.eup %7556  ;;  %7574 = vpow2.f32 %v5450_v14  ;;  %5759 = vmatmul.mubr.bf16.gmra.mrb[128].mxu0 %v5598_v54  ;;  %v9928_v13 = vadd.f32 %v5329_v49, %v9813_v8  ;;  %v5331_v38 = vpop.f32.mrb[149].mxu1  ;;  %v5576_v53 = vmul.f32 %v7555_v2, %v9865_v31 }
0x1d0a   :  { %v7559_v40 = vpop.eup %7558  ;;  %v5577_v23 = vmul.f32 %v7557_v29, %v9869_v56  ;;  %7576 = vpow2.f32 %v5452_v0  ;;  %v9933_v25 = vadd.f32 %v5331_v38, %v9819_v34  ;;  %v5333_v20 = vpop.f32.mrb[150].mxu1 }
0x1d0b   :  { %v7561_v60 = vpop.eup %7560  ;;  %v5486_v59 = vadd.f32 1.0, %v7559_v40  ;;  %7578 = vpow2.f32 %v5454_v32  ;;  %v6470_v46 = vmul.f32 -1.702, %v9928_v13  ;;  %v9937_v36 = vadd.f32 %v5333_v20, %v9813_v8  ;;  %v5335_v9 = vpop.f32.mrb[151].mxu1 }
0x1d0c   :  { %v7563_v16 = vpop.eup %7562  ;;  %v5487_v14 = vadd.f32 1.0, %v7561_v60  ;;  %7580 = vpow2.f32 %v5456_v61  ;;  %v6471_v31 = vmul.f32 -1.702, %v9933_v25  ;;  %v9941_v56 = vadd.f32 %v5335_v9, %v9819_v34 }
0x1d0d   :  { %v7565_v24 = vpop.eup %7564  ;;  %7582 = vrcp.f32 %v5486_v59  ;;  %v5488_v10 = vadd.f32 1.0, %v7563_v16  ;;  %v5458_v7 = vmul.f32 1.442695, %v6470_v46  ;;  %v6472_v0 = vmul.f32 -1.702, %v9937_v36 }
0x1d0e   :  { %7584 = vrcp.f32 %v5487_v14  ;;  %v5489_v43 = vadd.f32 1.0, %v7565_v24  ;;  %v5460_v33 = vmul.f32 1.442695, %v6471_v31  ;;  %v6473_v8 = vmul.f32 -1.702, %v9941_v56 }
0x1d0f   :  { %v7567_v32 = vpop.eup %7566  ;;  %7586 = vrcp.f32 %v5488_v10  ;;  %v5462_v54 = vmul.f32 1.442695, %v6472_v0  ;;  %v5601_v2 = vpack.c.bf16 %v5577_v23, %v5575_v52  ;;  %v5600_v61 = vpack.c.bf16 %v5576_v53, %v5574_v11 }
0x1d10   :  { %v7569_v49 = vpop.eup %7568  ;;  %7588 = vrcp.f32 %v5489_v43  ;;  %v5464_v34 = vmul.f32 1.442695, %v6473_v8  ;;  %v5578_v40 = vmul.f32 %v7567_v32, %v9874_v15 }
0x1d11   :  { %v7571_v29 = vpop.eup %7570  ;;  %7590 = vpow2.f32 %v5458_v7  ;;  %5766 = vmatprep.mubr.bf16.mxu0 %v5601_v2  ;;  %v5579_v59 = vmul.f32 %v7569_v49, %v9877_v63 }
0x1d12   :  { %v7573_v38 = vpop.eup %7572  ;;  %v5580_v20 = vmul.f32 %v7571_v29, %v9881_v26  ;;  %7592 = vpow2.f32 %v5460_v33  ;;  %5767 = vmatmul.mubr.bf16.gmra.mrb[132].mxu0 %v5600_v61 }
0x1d13   :  { %v7575_v60 = vpop.eup %7574  ;;  %v5581_v46 = vmul.f32 %v7573_v38, %v9885_v5  ;;  %7594 = vpow2.f32 %v5462_v54 }
0x1d14   :  { %v7577_v11 = vpop.eup %7576  ;;  %v5490_v52 = vadd.f32 1.0, %v7575_v60  ;;  %7596 = vpow2.f32 %v5464_v34  ;;  %v5602_v53 = vpack.c.bf16 %v5580_v20, %v5578_v40 }
0x1d15   :  { %v7579_v23 = vpop.eup %7578  ;;  %v5491_v9 = vadd.f32 1.0, %v7577_v11  ;;  %v5603_v16 = vpack.c.bf16 %v5581_v46, %v5579_v59 }
0x1d16   :  { %v7581_v14 = vpop.eup %7580  ;;  %7598 = vrcp.f32 %v5490_v52  ;;  %v5492_v15 = vadd.f32 1.0, %v7579_v23 }
0x1d17   :  { %v7583_v31 = vpop.eup %7582  ;;  %7600 = vrcp.f32 %v5491_v9  ;;  %v5493_v26 = vadd.f32 1.0, %v7581_v14  ;;  %5774 = vmatprep.mubr.bf16.mxu0 %v5603_v16 }
0x1d18   :  { %v7585_v24 = vpop.eup %7584  ;;  %7602 = vrcp.f32 %v5492_v15  ;;  %v5582_v10 = vmul.f32 %v7583_v31, %v9890_v50 }
0x1d19   :  { %v7587_v63 = vpop.eup %7586  ;;  %7604 = vrcp.f32 %v5493_v26  ;;  %v5583_v43 = vmul.f32 %v7585_v24, %v9893_v30 }
0x1d1a   :  { %v7589_v5 = vpop.eup %7588  ;;  %v5584_v7 = vmul.f32 %v7587_v63, %v9897_v4  ;;  %5775 = vmatmul.mubr.bf16.gmra.mrb[136].mxu0 %v5602_v53 }
0x1d1b   :  { %v7591_v0 = vpop.eup %7590  ;;  %v5585_v33 = vmul.f32 %v7589_v5, %v9901_v47 }
0x1d1c   :  { %v7593_v8 = vpop.eup %7592  ;;  %v5494_v32 = vadd.f32 1.0, %v7591_v0  ;;  %v5604_v54 = vpack.c.bf16 %v5584_v7, %v5582_v10 }
0x1d1d   :  { %v7595_v2 = vpop.eup %7594  ;;  %v5495_v61 = vadd.f32 1.0, %v7593_v8  ;;  %v5605_v49 = vpack.c.bf16 %v5585_v33, %v5583_v43 }
0x1d1e   :  { %v7597_v34 = vpop.eup %7596  ;;  %7606 = vrcp.f32 %v5494_v32  ;;  %v5496_v29 = vadd.f32 1.0, %v7595_v2 }
0x1d1f   :  { %7608 = vrcp.f32 %v5495_v61  ;;  %v5497_v38 = vadd.f32 1.0, %v7597_v34  ;;  %5782 = vmatprep.mubr.bf16.mxu0 %v5605_v49 }
0x1d20   :  { %v7599_v50 = vpop.eup %7598  ;;  %7610 = vrcp.f32 %v5496_v29 }
0x1d21   :  { %v7601_v4 = vpop.eup %7600  ;;  %7612 = vrcp.f32 %v5497_v38  ;;  %v5586_v47 = vmul.f32 %v7599_v50, %v9908_v51 }
0x1d22   :  { %v7603_v40 = vpop.eup %7602  ;;  %5783 = vmatmul.mubr.bf16.gmra.mrb[140].mxu0 %v5604_v54  ;;  %v5587_v60 = vmul.f32 %v7601_v4, %v9913_v57 }
0x1d23   :  { %v7605_v30 = vpop.eup %7604  ;;  %v5588_v20 = vmul.f32 %v7603_v40, %v9917_v42 }
0x1d24   :  { %v5589_v59 = vmul.f32 %v7605_v30, %v9921_v45  ;;  %v10312_v45 = vld [vmem:[#allocation6_spill] sm:$0xff] }
0x1d25   :  { %v5606_v46 = vpack.c.bf16 %v5588_v20, %v5586_v47  ;;  %v9963_v31 = vrot.slane %v9809_v17, %v10312_v45 }
0x1d26   :  { %v5607_v11 = vpack.c.bf16 %v5589_v59, %v5587_v60 }
0x1d28   :  { %v7607_v52 = vpop.eup %7606  ;;  %5790 = vmatprep.mubr.bf16.mxu0 %v5607_v11 }
0x1d29   :  { %v7609_v53 = vpop.eup %7608  ;;  %v5590_v16 = vmul.f32 %v7607_v52, %v9928_v13 }
0x1d2a   :  { %v7611_v23 = vpop.eup %7610  ;;  %5791 = vmatmul.mubr.bf16.gmra.mrb[144].mxu0 %v5606_v46  ;;  %v5591_v51 = vmul.f32 %v7609_v53, %v9933_v25 }
0x1d2b   :  { %v7613_v9 = vpop.eup %7612  ;;  %v5592_v14 = vmul.f32 %v7611_v23, %v9937_v36 }
0x1d2c   :  { %v5593_v42 = vmul.f32 %v7613_v9, %v9941_v56 }
0x1d2d   :  { %v5608_v15 = vpack.c.bf16 %v5592_v14, %v5590_v16 }
0x1d2e   :  { %v5609_v57 = vpack.c.bf16 %v5593_v42, %v5591_v51 }
0x1d30   :  { %5798 = vmatprep.mubr.bf16.mxu0 %v5609_v57 }
0x1d32   :  { %5799 = vmatmul.mubr.bf16.gmra.mrb[148].mxu0 %v5608_v15 }
0x1da1   :  { %v6647_v26 = vpop.f32.mrb[120].mxu0 }
0x1da2   :  { %v6648_v24 = vpop.f32.mrb[121].mxu0 }
0x1da3   :  { %v6649_v63 = vadd.f32 %v6648_v24, %v6647_v26  ;;  %v6650_v5 = vpop.f32.mrb[122].mxu0 }
0x1da4   :  { %v6651_v10 = vpop.f32.mrb[123].mxu0 }
0x1da5   :  { %v5745_v13 = vadd.f32 %v6649_v63, %v9963_v31  ;;  %v6652_v36 = vadd.f32 %v6651_v10, %v6650_v5 }
0x1da7   :  { %v5748_v25 = vadd.f32 %v6652_v36, %v9963_v31  ;;  %v9968_v56 = vadd.f32 %v5745_v13, %v9471_v19 }
0x1da9   :  { %v6653_v7 = vpop.f32.mrb[124].mxu0  ;;  %v5823_v0 = vsel %vm139_vm0, %v9968_v56, 0.0  ;;  %v9973_v17 = vadd.f32 %v5748_v25, %v9479_v22 }
0x1daa   :  { %5824 = vadd.xlane.f32.xlu1 %v5823_v0  ;;  %v6654_v43 = vpop.f32.mrb[125].mxu0 }
0x1dab   :  { %v6655_v33 = vadd.f32 %v6654_v43, %v6653_v7  ;;  %v6656_v8 = vpop.f32.mrb[126].mxu0  ;;  %v5826_v32 = vsel %vm139_vm0, %v9973_v17, 0.0 }
0x1dac   :  { %5827 = vadd.xlane.f32.xlu0 %v5826_v32  ;;  %v6657_v54 = vpop.f32.mrb[127].mxu0 }
0x1dad   :  { %v5753_v2 = vadd.f32 %v6655_v33, %v9963_v31  ;;  %v6658_v19 = vadd.f32 %v6657_v54, %v6656_v8 }
0x1daf   :  { %v5756_v61 = vadd.f32 %v6658_v19, %v9963_v31  ;;  %v9980_v49 = vadd.f32 %v5753_v2, %v9475_v58 }
0x1db1   :  { %v5829_v22 = vsel %vm139_vm0, %v9980_v49, 0.0  ;;  %v9985_v34 = vadd.f32 %v5756_v61, %v9486_v41 }
0x1db2   :  { %5830 = vadd.xlane.f32.xlu1 %v5829_v22 }
0x1db3   :  { %v5832_v29 = vsel %vm139_vm0, %v9985_v34, 0.0 }
0x1db4   :  { %5833 = vadd.xlane.f32.xlu0 %v5832_v29 }
0x1ddc   :  { %v6659_v38 = vpop.f32.mrb[128].mxu0 }
0x1ddd   :  { %v6660_v50 = vpop.f32.mrb[129].mxu0 }
0x1dde   :  { %v6661_v4 = vadd.f32 %v6660_v50, %v6659_v38  ;;  %v6662_v40 = vpop.f32.mrb[130].mxu0 }
0x1ddf   :  { %v6663_v30 = vpop.f32.mrb[131].mxu0 }
0x1de0   :  { %v5761_v47 = vadd.f32 %v6661_v4, %v9963_v31  ;;  %v6664_v58 = vadd.f32 %v6663_v30, %v6662_v40 }
0x1de2   :  { %v5764_v20 = vadd.f32 %v6664_v58, %v9963_v31  ;;  %v9992_v60 = vadd.f32 %v5761_v47, %v9495_v44 }
0x1de4   :  { %v5835_v41 = vsel %vm139_vm0, %v9992_v60, 0.0  ;;  %v9997_v59 = vadd.f32 %v5764_v20, %v9503_v1 }
0x1de5   :  { %v6665_v46 = vpop.f32.mrb[132].mxu0  ;;  %5836 = vadd.xlane.f32.xlu1 %v5835_v41 }
0x1de6   :  { %v6666_v11 = vpop.f32.mrb[133].mxu0  ;;  %v5838_v52 = vsel %vm139_vm0, %v9997_v59, 0.0 }
0x1de7   :  { %v6667_v53 = vadd.f32 %v6666_v11, %v6665_v46  ;;  %v6668_v23 = vpop.f32.mrb[134].mxu0  ;;  %5839 = vadd.xlane.f32.xlu0 %v5838_v52 }
0x1de8   :  { %v6669_v9 = vpop.f32.mrb[135].mxu0 }
0x1de9   :  { %v5769_v16 = vadd.f32 %v6667_v53, %v9963_v31  ;;  %v6670_v44 = vadd.f32 %v6669_v9, %v6668_v23 }
0x1deb   :  { %v5772_v14 = vadd.f32 %v6670_v44, %v9963_v31  ;;  %v10004_v51 = vadd.f32 %v5769_v16, %v9500_v48 }
0x1ded   :  { %v6671_v1 = vpop.f32.mrb[136].mxu0  ;;  %v5841_v42 = vsel %vm139_vm0, %v10004_v51, 0.0  ;;  %v10009_v15 = vadd.f32 %v5772_v14, %v9508_v12 }
0x1dee   :  { %5842 = vadd.xlane.f32.xlu1 %v5841_v42  ;;  %v6672_v57 = vpop.f32.mrb[137].mxu0 }
0x1def   :  { %v6673_v45 = vadd.f32 %v6672_v57, %v6671_v1  ;;  %v6674_v26 = vpop.f32.mrb[138].mxu0  ;;  %v5844_v24 = vsel %vm139_vm0, %v10009_v15, 0.0 }
0x1df0   :  { %5845 = vadd.xlane.f32.xlu0 %v5844_v24  ;;  %v6675_v63 = vpop.f32.mrb[139].mxu0 }
0x1df1   :  { %v5777_v5 = vadd.f32 %v6673_v45, %v9963_v31  ;;  %v6676_v48 = vadd.f32 %v6675_v63, %v6674_v26 }
0x1df3   :  { %v5780_v10 = vadd.f32 %v6676_v48, %v9963_v31  ;;  %v10016_v13 = vadd.f32 %v5777_v5, %v9517_v37 }
0x1df5   :  { %v6677_v36 = vpop.f32.mrb[140].mxu0  ;;  %v5847_v12 = vsel %vm139_vm0, %v10016_v13, 0.0  ;;  %v10021_v25 = vadd.f32 %v5780_v10, %v9527_v55 }
0x1df6   :  { %5848 = vadd.xlane.f32.xlu1 %v5847_v12  ;;  %v6678_v7 = vpop.f32.mrb[141].mxu0 }
0x1df7   :  { %v6679_v0 = vadd.f32 %v6678_v7, %v6677_v36  ;;  %v6680_v43 = vpop.f32.mrb[142].mxu0  ;;  %v5850_v33 = vsel %vm139_vm0, %v10021_v25, 0.0 }
0x1df8   :  { %5851 = vadd.xlane.f32.xlu0 %v5850_v33  ;;  %v6681_v8 = vpop.f32.mrb[143].mxu0 }
0x1df9   :  { %v5785_v32 = vadd.f32 %v6679_v0, %v9963_v31  ;;  %v6682_v37 = vadd.f32 %v6681_v8, %v6680_v43 }
0x1dfb   :  { %v5788_v54 = vadd.f32 %v6682_v37, %v9963_v31  ;;  %v10028_v2 = vadd.f32 %v5785_v32, %v9524_v27 }
0x1dfd   :  { %v6683_v19 = vpop.f32.mrb[144].mxu0  ;;  %v5853_v55 = vsel %vm139_vm0, %v10028_v2, 0.0  ;;  %v10033_v61 = vadd.f32 %v5788_v54, %v9532_v35 }
0x1dfe   :  { %5854 = vadd.xlane.f32.xlu1 %v5853_v55  ;;  %v6684_v22 = vpop.f32.mrb[145].mxu0 }
0x1dff   :  { %v6685_v29 = vadd.f32 %v6684_v22, %v6683_v19  ;;  %v6686_v38 = vpop.f32.mrb[146].mxu0  ;;  %v5856_v50 = vsel %vm139_vm0, %v10033_v61, 0.0 }
0x1e00   :  { %5857 = vadd.xlane.f32.xlu0 %v5856_v50  ;;  %v6687_v4 = vpop.f32.mrb[147].mxu0 }
0x1e01   :  { %v5793_v40 = vadd.f32 %v6685_v29, %v9963_v31  ;;  %v6688_v27 = vadd.f32 %v6687_v4, %v6686_v38 }
0x1e03   :  { %v5796_v30 = vadd.f32 %v6688_v27, %v9963_v31  ;;  %v10040_v47 = vadd.f32 %v5793_v40, %v9541_v28 }
0x1e05   :  { %v6689_v58 = vpop.f32.mrb[148].mxu0  ;;  %v5859_v35 = vsel %vm139_vm0, %v10040_v47, 0.0  ;;  %v10045_v20 = vadd.f32 %v5796_v30, %v9551_v3 }
0x1e06   :  { %5860 = vadd.xlane.f32.xlu1 %v5859_v35  ;;  %v6690_v41 = vpop.f32.mrb[149].mxu0 }
0x1e07   :  { %v6691_v46 = vadd.f32 %v6690_v41, %v6689_v58  ;;  %v6692_v11 = vpop.f32.mrb[150].mxu0  ;;  %v5862_v52 = vsel %vm139_vm0, %v10045_v20, 0.0 }
0x1e08   :  { %5863 = vadd.xlane.f32.xlu0 %v5862_v52  ;;  %v6693_v53 = vpop.f32.mrb[151].mxu0 }
0x1e09   :  { %v5801_v23 = vadd.f32 %v6691_v46, %v9963_v31  ;;  %v6694_v28 = vadd.f32 %v6693_v53, %v6692_v11 }
0x1e0b   :  { %v5804_v9 = vadd.f32 %v6694_v28, %v9963_v31  ;;  %v10052_v16 = vadd.f32 %v5801_v23, %v9548_v6 }
0x1e0d   :  { %v5865_v3 = vsel %vm139_vm0, %v10052_v16, 0.0  ;;  %v10057_v44 = vadd.f32 %v5804_v9, %v9556_v18 }
0x1e0e   :  { %5866 = vadd.xlane.f32.xlu1 %v5865_v3 }
0x1e0f   :  { %v5868_v14 = vsel %vm139_vm0, %v10057_v44, 0.0 }
0x1e10   :  { %5869 = vadd.xlane.f32.xlu0 %v5868_v14 }
0x1e37   :  { %v5825_v1 = vpop.xlane.xlu1 %5824 }
0x1e38   :  { %v5871_v42 = vmul.f32 0.015625, %v5825_v1 }
0x1e39   :  { %v5828_v57 = vpop.xlane.xlu0 %5827 }
0x1e3a   :  { %v10062_v45 = vsub.f32 %v9968_v56, %v5871_v42  ;;  %v5872_v31 = vmul.f32 0.015625, %v5828_v57 }
0x1e3c   :  { %v10065_v6 = vsub.f32 %v9973_v17, %v5872_v31  ;;  %v5903_v26 = vmul.f32 %v10062_v45, %v10062_v45 }
0x1e3e   :  { %v5919_v18 = vsel %vm139_vm0, %v5903_v26, 0.0  ;;  %v5904_v24 = vmul.f32 %v10065_v6, %v10065_v6 }
0x1e3f   :  { %v5831_v63 = vpop.xlane.xlu1 %5830  ;;  %5920 = vadd.xlane.f32.xlu1 %v5919_v18 }
0x1e40   :  { %v5873_v5 = vmul.f32 0.015625, %v5831_v63  ;;  %v5922_v48 = vsel %vm139_vm0, %v5904_v24, 0.0 }
0x1e41   :  { %5923 = vadd.xlane.f32.xlu0 %v5922_v48  ;;  %v5834_v56 = vpop.xlane.xlu0 %5833 }
0x1e42   :  { %v10074_v10 = vsub.f32 %v9980_v49, %v5873_v5  ;;  %v5874_v17 = vmul.f32 0.015625, %v5834_v56 }
0x1e44   :  { %v10077_v36 = vsub.f32 %v9985_v34, %v5874_v17  ;;  %v5905_v12 = vmul.f32 %v10074_v10, %v10074_v10 }
0x1e46   :  { %v5925_v7 = vsel %vm139_vm0, %v5905_v12, 0.0  ;;  %v5906_v0 = vmul.f32 %v10077_v36, %v10077_v36 }
0x1e47   :  { %5926 = vadd.xlane.f32.xlu1 %v5925_v7 }
0x1e48   :  { %v5928_v43 = vsel %vm139_vm0, %v5906_v0, 0.0 }
0x1e49   :  { %5929 = vadd.xlane.f32.xlu0 %v5928_v43 }
0x1e72   :  { %v5837_v33 = vpop.xlane.xlu1 %5836 }
0x1e73   :  { %v5875_v8 = vmul.f32 0.015625, %v5837_v33 }
0x1e74   :  { %v5840_v49 = vpop.xlane.xlu0 %5839 }
0x1e75   :  { %v10086_v32 = vsub.f32 %v9992_v60, %v5875_v8  ;;  %v5876_v34 = vmul.f32 0.015625, %v5840_v49 }
0x1e77   :  { %v10089_v37 = vsub.f32 %v9997_v59, %v5876_v34  ;;  %v5907_v54 = vmul.f32 %v10086_v32, %v10086_v32 }
0x1e79   :  { %v5931_v19 = vsel %vm139_vm0, %v5907_v54, 0.0  ;;  %v5908_v55 = vmul.f32 %v10089_v37, %v10089_v37  ;;  %v10313_v54 = vld [vmem:[#allocation10_spill] sm:$0xff] }
0x1e7a   :  { %5932 = vadd.xlane.f32.xlu1 %v5931_v19  ;;  %v6196_v19 = vmul.f32 %v10313_v54, %v10313_v54 }
0x1e7b   :  { %v5843_v22 = vpop.xlane.xlu1 %5842  ;;  %v5934_v29 = vsel %vm139_vm0, %v5908_v55, 0.0 }
0x1e7c   :  { %v5877_v38 = vmul.f32 0.015625, %v5843_v22  ;;  %5935 = vadd.xlane.f32.xlu0 %v5934_v29 }
0x1e7d   :  { %v5846_v60 = vpop.xlane.xlu0 %5845 }
0x1e7e   :  { %v10098_v50 = vsub.f32 %v10004_v51, %v5877_v38  ;;  %v5878_v59 = vmul.f32 0.015625, %v5846_v60 }
0x1e80   :  { %v10101_v4 = vsub.f32 %v10009_v15, %v5878_v59  ;;  %v5909_v40 = vmul.f32 %v10098_v50, %v10098_v50 }
0x1e82   :  { %v5937_v27 = vsel %vm139_vm0, %v5909_v40, 0.0  ;;  %v5910_v30 = vmul.f32 %v10101_v4, %v10101_v4 }
0x1e83   :  { %v5849_v58 = vpop.xlane.xlu1 %5848  ;;  %5938 = vadd.xlane.f32.xlu1 %v5937_v27 }
0x1e84   :  { %v5879_v35 = vmul.f32 0.015625, %v5849_v58  ;;  %v5940_v41 = vsel %vm139_vm0, %v5910_v30, 0.0 }
0x1e85   :  { %5941 = vadd.xlane.f32.xlu0 %v5940_v41  ;;  %v5852_v51 = vpop.xlane.xlu0 %5851 }
0x1e86   :  { %v10110_v46 = vsub.f32 %v10016_v13, %v5879_v35  ;;  %v5880_v15 = vmul.f32 0.015625, %v5852_v51  ;;  %v7660_v51 = vld [vmem:[%s10270_s2 + $0x10] sm:$0xff] }
0x1e88   :  { %v10113_v11 = vsub.f32 %v10021_v25, %v5880_v15  ;;  %v5911_v52 = vmul.f32 %v10110_v46, %v10110_v46  ;;  %v10164_v15 = vrot.slane %v7660_v51, %v10309_v39 }
0x1e8a   :  { %v5943_v53 = vsel %vm139_vm0, %v5911_v52, 0.0  ;;  %v5912_v23 = vmul.f32 %v10113_v11, %v10113_v11 }
0x1e8b   :  { %v5855_v28 = vpop.xlane.xlu1 %5854  ;;  %5944 = vadd.xlane.f32.xlu1 %v5943_v53 }
0x1e8c   :  { %v5881_v9 = vmul.f32 0.015625, %v5855_v28  ;;  %v5946_v3 = vsel %vm139_vm0, %v5912_v23, 0.0  ;;  %v10168_v28 = vrot.slane %v7660_v51, %v10310_v62 }
0x1e8d   :  { %5947 = vadd.xlane.f32.xlu0 %v5946_v3  ;;  %v5858_v13 = vpop.xlane.xlu0 %5857 }
0x1e8e   :  { %v10122_v14 = vsub.f32 %v10028_v2, %v5881_v9  ;;  %v5882_v25 = vmul.f32 0.015625, %v5858_v13 }
0x1e90   :  { %v10125_v1 = vsub.f32 %v10033_v61, %v5882_v25  ;;  %v5913_v42 = vmul.f32 %v10122_v14, %v10122_v14 }
0x1e92   :  { %v5949_v57 = vsel %vm139_vm0, %v5913_v42, 0.0  ;;  %v5914_v31 = vmul.f32 %v10125_v1, %v10125_v1 }
0x1e93   :  { %v5861_v26 = vpop.xlane.xlu1 %5860  ;;  %5950 = vadd.xlane.f32.xlu1 %v5949_v57 }
0x1e94   :  { %v5883_v18 = vmul.f32 0.015625, %v5861_v26  ;;  %v5952_v24 = vsel %vm139_vm0, %v5914_v31, 0.0 }
0x1e95   :  { %5953 = vadd.xlane.f32.xlu0 %v5952_v24  ;;  %v5864_v2 = vpop.xlane.xlu0 %5863 }
0x1e96   :  { %v10134_v63 = vsub.f32 %v10040_v47, %v5883_v18  ;;  %v5884_v61 = vmul.f32 0.015625, %v5864_v2 }
0x1e98   :  { %v10137_v5 = vsub.f32 %v10045_v20, %v5884_v61  ;;  %v5915_v48 = vmul.f32 %v10134_v63, %v10134_v63 }
0x1e9a   :  { %v5955_v56 = vsel %vm139_vm0, %v5915_v48, 0.0  ;;  %v5916_v17 = vmul.f32 %v10137_v5, %v10137_v5 }
0x1e9b   :  { %5956 = vadd.xlane.f32.xlu1 %v5955_v56  ;;  %v5867_v12 = vpop.xlane.xlu1 %5866 }
0x1e9c   :  { %v5885_v7 = vmul.f32 0.015625, %v5867_v12  ;;  %v5958_v0 = vsel %vm139_vm0, %v5916_v17, 0.0 }
0x1e9d   :  { %5959 = vadd.xlane.f32.xlu0 %v5958_v0  ;;  %v5870_v47 = vpop.xlane.xlu0 %5869 }
0x1e9e   :  { %v10146_v43 = vsub.f32 %v10052_v16, %v5885_v7  ;;  %v5886_v20 = vmul.f32 0.015625, %v5870_v47  ;;  %v6197_v16 = vsel %vm1276_vm13, %v6196_v19, 0.0 }
0x1ea0   :  { %v10149_v33 = vsub.f32 %v10057_v44, %v5886_v20  ;;  %v5917_v8 = vmul.f32 %v10146_v43, %v10146_v43 }
0x1ea2   :  { %v5961_v49 = vsel %vm139_vm0, %v5917_v8, 0.0  ;;  %v5918_v34 = vmul.f32 %v10149_v33, %v10149_v33 }
0x1ea3   :  { %5962 = vadd.xlane.f32.xlu1 %v5961_v49 }
0x1ea4   :  { %v5964_v55 = vsel %vm139_vm0, %v5918_v34, 0.0 }
0x1ea5   :  { %5965 = vadd.xlane.f32.xlu0 %v5964_v55 }
0x1ea9   :  { %6198 = vadd.xlane.f32.xlu0 %v6197_v16 }
0x1ecc   :  { %v5921_v44 = vpop.xlane.xlu1 %5920 }
0x1ecd   :  { %v5967_v22 = vmul.f32 0.015625, %v5921_v44 }
0x1ece   :  { %v5924_v29 = vpop.xlane.xlu0 %5923 }
0x1ecf   :  { %v5983_v38 = vadd.f32 1e-05, %v5967_v22  ;;  %v5968_v60 = vmul.f32 0.015625, %v5924_v29 }
0x1ed1   :  { %7614 = vrsqrt.f32 %v5983_v38  ;;  %v5984_v59 = vadd.f32 1e-05, %v5968_v60 }
0x1ed3   :  { %7616 = vrsqrt.f32 %v5984_v59 }
0x1ed4   :  { %v5927_v40 = vpop.xlane.xlu1 %5926 }
0x1ed5   :  { %v5969_v27 = vmul.f32 0.015625, %v5927_v40 }
0x1ed6   :  { %v5930_v30 = vpop.xlane.xlu0 %5929 }
0x1ed7   :  { %v5985_v58 = vadd.f32 1e-05, %v5969_v27  ;;  %v5970_v35 = vmul.f32 0.015625, %v5930_v30 }
0x1ed9   :  { %7618 = vrsqrt.f32 %v5985_v58  ;;  %v5986_v41 = vadd.f32 1e-05, %v5970_v35 }
0x1edb   :  { %v7615_v52 = vpop.eup %7614  ;;  %7620 = vrsqrt.f32 %v5986_v41 }
0x1edc   :  { %v6015_v53 = vmul.f32 %v7615_v52, %v10062_v45 }
0x1edd   :  { %v7617_v23 = vpop.eup %7616 }
0x1ede   :  { %v6016_v9 = vmul.f32 %v7617_v23, %v10065_v6  ;;  %v6035_v3 = vmul.f32 %v10164_v15, %v6015_v53 }
0x1ee0   :  { %v6036_v13 = vmul.f32 %v10164_v15, %v6016_v9  ;;  %v6055_v25 = vadd.f32 %v10168_v28, %v6035_v3 }
0x1ee2   :  { %v6056_v42 = vadd.f32 %v10168_v28, %v6036_v13 }
0x1ee3   :  { %v7619_v39 = vpop.eup %7618 }
0x1ee4   :  { %v6017_v57 = vmul.f32 %v7619_v39, %v10074_v10  ;;  %v6072_v31 = vpack.c.bf16 %v6056_v42, %v6055_v25 }
0x1ee5   :  { %v7621_v26 = vpop.eup %7620 }
0x1ee6   :  { %v6018_v45 = vmul.f32 %v7621_v26, %v10077_v36  ;;  %7018 = vmatpush3.bf16.msra.mxu1 %v6072_v31  ;;  %v6037_v62 = vmul.f32 %v10164_v15, %v6017_v57 }
0x1ee7   :  { %7019 = vmatprep.subr.bf16.mxu1 %v10302_v21 }
0x1ee8   :  { %v6038_v6 = vmul.f32 %v10164_v15, %v6018_v45  ;;  %v6057_v18 = vadd.f32 %v10168_v28, %v6037_v62 }
0x1eea   :  { %v6058_v24 = vadd.f32 %v10168_v28, %v6038_v6 }
0x1eec   :  { %v6073_v2 = vpack.c.bf16 %v6058_v24, %v6057_v18 }
0x1eee   :  { %7020 = vmatpush3.bf16.msra.mxu1 %v6073_v2 }
0x1eef   :  { %7021 = vmatprep.subr.bf16.mxu1 %v10302_v21 }
0x1f07   :  { %v5933_v10 = vpop.xlane.xlu1 %5932 }
0x1f08   :  { %v5971_v61 = vmul.f32 0.015625, %v5933_v10 }
0x1f09   :  { %v5936_v48 = vpop.xlane.xlu0 %5935 }
0x1f0a   :  { %v5987_v56 = vadd.f32 1e-05, %v5971_v61  ;;  %v5972_v36 = vmul.f32 0.015625, %v5936_v48 }
0x1f0c   :  { %7622 = vrsqrt.f32 %v5987_v56  ;;  %v5988_v17 = vadd.f32 1e-05, %v5972_v36 }
0x1f0e   :  { %7624 = vrsqrt.f32 %v5988_v17 }
0x1f10   :  { %v5939_v12 = vpop.xlane.xlu1 %5938 }
0x1f11   :  { %v5973_v7 = vmul.f32 0.015625, %v5939_v12 }
0x1f12   :  { %v5942_v0 = vpop.xlane.xlu0 %5941 }
0x1f13   :  { %v5989_v47 = vadd.f32 1e-05, %v5973_v7  ;;  %v5974_v20 = vmul.f32 0.015625, %v5942_v0 }
0x1f15   :  { %7626 = vrsqrt.f32 %v5989_v47  ;;  %v5990_v8 = vadd.f32 1e-05, %v5974_v20 }
0x1f16   :  { %v7623_v49 = vpop.eup %7622 }
0x1f17   :  { %v6019_v34 = vmul.f32 %v7623_v49, %v10086_v32  ;;  %7628 = vrsqrt.f32 %v5990_v8 }
0x1f18   :  { %v7625_v19 = vpop.eup %7624  ;;  %v5945_v55 = vpop.xlane.xlu1 %5944 }
0x1f19   :  { %v6020_v16 = vmul.f32 %v7625_v19, %v10089_v37  ;;  %v5975_v44 = vmul.f32 0.015625, %v5945_v55  ;;  %v6039_v22 = vmul.f32 %v10164_v15, %v6019_v34 }
0x1f1a   :  { %v5948_v29 = vpop.xlane.xlu0 %5947 }
0x1f1b   :  { %v5991_v38 = vadd.f32 1e-05, %v5975_v44  ;;  %v5976_v60 = vmul.f32 0.015625, %v5948_v29  ;;  %v6040_v59 = vmul.f32 %v10164_v15, %v6020_v16  ;;  %v6059_v27 = vadd.f32 %v10168_v28, %v6039_v22 }
0x1f1d   :  { %7630 = vrsqrt.f32 %v5991_v38  ;;  %v5992_v40 = vadd.f32 1e-05, %v5976_v60  ;;  %v6060_v30 = vadd.f32 %v10168_v28, %v6040_v59 }
0x1f1f   :  { %v7627_v32 = vpop.eup %7626  ;;  %7632 = vrsqrt.f32 %v5992_v40  ;;  %v6074_v58 = vpack.c.bf16 %v6060_v30, %v6059_v27 }
0x1f20   :  { %v6021_v35 = vmul.f32 %v7627_v32, %v10098_v50  ;;  %v5951_v37 = vpop.xlane.xlu1 %5950 }
0x1f21   :  { %v7629_v41 = vpop.eup %7628  ;;  %v5977_v51 = vmul.f32 0.015625, %v5951_v37  ;;  %7022 = vmatpush3.bf16.msra.mxu1 %v6074_v58 }
0x1f22   :  { %v6022_v52 = vmul.f32 %v7629_v41, %v10101_v4  ;;  %v5954_v53 = vpop.xlane.xlu0 %5953  ;;  %7023 = vmatprep.subr.bf16.mxu1 %v10302_v21  ;;  %v6041_v23 = vmul.f32 %v10164_v15, %v6021_v35 }
0x1f23   :  { %v5993_v9 = vadd.f32 1e-05, %v5977_v51  ;;  %v5978_v3 = vmul.f32 0.015625, %v5954_v53 }
0x1f24   :  { %v6042_v13 = vmul.f32 %v10164_v15, %v6022_v52  ;;  %v6061_v42 = vadd.f32 %v10168_v28, %v6041_v23  ;;  %v7227_v52 = vld [vmem:[%s10269_s1 + $0x4b0] ss:$8 sps:$4 sm:$0xff]  }
0x1f25   :  { %7634 = vrsqrt.f32 %v5993_v9  ;;  %v5994_v25 = vadd.f32 1e-05, %v5978_v3 }
0x1f26   :  { %v6062_v50 = vadd.f32 %v10168_v28, %v6042_v13 }
0x1f27   :  { %v7631_v39 = vpop.eup %7630  ;;  %7636 = vrsqrt.f32 %v5994_v25 }
0x1f28   :  { %v6023_v57 = vmul.f32 %v7631_v39, %v10110_v46  ;;  %v5957_v4 = vpop.xlane.xlu1 %5956  ;;  %v6075_v31 = vpack.c.bf16 %v6062_v50, %v6061_v42 }
0x1f29   :  { %v7633_v26 = vpop.eup %7632  ;;  %v5979_v45 = vmul.f32 0.015625, %v5957_v4 }
0x1f2a   :  { %v6024_v62 = vmul.f32 %v7633_v26, %v10113_v11  ;;  %7024 = vmatpush3.bf16.msra.mxu1 %v6075_v31  ;;  %v5960_v6 = vpop.xlane.xlu0 %5959  ;;  %v6043_v18 = vmul.f32 %v10164_v15, %v6023_v57  ;;  %v6211_v31 = vstv %s10273_s5 }
0x1f2b   :  { %v5995_v24 = vadd.f32 1e-05, %v5979_v45  ;;  %v5980_v2 = vmul.f32 0.015625, %v5960_v6  ;;  %7025 = vmatprep.subr.bf16.mxu1 %v10302_v21  ;;  %v6212_v26 = vmul.f32 1.442695, %v6211_v31 }
0x1f2c   :  { %v6044_v10 = vmul.f32 %v10164_v15, %v6024_v62  ;;  %v6063_v46 = vadd.f32 %v10168_v28, %v6043_v18 }
0x1f2d   :  { %7638 = vrsqrt.f32 %v5995_v24  ;;  %v5996_v61 = vadd.f32 1e-05, %v5980_v2 }
0x1f2e   :  { %v6064_v48 = vadd.f32 %v10168_v28, %v6044_v10 }
0x1f2f   :  { %v7635_v56 = vpop.eup %7634  ;;  %7640 = vrsqrt.f32 %v5996_v61 }
0x1f30   :  { %v6025_v11 = vmul.f32 %v7635_v56, %v10122_v14  ;;  %v5963_v36 = vpop.xlane.xlu1 %5962  ;;  %v6076_v17 = vpack.c.bf16 %v6064_v48, %v6063_v46 }
0x1f31   :  { %v7637_v12 = vpop.eup %7636  ;;  %v5981_v7 = vmul.f32 0.015625, %v5963_v36 }
0x1f32   :  { %v6026_v0 = vmul.f32 %v7637_v12, %v10125_v1  ;;  %7026 = vmatpush3.bf16.msra.mxu1 %v6076_v17  ;;  %v5966_v47 = vpop.xlane.xlu0 %5965  ;;  %v6045_v20 = vmul.f32 %v10164_v15, %v6025_v11 }
0x1f33   :  { %v5997_v8 = vadd.f32 1e-05, %v5981_v7  ;;  %v5982_v49 = vmul.f32 0.015625, %v5966_v47  ;;  %7027 = vmatprep.subr.bf16.mxu1 %v10302_v21 }
0x1f34   :  { %v6046_v34 = vmul.f32 %v10164_v15, %v6026_v0  ;;  %v6065_v14 = vadd.f32 %v10168_v28, %v6045_v20 }
0x1f35   :  { %7642 = vrsqrt.f32 %v5997_v8  ;;  %v5998_v19 = vadd.f32 1e-05, %v5982_v49 }
0x1f36   :  { %v6066_v55 = vadd.f32 %v10168_v28, %v6046_v34  ;;  %v6199_v62 = vpop.xlane.xlu0 %6198 }
0x1f37   :  { %v7639_v16 = vpop.eup %7638  ;;  %7644 = vrsqrt.f32 %v5998_v19 }
0x1f38   :  { %v6027_v1 = vmul.f32 %v7639_v16, %v10134_v63  ;;  %v6077_v44 = vpack.c.bf16 %v6066_v55, %v6065_v14  ;;  %7646 = vpow2.f32 %v6212_v26 }
0x1f39   :  { %v7641_v22 = vpop.eup %7640 }
0x1f3a   :  { %v6028_v29 = vmul.f32 %v7641_v22, %v10137_v5  ;;  %7028 = vmatpush3.bf16.msra.mxu1 %v6077_v44  ;;  %v6047_v38 = vmul.f32 %v10164_v15, %v6027_v1 }
0x1f3b   :  { %7029 = vmatprep.subr.bf16.mxu1 %v10302_v21 }
0x1f3c   :  { %v6048_v60 = vmul.f32 %v10164_v15, %v6028_v29  ;;  %v6067_v59 = vadd.f32 %v10168_v28, %v6047_v38 }
0x1f3e   :  { %v6068_v40 = vadd.f32 %v10168_v28, %v6048_v60 }
0x1f3f   :  { %v7643_v27 = vpop.eup %7642 }
0x1f40   :  { %v6029_v30 = vmul.f32 %v7643_v27, %v10146_v43  ;;  %v6078_v32 = vpack.c.bf16 %v6068_v40, %v6067_v59  ;;  %v6071_v43 = vld [vmem:[%s10269_s1 + $0x500] sm:$0xf] }
0x1f41   :  { %v7645_v63 = vpop.eup %7644 }
0x1f42   :  { %v6030_v58 = vmul.f32 %v7645_v63, %v10149_v33  ;;  %7030 = vmatpush3.bf16.msra.mxu1 %v6078_v32  ;;  %v6049_v5 = vmul.f32 %v10164_v15, %v6029_v30  ;;  %v7224_v33 = vld [vmem:[%s10269_s1 + $0x480] ss:$8 sps:$4 sm:$0xff]   ;;  %v7647_v45 = vpop.eup %7646 }
0x1f43   :  { %7031 = vmatprep.subr.bf16.mxu1 %v10302_v21  ;;  %7055 = vpush %v7647_v45 }
0x1f44   :  { %v6050_v35 = vmul.f32 %v10164_v15, %v6030_v58  ;;  %v6069_v37 = vadd.f32 %v10168_v28, %v6049_v5  ;;  %v7225_v15 = vld [vmem:[%s10269_s1 + $0x490] ss:$8 sps:$4 sm:$0xff]  }
0x1f46   :  { %v6070_v41 = vadd.f32 %v10168_v28, %v6050_v35  ;;  %v7226_v28 = vld [vmem:[%s10269_s1 + $0x4a0] ss:$8 sps:$4 sm:$0xff]  }
0x1f48   :  { %v6079_v51 = vpack.c.bf16 %v6070_v41, %v6069_v37 }
0x1f4a   :  { %7032 = vmatpush3.bf16.msra.mxu1 %v6079_v51 }
0x1f4b   :  { %7037 = vmatprep.subr.bf16.mxu1 %v10302_v21 }
0x1f4d   :  { %7034 = vmatmul.mubr.bf16.vlgmr.msra.gmra.mrb[152].mxu1 %v6071_v43 }
0x1f4e   :  { %7038 = vmatpush3.bf16.msra.mxu1 %v7224_v33  ;;  %7045 = vmatprep.mubr.msk.bf16.mxu1 %vm7687_vm1, %v10302_v21 }
0x1f4f   :  { %7039 = vmatprep.subr.bf16.mxu1 %v10302_v21 }
0x1f52   :  { %7040 = vmatpush3.bf16.msra.mxu1 %v7225_v15 }
0x1f53   :  { %7041 = vmatprep.subr.bf16.mxu1 %v10302_v21 }
0x1f56   :  { %7042 = vmatpush3.bf16.msra.mxu1 %v7226_v28 }
0x1f57   :  { %7043 = vmatprep.subr.bf16.mxu1 %v10302_v21 }
0x1f5a   :  { %7044 = vmatpush3.bf16.msra.mxu1 %v7227_v52 }
0x1f5b   :  { %7049 = vmatprep.subr.bf16.mxu1 %v10302_v21 }
0x1f74   :  { %s7056_s5 = spop %7055 }
0x1f75   :  { %v6263_v11 = vstv %s7056_s5 }
0x2020   :  { %v6114_v53 = vpop.f32.mrb[152].mxu1 }
0x2021   :  { %v6120_v23 = vpack.c.bf16 %v6114_v53, %v6114_v53  ;;  %v7035_v9 = vpop.f32.mrb[153].mxu1 }
0x2022   :  { %v6117_v3 = vpop.f32.mrb[154].mxu1 }
0x2023   :  { %7046 = vmatmul.mubr.msk.bf16.vlgmr.msra.gmra.mrb[156].mxu1 %vm139_vm0, %v6120_v23  ;;  %v7036_v13 = vpop.f32.mrb[155].mxu1 }
0x2024   :  { %7051 = vmatprep.mubr.msk.bf16.mxu1 %vm7687_vm1, %v10302_v21  ;;  %v6200_v21 = vadd.f32 1e-12, %v6199_v62  ;;  %vm6265_vm1 = vcmask 58368  }
0x20f6   :  { %v6190_v25 = vpop.f32.mrb[156].mxu1 }
0x20f7   :  { %v6203_v42 = vmul.f32 %v6190_v25, %v6190_v25  ;;  %v7047_v50 = vpop.f32.mrb[157].mxu1 }
0x20f8   :  { %v6193_v39 = vpop.f32.mrb[158].mxu1 }
0x20f9   :  { %v6204_v57 = vsel %vm139_vm0, %v6203_v42, 0.0  ;;  %v7048_v4 = vpop.f32.mrb[159].mxu1 }
0x20fa   :  { %6205 = vadd.xlane.f32.xlu1 %v6204_v57 }
0x2187   :  { %v6206_v6 = vpop.xlane.xlu1 %6205 }
0x2188   :  { %v6207_v18 = vadd.f32 1e-12, %v6206_v6 }
0x218a   :  { %7648 = vrsqrt.f32 %v6207_v18 }
0x218b   :  { %7650 = vrsqrt.f32 %v6200_v21 }
0x2194   :  { %v7649_v24 = vpop.eup %7648 }
0x2195   :  { %v6209_v2 = vmul.f32 %v7649_v24, %v6190_v25  ;;  %v7651_v61 = vpop.eup %7650 }
0x2196   :  { %v6202_v48 = vmul.f32 %v7651_v61, %v10313_v54 }
0x2197   :  { %v6216_v10 = vpack.c.bf16 %v6209_v2, %v6209_v2 }
0x2198   :  { %v6215_v56 = vpack.c.bf16 %v6202_v48, %v6202_v48 }
0x2199   :  { %v6221_v46 = vsel %vm139_vm0, %v6216_v10, 0 }
0x219a   :  { %7050 = vmatpush3.bf16.xpose.msra.mxu1 %v6221_v46 }
0x21a1   :  { %7052 = vmatmul.mubr.msk.bf16.vlgmr.msra.gmra.mrb[160].mxu1 %vm139_vm0, %v6215_v56 }
0x2274   :  { %v6257_v36 = vpop.f32.mrb[160].mxu1 }
0x2275   :  { %v6264_v17 = vmul.f32 %v6263_v11, %v6257_v36  ;;  %v7053_v12 = vpop.f32.mrb[161].mxu1 }
0x2276   :  { %v6260_v7 = vpop.f32.mrb[162].mxu1 }
0x2277   :  { %v7054_v0 = vpop.f32.mrb[163].mxu1  ;;  %6266 = vst.msk [vmem:[#allocation3] sm:$0x3] %vm6265_vm1, %v6264_v17 }
0x2278   :  { %7672 = shalt.err (!%p7669_p4)
}
0x2279   :  { %s7673_s12 = scalar_lea.hbm %s10274_s6, 32 }
0x227a   :  { %p7674_p5 = scmp.ne.s32.totalorder %s10274_s6, %s7673_s12  ;;  %p7677_p6 = scmp.lt.u32.totalorder %s7673_s12, %s10274_s6 }
0x227c   :  { %p7679_p7 = pnand %p7677_p6, %p7674_p5 }
0x227e   :  { %7682 = shalt.err (!%p7679_p7)
}
0x227f   :  { %6276 = dma.vmem_to_hbm [thread:$0]  %s6274_s8, 32, %s10274_s6, [#allocation4]  }
0x2280   :  { %7683 = dma.done.wait [#allocation4], 32  }
0x2281   :  { %7684 = vsyncadd [#allocation4], 4294967264 }
0x2282   :  { %6280 = vsyncpa [#allocation4], 1 }

</bundles_post_ra>
